<compile_context>
chip_gen: v5e
topology: v5e:2x2
jax: 0.10.0
libtpu: 0.0.40
codegen_flags: <defaults>
</compile_context>

<pallas_src>
import functools

import jax
import jax.numpy as jnp
from jax import lax
from jax.experimental import pallas as pl
from jax.experimental.pallas import tpu as pltpu

F32 = jnp.float32
BF16 = jnp.bfloat16
BN_EPS = 1e-5
C_HID = 320            # hidden width fixed by the module definition


def _gelu(x):
    # TODO(synk): PyTorch F.gelu default is the exact erf form; the tanh approximation
    # (max abs diff ~1e-3) is used because erf has no guaranteed Mosaic lowering.
    return jax.nn.gelu(x, approximate=True)


def feature_encoder_kernel(x_ref, w1_ref, b1_ref, g1_ref, be1_ref,
                           w2_ref, b2_ref, g2_ref, be2_ref,
                           w3_ref, b3_ref,
                           o_ref, pad_ref, *, lev, T, d1, d2, dmax):
    BT = x_ref.shape[0]

    # Zero ONLY the 2*dmax halo rows (Conv1d 'same' zero padding).  Interior rows are
    # always published before they are read, so no full-scratch zero fill is needed.
    pad_ref[0:dmax, :] = jnp.zeros((dmax, C_HID), F32)
    pad_ref[dmax + BT:dmax + BT + dmax, :] = jnp.zeros((dmax, C_HID), F32)

    # Per-row time index within its batch element, built in-kernel; boundary masks are
    # hoisted and de-duplicated here (JAX does not CSE broadcast_in_dim).
    lt = lax.rem(lax.broadcasted_iota(jnp.int32, (BT, 1), 0), jnp.int32(T))
    masks = {d: (lt >= d, lt < T - d) for d in sorted({d1, d2, 1}) if d < T}

    def publish(h):
        # Stage activation written directly into the haloed scratch rows [dmax, dmax+BT).
        pad_ref[dmax:dmax + BT, :h.shape[1]] = h

    def dconv(h, d, w_ref, b_ref):
        """Kernel-size-3, dilation-d, 'same' Conv1d as three bf16 MXU matmuls (f32 acc).

        `h` is the live f32 activation, already published into pad_ref; the +/-d taps are
        read back from the zero-haloed scratch and rows whose tap would cross a batch
        boundary are masked to zero (== Conv1d zero padding).
        """
        C = h.shape[1]
        acc = jnp.dot(h.astype(BF16), w_ref[1], preferred_element_type=F32)
        if d < T:  # if d >= T both outer taps are fully zero-padded -> skip statically
            lo, hi = masks[d]
            hm = jnp.where(lo, pad_ref[dmax - d:dmax - d + BT, :C], 0.0)   # h[t - d]
            hp = jnp.where(hi, pad_ref[dmax + d:dmax + d + BT, :C], 0.0)   # h[t + d]
            acc = acc + jnp.dot(hm.astype(BF16), w_ref[0], preferred_element_type=F32)
            acc = acc + jnp.dot(hp.astype(BF16), w_ref[2], preferred_element_type=F32)
        return acc + b_ref[...]

    def bn_gelu(y, g_ref, be_ref):
        # Training-mode BatchNorm1d: per-channel stats over all B*T rows, biased variance.
        mean = jnp.mean(y, axis=0, keepdims=True)
        r = y - mean
        var = jnp.mean(r * r, axis=0, keepdims=True)
        h = _gelu(r * lax.rsqrt(var + BN_EPS) * g_ref[...] + be_ref[...])
        publish(h)
        return h

    # conv1 (+ residual when lev != 1) -> bn1 -> gelu
    x = x_ref[...].astype(F32)                  # bf16 input, upcast once
    publish(x)
    h = dconv(x, d1, w1_ref, b1_ref)
    if lev != 1:
        h = h + x                               # Cin == 320 whenever lev != 1
    h = bn_gelu(h, g1_ref, be1_ref)

    # conv2 + residual -> bn2 -> gelu
    h = bn_gelu(dconv(h, d2, w2_ref, b2_ref) + h, g2_ref, be2_ref)

    # conv3 (640 out channels) -> GLU over channels (value = first half, gate = second)
    y3 = dconv(h, 1, w3_ref, b3_ref)            # (BT, 640) f32
    o_ref[...] = y3[:, :C_HID] / (1.0 + jnp.exp(-y3[:, C_HID:]))


def _vmem_limit_bytes():
    """~3/4 of physical VMEM (96 MiB on 128 MiB parts, 48 MiB on v7x's 64 MiB)."""
    try:
        cap = int(pltpu.get_tpu_info().vmem_capacity_bytes)
    except Exception:
        cap = 64 * 1024 * 1024
    return max(32 * 1024 * 1024, min(cap * 3 // 4, 112 * 1024 * 1024))


def init_params(key, k):
    """Parameters in the kernel's layout: conv taps as (K=3, Cin, Cout) bf16 weights."""
    cin = 270 if k == 1 else C_HID
    ks = jax.random.split(key, 6)
    scale = 0.05

    def conv_w(kk, cout, cin_):
        # PyTorch Conv1d weight layout (Cout, Cin, K) -> kernel layout (K, Cin, Cout)
        w = scale * jax.random.normal(kk, (cout, cin_, 3), F32)
        return jnp.transpose(w, (2, 1, 0)).astype(BF16)

    def conv_b(kk, cout):
        return scale * jax.random.normal(kk, (1, cout), F32)

    ones = jnp.ones((1, C_HID), F32)
    zeros = jnp.zeros((1, C_HID), F32)
    return dict(
        w1=conv_w(ks[0], C_HID, cin), b1=conv_b(ks[1], C_HID), g1=ones, be1=zeros,
        w2=conv_w(ks[2], C_HID, C_HID), b2=conv_b(ks[3], C_HID), g2=ones, be2=zeros,
        w3=conv_w(ks[4], 2 * C_HID, C_HID), b3=conv_b(ks[5], 2 * C_HID),
    )


def feature_encoder_block_btc(x_btc, params, k):
    """Channels-last entry point: x (B, T, Cin) -> (B, T, 320).  No layout transposes."""
    B, T, cin = x_btc.shape
    d1 = int(2 ** ((2 * k) % 5))
    d2 = int(2 ** ((2 * k + 1) % 5))
    dmax = ((max(d1, d2, 1) + 7) // 8) * 8      # halo rows, kept sublane-aligned
    BT = B * T

    x = x_btc.reshape(BT, cin).astype(BF16)     # bf16 input halves DMA + VMEM residency

    kernel = functools.partial(feature_encoder_kernel,
                               lev=k, T=T, d1=d1, d2=d2, dmax=dmax)
    n_in = 11
    out_flat = pl.pallas_call(
        kernel,
        out_shape=jax.ShapeDtypeStruct((BT, C_HID), F32),
        in_specs=[pl.BlockSpec(memory_space=pltpu.MemorySpace.VMEM)] * n_in,
        out_specs=pl.BlockSpec(memory_space=pltpu.MemorySpace.VMEM),
        scratch_shapes=[pltpu.VMEM((BT + 2 * dmax, C_HID), F32)],
        compiler_params=pltpu.CompilerParams(vmem_limit_bytes=_vmem_limit_bytes()),
    )(x,
      params["w1"], params["b1"], params["g1"], params["be1"],
      params["w2"], params["b2"], params["g2"], params["be2"],
      params["w3"], params["b3"])

    return out_flat.reshape(B, T, C_HID)


def feature_encoder_block(x_nct, params, k):
    """NCT wrapper for parity with the PyTorch module: x (B, Cin, T) -> (B, 320, T).

    TODO(synk): keep the surrounding model in (B, T, C) layout between blocks and call
    feature_encoder_block_btc directly; each standalone transpose here is an extra HBM
    round trip comparable to the kernel's own traffic.
    """
    y = feature_encoder_block_btc(jnp.transpose(x_nct, (0, 2, 1)), params, k)
    return jnp.transpose(y, (0, 2, 1))


if __name__ == "__main__":
    k = 3                      # dilation1 = 2^(6 % 5) = 2, dilation2 = 2^(7 % 5) = 4
    B, T = 2, 32
    cin = 270 if k == 1 else C_HID

    key = jax.random.PRNGKey(0)
    k_x, k_p = jax.random.split(key)
    x = jax.random.normal(k_x, (B, cin, T), F32)
    params = init_params(k_p, k)

    y = feature_encoder_block(x, params, k)
    y = jax.block_until_ready(y)
    assert y.shape == (B, C_HID, T), y.shape
    assert bool(jnp.all(jnp.isfinite(y)))
    print("KERNEL_OK")
</pallas_src>

<mosaic_0001>
module attributes {stable_mosaic.version = 11 : i64} {
  func.func @feature_encoder_kernel(%arg0: memref<64x320xbf16, #tpu.memory_space<vmem>>, %arg1: memref<3x320x320xbf16, #tpu.memory_space<vmem>>, %arg2: memref<1x320xf32, #tpu.memory_space<vmem>>, %arg3: memref<1x320xf32, #tpu.memory_space<vmem>>, %arg4: memref<1x320xf32, #tpu.memory_space<vmem>>, %arg5: memref<3x320x320xbf16, #tpu.memory_space<vmem>>, %arg6: memref<1x320xf32, #tpu.memory_space<vmem>>, %arg7: memref<1x320xf32, #tpu.memory_space<vmem>>, %arg8: memref<1x320xf32, #tpu.memory_space<vmem>>, %arg9: memref<3x320x640xbf16, #tpu.memory_space<vmem>>, %arg10: memref<1x640xf32, #tpu.memory_space<vmem>>, %arg11: memref<64x320xf32, #tpu.memory_space<vmem>>, %arg12: memref<80x320xf32, #tpu.memory_space<vmem>>) attributes {dimension_semantics = [], scalar_prefetch = 0 : i64, scratch_operands = 1 : i64, tpu.core_type = #tpu.core_type<tc>} {
    %cst = arith.constant 0.000000e+00 : f32
    %0 = vector.broadcast %cst : f32 to vector<8x320xf32>
    %c0 = arith.constant 0 : index
    %c0_0 = arith.constant 0 : index
    %1 = vector.load %arg12[%c0, %c0_0] : memref<80x320xf32, #tpu.memory_space<vmem>>, vector<8x320xf32>
    tpu.vector_store %arg12[%c0, %c0_0], %0 {strides = array<i32>} : memref<80x320xf32, #tpu.memory_space<vmem>>, vector<8x320xf32>,
    %cst_1 = arith.constant 0.000000e+00 : f32
    %2 = vector.broadcast %cst_1 : f32 to vector<8x320xf32>
    %c72 = arith.constant 72 : index
    %c0_2 = arith.constant 0 : index
    %3 = vector.load %arg12[%c72, %c0_2] : memref<80x320xf32, #tpu.memory_space<vmem>>, vector<8x320xf32>
    tpu.vector_store %arg12[%c72, %c0_2], %2 {strides = array<i32>} : memref<80x320xf32, #tpu.memory_space<vmem>>, vector<8x320xf32>,
    %4 = tpu.iota {dimensions = array<i32: 0>} : vector<64x1xi32>
    %c32_i32 = arith.constant 32 : i32
    %5 = vector.broadcast %c32_i32 : i32 to vector<64x1xi32>
    %6 = arith.remsi %4, %5 : vector<64x1xi32>
    %c1_i32 = arith.constant 1 : i32
    %7 = vector.broadcast %c1_i32 : i32 to vector<64x1xi32>
    %8 = arith.cmpi sge, %6, %7 : vector<64x1xi32>
    %c31_i32 = arith.constant 31 : i32
    %9 = vector.broadcast %c31_i32 : i32 to vector<64x1xi32>
    %10 = arith.cmpi slt, %6, %9 : vector<64x1xi32>
    %c2_i32 = arith.constant 2 : i32
    %11 = vector.broadcast %c2_i32 : i32 to vector<64x1xi32>
    %12 = arith.cmpi sge, %6, %11 : vector<64x1xi32>
    %c30_i32 = arith.constant 30 : i32
    %13 = vector.broadcast %c30_i32 : i32 to vector<64x1xi32>
    %14 = arith.cmpi slt, %6, %13 : vector<64x1xi32>
    %c4_i32 = arith.constant 4 : i32
    %15 = vector.broadcast %c4_i32 : i32 to vector<64x1xi32>
    %16 = arith.cmpi sge, %6, %15 : vector<64x1xi32>
    %c28_i32 = arith.constant 28 : i32
    %17 = vector.broadcast %c28_i32 : i32 to vector<64x1xi32>
    %18 = arith.cmpi slt, %6, %17 : vector<64x1xi32>
    %c0_3 = arith.constant 0 : index
    %c0_4 = arith.constant 0 : index
    %19 = vector.load %arg0[%c0_3, %c0_4] : memref<64x320xbf16, #tpu.memory_space<vmem>>, vector<64x320xbf16>
    %20 = arith.extf %19 : vector<64x320xbf16> to vector<64x320xf32>
    %c8 = arith.constant 8 : index
    %c0_5 = arith.constant 0 : index
    %21 = vector.load %arg12[%c8, %c0_5] : memref<80x320xf32, #tpu.memory_space<vmem>>, vector<64x320xf32>
    tpu.vector_store %arg12[%c8, %c0_5], %20 {strides = array<i32>} : memref<80x320xf32, #tpu.memory_space<vmem>>, vector<64x320xf32>,
    %22 = arith.truncf %20 : vector<64x320xf32> to vector<64x320xbf16>
    %c1 = arith.constant 1 : index
    %c0_6 = arith.constant 0 : index
    %c0_7 = arith.constant 0 : index
    %23 = vector.load %arg1[%c1, %c0_6, %c0_7] : memref<3x320x320xbf16, #tpu.memory_space<vmem>>, vector<1x320x320xbf16>
    %24 = vector.shape_cast %23 : vector<1x320x320xbf16> to vector<320x320xbf16>
    %cst_8 = arith.constant dense<0.000000e+00> : vector<64x320xf32>
    %25 = tpu.matmul %22, %24, %cst_8 {dimension_numbers = #tpu.dot_dimension_numbers<[1], [0], [0], [1], [0, 0, 1, 1], [], []>} : vector<64x320xbf16>, vector<320x320xbf16>, vector<64x320xf32> -> vector<64x320xf32>
    %c6 = arith.constant 6 : index
    %c0_9 = arith.constant 0 : index
    %26 = vector.load %arg12[%c6, %c0_9] : memref<80x320xf32, #tpu.memory_space<vmem>>, vector<64x320xf32>
    %cst_10 = arith.constant 0.000000e+00 : f32
    %27 = vector.shape_cast %12 : vector<64x1xi1> to vector<64x1xi1>
    %28 = vector.broadcast %27 : vector<64x1xi1> to vector<64x320xi1>
    %29 = vector.broadcast %cst_10 : f32 to vector<64x320xf32>
    %30 = arith.select %28, %26, %29 : vector<64x320xi1>, vector<64x320xf32>
    %c10 = arith.constant 10 : index
    %c0_11 = arith.constant 0 : index
    %31 = vector.load %arg12[%c10, %c0_11] : memref<80x320xf32, #tpu.memory_space<vmem>>, vector<64x320xf32>
    %cst_12 = arith.constant 0.000000e+00 : f32
    %32 = vector.shape_cast %14 : vector<64x1xi1> to vector<64x1xi1>
    %33 = vector.broadcast %32 : vector<64x1xi1> to vector<64x320xi1>
    %34 = vector.broadcast %cst_12 : f32 to vector<64x320xf32>
    %35 = arith.select %33, %31, %34 : vector<64x320xi1>, vector<64x320xf32>
    %36 = arith.truncf %30 : vector<64x320xf32> to vector<64x320xbf16>
    %c0_13 = arith.constant 0 : index
    %c0_14 = arith.constant 0 : index
    %c0_15 = arith.constant 0 : index
    %37 = vector.load %arg1[%c0_13, %c0_14, %c0_15] : memref<3x320x320xbf16, #tpu.memory_space<vmem>>, vector<1x320x320xbf16>
    %38 = vector.shape_cast %37 : vector<1x320x320xbf16> to vector<320x320xbf16>
    %cst_16 = arith.constant dense<0.000000e+00> : vector<64x320xf32>
    %39 = tpu.matmul %36, %38, %cst_16 {dimension_numbers = #tpu.dot_dimension_numbers<[1], [0], [0], [1], [0, 0, 1, 1], [], []>} : vector<64x320xbf16>, vector<320x320xbf16>, vector<64x320xf32> -> vector<64x320xf32>
    %40 = arith.addf %25, %39 : vector<64x320xf32>
    %41 = arith.truncf %35 : vector<64x320xf32> to vector<64x320xbf16>
    %c2 = arith.constant 2 : index
    %c0_17 = arith.constant 0 : index
    %c0_18 = arith.constant 0 : index
    %42 = vector.load %arg1[%c2, %c0_17, %c0_18] : memref<3x320x320xbf16, #tpu.memory_space<vmem>>, vector<1x320x320xbf16>
    %43 = vector.shape_cast %42 : vector<1x320x320xbf16> to vector<320x320xbf16>
    %cst_19 = arith.constant dense<0.000000e+00> : vector<64x320xf32>
    %44 = tpu.matmul %41, %43, %cst_19 {dimension_numbers = #tpu.dot_dimension_numbers<[1], [0], [0], [1], [0, 0, 1, 1], [], []>} : vector<64x320xbf16>, vector<320x320xbf16>, vector<64x320xf32> -> vector<64x320xf32>
    %45 = arith.addf %40, %44 : vector<64x320xf32>
    %c0_20 = arith.constant 0 : index
    %c0_21 = arith.constant 0 : index
    %46 = vector.load %arg2[%c0_20, %c0_21] : memref<1x320xf32, #tpu.memory_space<vmem>>, vector<1x320xf32>
    %47 = vector.broadcast %46 : vector<1x320xf32> to vector<64x320xf32>
    %48 = arith.addf %45, %47 : vector<64x320xf32>
    %49 = arith.addf %48, %20 : vector<64x320xf32>
    %cst_22 = arith.constant dense<0.000000e+00> : vector<320xf32>
    %50 = vector.multi_reduction <add>, %49, %cst_22 [0] : vector<64x320xf32> to vector<320xf32>
    %51 = vector.shape_cast %50 : vector<320xf32> to vector<1x320xf32>
    %cst_23 = arith.constant 6.400000e+01 : f32
    %52 = vector.broadcast %cst_23 : f32 to vector<1x320xf32>
    %53 = arith.divf %51, %52 : vector<1x320xf32>
    %54 = vector.broadcast %53 : vector<1x320xf32> to vector<64x320xf32>
    %55 = arith.subf %49, %54 : vector<64x320xf32>
    %56 = arith.mulf %55, %55 : vector<64x320xf32>
    %cst_24 = arith.constant dense<0.000000e+00> : vector<320xf32>
    %57 = vector.multi_reduction <add>, %56, %cst_24 [0] : vector<64x320xf32> to vector<320xf32>
    %58 = vector.shape_cast %57 : vector<320xf32> to vector<1x320xf32>
    %cst_25 = arith.constant 6.400000e+01 : f32
    %59 = vector.broadcast %cst_25 : f32 to vector<1x320xf32>
    %60 = arith.divf %58, %59 : vector<1x320xf32>
    %cst_26 = arith.constant 9.99999974E-6 : f32
    %61 = vector.broadcast %cst_26 : f32 to vector<1x320xf32>
    %62 = arith.addf %60, %61 : vector<1x320xf32>
    %63 = math.rsqrt %62 : vector<1x320xf32>
    %64 = vector.broadcast %63 : vector<1x320xf32> to vector<64x320xf32>
    %65 = arith.mulf %55, %64 : vector<64x320xf32>
    %c0_27 = arith.constant 0 : index
    %c0_28 = arith.constant 0 : index
    %66 = vector.load %arg3[%c0_27, %c0_28] : memref<1x320xf32, #tpu.memory_space<vmem>>, vector<1x320xf32>
    %67 = vector.broadcast %66 : vector<1x320xf32> to vector<64x320xf32>
    %68 = arith.mulf %65, %67 : vector<64x320xf32>
    %c0_29 = arith.constant 0 : index
    %c0_30 = arith.constant 0 : index
    %69 = vector.load %arg4[%c0_29, %c0_30] : memref<1x320xf32, #tpu.memory_space<vmem>>, vector<1x320xf32>
    %70 = vector.broadcast %69 : vector<1x320xf32> to vector<64x320xf32>
    %71 = arith.addf %68, %70 : vector<64x320xf32>
    %72 = arith.mulf %71, %71 : vector<64x320xf32>
    %73 = arith.mulf %71, %72 : vector<64x320xf32>
    %cst_31 = arith.constant 4.471500e-02 : f32
    %74 = vector.broadcast %cst_31 : f32 to vector<64x320xf32>
    %75 = arith.mulf %74, %73 : vector<64x320xf32>
    %76 = arith.addf %71, %75 : vector<64x320xf32>
    %cst_32 = arith.constant 0.797884583 : f32
    %77 = vector.broadcast %cst_32 : f32 to vector<64x320xf32>
    %78 = arith.mulf %77, %76 : vector<64x320xf32>
    %79 = math.tanh %78 : vector<64x320xf32>
    %cst_33 = arith.constant 1.000000e+00 : f32
    %80 = vector.broadcast %cst_33 : f32 to vector<64x320xf32>
    %81 = arith.addf %80, %79 : vector<64x320xf32>
    %cst_34 = arith.constant 5.000000e-01 : f32
    %82 = vector.broadcast %cst_34 : f32 to vector<64x320xf32>
    %83 = arith.mulf %82, %81 : vector<64x320xf32>
    %84 = arith.mulf %71, %83 : vector<64x320xf32>
    %c8_35 = arith.constant 8 : index
    %c0_36 = arith.constant 0 : index
    %85 = vector.load %arg12[%c8_35, %c0_36] : memref<80x320xf32, #tpu.memory_space<vmem>>, vector<64x320xf32>
    tpu.vector_store %arg12[%c8_35, %c0_36], %84 {strides = array<i32>} : memref<80x320xf32, #tpu.memory_space<vmem>>, vector<64x320xf32>,
    %86 = arith.truncf %84 : vector<64x320xf32> to vector<64x320xbf16>
    %c1_37 = arith.constant 1 : index
    %c0_38 = arith.constant 0 : index
    %c0_39 = arith.constant 0 : index
    %87 = vector.load %arg5[%c1_37, %c0_38, %c0_39] : memref<3x320x320xbf16, #tpu.memory_space<vmem>>, vector<1x320x320xbf16>
    %88 = vector.shape_cast %87 : vector<1x320x320xbf16> to vector<320x320xbf16>
    %cst_40 = arith.constant dense<0.000000e+00> : vector<64x320xf32>
    %89 = tpu.matmul %86, %88, %cst_40 {dimension_numbers = #tpu.dot_dimension_numbers<[1], [0], [0], [1], [0, 0, 1, 1], [], []>} : vector<64x320xbf16>, vector<320x320xbf16>, vector<64x320xf32> -> vector<64x320xf32>
    %c4 = arith.constant 4 : index
    %c0_41 = arith.constant 0 : index
    %90 = vector.load %arg12[%c4, %c0_41] : memref<80x320xf32, #tpu.memory_space<vmem>>, vector<64x320xf32>
    %cst_42 = arith.constant 0.000000e+00 : f32
    %91 = vector.shape_cast %16 : vector<64x1xi1> to vector<64x1xi1>
    %92 = vector.broadcast %91 : vector<64x1xi1> to vector<64x320xi1>
    %93 = vector.broadcast %cst_42 : f32 to vector<64x320xf32>
    %94 = arith.select %92, %90, %93 : vector<64x320xi1>, vector<64x320xf32>
    %c12 = arith.constant 12 : index
    %c0_43 = arith.constant 0 : index
    %95 = vector.load %arg12[%c12, %c0_43] : memref<80x320xf32, #tpu.memory_space<vmem>>, vector<64x320xf32>
    %cst_44 = arith.constant 0.000000e+00 : f32
    %96 = vector.shape_cast %18 : vector<64x1xi1> to vector<64x1xi1>
    %97 = vector.broadcast %96 : vector<64x1xi1> to vector<64x320xi1>
    %98 = vector.broadcast %cst_44 : f32 to vector<64x320xf32>
    %99 = arith.select %97, %95, %98 : vector<64x320xi1>, vector<64x320xf32>
    %100 = arith.truncf %94 : vector<64x320xf32> to vector<64x320xbf16>
    %c0_45 = arith.constant 0 : index
    %c0_46 = arith.constant 0 : index
    %c0_47 = arith.constant 0 : index
    %101 = vector.load %arg5[%c0_45, %c0_46, %c0_47] : memref<3x320x320xbf16, #tpu.memory_space<vmem>>, vector<1x320x320xbf16>
    %102 = vector.shape_cast %101 : vector<1x320x320xbf16> to vector<320x320xbf16>
    %cst_48 = arith.constant dense<0.000000e+00> : vector<64x320xf32>
    %103 = tpu.matmul %100, %102, %cst_48 {dimension_numbers = #tpu.dot_dimension_numbers<[1], [0], [0], [1], [0, 0, 1, 1], [], []>} : vector<64x320xbf16>, vector<320x320xbf16>, vector<64x320xf32> -> vector<64x320xf32>
    %104 = arith.addf %89, %103 : vector<64x320xf32>
    %105 = arith.truncf %99 : vector<64x320xf32> to vector<64x320xbf16>
    %c2_49 = arith.constant 2 : index
    %c0_50 = arith.constant 0 : index
    %c0_51 = arith.constant 0 : index
    %106 = vector.load %arg5[%c2_49, %c0_50, %c0_51] : memref<3x320x320xbf16, #tpu.memory_space<vmem>>, vector<1x320x320xbf16>
    %107 = vector.shape_cast %106 : vector<1x320x320xbf16> to vector<320x320xbf16>
    %cst_52 = arith.constant dense<0.000000e+00> : vector<64x320xf32>
    %108 = tpu.matmul %105, %107, %cst_52 {dimension_numbers = #tpu.dot_dimension_numbers<[1], [0], [0], [1], [0, 0, 1, 1], [], []>} : vector<64x320xbf16>, vector<320x320xbf16>, vector<64x320xf32> -> vector<64x320xf32>
    %109 = arith.addf %104, %108 : vector<64x320xf32>
    %c0_53 = arith.constant 0 : index
    %c0_54 = arith.constant 0 : index
    %110 = vector.load %arg6[%c0_53, %c0_54] : memref<1x320xf32, #tpu.memory_space<vmem>>, vector<1x320xf32>
    %111 = vector.broadcast %110 : vector<1x320xf32> to vector<64x320xf32>
    %112 = arith.addf %109, %111 : vector<64x320xf32>
    %113 = arith.addf %112, %84 : vector<64x320xf32>
    %cst_55 = arith.constant dense<0.000000e+00> : vector<320xf32>
    %114 = vector.multi_reduction <add>, %113, %cst_55 [0] : vector<64x320xf32> to vector<320xf32>
    %115 = vector.shape_cast %114 : vector<320xf32> to vector<1x320xf32>
    %cst_56 = arith.constant 6.400000e+01 : f32
    %116 = vector.broadcast %cst_56 : f32 to vector<1x320xf32>
    %117 = arith.divf %115, %116 : vector<1x320xf32>
    %118 = vector.broadcast %117 : vector<1x320xf32> to vector<64x320xf32>
    %119 = arith.subf %113, %118 : vector<64x320xf32>
    %120 = arith.mulf %119, %119 : vector<64x320xf32>
    %cst_57 = arith.constant dense<0.000000e+00> : vector<320xf32>
    %121 = vector.multi_reduction <add>, %120, %cst_57 [0] : vector<64x320xf32> to vector<320xf32>
    %122 = vector.shape_cast %121 : vector<320xf32> to vector<1x320xf32>
    %cst_58 = arith.constant 6.400000e+01 : f32
    %123 = vector.broadcast %cst_58 : f32 to vector<1x320xf32>
    %124 = arith.divf %122, %123 : vector<1x320xf32>
    %cst_59 = arith.constant 9.99999974E-6 : f32
    %125 = vector.broadcast %cst_59 : f32 to vector<1x320xf32>
    %126 = arith.addf %124, %125 : vector<1x320xf32>
    %127 = math.rsqrt %126 : vector<1x320xf32>
    %128 = vector.broadcast %127 : vector<1x320xf32> to vector<64x320xf32>
    %129 = arith.mulf %119, %128 : vector<64x320xf32>
    %c0_60 = arith.constant 0 : index
    %c0_61 = arith.constant 0 : index
    %130 = vector.load %arg7[%c0_60, %c0_61] : memref<1x320xf32, #tpu.memory_space<vmem>>, vector<1x320xf32>
    %131 = vector.broadcast %130 : vector<1x320xf32> to vector<64x320xf32>
    %132 = arith.mulf %129, %131 : vector<64x320xf32>
    %c0_62 = arith.constant 0 : index
    %c0_63 = arith.constant 0 : index
    %133 = vector.load %arg8[%c0_62, %c0_63] : memref<1x320xf32, #tpu.memory_space<vmem>>, vector<1x320xf32>
    %134 = vector.broadcast %133 : vector<1x320xf32> to vector<64x320xf32>
    %135 = arith.addf %132, %134 : vector<64x320xf32>
    %136 = arith.mulf %135, %135 : vector<64x320xf32>
    %137 = arith.mulf %135, %136 : vector<64x320xf32>
    %cst_64 = arith.constant 4.471500e-02 : f32
    %138 = vector.broadcast %cst_64 : f32 to vector<64x320xf32>
    %139 = arith.mulf %138, %137 : vector<64x320xf32>
    %140 = arith.addf %135, %139 : vector<64x320xf32>
    %cst_65 = arith.constant 0.797884583 : f32
    %141 = vector.broadcast %cst_65 : f32 to vector<64x320xf32>
    %142 = arith.mulf %141, %140 : vector<64x320xf32>
    %143 = math.tanh %142 : vector<64x320xf32>
    %cst_66 = arith.constant 1.000000e+00 : f32
    %144 = vector.broadcast %cst_66 : f32 to vector<64x320xf32>
    %145 = arith.addf %144, %143 : vector<64x320xf32>
    %cst_67 = arith.constant 5.000000e-01 : f32
    %146 = vector.broadcast %cst_67 : f32 to vector<64x320xf32>
    %147 = arith.mulf %146, %145 : vector<64x320xf32>
    %148 = arith.mulf %135, %147 : vector<64x320xf32>
    %c8_68 = arith.constant 8 : index
    %c0_69 = arith.constant 0 : index
    %149 = vector.load %arg12[%c8_68, %c0_69] : memref<80x320xf32, #tpu.memory_space<vmem>>, vector<64x320xf32>
    tpu.vector_store %arg12[%c8_68, %c0_69], %148 {strides = array<i32>} : memref<80x320xf32, #tpu.memory_space<vmem>>, vector<64x320xf32>,
    %150 = arith.truncf %148 : vector<64x320xf32> to vector<64x320xbf16>
    %c1_70 = arith.constant 1 : index
    %c0_71 = arith.constant 0 : index
    %c0_72 = arith.constant 0 : index
    %151 = vector.load %arg9[%c1_70, %c0_71, %c0_72] : memref<3x320x640xbf16, #tpu.memory_space<vmem>>, vector<1x320x640xbf16>
    %152 = vector.shape_cast %151 : vector<1x320x640xbf16> to vector<320x640xbf16>
    %cst_73 = arith.constant dense<0.000000e+00> : vector<64x640xf32>
    %153 = tpu.matmul %150, %152, %cst_73 {dimension_numbers = #tpu.dot_dimension_numbers<[1], [0], [0], [1], [0, 0, 1, 1], [], []>} : vector<64x320xbf16>, vector<320x640xbf16>, vector<64x640xf32> -> vector<64x640xf32>
    %c7 = arith.constant 7 : index
    %c0_74 = arith.constant 0 : index
    %154 = vector.load %arg12[%c7, %c0_74] : memref<80x320xf32, #tpu.memory_space<vmem>>, vector<64x320xf32>
    %cst_75 = arith.constant 0.000000e+00 : f32
    %155 = vector.shape_cast %8 : vector<64x1xi1> to vector<64x1xi1>
    %156 = vector.broadcast %155 : vector<64x1xi1> to vector<64x320xi1>
    %157 = vector.broadcast %cst_75 : f32 to vector<64x320xf32>
    %158 = arith.select %156, %154, %157 : vector<64x320xi1>, vector<64x320xf32>
    %c9 = arith.constant 9 : index
    %c0_76 = arith.constant 0 : index
    %159 = vector.load %arg12[%c9, %c0_76] : memref<80x320xf32, #tpu.memory_space<vmem>>, vector<64x320xf32>
    %cst_77 = arith.constant 0.000000e+00 : f32
    %160 = vector.shape_cast %10 : vector<64x1xi1> to vector<64x1xi1>
    %161 = vector.broadcast %160 : vector<64x1xi1> to vector<64x320xi1>
    %162 = vector.broadcast %cst_77 : f32 to vector<64x320xf32>
    %163 = arith.select %161, %159, %162 : vector<64x320xi1>, vector<64x320xf32>
    %164 = arith.truncf %158 : vector<64x320xf32> to vector<64x320xbf16>
    %c0_78 = arith.constant 0 : index
    %c0_79 = arith.constant 0 : index
    %c0_80 = arith.constant 0 : index
    %165 = vector.load %arg9[%c0_78, %c0_79, %c0_80] : memref<3x320x640xbf16, #tpu.memory_space<vmem>>, vector<1x320x640xbf16>
    %166 = vector.shape_cast %165 : vector<1x320x640xbf16> to vector<320x640xbf16>
    %cst_81 = arith.constant dense<0.000000e+00> : vector<64x640xf32>
    %167 = tpu.matmul %164, %166, %cst_81 {dimension_numbers = #tpu.dot_dimension_numbers<[1], [0], [0], [1], [0, 0, 1, 1], [], []>} : vector<64x320xbf16>, vector<320x640xbf16>, vector<64x640xf32> -> vector<64x640xf32>
    %168 = arith.addf %153, %167 : vector<64x640xf32>
    %169 = arith.truncf %163 : vector<64x320xf32> to vector<64x320xbf16>
    %c2_82 = arith.constant 2 : index
    %c0_83 = arith.constant 0 : index
    %c0_84 = arith.constant 0 : index
    %170 = vector.load %arg9[%c2_82, %c0_83, %c0_84] : memref<3x320x640xbf16, #tpu.memory_space<vmem>>, vector<1x320x640xbf16>
    %171 = vector.shape_cast %170 : vector<1x320x640xbf16> to vector<320x640xbf16>
    %cst_85 = arith.constant dense<0.000000e+00> : vector<64x640xf32>
    %172 = tpu.matmul %169, %171, %cst_85 {dimension_numbers = #tpu.dot_dimension_numbers<[1], [0], [0], [1], [0, 0, 1, 1], [], []>} : vector<64x320xbf16>, vector<320x640xbf16>, vector<64x640xf32> -> vector<64x640xf32>
    %173 = arith.addf %168, %172 : vector<64x640xf32>
    %c0_86 = arith.constant 0 : index
    %c0_87 = arith.constant 0 : index
    %174 = vector.load %arg10[%c0_86, %c0_87] : memref<1x640xf32, #tpu.memory_space<vmem>>, vector<1x640xf32>
    %175 = vector.broadcast %174 : vector<1x640xf32> to vector<64x640xf32>
    %176 = arith.addf %173, %175 : vector<64x640xf32>
    %177 = vector.extract_strided_slice %176 {offsets = [0, 0], sizes = [64, 320], strides = [1, 1]} : vector<64x640xf32> to vector<64x320xf32>
    %178 = vector.extract_strided_slice %176 {offsets = [0, 320], sizes = [64, 320], strides = [1, 1]} : vector<64x640xf32> to vector<64x320xf32>
    %cst_88 = arith.constant 0.000000e+00 : f32
    %179 = vector.broadcast %cst_88 : f32 to vector<64x320xf32>
    %180 = arith.subf %179, %178 : vector<64x320xf32>
    %181 = math.exp %180 : vector<64x320xf32>
    %cst_89 = arith.constant 1.000000e+00 : f32
    %182 = vector.broadcast %cst_89 : f32 to vector<64x320xf32>
    %183 = arith.addf %182, %181 : vector<64x320xf32>
    %184 = arith.divf %177, %183 : vector<64x320xf32>
    %c0_90 = arith.constant 0 : index
    %c0_91 = arith.constant 0 : index
    %185 = vector.load %arg11[%c0_90, %c0_91] : memref<64x320xf32, #tpu.memory_space<vmem>>, vector<64x320xf32>
    tpu.vector_store %arg11[%c0_90, %c0_91], %184 {strides = array<i32>} : memref<64x320xf32, #tpu.memory_space<vmem>>, vector<64x320xf32>,
    return
  }
}

</mosaic_0001>

<bundles_post_ra>
// kernel: tpu_custom_call.1
= control target key start
LH: loop header
LB: loop body
LE: loop exit
PB: predicated region body
PF: predicated region fallthrough
CT: control target
= control target key end

     0   :  { %16 = vsyncpa [#allocation4], 0  ;;  %s19874_s0 = inlined_call_operand.hbm [shape: bf16[64,320], index: 0, kind: input, shape index: {}]   ;;  %s19875_s1 = inlined_call_operand.hbm [shape: bf16[3,320,320], index: 1, kind: input, shape index: {}]   ;;  %s19876_s2 = inlined_call_operand.hbm [shape: f32[1,320], index: 2, kind: input, shape index: {}]   ;;  %s19877_s3 = inlined_call_operand.hbm [shape: f32[1,320], index: 3, kind: input, shape index: {}]   ;;  %s19878_s4 = inlined_call_operand.hbm [shape: f32[1,320], index: 4, kind: input, shape index: {}]   ;;  %s19879_s5 = inlined_call_operand.hbm [shape: bf16[3,320,320], index: 5, kind: input, shape index: {}]   ;;  %s19880_s6 = inlined_call_operand.hbm [shape: f32[1,320], index: 6, kind: input, shape index: {}]   ;;  %s19881_s7 = inlined_call_operand.hbm [shape: f32[1,320], index: 7, kind: input, shape index: {}]   ;;  %s19882_s8 = inlined_call_operand.hbm [shape: f32[1,320], index: 8, kind: input, shape index: {}]   ;;  %s19883_s9 = inlined_call_operand.hbm [shape: bf16[3,320,640], index: 9, kind: input, shape index: {}]   ;;  %s19884_s10 = inlined_call_operand.hbm [shape: f32[1,640], index: 10, kind: input, shape index: {}]   ;;  %s19885_s11 = inlined_call_operand.hbm [shape: f32[64,320], index: 11, kind: output, shape index: {}]  }
   0x1   :  { %17 = vsyncpa [#allocation7], 0 }
   0x2   :  { %18 = vsyncpa [#allocation10], 0 }
   0x3   :  { %19 = vsyncpa [#allocation13], 0 }
   0x4   :  { %20 = vsyncpa [#allocation16], 0 }
   0x5   :  { %21 = vsyncpa [#allocation19], 0 }
   0x6   :  { %22 = vsyncpa [#allocation5], 0  ;;  %s40_s19 = sshll.u32 %s19875_s1, 4  ;;  %s14930_s20 = smov [#allocation6]   ;;  %s41_s19 = int_to_ptr.hbm [resolvable:$true] %s40_s19 }
   0x7   :  { %s42_s21 = sshll.u32 %s14930_s20, 4  ;;  %s65_s24 = sshll.u32 %s19877_s3, 4  ;;  %s43_s21 = int_to_ptr.vmem [resolvable:$true] %s42_s21  ;;  %s66_s24 = int_to_ptr.hbm [resolvable:$true] %s65_s24 }
   0x8   :  { %s14931_s25 = smov 192   ;;  %s14932_s26 = smov 12  }
   0x9   :  { %48 = dma.hbm_to_vmem [thread:$0]  %s41_s19, 23040, %s43_s21, [#allocation7], %s14931_s25, %s14931_s25, %s14932_s26  }
   0xa   :  { %s14933_s27 = smov [#allocation9]   ;;  %s86_s1 = sshll.u32 %s19879_s5, 4  ;;  %s87_s1 = int_to_ptr.hbm [resolvable:$true] %s86_s1 }
   0xb   :  { %s67_s28 = sshll.u32 %s14933_s27, 4  ;;  %s111_s3 = sshll.u32 %s19881_s7, 4  ;;  %s68_s28 = int_to_ptr.vmem [resolvable:$true] %s67_s28  ;;  %s112_s3 = int_to_ptr.hbm [resolvable:$true] %s111_s3 }
   0xc   :  { %70 = dma.hbm_to_vmem [thread:$0]  %s66_s24, 48, %s68_s28, [#allocation10]  }
   0xd   :  { %s14934_s14 = smov [#allocation12]   ;;  %s14935_s16 = smov [#allocation15]  }
   0xe   :  { %s88_s15 = sshll.u32 %s14934_s14, 4  ;;  %s113_s17 = sshll.u32 %s14935_s16, 4  ;;  %s89_s15 = int_to_ptr.vmem [resolvable:$true] %s88_s15  ;;  %s114_s17 = int_to_ptr.vmem [resolvable:$true] %s113_s17 }
   0xf   :  { %94 = dma.hbm_to_vmem [thread:$0]  %s87_s1, 23040, %s89_s15, [#allocation13], %s14931_s25, %s14931_s25, %s14932_s26  }
  0x10   :  { %s132_s5 = sshll.u32 %s19883_s9, 4  ;;  %s14936_s20 = smov [#allocation18]   ;;  %s133_s5 = int_to_ptr.hbm [resolvable:$true] %s132_s5 }
  0x11   :  { %116 = dma.hbm_to_vmem [thread:$0]  %s112_s3, 48, %s114_s17, [#allocation16]  }
  0x12   :  { %s134_s21 = sshll.u32 %s14936_s20, 4  ;;  %s27_s23 = sshll.u32 %s19874_s0, 4  ;;  %s135_s21 = int_to_ptr.vmem [resolvable:$true] %s134_s21  ;;  %s28_s23 = int_to_ptr.hbm [resolvable:$true] %s27_s23 }
  0x13   :  { %s14937_s24 = smov 320   ;;  %s14938_s27 = smov 20  }
  0x14   :  { %140 = dma.hbm_to_vmem [thread:$0]  %s133_s5, 38400, %s135_s21, [#allocation19], %s14937_s24, %s14937_s24, %s14938_s27  }
  0x15   :  { %s14939_s28 = smov [#allocation3]   ;;  %s54_s9 = sshll.u32 %s19876_s2, 4  ;;  %s55_s9 = int_to_ptr.hbm [resolvable:$true] %s54_s9 }
  0x16   :  { %s29_s29 = sshll.u32 %s14939_s28, 4  ;;  %s76_s0 = sshll.u32 %s19878_s4, 4  ;;  %s30_s29 = int_to_ptr.vmem [resolvable:$true] %s29_s29  ;;  %s77_s0 = int_to_ptr.hbm [resolvable:$true] %s76_s0 }
  0x17   :  { %35 = dma.hbm_to_vmem [thread:$0]  %s28_s23, 1536, %s30_s29, [#allocation4], %s14931_s25, %s14931_s25, %s14932_s26  }
  0x18   :  { %s14940_s3 = smov [#allocation8]   ;;  %s14941_s15 = smov [#allocation11]  }
  0x19   :  { %s56_s14 = sshll.u32 %s14940_s3, 4  ;;  %s78_s16 = sshll.u32 %s14941_s15, 4  ;;  %s57_s14 = int_to_ptr.vmem [resolvable:$true] %s56_s14  ;;  %s79_s16 = int_to_ptr.vmem [resolvable:$true] %s78_s16 }
  0x1a   :  { %59 = dma.hbm_to_vmem [thread:$0]  %s55_s9, 48, %s57_s14, [#allocation7]  }
  0x1b   :  { %s100_s2 = sshll.u32 %s19880_s6, 4  ;;  %s122_s26 = sshll.u32 %s19882_s8, 4  ;;  %s101_s2 = int_to_ptr.hbm [resolvable:$true] %s100_s2  ;;  %s123_s26 = int_to_ptr.hbm [resolvable:$true] %s122_s26 }
  0x1c   :  { %81 = dma.hbm_to_vmem [thread:$0]  %s77_s0, 48, %s79_s16, [#allocation10]  }
  0x1d   :  { %s14942_s5 = smov [#allocation14]   ;;  %s14943_s20 = smov [#allocation17]  }
  0x1e   :  { %s102_s4 = sshll.u32 %s14942_s5, 4  ;;  %s124_s21 = sshll.u32 %s14943_s20, 4  ;;  %s103_s4 = int_to_ptr.vmem [resolvable:$true] %s102_s4  ;;  %s125_s21 = int_to_ptr.vmem [resolvable:$true] %s124_s21 }
  0x1f   :  { %105 = dma.hbm_to_vmem [thread:$0]  %s101_s2, 48, %s103_s4, [#allocation13]  }
  0x20   :  { %s146_s23 = sshll.u32 %s19884_s10, 4  ;;  %s14944_s6 = smov [#allocation20]   ;;  %s147_s23 = int_to_ptr.hbm [resolvable:$true] %s146_s23 }
  0x21   :  { %127 = dma.hbm_to_vmem [thread:$0]  %s123_s26, 48, %s125_s21, [#allocation16]  }
  0x22   :  { %s148_s24 = sshll.u32 %s14944_s6, 4  ;;  %s149_s24 = int_to_ptr.vmem [resolvable:$true] %s148_s24 }
  0x23   :  { %151 = dma.hbm_to_vmem [thread:$0]  %s147_s23, 80, %s149_s24, [#allocation19]  }
  0x24   :  { %14916 = dma.done.wait [#allocation4], 1536  }
  0x25   :  { %14917 = vsyncadd [#allocation4], 4294965760 }
  0x26   :  { %14918 = dma.done.wait [#allocation7], 23088  }
  0x27   :  { %14919 = vsyncadd [#allocation7], 4294944208 }
  0x28   :  { %14920 = dma.done.wait [#allocation10], 96  }
  0x29   :  { %14921 = vsyncadd [#allocation10], 4294967200 }
  0x2a   :  { %14922 = dma.done.wait [#allocation13], 23088  }
  0x2b   :  { %14923 = vsyncadd [#allocation13], 4294944208 }
  0x2c   :  { %14924 = dma.done.wait [#allocation16], 96  }
  0x2d   :  { %14925 = vsyncadd [#allocation16], 4294967200 }
  0x2e   :  { %14926 = dma.done.wait [#allocation19], 38480  }
  0x2f   :  { %14927 = vsyncadd [#allocation19], 4294928816  ;;  %vm199_vm0 = vcmask 523264   ;;  %v14945_v0 = vmov 0.0   ;;  %v204_v1 = vlaneseq  ;;  %v10684_v3 = vld [vmem:[#allocation6 + $0xa8] sm:$0xf] }
  0x30   :  { %200 = vst.msk [vmem:[#allocation2 + $0x10] sm:$0xff] %vm199_vm0, %v14945_v0  ;;  %v13776_v4 = vld [vmem:[#allocation6 + $0xb0] sm:$0xf0]  ;;  %v10780_v5 = vld [vmem:[#allocation6 + $0x168] sm:$0xf]  ;;  %vm532_vm1 = vcmask 1041408  }
  0x31   :  { %197 = vst [vmem:[#allocation2] sm:$0xff] %v14945_v0  ;;  %v15055_v2 = vshrl.u32 %v204_v1, 7  ;;  %v10685_v6 = vor.u32 %v13776_v4, %v10684_v3  ;;  %v13800_v7 = vld [vmem:[#allocation6 + $0x170] sm:$0xf0]  ;;  %v10828_v8 = vld [vmem:[#allocation6 + $0x1c8] sm:$0xf] }
  0x32   :  { %198 = vst [vmem:[#allocation2 + $0x8] sm:$0xff] %v14945_v0  ;;  %v13812_v9 = vld [vmem:[#allocation6 + $0x1d0] sm:$0xf0]  ;;  %v15058_v10 = vor.u32 %v13800_v7, %v10780_v5  ;;  %v13775_v12 = vld [vmem:[#allocation6 + $0xac] sm:$0xf]  ;;  %v15084_v4 = vld [vmem:[#allocation3] sm:$0xff] }
  0x33   :  { %201 = vst [vmem:[#allocation2 + $0xd8] sm:$0xff] %v14945_v0  ;;  %v10829_v11 = vor.u32 %v13812_v9, %v10828_v8  ;;  %v10686_v13 = vld [vmem:[#allocation6 + $0xb4] sm:$0xf0]  ;;  %v10672_v14 = vld [vmem:[#allocation6 + $0x90] sm:$0xf]  ;;  %1190 = vmatpush.bf16.msra.mxu0 %v10685_v6  ;;  %v15075_v53 = vand.u32 31, %v15055_v2 }
  0x34   :  { %202 = vst [vmem:[#allocation2 + $0xe0] sm:$0xff] %v14945_v0  ;;  %v10689_v15 = vor.u32 %v13775_v12, %v10686_v13  ;;  %v13773_v16 = vld [vmem:[#allocation6 + $0x98] sm:$0xf0]  ;;  %v10768_v17 = vld [vmem:[#allocation6 + $0x150] sm:$0xf]  ;;  %14354 = vmatpush.bf16.msra.mxu1 %v15058_v10  ;;  %vm14946_vm3 = vmmov 1  }
  0x35   :  { %203 = vst.msk [vmem:[#allocation2 + $0xe8] sm:$0xff] %vm199_vm0, %v14945_v0  ;;  %v13797_v18 = vld [vmem:[#allocation6 + $0x158] sm:$0xf0]  ;;  %1252 = vmatpush.bf16.msra.mxu2 %v10829_v11  ;;  %v10673_v19 = vor.u32 %v13773_v16, %v10672_v14  ;;  %v10816_v21 = vld [vmem:[#allocation6 + $0x1b0] sm:$0xf]  ;;  %vm285_vm2 = vcmp.ge.s32.totalorder %v15075_v53, 2 }
  0x36   :  { %v15061_v20 = vor.u32 %v13797_v18, %v10768_v17  ;;  %v13809_v22 = vld [vmem:[#allocation6 + $0x1b8] sm:$0xf0]  ;;  %v13772_v23 = vld [vmem:[#allocation6 + $0x94] sm:$0xf]  ;;  %1277 = vmatpush.bf16.msra.mxu3 %v10689_v15  ;;  %v10674_v25 = vld [vmem:[#allocation6 + $0x9c] sm:$0xf0]  ;;  %v333_v17 = vunpack.c.l.bf16 %v15084_v4 }
  0x37   :  { %v10817_v24 = vor.u32 %v13809_v22, %v10816_v21  ;;  %v10660_v26 = vld [vmem:[#allocation6 + $0x78] sm:$0xf]  ;;  %v13770_v27 = vld [vmem:[#allocation6 + $0x80] sm:$0xf0]  ;;  %v10677_v28 = vor.u32 %v13772_v23, %v10674_v25  ;;  %1191 = vmatpush.bf16.msra.mxu0 %v10673_v19  ;;  %v13769_v34 = vld [vmem:[#allocation6 + $0x7c] sm:$0xf] }
  0x38   :  { %v10756_v29 = vld [vmem:[#allocation6 + $0x138] sm:$0xf]  ;;  %v13794_v30 = vld [vmem:[#allocation6 + $0x140] sm:$0xf0]  ;;  %v10661_v32 = vor.u32 %v13770_v27, %v10660_v26  ;;  %v10662_v35 = vld [vmem:[#allocation6 + $0x84] sm:$0xf0]  ;;  %14355 = vmatpush.bf16.msra.mxu1 %v15061_v20 }
  0x39   :  { %v10804_v31 = vld [vmem:[#allocation6 + $0x198] sm:$0xf]  ;;  %v13806_v33 = vld [vmem:[#allocation6 + $0x1a0] sm:$0xf0]  ;;  %1253 = vmatpush.bf16.msra.mxu2 %v10817_v24  ;;  %v15064_v36 = vor.u32 %v13794_v30, %v10756_v29  ;;  %v10648_v38 = vld [vmem:[#allocation6 + $0x60] sm:$0xf]  ;;  %v10665_v41 = vor.u32 %v13769_v34, %v10662_v35 }
  0x3a   :  { %v10805_v37 = vor.u32 %v13806_v33, %v10804_v31  ;;  %v13767_v39 = vld [vmem:[#allocation6 + $0x68] sm:$0xf0]  ;;  %v10744_v40 = vld [vmem:[#allocation6 + $0x120] sm:$0xf]  ;;  %1278 = vmatpush.bf16.msra.mxu3 %v10677_v28  ;;  %v13766_v45 = vld [vmem:[#allocation6 + $0x64] sm:$0xf] }
  0x3b   :  { %v13791_v42 = vld [vmem:[#allocation6 + $0x128] sm:$0xf0]  ;;  %v10792_v43 = vld [vmem:[#allocation6 + $0x180] sm:$0xf]  ;;  %v10650_v46 = vld [vmem:[#allocation6 + $0x6c] sm:$0xf0]  ;;  %1192 = vmatpush.bf16.msra.mxu0 %v10661_v32  ;;  %v10649_v48 = vor.u32 %v13767_v39, %v10648_v38  ;;  %v334_v38 = vunpack.c.h.bf16 %v15084_v4 }
  0x3c   :  { %v13803_v44 = vld [vmem:[#allocation6 + $0x188] sm:$0xf0]  ;;  %v15066_v47 = vld [vmem:[#allocation3 + $0x8] sm:$0xf]  ;;  %v15068_v49 = vld [vmem:[#allocation3 + $0x14] sm:$0xf]  ;;  %14356 = vmatpush.bf16.msra.mxu1 %v15064_v36  ;;  %v15072_v51 = vor.u32 %v13791_v42, %v10744_v40  ;;  %v10653_v57 = vor.u32 %v13766_v45, %v10650_v46 }
  0x3d   :  { %19969 = vst [vmem:[#allocation29_spill] sm:$0xff] %v15066_v47  ;;  %v19893_v50 = vunpack.c.l.bf16 %v15066_v47  ;;  %1254 = vmatpush.bf16.msra.mxu2 %v10805_v37  ;;  %v10793_v52 = vor.u32 %v13803_v44, %v10792_v43  ;;  %v19892_v54 = vunpack.c.l.bf16 %v15068_v49  ;;  %v13799_v55 = vld [vmem:[#allocation6 + $0x16c] sm:$0xf]  ;;  %v10782_v56 = vld [vmem:[#allocation6 + $0x174] sm:$0xf0]  ;;  %v534_v45 = vrot.slane %v333_v17, 6  ;;  %vm15167_vm4 = vmpackc.low %vm14946_vm3, %vm285_vm2 }
  0x3e   :  { %19970 = vst [vmem:[#allocation30_spill] sm:$0xff] %v15068_v49  ;;  %1279 = vmatpush.bf16.msra.mxu3 %v10665_v41  ;;  %v10785_v58 = vor.u32 %v13799_v55, %v10782_v56  ;;  %v10636_v59 = vld [vmem:[#allocation6 + $0x48] sm:$0xf]  ;;  %v13764_v60 = vld [vmem:[#allocation6 + $0x50] sm:$0xf0]  ;;  %v319_v8 = vld [vmem:[#allocation3 + $0xc] sm:$0xff] }
  0x3f   :  { %19971 = vst [vmem:[#allocation31_spill] sm:$0xff] %v15075_v53  ;;  %v464_v61 = vld [vmem:[#allocation2 + $0x10] sm:$0xc0]  ;;  %v10732_v62 = vld [vmem:[#allocation6 + $0x108] sm:$0xf]  ;;  %1193 = vmatpush.bf16.msra.mxu0 %v10649_v48  ;;  %v10637_v0 = vor.u32 %v13764_v60, %v10636_v59  ;;  %v15091_v24 = vunpack.c.l.bf16 %v319_v8  ;;  %v15104_v39 = vunpack.c.h.bf16 %v319_v8  ;;  %vm666_vm7 = vcmask 1045504  }
  0x40   :  { %359 = vst.msk [vmem:[#allocation2 + $0x28] sm:$0xff] %vm199_vm0, %v19893_v50  ;;  %v13788_v63 = vld [vmem:[#allocation6 + $0x110] sm:$0xf0]  ;;  %v13763_v1 = vld [vmem:[#allocation6 + $0x4c] sm:$0xf]  ;;  %14357 = vmatpush.bf16.msra.mxu1 %v15072_v51  ;;  %v539_v18 = vrot.slane %v464_v61, 6 }
  0x41   :  { %362 = vst.msk [vmem:[#allocation2 + $0x40] sm:$0xff] %vm199_vm0, %v19892_v54  ;;  %v10638_v3 = vld [vmem:[#allocation6 + $0x54] sm:$0xf0]  ;;  %1255 = vmatpush.bf16.msra.mxu2 %v10793_v52  ;;  %v15088_v5 = vor.u32 %v13788_v63, %v10732_v62  ;;  %v10624_v6 = vld [vmem:[#allocation6 + $0x30] sm:$0xf]  ;;  %v542_v46 = vrot.slane %v15091_v24, 6 }
  0x42   :  { %v13761_v7 = vld [vmem:[#allocation6 + $0x38] sm:$0xf0]  ;;  %1280 = vmatpush.bf16.msra.mxu3 %v10653_v57  ;;  %v10641_v9 = vor.u32 %v13763_v1, %v10638_v3  ;;  %v10720_v11 = vld [vmem:[#allocation6 + $0xf0] sm:$0xf]  ;;  %v13796_v13 = vld [vmem:[#allocation6 + $0x154] sm:$0xf] }
  0x43   :  { %v13785_v12 = vld [vmem:[#allocation6 + $0xf8] sm:$0xf0]  ;;  %v13760_v14 = vld [vmem:[#allocation6 + $0x34] sm:$0xf]  ;;  %v10626_v15 = vld [vmem:[#allocation6 + $0x3c] sm:$0xf0]  ;;  %1194 = vmatpush.bf16.msra.mxu0 %v10637_v0  ;;  %v10625_v19 = vor.u32 %v13761_v7, %v10624_v6 }
  0x44   :  { %v10770_v16 = vld [vmem:[#allocation6 + $0x15c] sm:$0xf0]  ;;  %v10612_v22 = vld [vmem:[#allocation6 + $0x18] sm:$0xf]  ;;  %v13758_v23 = vld [vmem:[#allocation6 + $0x20] sm:$0xf0]  ;;  %14358 = vmatpush.bf16.msra.mxu1 %v15088_v5  ;;  %v15094_v26 = vor.u32 %v13785_v12, %v10720_v11  ;;  %v10629_v31 = vor.u32 %v13760_v14, %v10626_v15  ;;  %v543_v12 = vsel %vm532_vm1, %v534_v45, %v542_v46 }
  0x45   :  { %1306 = vmatpush.bf16.msrb.mxu2 %v10785_v58  ;;  %v10773_v21 = vor.u32 %v13796_v13, %v10770_v16  ;;  %19972 = vst [vmem:[#allocation32_spill] sm:$0xff] %v15091_v24  ;;  %v10708_v27 = vld [vmem:[#allocation6 + $0xd8] sm:$0xf]  ;;  %v13782_v28 = vld [vmem:[#allocation6 + $0xe0] sm:$0xf0]  ;;  %v10613_v41 = vor.u32 %v13758_v23, %v10612_v22  ;;  %v544_v7 = vrot.slane %v15104_v39, 6 }
  0x46   :  { %357 = vst [vmem:[#allocation2 + $0x18] sm:$0xff] %v333_v17  ;;  %1281 = vmatpush.bf16.msra.mxu3 %v10641_v9  ;;  %v13757_v32 = vld [vmem:[#allocation6 + $0x1c] sm:$0xf]  ;;  %v10614_v33 = vld [vmem:[#allocation6 + $0x24] sm:$0xf0]  ;;  %v15114_v55 = vor.u32 %v13782_v28, %v10708_v27  ;;  %s14948_s8 = smov 64  }
  0x47   :  { %v467_v25 = vld [vmem:[#allocation2 + $0x28] sm:$0xff]  ;;  %v15099_v35 = vld [vmem:[#allocation6] sm:$0xf]  ;;  %v15101_v37 = vld [vmem:[#allocation6 + $0x8] sm:$0xf0]  ;;  %1195 = vmatpush.bf16.msra.mxu0 %v10625_v19  ;;  %358 = vst [vmem:[#allocation2 + $0x20] sm:$0xff] %v334_v38  ;;  %v10617_v61 = vor.u32 %v13757_v32, %v10614_v33 }
  0x48   :  { %v15096_v29 = vld [vmem:[#allocation2 + $0x40] sm:$0xff]  ;;  %v540_v30 = vrot.slane %v467_v25, 6  ;;  %v10696_v42 = vld [vmem:[#allocation6 + $0xc0] sm:$0xf]  ;;  %v13779_v43 = vld [vmem:[#allocation6 + $0xc8] sm:$0xf0]  ;;  %14359 = vmatpush.bf16.msra.mxu1 %v15094_v26  ;;  %v10601_v3 = vor.u32 %v15101_v37, %v15099_v35 }
  0x49   :  { %1307 = vmatpush.bf16.msrb.mxu2 %v10773_v21  ;;  %v546_v34 = vrot.slane %v15096_v29, 6  ;;  %v462_v44 = vld [vmem:[#allocation2] sm:$0xc0]  ;;  %v13754_v56 = vld [vmem:[#allocation6 + $0x4] sm:$0xf]  ;;  %v15118_v58 = vld [vmem:[#allocation3 + $0x18] sm:$0xff]  ;;  %v15146_v17 = vor.u32 %v13779_v43, %v10696_v42 }
  0x4a   :  { %v541_v40 = vsel %vm532_vm1, %v539_v18, %v540_v30  ;;  %v533_v57 = vrot.slane %v462_v44, 6  ;;  %v15120_v59 = vld [vmem:[#allocation3 + $0x24] sm:$0xff]  ;;  %1282 = vmatpush.bf16.msra.mxu3 %v10629_v31  ;;  %v10602_v62 = vld [vmem:[#allocation6 + $0xc] sm:$0xf0]  ;;  %v15125_v63 = vunpack.c.h.bf16 %v15118_v58  ;;  %v15127_v0 = vld [vmem:[#allocation3 + $0x20] sm:$0xf] }
  0x4b   :  { %v547_v48 = vsel %vm532_vm1, %v540_v30, %v546_v34  ;;  %v610_v52 = vsel %vm285_vm2, %v541_v40, 0.0  ;;  %19973 = vst [vmem:[#allocation33_spill] sm:$0xff] %v15127_v0  ;;  %v15129_v1 = vld [vmem:[#allocation3 + $0x2c] sm:$0xf]  ;;  %v15134_v6 = vunpack.c.h.bf16 %v15120_v59  ;;  %v13793_v8 = vld [vmem:[#allocation6 + $0x13c] sm:$0xf]  ;;  %1196 = vmatpush.bf16.msra.mxu0 %v10613_v41  ;;  %v19891_v14 = vunpack.c.l.bf16 %v15127_v0 }
  0x4c   :  { %v15122_v60 = vpack.c.bf16 %v547_v48, %v610_v52  ;;  %19974 = vst [vmem:[#allocation34_spill] sm:$0xff] %v15129_v1  ;;  %v10758_v9 = vld [vmem:[#allocation6 + $0x144] sm:$0xf0]  ;;  %v535_v11 = vsel %vm532_vm1, %v533_v57, %v534_v45  ;;  %v550_v13 = vrot.slane %v15125_v63, 6  ;;  %v13790_v15 = vld [vmem:[#allocation6 + $0x124] sm:$0xf]  ;;  %14360 = vmatpush.bf16.msra.mxu1 %v15114_v55  ;;  %v19890_v19 = vunpack.c.l.bf16 %v15129_v1 }
  0x4d   :  { %19975 = vst [vmem:[#allocation35_spill] sm:$0xff] %v15134_v6  ;;  %v10746_v16 = vld [vmem:[#allocation6 + $0x12c] sm:$0xf0]  ;;  %v556_v18 = vrot.slane %v15134_v6, 6  ;;  %v10761_v21 = vor.u32 %v13793_v8, %v10758_v9  ;;  %v13777_v23 = vld [vmem:[#allocation6 + $0xb8] sm:$0xf0]  ;;  %v10605_v25 = vor.u32 %v13754_v56, %v10602_v62  ;;  %v15156_v32 = vpack.c.bf16 %v543_v12, %v535_v11 }
  0x4e   :  { %10850 = vmatmul.msk.bf16.vlgmr.msra.gmra.mxu2 %vm199_vm0, %v15122_v60  ;;  %v10692_v22 = vld [vmem:[#allocation6 + $0xb0] sm:$0xf]  ;;  %1283 = vmatpush.bf16.msra.mxu3 %v10617_v61  ;;  %v551_v27 = vsel %vm532_vm1, %v544_v7, %v550_v13  ;;  %365 = vst.msk [vmem:[#allocation2 + $0x58] sm:$0xff] %vm199_vm0, %v19891_v14  ;;  %v13811_v30 = vld [vmem:[#allocation6 + $0x1cc] sm:$0xf]  ;;  %v10749_v35 = vor.u32 %v13790_v15, %v10746_v16  ;;  %v15183_v57 = vld [vmem:[#allocation3 + $0x3c] sm:$0xff]  ;;  %v15195_v11 = vunpack.c.l.bf16 %v15118_v58  ;;  %v15198_v12 = vunpack.c.l.bf16 %v15120_v59 }
  0x4f   :  { %v10693_v28 = vor.u32 %v13777_v23, %v10692_v22  ;;  %v10830_v31 = vld [vmem:[#allocation6 + $0x1d4] sm:$0xf0]  ;;  %v557_v33 = vsel %vm532_vm1, %v550_v13, %v556_v18  ;;  %368 = vst.msk [vmem:[#allocation2 + $0x70] sm:$0xff] %vm199_vm0, %v19890_v19  ;;  %1308 = vmatpush.bf16.msrb.mxu2 %v10761_v21  ;;  %v13774_v40 = vld [vmem:[#allocation6 + $0xa0] sm:$0xf0]  ;;  %1197 = vmatpush.bf16.msra.mxu0 %v10601_v3  ;;  %v15181_v48 = vld [vmem:[#allocation3 + $0x30] sm:$0xff]  ;;  %v15212_v59 = vunpack.c.h.bf16 %v15183_v57 }
  0x50   :  { %v10680_v37 = vld [vmem:[#allocation6 + $0x98] sm:$0xf]  ;;  %v15171_v42 = vpack.c.bf16 %v557_v33, %v551_v27  ;;  %v15173_v43 = vor.u32 %v13811_v30, %v10830_v31  ;;  %v15177_v45 = vld [vmem:[#allocation3 + $0x44] sm:$0xf]  ;;  %14361 = vmatpush.bf16.msra.mxu1 %v15146_v17  ;;  %v13787_v52 = vld [vmem:[#allocation6 + $0x10c] sm:$0xf]  ;;  %v15209_v22 = vunpack.c.h.bf16 %v15181_v48 }
  0x51   :  { %v15175_v44 = vld [vmem:[#allocation3 + $0x38] sm:$0xf]  ;;  %19979 = vst [vmem:[#allocation37_spill] sm:$0xff] %v15177_v45  ;;  %v10681_v56 = vor.u32 %v13774_v40, %v10680_v37  ;;  %v19888_v62 = vunpack.c.l.bf16 %v15177_v45  ;;  %v13771_v9 = vld [vmem:[#allocation6 + $0x88] sm:$0xf0]  ;;  %v209_v58 = vadd.s32 32, %v15055_v2 }
  0x52   :  { %19978 = vst [vmem:[#allocation36_spill] sm:$0xff] %v15175_v44  ;;  %1284 = vmatpush.bf16.msra.mxu3 %v10605_v25  ;;  %v19889_v61 = vunpack.c.l.bf16 %v15175_v44  ;;  %v10734_v3 = vld [vmem:[#allocation6 + $0x114] sm:$0xf0]  ;;  %10840 = vmatmul.msk.bf16.vlgmr.msra.gmra.mxu0 %vm15167_vm4, %v15156_v32  ;;  %v13784_v15 = vld [vmem:[#allocation6 + $0xf4] sm:$0xf]  ;;  %vm3549_vm2 = vcmask 1043456  }
  0x53   :  { %1219 = vmatpush.bf16.msrb.mxu0 %v15058_v10  ;;  %v15187_v8 = vld [vmem:[#allocation3 + $0x54] sm:$0xff]  ;;  %1309 = vmatpush.bf16.msrb.mxu2 %v10749_v35  ;;  %v10668_v10 = vld [vmem:[#allocation6 + $0x80] sm:$0xf]  ;;  %v10737_v13 = vor.u32 %v13787_v52, %v10734_v3  ;;  %19980 = vst [vmem:[#allocation38_spill] sm:$0xff] %v15209_v22  ;;  %v10656_v30 = vld [vmem:[#allocation6 + $0x68] sm:$0xf] }
  0x54   :  { %1364 = vmatpush.bf16.msrb.mxu1 %v10693_v28  ;;  %371 = vst.msk [vmem:[#allocation2 + $0x88] sm:$0xff] %vm199_vm0, %v19889_v61  ;;  %v10722_v16 = vld [vmem:[#allocation6 + $0xfc] sm:$0xf0]  ;;  %v13808_v23 = vld [vmem:[#allocation6 + $0x1b4] sm:$0xf]  ;;  %v355_v25 = vunpack.c.h.bf16 %v15187_v8  ;;  %s14949_s10 = smov [#allocation21]  }
  0x55   :  { %1232 = vmatmul.bf16.vlgmr.msra.gmra.mxu1 %v15171_v42  ;;  %v473_v21 = vld [vmem:[#allocation2 + $0x58] sm:$0xff]  ;;  %10856 = vmatmul.msk.bf16.vlgmr.msra.gmra.mxu3 %vm15167_vm4, %v15156_v32  ;;  %19981 = vst [vmem:[#allocation39_spill] sm:$0xff] %v15212_v59  ;;  %v10818_v31 = vld [vmem:[#allocation6 + $0x1bc] sm:$0xf0]  ;;  %v10725_v35 = vor.u32 %v13784_v15, %v10722_v16  ;;  %v13768_v37 = vld [vmem:[#allocation6 + $0x70] sm:$0xf0] }
  0x56   :  { %14362 = vmatpush.bf16.msrb.mxu3 %v15173_v43  ;;  %374 = vst.msk [vmem:[#allocation2 + $0xa0] sm:$0xff] %vm199_vm0, %v19888_v62  ;;  %v15218_v27 = vld [vmem:[#allocation2 + $0x70] sm:$0xff]  ;;  %v552_v28 = vrot.slane %v473_v21, 6  ;;  %v15221_v40 = vor.u32 %v13808_v23, %v10818_v31  ;;  %v15223_v52 = vld [vmem:[#allocation3 + $0x50] sm:$0xf]  ;;  %v548_v21 = vrot.slane %v15195_v11, 6  ;;  %v10657_v23 = vor.u32 %v13768_v37, %v10656_v30 }
  0x57   :  { %1220 = vmatpush.bf16.msrb.mxu0 %v15061_v20  ;;  %v10669_v20 = vor.u32 %v13771_v9, %v10668_v10  ;;  %v558_v33 = vrot.slane %v15218_v27, 6  ;;  %1310 = vmatpush.bf16.msrb.mxu2 %v10737_v13  ;;  %379 = vst [vmem:[#allocation2 + $0xc8] sm:$0xff] %v355_v25  ;;  %v15230_v10 = vld [vmem:[#allocation3 + $0x5c] sm:$0xf]  ;;  %v19887_v9 = vunpack.c.l.bf16 %v15223_v52  ;;  %v562_v15 = vrot.slane %v15209_v22, 6  ;;  %s10578_s27 = sshll.u32 %s14949_s10, 4  ;;  %s10579_s27 = int_to_ptr.vmem [resolvable:$true] %s10578_s27 }
  0x58   :  { %1365 = vmatpush.bf16.msrb.mxu1 %v10681_v56  ;;  %19982 = vst [vmem:[#allocation40_spill] sm:$0xff] %v15223_v52  ;;  %v553_v3 = vsel %vm532_vm1, %v546_v34, %v552_v28  ;;  %v554_v56 = vrot.slane %v15198_v12, 6  ;;  %v568_v16 = vrot.slane %v15212_v59, 6  ;;  %v19886_v29 = vunpack.c.l.bf16 %v15230_v10  ;;  %v10644_v27 = vld [vmem:[#allocation6 + $0x50] sm:$0xf]  ;;  %s10580_s30 = sshll.u32 %s19885_s11, 4  ;;  %s10581_s30 = int_to_ptr.hbm [resolvable:$true] %s10580_s30 }
  0x59   :  { %19983 = vst [vmem:[#allocation41_spill] sm:$0xff] %v15230_v10  ;;  %v559_v13 = vsel %vm532_vm1, %v552_v28, %v558_v33  ;;  %v549_v28 = vsel %vm532_vm1, %v542_v46, %v548_v21  ;;  %v15255_v30 = vand.u32 31, %v209_v58  ;;  %v13781_v31 = vld [vmem:[#allocation6 + $0xdc] sm:$0xf]  ;;  %v563_v37 = vsel %vm532_vm1, %v556_v18, %v562_v15  ;;  %v10698_v62 = vld [vmem:[#allocation6 + $0xcc] sm:$0xf0] }
  0x5a   :  { %14363 = vmatpush.bf16.msrb.mxu3 %v15221_v40  ;;  %v15239_v34 = vpack.c.bf16 %v559_v13, %v553_v3  ;;  %377 = vst.msk [vmem:[#allocation2 + $0xb8] sm:$0xff] %vm199_vm0, %v19887_v9  ;;  %v569_v3 = vsel %vm532_vm1, %v562_v15, %v568_v16  ;;  %v354_v46 = vunpack.c.l.bf16 %v15187_v8  ;;  %v13778_v9 = vld [vmem:[#allocation6 + $0xc4] sm:$0xf]  ;;  %v10632_v18 = vld [vmem:[#allocation6 + $0x38] sm:$0xf]  ;;  %s14950_s11 = smov 384  }
  0x5b   :  { %1221 = vmatpush.bf16.msrb.mxu0 %v15064_v36  ;;  %v479_v25 = vld [vmem:[#allocation2 + $0x88] sm:$0xff]  ;;  %1311 = vmatpush.bf16.msrb.mxu2 %v10725_v35  ;;  %380 = vst.msk [vmem:[#allocation2 + $0xd0] sm:$0xff] %vm199_vm0, %v19886_v29  ;;  %v10710_v35 = vld [vmem:[#allocation6 + $0xe4] sm:$0xf0]  ;;  %v13762_v19 = vld [vmem:[#allocation6 + $0x40] sm:$0xf0]  ;;  %v10701_v14 = vor.u32 %v13778_v9, %v10698_v62  ;;  %v15270_v15 = vpack.c.bf16 %v569_v3, %v563_v37 }
  0x5c   :  { %1366 = vmatpush.bf16.msrb.mxu1 %v10669_v20  ;;  %v13765_v36 = vld [vmem:[#allocation6 + $0x58] sm:$0xf0]  ;;  %v555_v20 = vsel %vm532_vm1, %v548_v21, %v554_v56  ;;  %19984 = vst [vmem:[#allocation42_spill] sm:$0xff] %v15255_v30  ;;  %v10713_v13 = vor.u32 %v13781_v31, %v10710_v35  ;;  %v564_v21 = vrot.slane %v479_v25, 6  ;;  %vm289_vm5 = vcmp.ge.s32.totalorder %v15255_v30, 2  ;;  %v329_v9 = vld [vmem:[#allocation3 + $0x48] sm:$0xff] }
  0x5d   :  { %v15265_v29 = vld [vmem:[#allocation2 + $0xa0] sm:$0xff]  ;;  %v10645_v58 = vor.u32 %v13765_v36, %v10644_v27  ;;  %v15267_v61 = vpack.c.bf16 %v555_v20, %v549_v28  ;;  %v10806_v31 = vld [vmem:[#allocation6 + $0x1a4] sm:$0xf0]  ;;  %vm15275_vm6 = vmpackc.low %vm14946_vm3, %vm289_vm5  ;;  %378 = vst [vmem:[#allocation2 + $0xc0] sm:$0xff] %v354_v46  ;;  %v10633_v27 = vor.u32 %v13762_v19, %v10632_v18  ;;  %v15289_v20 = vunpack.c.l.bf16 %v15181_v48  ;;  %s14951_s1 = smov 24  }
  0x5e   :  { %10851 = vmatmul.msk.bf16.gmra.mxu2 %vm199_vm0, %v15239_v34  ;;  %v565_v62 = vsel %vm532_vm1, %v558_v33, %v564_v21  ;;  %v10620_v36 = vld [vmem:[#allocation6 + $0x20] sm:$0xf]  ;;  %v13759_v28 = vld [vmem:[#allocation6 + $0x28] sm:$0xf0]  ;;  %v15301_v33 = vunpack.c.h.bf16 %v329_v9  ;;  %v487_v48 = vld [vmem:[#allocation2 + $0xc8] sm:$0x3f] }
  0x5f   :  { %1222 = vmatpush.bf16.msrb.mxu0 %v15072_v51  ;;  %1312 = vmatpush.bf16.msrb.mxu2 %v10713_v13  ;;  %v13805_v51 = vld [vmem:[#allocation6 + $0x19c] sm:$0xf]  ;;  %v10621_v35 = vor.u32 %v13759_v28, %v10620_v36  ;;  %v13756_v37 = vld [vmem:[#allocation6 + $0x10] sm:$0xf0]  ;;  %v560_v13 = vrot.slane %v15289_v20, 6 }
  0x60   :  { %1367 = vmatpush.bf16.msrb.mxu1 %v10657_v23  ;;  %v570_v23 = vrot.slane %v15265_v29, 6  ;;  %v15281_v25 = vor.u32 %v13805_v51, %v10806_v31  ;;  %19987 = vst [vmem:[#allocation43_spill] sm:$0xff] %v15301_v33  ;;  %v10836_v31 = vld [vmem:[#allocation6 + $0x1d0] sm:$0xf]  ;;  %v13697_v8 = vld [vmem:[#allocation6 + $0x1fc] sm:$0xf] }
  0x61   :  { %v13732_v53 = vld [vmem:[#allocation6 + $0x310] sm:$0xf0]  ;;  %v13702_v45 = vld [vmem:[#allocation6 + $0x220] sm:$0xf0]  ;;  %v13699_v0 = vld [vmem:[#allocation6 + $0x208] sm:$0xf0] }
  0x62   :  { %1203 = vmatmul.bf16.gmra.mxu0 %v15267_v61  ;;  %14364 = vmatpush.bf16.msrb.mxu3 %v15281_v25  ;;  %v571_v19 = vsel %vm532_vm1, %v564_v21, %v570_v23  ;;  %v574_v21 = vrot.slane %v15301_v33, 6 }
  0x63   :  { %1223 = vmatpush.bf16.msrb.mxu0 %v15088_v5  ;;  %1313 = vmatpush.bf16.msrb.mxu2 %v10701_v14  ;;  %v15292_v5 = vunpack.c.l.bf16 %v15183_v57  ;;  %v622_v14 = vsel %vm289_vm5, %v565_v62, 0.0  ;;  %v10608_v57 = vld [vmem:[#allocation6 + $0x8] sm:$0xf]  ;;  %v13813_v62 = vld [vmem:[#allocation6 + $0x1d8] sm:$0xf0] }
  0x64   :  { %1368 = vmatpush.bf16.msrb.mxu1 %v10645_v58  ;;  %v15304_v3 = vpack.c.bf16 %v571_v19, %v622_v14  ;;  %v580_v58 = vrot.slane %v487_v48, 6  ;;  %v10609_v18 = vor.u32 %v13756_v37, %v10608_v57  ;;  %v575_v36 = vsel %vm532_vm1, %v568_v16, %v574_v21  ;;  %v13740_v19 = vld [vmem:[#allocation6 + $0x350] sm:$0xf0]  ;;  %v13802_v14 = vld [vmem:[#allocation6 + $0x184] sm:$0xf] }
  0x65   :  { %10849 = vmatmul.msk.bf16.gmra.mxu1 %vm15275_vm6, %v15270_v15  ;;  %1290 = vmatmul.bf16.gmra.mxu3 %v15267_v61  ;;  %v566_v46 = vrot.slane %v15292_v5, 6  ;;  %v10837_v28 = vor.u32 %v13813_v62, %v10836_v31  ;;  %v10794_v48 = vld [vmem:[#allocation6 + $0x18c] sm:$0xf0]  ;;  %v488_v57 = vld [vmem:[#allocation2 + $0xd0] sm:$0x3f] }
  0x66   :  { %v10797_v37 = vor.u32 %v13802_v14, %v10794_v48  ;;  %v13801_v31 = vld [vmem:[#allocation6 + $0x178] sm:$0xf0]  ;;  %v13798_v14 = vld [vmem:[#allocation6 + $0x160] sm:$0xf0] }
  0x67   :  { %1224 = vmatpush.bf16.msrb.mxu0 %v15094_v26  ;;  %v561_v26 = vsel %vm532_vm1, %v554_v56, %v560_v13  ;;  %v567_v51 = vsel %vm532_vm1, %v560_v13, %v566_v46  ;;  %1426 = vmatpush.bf16.msra.mxu2 %v10837_v28  ;;  %v13737_v28 = vld [vmem:[#allocation6 + $0x338] sm:$0xf0] }
  0x68   :  { %1369 = vmatpush.bf16.msrb.mxu1 %v10633_v27  ;;  %v11116_v27 = vld [vmem:[#allocation6 + $0x348] sm:$0xf]  ;;  %v15322_v13 = vpack.c.bf16 %v567_v51, %v561_v26  ;;  %14365 = vmatpush.bf16.msrb.mxu3 %v10797_v37  ;;  %v463_v48 = vld [vmem:[#allocation2 + $0x8] sm:$0xc0] }
  0x69   :  { %v11117_v56 = vor.u32 %v13740_v19, %v11116_v27  ;;  %v10824_v27 = vld [vmem:[#allocation6 + $0x1b8] sm:$0xf] }
  0x6a   :  { %v10776_v19 = vld [vmem:[#allocation6 + $0x158] sm:$0xf] }
  0x6b   :  { %1225 = vmatpush.bf16.msrb.mxu0 %v15114_v55  ;;  %v581_v55 = vsel %vm532_vm1, %v574_v21, %v580_v58  ;;  %v582_v21 = vrot.slane %v488_v57, 6  ;;  %v10777_v57 = vor.u32 %v13798_v14, %v10776_v19  ;;  %v10728_v14 = vld [vmem:[#allocation6 + $0xf8] sm:$0xf] }
  0x6c   :  { %1370 = vmatpush.bf16.msrb.mxu1 %v10621_v35  ;;  %v485_v35 = vld [vmem:[#allocation2 + $0xb8] sm:$0xff]  ;;  %v15324_v54 = vpack.c.bf16 %v581_v55, %v575_v36  ;;  %v13810_v36 = vld [vmem:[#allocation6 + $0x1c0] sm:$0xf0]  ;;  %v11104_v55 = vld [vmem:[#allocation6 + $0x330] sm:$0xf] }
  0x6d   :  { %v576_v16 = vrot.slane %v485_v35, 6  ;;  %v11105_v35 = vor.u32 %v13737_v28, %v11104_v55  ;;  %v13716_v55 = vld [vmem:[#allocation6 + $0x290] sm:$0xf0]  ;;  %v11080_v28 = vld [vmem:[#allocation6 + $0x300] sm:$0xf] }
  0x6e   :  { %10852 = vmatmul.msk.bf16.gmra.mxu2 %vm199_vm0, %v15304_v3 }
  0x6f   :  { %1226 = vmatpush.bf16.msrb.mxu0 %v15146_v17  ;;  %v15331_v17 = vunpack.c.l.bf16 %v329_v9  ;;  %v583_v58 = vsel %vm532_vm1, %v576_v16, %v582_v21  ;;  %v10788_v9 = vld [vmem:[#allocation6 + $0x170] sm:$0xf]  ;;  %v10764_v21 = vld [vmem:[#allocation6 + $0x140] sm:$0xf] }
  0x70   :  { %1371 = vmatpush.bf16.msrb.mxu1 %v10609_v18  ;;  %v486_v18 = vld [vmem:[#allocation2 + $0xc0] sm:$0x3f]  ;;  %v10789_v29 = vor.u32 %v13801_v31, %v10788_v9 }
  0x71   :  { %v572_v26 = vrot.slane %v15331_v17, 6  ;;  %v578_v51 = vrot.slane %v486_v18, 6  ;;  %v13792_v9 = vld [vmem:[#allocation6 + $0x130] sm:$0xf0] }
  0x72   :  { %10843 = vmatmul.msk.bf16.gmra.mxu0 %vm15275_vm6, %v15322_v13  ;;  %1393 = vmatpush.bf16.msra.mxu3 %v10789_v29 }
  0x73   :  { %1339 = vmatpush.bf16.msra.mxu0 %v15173_v43  ;;  %v577_v43 = vsel %vm532_vm1, %v570_v23, %v576_v16  ;;  %v573_v23 = vsel %vm532_vm1, %v566_v46, %v572_v26  ;;  %v579_v62 = vsel %vm532_vm1, %v572_v26, %v578_v51  ;;  %v13795_v46 = vld [vmem:[#allocation6 + $0x148] sm:$0xf0]  ;;  %v10752_v51 = vld [vmem:[#allocation6 + $0x128] sm:$0xf] }
  0x74   :  { %1872 = vmatpush.bf16.msra.mxu1 %v11117_v56  ;;  %v11092_v56 = vld [vmem:[#allocation6 + $0x318] sm:$0xf]  ;;  %v15348_v16 = vpack.c.bf16 %v579_v62, %v573_v23  ;;  %v10765_v26 = vor.u32 %v13795_v46, %v10764_v21  ;;  %v10740_v23 = vld [vmem:[#allocation6 + $0x110] sm:$0xf]  ;;  %v13789_v62 = vld [vmem:[#allocation6 + $0x118] sm:$0xf0] }
  0x75   :  { %1242 = vmatmul.bf16.gmra.mxu1 %v15324_v54  ;;  %10859 = vmatmul.msk.bf16.gmra.mxu3 %vm15275_vm6, %v15322_v13  ;;  %v10716_v21 = vld [vmem:[#allocation6 + $0xe0] sm:$0xf]  ;;  %v13783_v46 = vld [vmem:[#allocation6 + $0xe8] sm:$0xf0] }
  0x76   :  { %1394 = vmatpush.bf16.msra.mxu3 %v10777_v57 }
  0x77   :  { %1340 = vmatpush.bf16.msra.mxu0 %v15221_v40  ;;  %v15341_v40 = vpack.c.bf16 %v583_v58, %v577_v43  ;;  %v536_v43 = vrot.slane %v463_v48, 6  ;;  %v537_v58 = vrot.slane %v334_v38, 6  ;;  %v10753_v38 = vor.u32 %v13792_v9, %v10752_v51  ;;  %v13786_v48 = vld [vmem:[#allocation6 + $0x100] sm:$0xf0]  ;;  %v10704_v9 = vld [vmem:[#allocation6 + $0xc8] sm:$0xf] }
  0x78   :  { %1873 = vmatpush.bf16.msra.mxu1 %v11105_v35  ;;  %v10729_v57 = vor.u32 %v13786_v48, %v10728_v14  ;;  %v10717_v51 = vor.u32 %v13783_v46, %v10716_v21  ;;  %v10972_v14 = vld [vmem:[#allocation6 + $0x228] sm:$0xf]  ;;  %v13704_v48 = vld [vmem:[#allocation6 + $0x230] sm:$0xf0]  ;;  %v10960_v46 = vld [vmem:[#allocation6 + $0x210] sm:$0xf] }
  0x79   :  { %v538_v31 = vsel %vm532_vm1, %v536_v43, %v537_v58  ;;  %v545_v4 = vsel %vm532_vm1, %v537_v58, %v544_v7  ;;  %v13731_v7 = vld [vmem:[#allocation6 + $0x308] sm:$0xf0]  ;;  %v11008_v58 = vld [vmem:[#allocation6 + $0x270] sm:$0xf]  ;;  %v11164_v21 = vld [vmem:[#allocation6 + $0x3a8] sm:$0xf] }
  0x7a   :  { %1395 = vmatpush.bf16.msra.mxu3 %v10765_v26  ;;  %v15361_v29 = vpack.c.bf16 %v545_v4, %v538_v31  ;;  %v11081_v35 = vor.u32 %v13731_v7, %v11080_v28  ;;  %v13780_v31 = vld [vmem:[#allocation6 + $0xd0] sm:$0xf0]  ;;  %v11056_v28 = vld [vmem:[#allocation6 + $0x2d0] sm:$0xf]  ;;  %v13725_v7 = vld [vmem:[#allocation6 + $0x2d8] sm:$0xf0] }
  0x7b   :  { %1341 = vmatpush.bf16.msra.mxu0 %v15281_v25  ;;  %v10825_v25 = vor.u32 %v13810_v36, %v10824_v27  ;;  %v10741_v27 = vor.u32 %v13789_v62, %v10740_v23  ;;  %v11020_v36 = vld [vmem:[#allocation6 + $0x288] sm:$0xf]  ;;  %v13710_v23 = vld [vmem:[#allocation6 + $0x260] sm:$0xf0]  ;;  %v10705_v62 = vor.u32 %v13780_v31, %v10704_v9 }
  0x7c   :  { %v11021_v43 = vor.u32 %v13716_v55, %v11020_v36  ;;  %v10984_v36 = vld [vmem:[#allocation6 + $0x240] sm:$0xf]  ;;  %v13707_v55 = vld [vmem:[#allocation6 + $0x248] sm:$0xf0] }
  0x7d   :  { %1427 = vmatpush.bf16.msra.mxu2 %v10825_v25  ;;  %v13807_v25 = vld [vmem:[#allocation6 + $0x1a8] sm:$0xf0] }
  0x7e   :  { %10853 = vmatmul.msk.bf16.gmra.mxu2 %vm199_vm0, %v15341_v40  ;;  %1396 = vmatpush.bf16.msra.mxu3 %v10753_v38  ;;  %v10996_v38 = vld [vmem:[#allocation6 + $0x258] sm:$0xf] }
  0x7f   :  { %1342 = vmatpush.bf16.msra.mxu0 %v10797_v37  ;;  %v13734_v37 = vld [vmem:[#allocation6 + $0x320] sm:$0xf0] }
  0x80   :  { %v11093_v18 = vor.u32 %v13734_v37, %v11092_v56  ;;  %v11068_v56 = vld [vmem:[#allocation6 + $0x2e8] sm:$0xf]  ;;  %v13728_v37 = vld [vmem:[#allocation6 + $0x2f0] sm:$0xf0] }
  0x81   :  { %v11069_v26 = vor.u32 %v13728_v37, %v11068_v56  ;;  %v13722_v56 = vld [vmem:[#allocation6 + $0x2c0] sm:$0xf0]  ;;  %v10973_v37 = vor.u32 %v13704_v48, %v10972_v14  ;;  %v11010_v14 = vld [vmem:[#allocation6 + $0x27c] sm:$0xf0]  ;;  %v13751_v48 = vld [vmem:[#allocation6 + $0x3ac] sm:$0xf] }
  0x82   :  { %1213 = vmatmul.bf16.gmra.mxu0 %v15348_v16  ;;  %1874 = vmatpush.bf16.msra.mxu1 %v11093_v18  ;;  %v13713_v18 = vld [vmem:[#allocation6 + $0x278] sm:$0xf0] }
  0x83   :  { %1397 = vmatpush.bf16.msra.mxu3 %v10741_v27  ;;  %v11009_v4 = vor.u32 %v13713_v18, %v11008_v58  ;;  %v10997_v27 = vor.u32 %v13710_v23, %v10996_v38  ;;  %v13752_v18 = vld [vmem:[#allocation6 + $0x3b0] sm:$0xf0]  ;;  %v13698_v38 = vld [vmem:[#allocation6 + $0x200] sm:$0xf0] }
  0x84   :  { %v11165_v9 = vor.u32 %v13752_v18, %v11164_v21  ;;  %v13749_v21 = vld [vmem:[#allocation6 + $0x398] sm:$0xf0] }
  0x85   :  { %10872 = vmatmul.msk.bf16.vlgmr.msrb.gmra.mxu1 %vm15167_vm4, %v15156_v32  ;;  %1300 = vmatmul.bf16.gmra.mxu3 %v15348_v16  ;;  %v10812_v32 = vld [vmem:[#allocation6 + $0x1a0] sm:$0xf] }
  0x86   :  { %v10813_v19 = vor.u32 %v13807_v25, %v10812_v32  ;;  %1875 = vmatpush.bf16.msra.mxu1 %v11081_v35  ;;  %v10985_v32 = vor.u32 %v13707_v55, %v10984_v36  ;;  %v13804_v25 = vld [vmem:[#allocation6 + $0x190] sm:$0xf0]  ;;  %v11057_v35 = vor.u32 %v13725_v7, %v11056_v28  ;;  %v13695_v36 = vld [vmem:[#allocation6 + $0x1e8] sm:$0xf0]  ;;  %v11118_v28 = vld [vmem:[#allocation6 + $0x354] sm:$0xf0] }
  0x87   :  { %1398 = vmatpush.bf16.msra.mxu3 %v10729_v57  ;;  %v11044_v57 = vld [vmem:[#allocation6 + $0x2b8] sm:$0xf]  ;;  %v13715_v55 = vld [vmem:[#allocation6 + $0x28c] sm:$0xf] }
  0x88   :  { %1428 = vmatpush.bf16.msra.mxu2 %v10813_v19  ;;  %v11045_v58 = vor.u32 %v13722_v56, %v11044_v57 }
  0x8a   :  { %1876 = vmatpush.bf16.msra.mxu1 %v11069_v26  ;;  %v11032_v26 = vld [vmem:[#allocation6 + $0x2a0] sm:$0xf] }
  0x8b   :  { %1399 = vmatpush.bf16.msra.mxu3 %v10717_v51  ;;  %v13719_v51 = vld [vmem:[#allocation6 + $0x2a8] sm:$0xf0] }
  0x8c   :  { %v11033_v23 = vor.u32 %v13719_v51, %v11032_v26  ;;  %v10888_v26 = vld [vmem:[#allocation3] sm:$0xf]  ;;  %v13683_v51 = vld [vmem:[#allocation3 + $0x8] sm:$0xf0] }
  0x8d   :  { %v15390_v41 = vor.u32 %v13683_v51, %v10888_v26  ;;  %v13727_v26 = vld [vmem:[#allocation6 + $0x2ec] sm:$0xf]  ;;  %v11070_v51 = vld [vmem:[#allocation6 + $0x2f4] sm:$0xf0] }
  0x8e   :  { %10862 = vmatmul.msk.bf16.vlgmr.msrb.gmra.mxu2 %vm15167_vm4, %v15361_v29  ;;  %1877 = vmatpush.bf16.msra.mxu1 %v11057_v35  ;;  %v11166_v35 = vld [vmem:[#allocation6 + $0x3b4] sm:$0xf0] }
  0x8f   :  { %1400 = vmatpush.bf16.msra.mxu3 %v10705_v62  ;;  %v11169_v56 = vor.u32 %v13751_v48, %v11166_v35  ;;  %v11082_v48 = vld [vmem:[#allocation6 + $0x30c] sm:$0xf0] }
  0x92   :  { %10846 = vmatmul.msk.bf16.vlgmr.msrb.gmra.mxu0 %vm15167_vm4, %v15361_v29  ;;  %1878 = vmatpush.bf16.msra.mxu1 %v11045_v58  ;;  %v11106_v58 = vld [vmem:[#allocation6 + $0x33c] sm:$0xf0] }
  0x93   :  { %1843 = vmatpush.bf16.msrb.mxu0 %v11021_v43  ;;  %v13701_v43 = vld [vmem:[#allocation6 + $0x218] sm:$0xf0] }
  0x94   :  { %v10961_v31 = vor.u32 %v13701_v43, %v10960_v46  ;;  %v13736_v46 = vld [vmem:[#allocation6 + $0x334] sm:$0xf] }
  0x95   :  { %1377 = vmatmul.bf16.gmra.mxu1 %v15267_v61  ;;  %10868 = vmatmul.msk.bf16.vlgmr.msrb.gmra.mxu3 %vm199_vm0, %v15304_v3  ;;  %v10800_v61 = vld [vmem:[#allocation6 + $0x188] sm:$0xf]  ;;  %v11109_v18 = vor.u32 %v13736_v46, %v11106_v58  ;;  %v13685_v46 = vld [vmem:[#allocation3 + $0x1c] sm:$0xf] }
  0x96   :  { %v10801_v19 = vor.u32 %v13804_v25, %v10800_v61  ;;  %1905 = vmatpush.bf16.msrb.mxu3 %v11165_v9  ;;  %1879 = vmatpush.bf16.msra.mxu1 %v11033_v23  ;;  %v13739_v25 = vld [vmem:[#allocation6 + $0x34c] sm:$0xf]  ;;  %v13709_v9 = vld [vmem:[#allocation6 + $0x25c] sm:$0xf]  ;;  %v11094_v23 = vld [vmem:[#allocation6 + $0x324] sm:$0xf0] }
  0x97   :  { %1844 = vmatpush.bf16.msrb.mxu0 %v11009_v4  ;;  %v10948_v4 = vld [vmem:[#allocation6 + $0x1f8] sm:$0xf]  ;;  %v11121_v7 = vor.u32 %v13739_v25, %v11118_v28 }
  0x98   :  { %1429 = vmatpush.bf16.msra.mxu2 %v10801_v19  ;;  %v10949_v62 = vor.u32 %v13698_v38, %v10948_v4  ;;  %v13712_v19 = vld [vmem:[#allocation6 + $0x274] sm:$0xf]  ;;  %v10890_v4 = vld [vmem:[#allocation3 + $0xc] sm:$0xf0]  ;;  %v11140_v28 = vld [vmem:[#allocation6 + $0x378] sm:$0xf] }
  0x99   :  { %v11013_v57 = vor.u32 %v13712_v19, %v11010_v14  ;;  %v13746_v19 = vld [vmem:[#allocation6 + $0x380] sm:$0xf0] }
  0x9a   :  { %1992 = vmatpush.bf16.msrb.mxu1 %v11169_v56  ;;  %v11141_v14 = vor.u32 %v13746_v19, %v11140_v28  ;;  %v13686_v56 = vld [vmem:[#allocation3 + $0x20] sm:$0xf0]  ;;  %v11058_v28 = vld [vmem:[#allocation6 + $0x2dc] sm:$0xf0] }
  0x9b   :  { %1845 = vmatpush.bf16.msrb.mxu0 %v10997_v27  ;;  %v10936_v27 = vld [vmem:[#allocation6 + $0x1e0] sm:$0xf] }
  0x9e   :  { %1319 = vmatmul.bf16.gmra.mxu2 %v15171_v42 }
  0x9f   :  { %1846 = vmatpush.bf16.msrb.mxu0 %v10985_v32  ;;  %v11022_v32 = vld [vmem:[#allocation6 + $0x294] sm:$0xf0] }
  0xa0   :  { %v11025_v61 = vor.u32 %v13715_v55, %v11022_v32  ;;  %v13748_v55 = vld [vmem:[#allocation6 + $0x394] sm:$0xf]  ;;  %v11154_v32 = vld [vmem:[#allocation6 + $0x39c] sm:$0xf0] }
  0xa1   :  { %v11157_v25 = vor.u32 %v13748_v55, %v11154_v32  ;;  %v13743_v55 = vld [vmem:[#allocation6 + $0x368] sm:$0xf0] }
  0xa2   :  { %10866 = vmatmul.msk.bf16.vlgmr.msra.gmra.mxu0 %vm199_vm0, %v15122_v60  ;;  %1930 = vmatpush.bf16.msrb.mxu2 %v11025_v61 }
  0xa3   :  { %1847 = vmatpush.bf16.msrb.mxu0 %v10973_v37  ;;  %v11152_v37 = vld [vmem:[#allocation6 + $0x390] sm:$0xf]  ;;  %1993 = vmatpush.bf16.msrb.mxu1 %v11157_v25  ;;  %v13724_v25 = vld [vmem:[#allocation6 + $0x2d4] sm:$0xf] }
  0xa4   :  { %v11153_v43 = vor.u32 %v13749_v21, %v11152_v37  ;;  %v13703_v37 = vld [vmem:[#allocation6 + $0x22c] sm:$0xf]  ;;  %v10974_v21 = vld [vmem:[#allocation6 + $0x234] sm:$0xf0] }
  0xa5   :  { %10875 = vmatmul.msk.bf16.gmra.mxu1 %vm15275_vm6, %v15322_v13  ;;  %10869 = vmatmul.msk.bf16.gmra.mxu3 %vm199_vm0, %v15341_v40  ;;  %v10937_v13 = vor.u32 %v13695_v36, %v10936_v27  ;;  %v10977_v58 = vor.u32 %v13703_v37, %v10974_v21  ;;  %v10914_v37 = vld [vmem:[#allocation3 + $0x3c] sm:$0xf0] }
  0xa6   :  { %1931 = vmatpush.bf16.msrb.mxu2 %v11013_v57  ;;  %1906 = vmatpush.bf16.msrb.mxu3 %v11153_v43  ;;  %v10900_v57 = vld [vmem:[#allocation3 + $0x18] sm:$0xf]  ;;  %v10902_v43 = vld [vmem:[#allocation3 + $0x24] sm:$0xf0] }
  0xa7   :  { %1848 = vmatpush.bf16.msrb.mxu0 %v10961_v31  ;;  %v10998_v31 = vld [vmem:[#allocation6 + $0x264] sm:$0xf0] }
  0xa8   :  { %v11001_v38 = vor.u32 %v13709_v9, %v10998_v31  ;;  %v13700_v9 = vld [vmem:[#allocation6 + $0x214] sm:$0xf] }
  0xaa   :  { %1932 = vmatpush.bf16.msrb.mxu2 %v11001_v38  ;;  %1907 = vmatpush.bf16.msrb.mxu3 %v11141_v14  ;;  %v13745_v38 = vld [vmem:[#allocation6 + $0x37c] sm:$0xf]  ;;  %v11061_v14 = vor.u32 %v13724_v25, %v11058_v28  ;;  %v13718_v28 = vld [vmem:[#allocation6 + $0x2a4] sm:$0xf] }
  0xab   :  { %1849 = vmatpush.bf16.msrb.mxu0 %v10949_v62  ;;  %v13706_v62 = vld [vmem:[#allocation6 + $0x244] sm:$0xf] }
  0xae   :  { %10865 = vmatmul.msk.bf16.gmra.mxu2 %vm15275_vm6, %v15270_v15 }
  0xaf   :  { %1850 = vmatpush.bf16.msrb.mxu0 %v10937_v13  ;;  %v10986_v13 = vld [vmem:[#allocation6 + $0x24c] sm:$0xf0] }
  0xb0   :  { %v10989_v61 = vor.u32 %v13706_v62, %v10986_v13  ;;  %v11128_v13 = vld [vmem:[#allocation6 + $0x360] sm:$0xf] }
  0xb2   :  { %10867 = vmatmul.msk.bf16.gmra.mxu0 %vm199_vm0, %v15239_v34  ;;  %1933 = vmatpush.bf16.msrb.mxu2 %v10989_v61  ;;  %v11129_v61 = vor.u32 %v13743_v55, %v11128_v13 }
  0xb3   :  { %1959 = vmatpush.bf16.msra.mxu0 %v11121_v7  ;;  %v13730_v7 = vld [vmem:[#allocation6 + $0x304] sm:$0xf] }
  0xb4   :  { %v11085_v35 = vor.u32 %v13730_v7, %v11082_v48  ;;  %1908 = vmatpush.bf16.msrb.mxu3 %v11129_v61 }
  0xb5   :  { %1387 = vmatmul.bf16.gmra.mxu1 %v15348_v16  ;;  %10878 = vmatmul.msk.bf16.vlgmr.msra.gmra.mxu3 %vm15167_vm4, %v15361_v29  ;;  %v13682_v16 = vld [vmem:[#allocation3 + $0x4] sm:$0xf]  ;;  %v13733_v29 = vld [vmem:[#allocation6 + $0x31c] sm:$0xf] }
  0xb6   :  { %v15392_v27 = vor.u32 %v13682_v16, %v10890_v4  ;;  %v11097_v36 = vor.u32 %v13733_v29, %v11094_v23  ;;  %1934 = vmatpush.bf16.msrb.mxu2 %v10977_v58  ;;  %v15405_v16 = vor.u32 %v13685_v46, %v10902_v43  ;;  %v11073_v4 = vor.u32 %v13727_v26, %v11070_v51  ;;  %v11142_v29 = vld [vmem:[#allocation6 + $0x384] sm:$0xf0]  ;;  %v13721_v58 = vld [vmem:[#allocation6 + $0x2bc] sm:$0xf]  ;;  %v13694_v51 = vld [vmem:[#allocation6 + $0x1e4] sm:$0xf] }
  0xb7   :  { %1960 = vmatpush.bf16.msra.mxu0 %v11109_v18  ;;  %v15401_v18 = vor.u32 %v13686_v56, %v10900_v57  ;;  %v10950_v57 = vld [vmem:[#allocation6 + $0x204] sm:$0xf0]  ;;  %v13688_v56 = vld [vmem:[#allocation3 + $0x34] sm:$0xf] }
  0xb8   :  { %v10953_v21 = vor.u32 %v13697_v8, %v10950_v57  ;;  %v11046_v26 = vld [vmem:[#allocation6 + $0x2c4] sm:$0xf0]  ;;  %v11028_v8 = vld [vmem:[#allocation6 + $0x290] sm:$0xf] }
  0xbb   :  { %1961 = vmatpush.bf16.msra.mxu0 %v11097_v36  ;;  %v11145_v36 = vor.u32 %v13745_v38, %v11142_v29  ;;  %v11049_v38 = vor.u32 %v13721_v58, %v11046_v26  ;;  %v13742_v29 = vld [vmem:[#allocation6 + $0x364] sm:$0xf] }
  0xbd   :  { %1994 = vmatpush.bf16.msrb.mxu1 %v11145_v36 }
  0xbe   :  { %1329 = vmatmul.bf16.gmra.mxu2 %v15324_v54 }
  0xbf   :  { %1962 = vmatpush.bf16.msra.mxu0 %v11085_v35  ;;  %v10912_v35 = vld [vmem:[#allocation3 + $0x30] sm:$0xf] }
  0xc2   :  { %1851 = vmatmul.bf16.vlgmr.msrb.gmra.mxu0 %v15390_v41 }
  0xc3   :  { %1963 = vmatpush.bf16.msra.mxu0 %v11073_v4 }
  0xc5   :  { %1880 = vmatmul.bf16.vlgmr.msra.gmra.mxu1 %v15392_v27  ;;  %1406 = vmatmul.bf16.gmra.mxu3 %v15171_v42 }
  0xc7   :  { %1964 = vmatpush.bf16.msra.mxu0 %v11061_v14  ;;  %v11034_v14 = vld [vmem:[#allocation6 + $0x2ac] sm:$0xf0] }
  0xcb   :  { %1965 = vmatpush.bf16.msra.mxu0 %v11049_v38  ;;  %v13691_v38 = vld [vmem:[#allocation3 + $0x4c] sm:$0xf] }
  0xce   :  { %10882 = vmatmul.msk.bf16.vlgmr.msra.gmra.mxu2 %vm199_vm0, %v15122_v60  ;;  %v10962_v60 = vld [vmem:[#allocation6 + $0x21c] sm:$0xf0] }
  0xcf   :  { %v15403_v31 = vpop.f32.mrf.mxu0  ;;  %v10965_v62 = vor.u32 %v13700_v9, %v10962_v60  ;;  %v15424_v60 = vor.u32 %v13688_v56, %v10914_v37 }
  0xd1   :  { %v15399_v42 = vpop.f32.mrf.mxu2  ;;  %1935 = vmatpush.bf16.msrb.mxu2 %v10965_v62  ;;  %v11130_v62 = vld [vmem:[#allocation6 + $0x36c] sm:$0xf0] }
  0xd2   :  { %v1233_v23 = vpop.f32.mrf.mxu1  ;;  %1856 = vmatmul.bf16.gmra.mxu0 %v15401_v18  ;;  %v11133_v61 = vor.u32 %v13742_v29, %v11130_v62  ;;  %v10896_v62 = vld [vmem:[#allocation3 + $0x8] sm:$0xf] }
  0xd4   :  { %1995 = vmatpush.bf16.msrb.mxu1 %v11133_v61 }
  0xd5   :  { %1885 = vmatmul.bf16.gmra.mxu1 %v15405_v16  ;;  %10881 = vmatmul.msk.bf16.gmra.mxu3 %vm15275_vm6, %v15270_v15  ;;  %v13689_v15 = vld [vmem:[#allocation3 + $0x38] sm:$0xf0] }
  0xd6   :  { %v15420_v43 = vor.u32 %v13689_v15, %v10912_v35  ;;  %1936 = vmatpush.bf16.msrb.mxu2 %v10953_v21  ;;  %v11037_v15 = vor.u32 %v13718_v28, %v11034_v14 }
  0xd7   :  { %v15416_v7 = vpop.f32.mrf.mxu0 }
  0xd8   :  { %v15414_v19 = vpop.f32.mrf.mxu3  ;;  %1966 = vmatpush.bf16.msra.mxu0 %v11037_v15  ;;  %v13714_v15 = vld [vmem:[#allocation6 + $0x280] sm:$0xf0] }
  0xd9   :  { %v15412_v32 = vpop.f32.mrf.mxu2 }
  0xda   :  { %v1235_v48 = vpop.f32.mrf.mxu1 }
  0xde   :  { %10883 = vmatmul.msk.bf16.gmra.mxu2 %vm199_vm0, %v15239_v34  ;;  %v10938_v34 = vld [vmem:[#allocation6 + $0x1ec] sm:$0xf0] }
  0xdf   :  { %v1204_v4 = vpop.f32.mrf.mxu0  ;;  %v10941_v55 = vor.u32 %v13694_v51, %v10938_v34  ;;  %v11124_v51 = vld [vmem:[#allocation6 + $0x350] sm:$0xf]  ;;  %v10926_v34 = vld [vmem:[#allocation3 + $0x54] sm:$0xf0] }
  0xe0   :  { %v15422_v9 = vpop.f32.mrf.mxu3  ;;  %v1234_v36 = vadd.f32 %v1233_v23, %v1204_v4  ;;  %v13717_v23 = vld [vmem:[#allocation6 + $0x298] sm:$0xf0]  ;;  %v15441_v14 = vor.u32 %v13691_v38, %v10926_v34 }
  0xe1   :  { %v1262_v46 = vpop.f32.mrf.mxu2  ;;  %1937 = vmatpush.bf16.msrb.mxu2 %v10941_v55  ;;  %v11029_v37 = vor.u32 %v13717_v23, %v11028_v8  ;;  %v13741_v4 = vld [vmem:[#allocation6 + $0x358] sm:$0xf0] }
  0xe2   :  { %v1238_v13 = vpop.f32.mrf.mxu1  ;;  %1861 = vmatmul.bf16.gmra.mxu0 %v15420_v43  ;;  %v15427_v25 = vadd.f32 %v1262_v46, %v1234_v36  ;;  %v10924_v46 = vld [vmem:[#allocation3 + $0x48] sm:$0xf]  ;;  %v11125_v29 = vor.u32 %v13741_v4, %v11124_v51  ;;  %v13684_v36 = vld [vmem:[#allocation3 + $0x10] sm:$0xf0]  ;;  %v11112_v51 = vld [vmem:[#allocation6 + $0x338] sm:$0xf] }
  0xe3   :  { %2017 = vmatpush.bf16.msra.mxu3 %v11029_v37  ;;  %v13738_v4 = vld [vmem:[#allocation6 + $0x340] sm:$0xf0] }
  0xe5   :  { %1890 = vmatmul.bf16.gmra.mxu1 %v15424_v60  ;;  %1416 = vmatmul.bf16.gmra.mxu3 %v15324_v54  ;;  %v13692_v54 = vld [vmem:[#allocation3 + $0x50] sm:$0xf0] }
  0xe6   :  { %v15437_v61 = vor.u32 %v13692_v54, %v10924_v46  ;;  %2046 = vmatpush.bf16.msra.mxu2 %v11125_v29  ;;  %v11113_v46 = vor.u32 %v13738_v4, %v11112_v51  ;;  %v11272_v54 = vld [vmem:[#allocation6 + $0x468] sm:$0xf]  ;;  %v13836_v29 = vld [vmem:[#allocation6 + $0x470] sm:$0xf0]  ;;  %v13833_v4 = vld [vmem:[#allocation6 + $0x458] sm:$0xf0] }
  0xe7   :  { %v1206_v56 = vpop.f32.mrf.mxu0  ;;  %v11273_v38 = vor.u32 %v13836_v29, %v11272_v54  ;;  %v13687_v54 = vld [vmem:[#allocation3 + $0x28] sm:$0xf0] }
  0xe8   :  { %v15431_v57 = vpop.f32.mrf.mxu3  ;;  %v1236_v21 = vadd.f32 %v1235_v48, %v1206_v56  ;;  %v15443_v56 = vor.u32 %v13684_v36, %v10896_v62 }
  0xe9   :  { %v1264_v35 = vpop.f32.mrf.mxu2  ;;  %2529 = vmatpush.bf16.msra.mxu1 %v11273_v38 }
  0xea   :  { %v1240_v58 = vpop.f32.mrf.mxu1  ;;  %v15433_v26 = vadd.f32 %v1264_v35, %v1236_v21  ;;  %v11016_v35 = vld [vmem:[#allocation6 + $0x278] sm:$0xf]  ;;  %v13753_v21 = vld [vmem:[#allocation6 + $0x3b8] sm:$0xf0]  ;;  %2047 = vmatpush.bf16.msra.mxu2 %v11113_v46  ;;  %v10908_v46 = vld [vmem:[#allocation3 + $0x20] sm:$0xf] }
  0xeb   :  { %v11017_v37 = vor.u32 %v13714_v15, %v11016_v35  ;;  %v13711_v35 = vld [vmem:[#allocation6 + $0x268] sm:$0xf0] }
  0xed   :  { %2018 = vmatpush.bf16.msra.mxu3 %v11017_v37 }
  0xee   :  { %10884 = vmatmul.msk.bf16.gmra.mxu2 %vm199_vm0, %v15304_v3  ;;  %v11172_v3 = vld [vmem:[#allocation6 + $0x3b0] sm:$0xf] }
  0xef   :  { %v1209_v28 = vpop.f32.mrf.mxu0  ;;  %v11173_v50 = vor.u32 %v13753_v21, %v11172_v3  ;;  %v11260_v21 = vld [vmem:[#allocation6 + $0x450] sm:$0xf] }
  0xf0   :  { %v15439_v48 = vpop.f32.mrf.mxu3  ;;  %v1239_v8 = vadd.f32 %v1238_v13, %v1209_v28  ;;  %v11004_v28 = vld [vmem:[#allocation6 + $0x260] sm:$0xf]  ;;  %v11261_v29 = vor.u32 %v13833_v4, %v11260_v21  ;;  %v11248_v4 = vld [vmem:[#allocation6 + $0x438] sm:$0xf] }
  0xf1   :  { %v1267_v55 = vpop.f32.mrf.mxu2  ;;  %2079 = vmatpush.bf16.msrb.mxu0 %v11173_v50  ;;  %v11005_v37 = vor.u32 %v13711_v35, %v11004_v28  ;;  %v11100_v50 = vld [vmem:[#allocation6 + $0x320] sm:$0xf]  ;;  %v11160_v28 = vld [vmem:[#allocation6 + $0x398] sm:$0xf] }
  0xf2   :  { %v1243_v23 = vpop.f32.mrf.mxu1  ;;  %1866 = vmatmul.bf16.gmra.mxu0 %v15437_v61  ;;  %v15446_v34 = vadd.f32 %v1267_v55, %v1239_v8  ;;  %v13735_v8 = vld [vmem:[#allocation6 + $0x328] sm:$0xf0]  ;;  %2530 = vmatpush.bf16.msra.mxu1 %v11261_v29 }
  0xf3   :  { %2019 = vmatpush.bf16.msra.mxu3 %v11005_v37  ;;  %v11101_v51 = vor.u32 %v13735_v8, %v11100_v50  ;;  %v13750_v50 = vld [vmem:[#allocation6 + $0x3a0] sm:$0xf0]  ;;  %v11088_v8 = vld [vmem:[#allocation6 + $0x308] sm:$0xf] }
  0xf4   :  { %v11161_v10 = vor.u32 %v13750_v50, %v11160_v28  ;;  %v11089_v21 = vor.u32 %v13732_v53, %v11088_v8  ;;  %v10920_v50 = vld [vmem:[#allocation3 + $0x38] sm:$0xf] }
  0xf5   :  { %1895 = vmatmul.bf16.gmra.mxu1 %v15441_v14  ;;  %11174 = vmatmul.msk.bf16.vlgmr.msrb.gmra.mxu3 %vm199_vm0, %v15443_v56 }
  0xf6   :  { %2048 = vmatpush.bf16.msra.mxu2 %v11101_v51  ;;  %v13830_v51 = vld [vmem:[#allocation6 + $0x440] sm:$0xf0]  ;;  %2080 = vmatpush.bf16.msrb.mxu0 %v11161_v10  ;;  %v11076_v10 = vld [vmem:[#allocation6 + $0x2f0] sm:$0xf] }
  0xf7   :  { %v1211_v36 = vpop.f32.mrf.mxu0  ;;  %v11249_v29 = vor.u32 %v13830_v51, %v11248_v4  ;;  %v13690_v4 = vld [vmem:[#allocation3 + $0x40] sm:$0xf0] }
  0xf8   :  { %v15451_v62 = vpop.f32.mrf.mxu3  ;;  %v1241_v15 = vadd.f32 %v1240_v58, %v1211_v36  ;;  %v10992_v36 = vld [vmem:[#allocation6 + $0x248] sm:$0xf] }
  0xf9   :  { %v1269_v13 = vpop.f32.mrf.mxu2  ;;  %2531 = vmatpush.bf16.msra.mxu1 %v11249_v29  ;;  %v10968_v29 = vld [vmem:[#allocation6 + $0x218] sm:$0xf] }
  0xfa   :  { %v1245_v3 = vpop.f32.mrf.mxu1  ;;  %v15453_v55 = vadd.f32 %v1269_v13, %v1241_v15  ;;  %v13708_v13 = vld [vmem:[#allocation6 + $0x250] sm:$0xf0]  ;;  %2049 = vmatpush.bf16.msra.mxu2 %v11089_v21  ;;  %v13827_v21 = vld [vmem:[#allocation6 + $0x428] sm:$0xf0] }
  0xfb   :  { %v10993_v37 = vor.u32 %v13708_v13, %v10992_v36 }
  0xfd   :  { %2020 = vmatpush.bf16.msra.mxu3 %v10993_v37  ;;  %v11236_v37 = vld [vmem:[#allocation6 + $0x420] sm:$0xf] }
  0xfe   :  { %10885 = vmatmul.msk.bf16.gmra.mxu2 %vm199_vm0, %v15341_v40  ;;  %v15461_v40 = vor.u32 %v13687_v54, %v10908_v46  ;;  %v10980_v54 = vld [vmem:[#allocation6 + $0x230] sm:$0xf]  ;;  %v11237_v51 = vor.u32 %v13827_v21, %v11236_v37  ;;  %v13726_v21 = vld [vmem:[#allocation6 + $0x2e0] sm:$0xf0] }
  0xff   :  { %v1214_v58 = vpop.f32.mrf.mxu0 }
 0x100   :  { %v15457_v30 = vpop.f32.mrf.mxu3  ;;  %v1244_v35 = vadd.f32 %v1243_v23, %v1214_v58  ;;  %v13705_v58 = vld [vmem:[#allocation6 + $0x238] sm:$0xf0]  ;;  %2532 = vmatpush.bf16.msra.mxu1 %v11237_v51 }
 0x101   :  { %v1272_v38 = vpop.f32.mrf.mxu2 }
 0x102   :  { %v15459_v15 = vpop.f32.mrf.mxu1  ;;  %1967 = vmatmul.bf16.vlgmr.msra.gmra.mxu0 %v15392_v27  ;;  %v15464_v52 = vadd.f32 %v1272_v38, %v1244_v35  ;;  %v10981_v38 = vor.u32 %v13705_v58, %v10980_v54  ;;  %v13729_v35 = vld [vmem:[#allocation6 + $0x2f8] sm:$0xf0]  ;;  %v11148_v58 = vld [vmem:[#allocation6 + $0x380] sm:$0xf] }
 0x103   :  { %v11077_v8 = vor.u32 %v13729_v35, %v11076_v10  ;;  %v15483_v35 = vor.u32 %v13690_v4, %v10920_v50  ;;  %v13696_v50 = vld [vmem:[#allocation6 + $0x1f0] sm:$0xf0] }
 0x104   :  { %2021 = vmatpush.bf16.msra.mxu3 %v10981_v38  ;;  %v11064_v38 = vld [vmem:[#allocation6 + $0x2d8] sm:$0xf] }
 0x105   :  { %11178 = vmatmul.msk.bf16.vlgmr.msrb.gmra.mxu1 %vm199_vm0, %v15443_v56  ;;  %11175 = vmatmul.msk.bf16.gmra.mxu3 %vm199_vm0, %v15461_v40 }
 0x106   :  { %2050 = vmatpush.bf16.msra.mxu2 %v11077_v8  ;;  %v11224_v8 = vld [vmem:[#allocation6 + $0x408] sm:$0xf] }
 0x107   :  { %v1216_v53 = vpop.f32.mrf.mxu0 }
 0x108   :  { %v15470_v46 = vpop.f32.mrf.mxu3  ;;  %v1246_v36 = vadd.f32 %v1245_v3, %v1216_v53  ;;  %v10969_v3 = vor.u32 %v13702_v45, %v10968_v29  ;;  %v13824_v45 = vld [vmem:[#allocation6 + $0x410] sm:$0xf0]  ;;  %v11065_v29 = vor.u32 %v13726_v21, %v11064_v38  ;;  %v11052_v38 = vld [vmem:[#allocation6 + $0x2c0] sm:$0xf]  ;;  %v11212_v21 = vld [vmem:[#allocation6 + $0x3f0] sm:$0xf] }
 0x109   :  { %v1274_v23 = vpop.f32.mrf.mxu2 }
 0x10a   :  { %v15472_v13 = vpop.f32.mrf.mxu1  ;;  %v15474_v28 = vadd.f32 %v1274_v23, %v1246_v36  ;;  %v13747_v36 = vld [vmem:[#allocation6 + $0x388] sm:$0xf0]  ;;  %2022 = vmatpush.bf16.msra.mxu3 %v10969_v3  ;;  %2051 = vmatpush.bf16.msra.mxu2 %v11065_v29  ;;  %v10932_v29 = vld [vmem:[#allocation3 + $0x50] sm:$0xf] }
 0x10b   :  { %v11149_v37 = vor.u32 %v13747_v36, %v11148_v58 }
 0x10d   :  { %2081 = vmatpush.bf16.msrb.mxu0 %v11149_v37  ;;  %v13723_v37 = vld [vmem:[#allocation6 + $0x2c8] sm:$0xf0] }
 0x10e   :  { %1938 = vmatmul.bf16.vlgmr.msrb.gmra.mxu2 %v15390_v41 }
 0x10f   :  { %v1228_v23 = vpop.f32.mrf.mxu0 }
 0x110   :  { %v15478_v54 = vpop.f32.mrf.mxu3  ;;  %v1229_v1 = vadd.f32 %v1228_v23, %v15403_v31  ;;  %v10944_v31 = vld [vmem:[#allocation6 + $0x1e8] sm:$0xf] }
 0x111   :  { %v1315_v44 = vpop.f32.mrf.mxu2  ;;  %v10945_v3 = vor.u32 %v13696_v50, %v10944_v31  ;;  %v13744_v50 = vld [vmem:[#allocation6 + $0x370] sm:$0xf0] }
 0x112   :  { %v1316_v53 = vadd.f32 %v1315_v44, %v15414_v19  ;;  %v15481_v10 = vpop.f32.mrf.mxu1  ;;  %v11225_v44 = vor.u32 %v13824_v45, %v11224_v8  ;;  %v10956_v19 = vld [vmem:[#allocation6 + $0x200] sm:$0xf]  ;;  %1972 = vmatmul.bf16.gmra.mxu0 %v15405_v16  ;;  %v15487_v49 = vadd.f32 %v15399_v42, %v1229_v1  ;;  %v11053_v8 = vor.u32 %v13723_v37, %v11052_v38  ;;  %v13821_v45 = vld [vmem:[#allocation6 + $0x3f8] sm:$0xf0]  ;;  %v13720_v37 = vld [vmem:[#allocation6 + $0x2b0] sm:$0xf0] }
 0x113   :  { %v10957_v51 = vor.u32 %v13699_v0, %v10956_v19 }
 0x114   :  { %2533 = vmatpush.bf16.msra.mxu1 %v11225_v44  ;;  %v11213_v44 = vor.u32 %v13821_v45, %v11212_v21  ;;  %2052 = vmatpush.bf16.msra.mxu2 %v11053_v8  ;;  %v11200_v21 = vld [vmem:[#allocation6 + $0x3d8] sm:$0xf]  ;;  %v13818_v45 = vld [vmem:[#allocation6 + $0x3e0] sm:$0xf0] }
 0x115   :  { %11179 = vmatmul.msk.bf16.gmra.mxu1 %vm199_vm0, %v15461_v40  ;;  %11176 = vmatmul.msk.bf16.gmra.mxu3 %vm199_vm0, %v15483_v35  ;;  %v11201_v47 = vor.u32 %v13818_v45, %v11200_v21  ;;  %v13872_v21 = vld [vmem:[#allocation6 + $0x590] sm:$0xf0] }
 0x116   :  { %2023 = vmatpush.bf16.msra.mxu3 %v10957_v51 }
 0x117   :  { %v1230_v1 = vpop.f32.mrf.mxu0 }
 0x118   :  { %v15494_v0 = vpop.f32.mrf.mxu3  ;;  %v1231_v42 = vadd.f32 %v1230_v1, %v15416_v7  ;;  %2534 = vmatpush.bf16.msra.mxu1 %v11213_v44 }
 0x119   :  { %v1317_v4 = vpop.f32.mrf.mxu2 }
 0x11a   :  { %v1318_v23 = vadd.f32 %v1317_v4, %v15422_v9  ;;  %v15497_v58 = vpop.f32.mrf.mxu1  ;;  %2024 = vmatpush.bf16.msra.mxu3 %v10945_v3  ;;  %v15500_v36 = vadd.f32 %v15412_v32, %v1231_v42  ;;  %v13693_v9 = vld [vmem:[#allocation3 + $0x58] sm:$0xf0]  ;;  %v11136_v32 = vld [vmem:[#allocation6 + $0x368] sm:$0xf] }
 0x11b   :  { %v11040_v4 = vld [vmem:[#allocation6 + $0x2a8] sm:$0xf]  ;;  %v15510_v42 = vor.u32 %v13693_v9, %v10932_v29  ;;  %v11137_v38 = vor.u32 %v13744_v50, %v11136_v32  ;;  %v13860_v50 = vld [vmem:[#allocation6 + $0x530] sm:$0xf0] }
 0x11c   :  { %v11041_v8 = vor.u32 %v13720_v37, %v11040_v4  ;;  %2535 = vmatpush.bf16.msra.mxu1 %v11201_v47  ;;  %v11368_v32 = vld [vmem:[#allocation6 + $0x528] sm:$0xf] }
 0x11d   :  { %2082 = vmatpush.bf16.msrb.mxu0 %v11137_v38  ;;  %v11369_v38 = vor.u32 %v13860_v50, %v11368_v32  ;;  %v11416_v47 = vld [vmem:[#allocation6 + $0x588] sm:$0xf]  ;;  %v11274_v50 = vld [vmem:[#allocation6 + $0x474] sm:$0xf0] }
 0x11e   :  { %1943 = vmatmul.bf16.gmra.mxu2 %v15401_v18  ;;  %v11417_v45 = vor.u32 %v13872_v21, %v11416_v47 }
 0x11f   :  { %v1344_v31 = vpop.f32.mrf.mxu0  ;;  %2053 = vmatpush.bf16.msra.mxu2 %v11041_v8  ;;  %2558 = vmatpush.bf16.msrb.mxu3 %v11369_v38  ;;  %v13859_v38 = vld [vmem:[#allocation6 + $0x52c] sm:$0xf] }
 0x120   :  { %v15504_v51 = vpop.f32.mrf.mxu3  ;;  %v15506_v3 = vadd.f32 %v1344_v31, %v1316_v53  ;;  %v13815_v53 = vld [vmem:[#allocation6 + $0x3c8] sm:$0xf0] }
 0x121   :  { %v1320_v19 = vpop.f32.mrf.mxu2 }
 0x122   :  { %v1321_v7 = vadd.f32 %v1320_v19, %v15431_v57  ;;  %19988 = vst [vmem:[#allocation44_spill] sm:$0xff] %v15506_v3  ;;  %v15508_v1 = vpop.f32.mrf.mxu1  ;;  %1977 = vmatmul.bf16.gmra.mxu0 %v15424_v60  ;;  %v11188_v57 = vld [vmem:[#allocation6 + $0x3c0] sm:$0xf]  ;;  %v11370_v3 = vld [vmem:[#allocation6 + $0x534] sm:$0xf0] }
 0x123   :  { %v11189_v9 = vor.u32 %v13815_v53, %v11188_v57  ;;  %2591 = vmatpush.bf16.msrb.mxu2 %v11417_v45  ;;  %v11373_v47 = vor.u32 %v13859_v38, %v11370_v3  ;;  %v11262_v38 = vld [vmem:[#allocation6 + $0x45c] sm:$0xf0] }
 0x125   :  { %11180 = vmatmul.msk.bf16.gmra.mxu1 %vm199_vm0, %v15483_v35  ;;  %11177 = vmatmul.msk.bf16.gmra.mxu3 %vm199_vm0, %v15510_v42 }
 0x126   :  { %2536 = vmatpush.bf16.msra.mxu1 %v11189_v9 }
 0x127   :  { %v1346_v31 = vpop.f32.mrf.mxu0 }
 0x128   :  { %v15518_v19 = vpop.f32.mrf.mxu3  ;;  %v15520_v4 = vadd.f32 %v1346_v31, %v1318_v23  ;;  %v13857_v23 = vld [vmem:[#allocation6 + $0x518] sm:$0xf0]  ;;  %v13835_v31 = vld [vmem:[#allocation6 + $0x46c] sm:$0xf] }
 0x129   :  { %v1322_v29 = vpop.f32.mrf.mxu2  ;;  %v11277_v33 = vor.u32 %v13835_v31, %v11274_v50 }
 0x12a   :  { %v1323_v44 = vadd.f32 %v1322_v29, %v15439_v48  ;;  %19989 = vst [vmem:[#allocation45_spill] sm:$0xff] %v15520_v4  ;;  %v15522_v37 = vpop.f32.mrf.mxu1  ;;  %v11356_v29 = vld [vmem:[#allocation6 + $0x510] sm:$0xf]  ;;  %2645 = vmatpush.bf16.msrb.mxu1 %v11373_v47 }
 0x12b   :  { %v11357_v9 = vor.u32 %v13857_v23, %v11356_v29  ;;  %2616 = vmatpush.bf16.msra.mxu0 %v11277_v33  ;;  %v13854_v29 = vld [vmem:[#allocation6 + $0x500] sm:$0xf0]  ;;  %v13832_v23 = vld [vmem:[#allocation6 + $0x454] sm:$0xf] }
 0x12c   :  { %v11265_v47 = vor.u32 %v13832_v23, %v11262_v38 }
 0x12d   :  { %2559 = vmatpush.bf16.msrb.mxu3 %v11357_v9 }
 0x12e   :  { %1948 = vmatmul.bf16.gmra.mxu2 %v15420_v43 }
 0x12f   :  { %v1349_v53 = vpop.f32.mrf.mxu0  ;;  %2617 = vmatpush.bf16.msra.mxu0 %v11265_v47  ;;  %v11332_v47 = vld [vmem:[#allocation6 + $0x4e0] sm:$0xf] }
 0x130   :  { %v15526_v57 = vpop.f32.mrf.mxu3  ;;  %v15528_v4 = vadd.f32 %v1349_v53, %v1321_v7  ;;  %v668_v7 = vrot.slane %v15091_v24, 2  ;;  %v11344_v53 = vld [vmem:[#allocation6 + $0x4f8] sm:$0xf]  ;;  %v13851_v24 = vld [vmem:[#allocation6 + $0x4e8] sm:$0xf0] }
 0x131   :  { %v1325_v8 = vpop.f32.mrf.mxu2  ;;  %v11345_v50 = vor.u32 %v13854_v29, %v11344_v53  ;;  %v11358_v53 = vld [vmem:[#allocation6 + $0x51c] sm:$0xf0] }
 0x132   :  { %v1326_v48 = vadd.f32 %v1325_v8, %v15451_v62  ;;  %v15530_v32 = vpop.f32.mrf.mxu1  ;;  %1982 = vmatmul.bf16.gmra.mxu0 %v15441_v14  ;;  %v632_v62 = vld [vmem:[#allocation2 + $0x18] sm:$0xfc] }
 0x133   :  { %v667_v9 = vrot.slane %v632_v62, 2  ;;  %2560 = vmatpush.bf16.msrb.mxu3 %v11345_v50 }
 0x134   :  { %v15533_v21 = vadd.f32 %v15494_v0, %v1326_v48 }
 0x135   :  { %11181 = vmatmul.msk.bf16.gmra.mxu1 %vm199_vm0, %v15510_v42  ;;  %2025 = vmatmul.bf16.vlgmr.msra.gmra.mxu3 %v15390_v41 }
 0x137   :  { %v1351_v48 = vpop.f32.mrf.mxu0 }
 0x138   :  { %v1402_v0 = vpop.f32.mrf.mxu3  ;;  %v15545_v33 = vadd.f32 %v1351_v48, %v1323_v44  ;;  %v19991_v44 = vrot.slane %v15195_v11, 2  ;;  %v13856_v48 = vld [vmem:[#allocation6 + $0x514] sm:$0xf] }
 0x139   :  { %v1327_v8 = vpop.f32.mrf.mxu2  ;;  %v15543_v31 = vadd.f32 %v1402_v0, %v15459_v15  ;;  %v669_v15 = vsel %vm666_vm7, %v667_v9, %v668_v7  ;;  %v11361_v29 = vor.u32 %v13856_v48, %v11358_v53  ;;  %v13829_v9 = vld [vmem:[#allocation6 + $0x43c] sm:$0xf] }
 0x13a   :  { %v1328_v3 = vadd.f32 %v1327_v8, %v15457_v30  ;;  %v15547_v41 = vpop.f32.mrf.mxu1  ;;  %v11404_v30 = vld [vmem:[#allocation6 + $0x570] sm:$0xf]  ;;  %v13869_v8 = vld [vmem:[#allocation6 + $0x578] sm:$0xf0]  ;;  %v677_v0 = vsel %vm666_vm7, %v668_v7, %v19991_v44  ;;  %v11250_v44 = vld [vmem:[#allocation6 + $0x444] sm:$0xf0] }
 0x13b   :  { %v11405_v62 = vor.u32 %v13869_v8, %v11404_v30  ;;  %v15558_v38 = vpack.c.bf16 %v677_v0, %v669_v15  ;;  %2646 = vmatpush.bf16.msrb.mxu1 %v11361_v29  ;;  %v11333_v8 = vor.u32 %v13851_v24, %v11332_v47  ;;  %v13853_v48 = vld [vmem:[#allocation6 + $0x4fc] sm:$0xf]  ;;  %v11253_v53 = vor.u32 %v13829_v9, %v11250_v44 }
 0x13c   :  { %v15550_v45 = vadd.f32 %v15504_v51, %v1328_v3 }
 0x13d   :  { %2592 = vmatpush.bf16.msrb.mxu2 %v11405_v62  ;;  %v11346_v62 = vld [vmem:[#allocation6 + $0x504] sm:$0xf0]  ;;  %2561 = vmatpush.bf16.msrb.mxu3 %v11333_v8  ;;  %v11238_v8 = vld [vmem:[#allocation6 + $0x42c] sm:$0xf0] }
 0x13e   :  { %19990 = vst [vmem:[#allocation46_spill] sm:$0xff] %v15550_v45  ;;  %1953 = vmatmul.bf16.gmra.mxu2 %v15437_v61  ;;  %2618 = vmatpush.bf16.msra.mxu0 %v11253_v53  ;;  %v19993_v53 = vrot.slane %v15195_v11, 2 }
 0x13f   :  { %v1852_v50 = vpop.f32.mrf.mxu0 }
 0x140   :  { %v1404_v3 = vpop.f32.mrf.mxu3  ;;  %v1853_v7 = vadd.f32 %v1852_v50, %v15487_v49  ;;  %v13826_v50 = vld [vmem:[#allocation6 + $0x424] sm:$0xf] }
 0x141   :  { %v1330_v23 = vpop.f32.mrf.mxu2  ;;  %v15561_v45 = vadd.f32 %v1404_v3, %v15472_v13  ;;  %v208_v13 = vadd.s32 24, %v15055_v2  ;;  %v11320_v3 = vld [vmem:[#allocation6 + $0x4c8] sm:$0xf]  ;;  %v11241_v44 = vor.u32 %v13826_v50, %v11238_v8  ;;  %v11226_v8 = vld [vmem:[#allocation6 + $0x414] sm:$0xf0] }
 0x142   :  { %v1331_v51 = vadd.f32 %v1330_v23, %v15470_v46  ;;  %v1881_v30 = vpop.f32.mrf.mxu1  ;;  %v11349_v46 = vor.u32 %v13853_v48, %v11346_v62  ;;  %11182 = vmatmul.msk.bf16.vlgmr.msrb.gmra.mxu0 %vm199_vm0, %v15443_v56  ;;  %v13848_v56 = vld [vmem:[#allocation6 + $0x4d0] sm:$0xf0]  ;;  %v13866_v62 = vld [vmem:[#allocation6 + $0x560] sm:$0xf0] }
 0x143   :  { %v15567_v15 = vadd.f32 %v1881_v30, %v1853_v7  ;;  %v15574_v24 = vand.u32 31, %v208_v13  ;;  %v11321_v30 = vor.u32 %v13848_v56, %v11320_v3  ;;  %2619 = vmatpush.bf16.msra.mxu0 %v11241_v44  ;;  %v13847_v44 = vld [vmem:[#allocation6 + $0x4cc] sm:$0xf] }
 0x144   :  { %v15565_v23 = vadd.f32 %v15518_v19, %v1331_v51  ;;  %2647 = vmatpush.bf16.msrb.mxu1 %v11349_v46  ;;  %v682_v19 = vrot.slane %v15198_v12, 2 }
 0x145   :  { %2537 = vmatmul.bf16.vlgmr.msra.gmra.mxu1 %v15558_v38  ;;  %2030 = vmatmul.bf16.gmra.mxu3 %v15401_v18  ;;  %19992 = vst [vmem:[#allocation47_spill] sm:$0xff] %v15574_v24  ;;  %v688_v18 = vrot.slane %v15289_v20, 2  ;;  %vm296_vm8 = vcmp.lt.s32.totalorder %v15574_v24, 30  ;;  %v13846_v24 = vld [vmem:[#allocation6 + $0x4c0] sm:$0xf0] }
 0x146   :  { %2562 = vmatpush.bf16.msrb.mxu3 %v11321_v30  ;;  %v683_v46 = vsel %vm666_vm7, %v19993_v53, %v682_v19  ;;  %vm15599_vm9 = vmpackc.low %vm296_vm8, %vm14946_vm3  ;;  %v13823_v30 = vld [vmem:[#allocation6 + $0x40c] sm:$0xf] }
 0x147   :  { %v1854_v51 = vpop.f32.mrf.mxu0  ;;  %v11229_v53 = vor.u32 %v13823_v30, %v11226_v8  ;;  %v11214_v30 = vld [vmem:[#allocation6 + $0x3fc] sm:$0xf0] }
 0x148   :  { %v1407_v29 = vpop.f32.mrf.mxu3  ;;  %v1855_v9 = vadd.f32 %v1854_v51, %v15500_v36  ;;  %v13850_v36 = vld [vmem:[#allocation6 + $0x4e4] sm:$0xf]  ;;  %v13845_v51 = vld [vmem:[#allocation6 + $0x4b8] sm:$0xf0] }
 0x149   :  { %v1332_v49 = vpop.f32.mrf.mxu2  ;;  %v15579_v47 = vadd.f32 %v1407_v29, %v15481_v10  ;;  %v11392_v10 = vld [vmem:[#allocation6 + $0x558] sm:$0xf]  ;;  %v11308_v29 = vld [vmem:[#allocation6 + $0x4b0] sm:$0xf]  ;;  %2620 = vmatpush.bf16.msra.mxu0 %v11229_v53 }
 0x14a   :  { %v1333_v0 = vadd.f32 %v1332_v49, %v15478_v54  ;;  %v1883_v7 = vpop.f32.mrf.mxu1  ;;  %v11393_v13 = vor.u32 %v13866_v62, %v11392_v10  ;;  %v11334_v49 = vld [vmem:[#allocation6 + $0x4ec] sm:$0xf0]  ;;  %v11309_v56 = vor.u32 %v13845_v51, %v11308_v29 }
 0x14b   :  { %v15586_v54 = vadd.f32 %v1883_v7, %v1855_v9 }
 0x14c   :  { %v15584_v48 = vadd.f32 %v15526_v57, %v1333_v0  ;;  %v689_v57 = vsel %vm666_vm7, %v682_v19, %v688_v18  ;;  %v11337_v0 = vor.u32 %v13850_v36, %v11334_v49  ;;  %2593 = vmatpush.bf16.msrb.mxu2 %v11393_v13  ;;  %2563 = vmatpush.bf16.msrb.mxu3 %v11309_v56  ;;  %v11322_v13 = vld [vmem:[#allocation6 + $0x4d4] sm:$0xf0] }
 0x14d   :  { %v15606_v7 = vpack.c.bf16 %v689_v57, %v683_v46  ;;  %v11296_v49 = vld [vmem:[#allocation6 + $0x498] sm:$0xf]  ;;  %v11325_v29 = vor.u32 %v13847_v44, %v11322_v13  ;;  %v13863_v13 = vld [vmem:[#allocation6 + $0x548] sm:$0xf0] }
 0x14e   :  { %2054 = vmatmul.bf16.vlgmr.msra.gmra.mxu2 %v15392_v27  ;;  %2648 = vmatpush.bf16.msrb.mxu1 %v11337_v0 }
 0x14f   :  { %v1857_v19 = vpop.f32.mrf.mxu0 }
 0x150   :  { %v1409_v9 = vpop.f32.mrf.mxu3  ;;  %v1858_v62 = vadd.f32 %v1857_v19, %v15427_v25  ;;  %v11284_v25 = vld [vmem:[#allocation6 + $0x480] sm:$0xf]  ;;  %v13820_v19 = vld [vmem:[#allocation6 + $0x3f4] sm:$0xf] }
 0x151   :  { %v1431_v3 = vpop.f32.mrf.mxu2  ;;  %v15609_v10 = vadd.f32 %v1409_v9, %v15497_v58  ;;  %v13839_v58 = vld [vmem:[#allocation6 + $0x488] sm:$0xf0] }
 0x152   :  { %v15604_v50 = vadd.f32 %v1431_v3, %v15543_v31  ;;  %v1886_v36 = vpop.f32.mrf.mxu1  ;;  %v13842_v31 = vld [vmem:[#allocation6 + $0x4a0] sm:$0xf0]  ;;  %11183 = vmatmul.msk.bf16.gmra.mxu0 %vm199_vm0, %v15461_v40  ;;  %2649 = vmatpush.bf16.msrb.mxu1 %v11325_v29  ;;  %v11285_v57 = vor.u32 %v13839_v58, %v11284_v25  ;;  %v694_v40 = vrot.slane %v15292_v5, 2  ;;  %v11310_v29 = vld [vmem:[#allocation6 + $0x4bc] sm:$0xf0] }
 0x153   :  { %v11297_v51 = vor.u32 %v13842_v31, %v11296_v49  ;;  %v15612_v3 = vadd.f32 %v1886_v36, %v1858_v62  ;;  %v700_v62 = vrot.slane %v15331_v17, 2  ;;  %v11217_v36 = vor.u32 %v13820_v19, %v11214_v30  ;;  %v13844_v31 = vld [vmem:[#allocation6 + $0x4b4] sm:$0xf] }
 0x154   :  { %v695_v49 = vsel %vm666_vm7, %v688_v18, %v694_v40  ;;  %v11202_v18 = vld [vmem:[#allocation6 + $0x3e4] sm:$0xf0] }
 0x155   :  { %11428 = vmatmul.msk.bf16.gmra.mxu1 %vm15599_vm9, %v15606_v7  ;;  %2035 = vmatmul.bf16.gmra.mxu3 %v15420_v43 }
 0x156   :  { %2564 = vmatpush.bf16.msrb.mxu3 %v11297_v51  ;;  %2621 = vmatpush.bf16.msra.mxu0 %v11217_v36  ;;  %v11313_v51 = vor.u32 %v13844_v31, %v11310_v29  ;;  %v633_v31 = vld [vmem:[#allocation2 + $0x20] sm:$0xfc] }
 0x157   :  { %v1859_v9 = vpop.f32.mrf.mxu0 }
 0x158   :  { %v1412_v56 = vpop.f32.mrf.mxu3  ;;  %v1860_v43 = vadd.f32 %v1859_v9, %v15433_v26  ;;  %v701_v26 = vsel %vm666_vm7, %v694_v40, %v700_v62  ;;  %2650 = vmatpush.bf16.msrb.mxu1 %v11313_v51  ;;  %v13841_v9 = vld [vmem:[#allocation6 + $0x49c] sm:$0xf]  ;;  %v11286_v51 = vld [vmem:[#allocation6 + $0x48c] sm:$0xf0] }
 0x159   :  { %v1433_v46 = vpop.f32.mrf.mxu2  ;;  %v15625_v8 = vadd.f32 %v1412_v56, %v15508_v1  ;;  %v13817_v56 = vld [vmem:[#allocation6 + $0x3dc] sm:$0xf] }
 0x15a   :  { %v15621_v0 = vadd.f32 %v1433_v46, %v15561_v45  ;;  %v1888_v44 = vpop.f32.mrf.mxu1  ;;  %2565 = vmatpush.bf16.msrb.mxu3 %v11285_v57  ;;  %v11380_v45 = vld [vmem:[#allocation6 + $0x540] sm:$0xf]  ;;  %v15641_v57 = vpack.c.bf16 %v701_v26, %v695_v49  ;;  %v11190_v49 = vld [vmem:[#allocation6 + $0x3cc] sm:$0xf0]  ;;  %v13838_v26 = vld [vmem:[#allocation6 + $0x484] sm:$0xf] }
 0x15b   :  { %v15629_v53 = vadd.f32 %v1888_v44, %v1860_v43  ;;  %v11381_v1 = vor.u32 %v13863_v13, %v11380_v45  ;;  %v11205_v43 = vor.u32 %v13817_v56, %v11202_v18  ;;  %v11298_v44 = vld [vmem:[#allocation6 + $0x4a4] sm:$0xf0]  ;;  %v11289_v56 = vor.u32 %v13838_v26, %v11286_v51  ;;  %v11418_v18 = vld [vmem:[#allocation6 + $0x594] sm:$0xf0] }
 0x15c   :  { %v11301_v36 = vor.u32 %v13841_v9, %v11298_v44  ;;  %v638_v13 = vld [vmem:[#allocation2 + $0xd8] sm:$0x3]  ;;  %v671_v44 = vrot.slane %v15104_v39, 2 }
 0x15d   :  { %2594 = vmatpush.bf16.msrb.mxu2 %v11381_v1  ;;  %2622 = vmatpush.bf16.msra.mxu0 %v11205_v43 }
 0x15e   :  { %2059 = vmatmul.bf16.gmra.mxu2 %v15405_v16  ;;  %2651 = vmatpush.bf16.msrb.mxu1 %v11301_v36 }
 0x15f   :  { %v1862_v46 = vpop.f32.mrf.mxu0 }
 0x160   :  { %v1414_v16 = vpop.f32.mrf.mxu3  ;;  %v1863_v40 = vadd.f32 %v1862_v46, %v15446_v34  ;;  %v13814_v34 = vld [vmem:[#allocation6 + $0x3c4] sm:$0xf] }
 0x161   :  { %v1436_v25 = vpop.f32.mrf.mxu2  ;;  %v15644_v19 = vadd.f32 %v1414_v16, %v15522_v37  ;;  %v635_v37 = vld [vmem:[#allocation2 + $0xc0] sm:$0xff]  ;;  %v11193_v29 = vor.u32 %v13814_v34, %v11190_v49  ;;  %v670_v34 = vrot.slane %v633_v31, 2  ;;  %v13837_v49 = vld [vmem:[#allocation6 + $0x478] sm:$0xf0] }
 0x162   :  { %v15639_v58 = vadd.f32 %v1436_v25, %v15579_v47  ;;  %v1891_v30 = vpop.f32.mrf.mxu1  ;;  %11184 = vmatmul.msk.bf16.gmra.mxu0 %vm199_vm0, %v15483_v35  ;;  %v212_v47 = vadd.s32 56, %v15055_v2  ;;  %v706_v46 = vrot.slane %v635_v37, 2  ;;  %2652 = vmatpush.bf16.msrb.mxu1 %v11289_v56 }
 0x163   :  { %v15647_v45 = vadd.f32 %v1891_v30, %v1863_v40  ;;  %v712_v30 = vrot.slane %v638_v13, 2  ;;  %2623 = vmatpush.bf16.msra.mxu0 %v11193_v29 }
 0x164   :  { %v15663_v36 = vand.u32 31, %v212_v47  ;;  %v672_v47 = vsel %vm666_vm7, %v670_v34, %v671_v44 }
 0x165   :  { %2547 = vmatmul.bf16.gmra.mxu1 %v15641_v57  ;;  %2040 = vmatmul.bf16.gmra.mxu3 %v15437_v61  ;;  %v13871_v61 = vld [vmem:[#allocation6 + $0x58c] sm:$0xf]  ;;  %v713_v13 = vsel %vm666_vm7, %v706_v46, %v712_v30  ;;  %v11424_v30 = vld [vmem:[#allocation6 + $0x590] sm:$0xf] }
 0x166   :  { %v11421_v43 = vor.u32 %v13871_v61, %v11418_v18  ;;  %19997 = vst [vmem:[#allocation49_spill] sm:$0xff] %v15663_v36  ;;  %vm300_vm10 = vcmp.lt.s32.totalorder %v15663_v36, 30  ;;  %v13861_v18 = vld [vmem:[#allocation6 + $0x538] sm:$0xf0] }
 0x167   :  { %v1864_v16 = vpop.f32.mrf.mxu0  ;;  %vm15689_vm11 = vmpackc.low %vm300_vm10, %vm14946_vm3 }
 0x168   :  { %v1417_v35 = vpop.f32.mrf.mxu3  ;;  %v1865_v9 = vadd.f32 %v1864_v16, %v15453_v55  ;;  %2678 = vmatpush.bf16.msra.mxu3 %v11421_v43  ;;  %v707_v55 = vsel %vm666_vm7, %v700_v62, %v706_v46  ;;  %v13873_v43 = vld [vmem:[#allocation6 + $0x598] sm:$0xf0] }
 0x169   :  { %v1438_v1 = vpop.f32.mrf.mxu2  ;;  %v15658_v2 = vadd.f32 %v1417_v35, %v15530_v32  ;;  %v11280_v32 = vld [vmem:[#allocation6 + $0x470] sm:$0xf]  ;;  %v15680_v35 = vpack.c.bf16 %v713_v13, %v707_v55  ;;  %v11425_v34 = vor.u32 %v13873_v43, %v11424_v30  ;;  %v634_v30 = vld [vmem:[#allocation2 + $0x28] sm:$0xfc] }
 0x16a   :  { %v15655_v25 = vadd.f32 %v1438_v1, %v15609_v10  ;;  %v1893_v40 = vpop.f32.mrf.mxu1  ;;  %v678_v10 = vrot.slane %v15125_v63, 2  ;;  %v11281_v26 = vor.u32 %v13837_v49, %v11280_v32 }
 0x16b   :  { %v15665_v37 = vadd.f32 %v1893_v40, %v1865_v9  ;;  %v11268_v9 = vld [vmem:[#allocation6 + $0x458] sm:$0xf]  ;;  %2765 = vmatpush.bf16.msra.mxu1 %v11425_v34 }
 0x16c   :  { %19996 = vst [vmem:[#allocation48_spill] sm:$0xff] %v15655_v25  ;;  %v679_v1 = vsel %vm666_vm7, %v671_v44, %v678_v10  ;;  %2703 = vmatpush.bf16.msra.mxu2 %v11281_v26 }
 0x16d   :  { %v15693_v61 = vpack.c.bf16 %v679_v1, %v672_v47  ;;  %v684_v1 = vrot.slane %v15134_v6, 2 }
 0x16e   :  { %2064 = vmatmul.bf16.gmra.mxu2 %v15424_v60 }
 0x16f   :  { %v1867_v51 = vpop.f32.mrf.mxu0 }
 0x170   :  { %v1419_v29 = vpop.f32.mrf.mxu3  ;;  %v1868_v16 = vadd.f32 %v1867_v51, %v15464_v52  ;;  %v13834_v52 = vld [vmem:[#allocation6 + $0x460] sm:$0xf0]  ;;  %v11406_v51 = vld [vmem:[#allocation6 + $0x57c] sm:$0xf0] }
 0x171   :  { %v1441_v31 = vpop.f32.mrf.mxu2  ;;  %v15683_v62 = vadd.f32 %v1419_v29, %v15547_v41  ;;  %v11269_v44 = vor.u32 %v13834_v52, %v11268_v9  ;;  %v13868_v29 = vld [vmem:[#allocation6 + $0x574] sm:$0xf]  ;;  %v11256_v9 = vld [vmem:[#allocation6 + $0x440] sm:$0xf] }
 0x172   :  { %v15678_v60 = vadd.f32 %v1441_v31, %v15625_v8  ;;  %v1896_v46 = vpop.f32.mrf.mxu1  ;;  %v11376_v8 = vld [vmem:[#allocation6 + $0x530] sm:$0xf]  ;;  %11185 = vmatmul.msk.bf16.gmra.mxu0 %vm199_vm0, %v15510_v42  ;;  %v690_v31 = vrot.slane %v15209_v22, 2 }
 0x173   :  { %v15695_v40 = vadd.f32 %v1896_v46, %v1868_v16  ;;  %v11377_v41 = vor.u32 %v13861_v18, %v11376_v8  ;;  %2704 = vmatpush.bf16.msra.mxu2 %v11269_v44  ;;  %v11364_v16 = vld [vmem:[#allocation6 + $0x518] sm:$0xf]  ;;  %v11409_v8 = vor.u32 %v13868_v29, %v11406_v51  ;;  %v14594_v44 = vld [vmem:[#allocation2 + $0x40] sm:$0xff]  ;;  %v673_v29 = vrot.slane %v634_v30, 2  ;;  %v11352_v51 = vld [vmem:[#allocation6 + $0x500] sm:$0xf] }
 0x174   :  { %v691_v52 = vsel %vm666_vm7, %v684_v1, %v690_v31  ;;  %v674_v34 = vrot.slane %v14594_v44, 2 }
 0x175   :  { %11431 = vmatmul.msk.bf16.gmra.mxu1 %vm15689_vm11, %v15680_v35  ;;  %2566 = vmatmul.bf16.vlgmr.msrb.gmra.mxu3 %v15693_v61 }
 0x176   :  { %2732 = vmatpush.bf16.msrb.mxu0 %v11377_v41  ;;  %2679 = vmatpush.bf16.msra.mxu3 %v11409_v8  ;;  %v11244_v8 = vld [vmem:[#allocation6 + $0x428] sm:$0xf] }
 0x177   :  { %v1869_v55 = vpop.f32.mrf.mxu0 }
 0x178   :  { %v1910_v42 = vpop.f32.mrf.mxu3  ;;  %v1870_v26 = vadd.f32 %v1869_v55, %v15474_v28  ;;  %v685_v28 = vsel %vm666_vm7, %v678_v10, %v684_v1  ;;  %v15724_v55 = vld [vmem:[#allocation2 + $0x58] sm:$0xff] }
 0x179   :  { %v1443_v32 = vpop.f32.mrf.mxu2  ;;  %v15707_v13 = vadd.f32 %v1910_v42, %v15567_v15  ;;  %v13831_v15 = vld [vmem:[#allocation6 + $0x448] sm:$0xf0]  ;;  %v15732_v1 = vpack.c.bf16 %v691_v52, %v685_v28 }
 0x17a   :  { %v15704_v49 = vadd.f32 %v1443_v32, %v15644_v19  ;;  %v1898_v47 = vpop.f32.mrf.mxu1  ;;  %v13858_v19 = vld [vmem:[#allocation6 + $0x520] sm:$0xf0]  ;;  %v11257_v41 = vor.u32 %v13831_v15, %v11256_v9 }
 0x17b   :  { %v15712_v46 = vadd.f32 %v1898_v47, %v1870_v26  ;;  %v11365_v18 = vor.u32 %v13858_v19, %v11364_v16  ;;  %v19909_v26 = vrot.slane %v15724_v55, 2  ;;  %v13855_v16 = vld [vmem:[#allocation6 + $0x508] sm:$0xf0]  ;;  %v13828_v19 = vld [vmem:[#allocation6 + $0x430] sm:$0xf0] }
 0x17c   :  { %20000 = vst [vmem:[#allocation50_spill] sm:$0xff] %v15704_v49  ;;  %2705 = vmatpush.bf16.msra.mxu2 %v11257_v41  ;;  %v13870_v9 = vld [vmem:[#allocation6 + $0x580] sm:$0xf0]  ;;  %v11245_v15 = vor.u32 %v13828_v19, %v11244_v8  ;;  %v11394_v19 = vld [vmem:[#allocation6 + $0x564] sm:$0xf0] }
 0x17d   :  { %2733 = vmatpush.bf16.msrb.mxu0 %v11365_v18  ;;  %v11412_v18 = vld [vmem:[#allocation6 + $0x578] sm:$0xf]  ;;  %v681_v28 = vsel %vm666_vm7, %v674_v34, %v19909_v26  ;;  %v13849_v49 = vld [vmem:[#allocation6 + $0x4d8] sm:$0xf0] }
 0x17e   :  { %2069 = vmatmul.bf16.gmra.mxu2 %v15441_v14  ;;  %v11413_v41 = vor.u32 %v13870_v9, %v11412_v18  ;;  %v11340_v18 = vld [vmem:[#allocation6 + $0x4e8] sm:$0xf] }
 0x17f   :  { %v1968_v42 = vpop.f32.mrf.mxu0 }
 0x180   :  { %v1912_v32 = vpop.f32.mrf.mxu3  ;;  %2706 = vmatpush.bf16.msra.mxu2 %v11245_v15  ;;  %2766 = vmatpush.bf16.msra.mxu1 %v11413_v41  ;;  %v11232_v41 = vld [vmem:[#allocation6 + $0x410] sm:$0xf] }
 0x181   :  { %v1446_v43 = vpop.f32.mrf.mxu2  ;;  %v15728_v10 = vadd.f32 %v1912_v32, %v15586_v54  ;;  %v675_v54 = vsel %vm666_vm7, %v673_v29, %v674_v34  ;;  %v20002_v34 = vld [vmem:[#allocation43_spill] sm:$0xff] }
 0x182   :  { %v15722_v14 = vadd.f32 %v1446_v43, %v15658_v2  ;;  %v15730_v47 = vpop.f32.mrf.mxu1  ;;  %2624 = vmatmul.bf16.vlgmr.msra.gmra.mxu0 %v15558_v38  ;;  %v11353_v2 = vor.u32 %v13855_v16, %v11352_v51  ;;  %v15746_v43 = vpack.c.bf16 %v681_v28, %v675_v54  ;;  %v696_v16 = vrot.slane %v15212_v59, 2  ;;  %v13825_v54 = vld [vmem:[#allocation6 + $0x418] sm:$0xf0]  ;;  %v11382_v59 = vld [vmem:[#allocation6 + $0x54c] sm:$0xf0] }
 0x183   :  { %v19910_v8 = vrot.slane %v20002_v34, 2 }
 0x184   :  { %2734 = vmatpush.bf16.msrb.mxu0 %v11353_v2  ;;  %v13865_v2 = vld [vmem:[#allocation6 + $0x55c] sm:$0xf]  ;;  %v697_v28 = vsel %vm666_vm7, %v690_v31, %v696_v16 }
 0x185   :  { %2653 = vmatmul.bf16.vlgmr.msrb.gmra.mxu1 %v15693_v61  ;;  %11434 = vmatmul.msk.bf16.gmra.mxu3 %vm15599_vm9, %v15732_v1  ;;  %v11397_v9 = vor.u32 %v13865_v2, %v11394_v19  ;;  %v15765_v2 = vld [vmem:[#allocation2 + $0x88] sm:$0xff] }
 0x186   :  { %v19911_v19 = vrot.slane %v15765_v2, 2 }
 0x187   :  { %v15748_v32 = vpop.f32.mrf.mxu0  ;;  %2680 = vmatpush.bf16.msra.mxu3 %v11397_v9 }
 0x188   :  { %v1915_v44 = vpop.f32.mrf.mxu3 }
 0x189   :  { %v1448_v52 = vpop.f32.mrf.mxu2  ;;  %v15751_v51 = vadd.f32 %v1915_v44, %v15612_v3  ;;  %v11233_v3 = vor.u32 %v13825_v54, %v11232_v41  ;;  %v14596_v44 = vld [vmem:[#allocation2 + $0x70] sm:$0xff] }
 0x18a   :  { %v15744_v30 = vadd.f32 %v1448_v52, %v15683_v62  ;;  %v15753_v29 = vpop.f32.mrf.mxu1  ;;  %v13852_v62 = vld [vmem:[#allocation6 + $0x4f0] sm:$0xf0]  ;;  %v703_v52 = vsel %vm666_vm7, %v696_v16, %v19910_v8  ;;  %v686_v26 = vrot.slane %v14596_v44, 2 }
 0x18b   :  { %v11341_v15 = vor.u32 %v13852_v62, %v11340_v18  ;;  %2707 = vmatpush.bf16.msra.mxu2 %v11233_v3  ;;  %v20003_v62 = vld [vmem:[#allocation44_spill] sm:$0xff]  ;;  %v15776_v16 = vpack.c.bf16 %v703_v52, %v697_v28 }
 0x18c   :  { %20001 = vst [vmem:[#allocation51_spill] sm:$0xff] %v15744_v30  ;;  %v693_v8 = vsel %vm666_vm7, %v686_v26, %v19911_v19  ;;  %v11220_v3 = vld [vmem:[#allocation6 + $0x3f8] sm:$0xf] }
 0x18d   :  { %2735 = vmatpush.bf16.msrb.mxu0 %v11341_v15  ;;  %v11328_v15 = vld [vmem:[#allocation6 + $0x4d0] sm:$0xf] }
 0x18e   :  { %11438 = vmatmul.msk.bf16.vlgmr.msrb.gmra.mxu2 %vm199_vm0, %v15746_v43 }
 0x18f   :  { %v15769_v54 = vpop.f32.mrf.mxu0 }
 0x190   :  { %v1917_v41 = vpop.f32.mrf.mxu3 }
 0x191   :  { %v1939_v18 = vpop.f32.mrf.mxu2  ;;  %v15772_v31 = vadd.f32 %v1917_v41, %v15629_v53  ;;  %v11400_v53 = vld [vmem:[#allocation6 + $0x560] sm:$0xf]  ;;  %v13867_v41 = vld [vmem:[#allocation6 + $0x568] sm:$0xf0] }
 0x192   :  { %v1940_v9 = vadd.f32 %v1939_v18, %v20003_v62  ;;  %v15774_v30 = vpop.f32.mrf.mxu1  ;;  %11444 = vmatmul.msk.bf16.gmra.mxu0 %vm15599_vm9, %v15606_v7  ;;  %v11329_v18 = vor.u32 %v13849_v49, %v11328_v15  ;;  %v13822_v62 = vld [vmem:[#allocation6 + $0x400] sm:$0xf0]  ;;  %v11401_v28 = vor.u32 %v13867_v41, %v11400_v53  ;;  %v753_v49 = vsel %vm296_vm8, %v693_v8, 0.0 }
 0x193   :  { %v13862_v15 = vld [vmem:[#allocation6 + $0x544] sm:$0xf] }
 0x194   :  { %v1969_v44 = vadd.f32 %v1968_v42, %v1940_v9  ;;  %v11221_v42 = vor.u32 %v13822_v62, %v11220_v3  ;;  %v20004_v9 = vrot.slane %v15724_v55, 2  ;;  %2736 = vmatpush.bf16.msrb.mxu0 %v11329_v18  ;;  %2767 = vmatpush.bf16.msra.mxu1 %v11401_v28  ;;  %v636_v3 = vld [vmem:[#allocation2 + $0xc8] sm:$0xff]  ;;  %v639_v62 = vld [vmem:[#allocation2 + $0xe0] sm:$0x3]  ;;  %v11385_v53 = vor.u32 %v13862_v15, %v11382_v59  ;;  %v11208_v59 = vld [vmem:[#allocation6 + $0x3e0] sm:$0xf] }
 0x195   :  { %11450 = vmatmul.msk.bf16.gmra.mxu1 %vm15599_vm9, %v15732_v1  ;;  %2576 = vmatmul.bf16.gmra.mxu3 %v15776_v16  ;;  %v708_v18 = vrot.slane %v636_v3, 2  ;;  %v11316_v28 = vld [vmem:[#allocation6 + $0x4b8] sm:$0xf] }
 0x196   :  { %v15788_v52 = vadd.f32 %v15730_v47, %v1969_v44  ;;  %v687_v19 = vsel %vm666_vm7, %v20004_v9, %v686_v26  ;;  %2708 = vmatpush.bf16.msra.mxu2 %v11221_v42  ;;  %v20005_v47 = vld [vmem:[#allocation45_spill] sm:$0xff]  ;;  %2681 = vmatpush.bf16.msra.mxu3 %v11385_v53  ;;  %v714_v42 = vrot.slane %v639_v62, 2  ;;  %v11317_v6 = vor.u32 %v13846_v24, %v11316_v28 }
 0x197   :  { %v15797_v41 = vpack.c.bf16 %v753_v49, %v687_v19  ;;  %v1975_v55 = vpop.f32.mrf.mxu0 }
 0x198   :  { %v1920_v22 = vpop.f32.mrf.mxu3  ;;  %2737 = vmatpush.bf16.msrb.mxu0 %v11317_v6  ;;  %v14598_v6 = vld [vmem:[#allocation2 + $0xa0] sm:$0xff] }
 0x199   :  { %v1941_v25 = vpop.f32.mrf.mxu2  ;;  %v15800_v26 = vadd.f32 %v1920_v22, %v15647_v45  ;;  %v20006_v45 = vrot.slane %v20002_v34, 2 }
 0x19a   :  { %v1942_v44 = vadd.f32 %v1941_v25, %v20005_v47  ;;  %v2004_v9 = vpop.f32.mrf.mxu1  ;;  %v13819_v25 = vld [vmem:[#allocation6 + $0x3e8] sm:$0xf0] }
 0x19b   :  { %v11209_v22 = vor.u32 %v13819_v25, %v11208_v59  ;;  %v709_v49 = vsel %vm666_vm7, %v20006_v45, %v708_v18  ;;  %v11304_v25 = vld [vmem:[#allocation6 + $0x4a0] sm:$0xf]  ;;  %v11388_v45 = vld [vmem:[#allocation6 + $0x548] sm:$0xf] }
 0x19c   :  { %v1971_v8 = vadd.f32 %v15748_v32, %v1942_v44  ;;  %v715_v32 = vsel %vm666_vm7, %v708_v18, %v714_v42  ;;  %v698_v44 = vrot.slane %v14598_v6, 2  ;;  %v13843_v18 = vld [vmem:[#allocation6 + $0x4a8] sm:$0xf0]  ;;  %v11196_v42 = vld [vmem:[#allocation6 + $0x3c8] sm:$0xf] }
 0x19d   :  { %2709 = vmatpush.bf16.msra.mxu2 %v11209_v22  ;;  %v13816_v22 = vld [vmem:[#allocation6 + $0x3d0] sm:$0xf0]  ;;  %v11292_v6 = vld [vmem:[#allocation6 + $0x488] sm:$0xf] }
 0x19e   :  { %11439 = vmatmul.msk.bf16.gmra.mxu2 %vm199_vm0, %v15797_v41  ;;  %v15806_v19 = vadd.f32 %v15753_v29, %v1971_v8  ;;  %v15816_v29 = vpack.c.bf16 %v715_v32, %v709_v49  ;;  %v14599_v8 = vld [vmem:[#allocation2 + $0xb8] sm:$0xff] }
 0x19f   :  { %v1978_v62 = vpop.f32.mrf.mxu0  ;;  %v704_v28 = vrot.slane %v14599_v8, 2  ;;  %v13840_v8 = vld [vmem:[#allocation6 + $0x490] sm:$0xf0] }
 0x1a0   :  { %v1922_v3 = vpop.f32.mrf.mxu3 }
 0x1a1   :  { %v1944_v15 = vpop.f32.mrf.mxu2  ;;  %v15814_v53 = vadd.f32 %v1922_v3, %v15665_v37  ;;  %v11197_v37 = vor.u32 %v13816_v22, %v11196_v42  ;;  %v705_v3 = vsel %vm666_vm7, %v698_v44, %v704_v28 }
 0x1a2   :  { %v1945_v24 = vadd.f32 %v1944_v15, %v15528_v4  ;;  %v2007_v47 = vpop.f32.mrf.mxu1  ;;  %2634 = vmatmul.bf16.gmra.mxu0 %v15641_v57  ;;  %v11305_v4 = vor.u32 %v13843_v18, %v11304_v25  ;;  %v13864_v15 = vld [vmem:[#allocation6 + $0x550] sm:$0xf0]  ;;  %v11293_v18 = vor.u32 %v13840_v8, %v11292_v6 }
 0x1a3   :  { %v11389_v49 = vor.u32 %v13864_v15, %v11388_v45  ;;  %2710 = vmatpush.bf16.msra.mxu2 %v11197_v37 }
 0x1a4   :  { %v1974_v59 = vadd.f32 %v15769_v54, %v1945_v24  ;;  %v20007_v54 = vrot.slane %v15765_v2, 2  ;;  %2738 = vmatpush.bf16.msrb.mxu0 %v11305_v4  ;;  %v640_v4 = vld [vmem:[#allocation2 + $0xe8] sm:$0x3] }
 0x1a5   :  { %2663 = vmatmul.bf16.gmra.mxu1 %v15776_v16  ;;  %11437 = vmatmul.msk.bf16.gmra.mxu3 %vm15689_vm11, %v15816_v29 }
 0x1a6   :  { %v15822_v32 = vadd.f32 %v15774_v30, %v1974_v59  ;;  %v699_v24 = vsel %vm666_vm7, %v20007_v54, %v698_v44  ;;  %2768 = vmatpush.bf16.msra.mxu1 %v11389_v49  ;;  %v637_v44 = vld [vmem:[#allocation2 + $0xd0] sm:$0xff]  ;;  %v716_v54 = vrot.slane %v640_v4, 2 }
 0x1a7   :  { %v15832_v59 = vpack.c.bf16 %v705_v3, %v699_v24  ;;  %v1980_v22 = vpop.f32.mrf.mxu0  ;;  %v710_v49 = vrot.slane %v637_v44, 2 }
 0x1a8   :  { %v1925_v42 = vpop.f32.mrf.mxu3  ;;  %2739 = vmatpush.bf16.msrb.mxu0 %v11293_v18  ;;  %v20008_v18 = vld [vmem:[#allocation46_spill] sm:$0xff] }
 0x1a9   :  { %v1946_v25 = vpop.f32.mrf.mxu2  ;;  %v15835_v45 = vadd.f32 %v1925_v42, %v15695_v40 }
 0x1aa   :  { %v1947_v30 = vadd.f32 %v1946_v25, %v15545_v33  ;;  %v2009_v2 = vpop.f32.mrf.mxu1 }
 0x1ac   :  { %v1976_v15 = vadd.f32 %v1975_v55, %v1947_v30  ;;  %v717_v55 = vsel %vm666_vm7, %v710_v49, %v716_v54 }
 0x1ae   :  { %11440 = vmatmul.msk.bf16.gmra.mxu2 %vm199_vm0, %v15832_v59  ;;  %v15839_v37 = vadd.f32 %v2004_v9, %v1976_v15 }
 0x1af   :  { %v1983_v6 = vpop.f32.mrf.mxu0 }
 0x1b0   :  { %v1927_v3 = vpop.f32.mrf.mxu3 }
 0x1b1   :  { %v1949_v33 = vpop.f32.mrf.mxu2  ;;  %v15843_v40 = vadd.f32 %v1927_v3, %v15712_v46  ;;  %v765_v46 = vsel %vm300_vm10, %v717_v55, 0.0 }
 0x1b2   :  { %v1950_v24 = vadd.f32 %v1949_v33, %v15533_v21  ;;  %v2012_v8 = vpop.f32.mrf.mxu1  ;;  %11447 = vmatmul.msk.bf16.gmra.mxu0 %vm15689_vm11, %v15680_v35  ;;  %v711_v21 = vsel %vm666_vm7, %v704_v28, %v710_v49 }
 0x1b3   :  { %v15860_v42 = vpack.c.bf16 %v765_v46, %v711_v21 }
 0x1b4   :  { %v1979_v25 = vadd.f32 %v1978_v62, %v1950_v24 }
 0x1b5   :  { %11453 = vmatmul.msk.bf16.gmra.mxu1 %vm15689_vm11, %v15816_v29  ;;  %11454 = vmatmul.msk.bf16.vlgmr.msra.gmra.mxu3 %vm199_vm0, %v15746_v43 }
 0x1b6   :  { %v15852_v9 = vadd.f32 %v2007_v47, %v1979_v25 }
 0x1b7   :  { %v1985_v44 = vpop.f32.mrf.mxu0 }
 0x1b8   :  { %v2026_v15 = vpop.f32.mrf.mxu3 }
 0x1b9   :  { %v1951_v62 = vpop.f32.mrf.mxu2  ;;  %v2027_v4 = vadd.f32 %v2026_v15, %v15604_v50 }
 0x1ba   :  { %v1952_v30 = vadd.f32 %v1951_v62, %v20008_v18  ;;  %v2014_v54 = vpop.f32.mrf.mxu1 }
 0x1bc   :  { %v1981_v47 = vadd.f32 %v1980_v22, %v1952_v30 }
 0x1be   :  { %11441 = vmatmul.msk.bf16.gmra.mxu2 %vm199_vm0, %v15860_v42  ;;  %v15865_v28 = vadd.f32 %v2009_v2, %v1981_v47 }
 0x1bf   :  { %v2084_v3 = vpop.f32.mrf.mxu0 }
 0x1c0   :  { %v15868_v24 = vpop.f32.mrf.mxu3 }
 0x1c1   :  { %v1954_v49 = vpop.f32.mrf.mxu2 }
 0x1c2   :  { %v1955_v33 = vadd.f32 %v1954_v49, %v15565_v23  ;;  %v15870_v25 = vpop.f32.mrf.mxu1  ;;  %2740 = vmatmul.bf16.vlgmr.msrb.gmra.mxu0 %v15693_v61 }
 0x1c4   :  { %v1984_v55 = vadd.f32 %v1983_v6, %v1955_v33 }
 0x1c5   :  { %11470 = vmatmul.msk.bf16.vlgmr.msra.gmra.mxu1 %vm199_vm0, %v15746_v43  ;;  %11455 = vmatmul.msk.bf16.gmra.mxu3 %vm199_vm0, %v15797_v41 }
 0x1c6   :  { %v15875_v50 = vadd.f32 %v2012_v8, %v1984_v55 }
 0x1c7   :  { %v15880_v21 = vpop.f32.mrf.mxu0 }
 0x1c8   :  { %v2031_v23 = vpop.f32.mrf.mxu3 }
 0x1c9   :  { %v1956_v22 = vpop.f32.mrf.mxu2  ;;  %v2032_v46 = vadd.f32 %v2031_v23, %v15639_v58 }
 0x1ca   :  { %v1957_v2 = vadd.f32 %v1956_v22, %v15584_v48  ;;  %v15883_v62 = vpop.f32.mrf.mxu1 }
 0x1cc   :  { %v1986_v6 = vadd.f32 %v1985_v44, %v1957_v2 }
 0x1ce   :  { %2711 = vmatmul.bf16.vlgmr.msra.gmra.mxu2 %v15558_v38  ;;  %v15886_v61 = vadd.f32 %v2014_v54, %v1986_v6 }
 0x1cf   :  { %v2089_v30 = vpop.f32.mrf.mxu0 }
 0x1d0   :  { %20009 = vst [vmem:[#allocation44_spill] sm:$0xff] %v15886_v61  ;;  %v15888_v18 = vpop.f32.mrf.mxu3 }
 0x1d1   :  { %v2055_v43 = vpop.f32.mrf.mxu2 }
 0x1d2   :  { %v2056_v8 = vadd.f32 %v2055_v43, %v2027_v4  ;;  %v15890_v15 = vpop.f32.mrf.mxu1  ;;  %11466 = vmatmul.msk.bf16.gmra.mxu0 %vm15599_vm9, %v15732_v1 }
 0x1d4   :  { %v15892_v48 = vadd.f32 %v2084_v3, %v2056_v8 }
 0x1d5   :  { %11471 = vmatmul.msk.bf16.gmra.mxu1 %vm199_vm0, %v15797_v41  ;;  %11456 = vmatmul.msk.bf16.gmra.mxu3 %vm199_vm0, %v15832_v59 }
 0x1d7   :  { %v15903_v44 = vpop.f32.mrf.mxu0 }
 0x1d8   :  { %v2036_v58 = vpop.f32.mrf.mxu3 }
 0x1d9   :  { %v15901_v38 = vpop.f32.mrf.mxu2  ;;  %v2037_v4 = vadd.f32 %v2036_v58, %v15678_v60 }
 0x1da   :  { %v15906_v54 = vpop.f32.mrf.mxu1 }
 0x1de   :  { %11460 = vmatmul.msk.bf16.gmra.mxu2 %vm15599_vm9, %v15606_v7 }
 0x1df   :  { %v2094_v41 = vpop.f32.mrf.mxu0 }
 0x1e0   :  { %v15911_v49 = vpop.f32.mrf.mxu3 }
 0x1e1   :  { %v2060_v1 = vpop.f32.mrf.mxu2  ;;  %20010 = vst [vmem:[#allocation45_spill] sm:$0xff] %v15911_v49 }
 0x1e2   :  { %v2061_v47 = vadd.f32 %v2060_v1, %v2032_v46  ;;  %v15913_v33 = vpop.f32.mrf.mxu1  ;;  %2750 = vmatmul.bf16.gmra.mxu0 %v15776_v16 }
 0x1e4   :  { %v15915_v3 = vadd.f32 %v2089_v30, %v2061_v47 }
 0x1e5   :  { %11472 = vmatmul.msk.bf16.gmra.mxu1 %vm199_vm0, %v15832_v59  ;;  %11457 = vmatmul.msk.bf16.gmra.mxu3 %vm199_vm0, %v15860_v42 }
 0x1e7   :  { %v15924_v7 = vpop.f32.mrf.mxu0 }
 0x1e8   :  { %v2041_v27 = vpop.f32.mrf.mxu3  ;;  %20011 = vst [vmem:[#allocation46_spill] sm:$0xff] %v15924_v7 }
 0x1e9   :  { %v15922_v60 = vpop.f32.mrf.mxu2  ;;  %v2042_v55 = vadd.f32 %v2041_v27, %v15722_v14 }
 0x1ea   :  { %v15927_v22 = vpop.f32.mrf.mxu1 }
 0x1ee   :  { %2721 = vmatmul.bf16.gmra.mxu2 %v15641_v57 }
 0x1ef   :  { %v2099_v46 = vpop.f32.mrf.mxu0 }
 0x1f0   :  { %v15930_v16 = vpop.f32.mrf.mxu3 }
 0x1f1   :  { %v2065_v2 = vpop.f32.mrf.mxu2  ;;  %20012 = vst [vmem:[#allocation52_spill] sm:$0xff] %v15930_v16 }
 0x1f2   :  { %v2066_v23 = vadd.f32 %v2065_v2, %v2037_v4  ;;  %v15932_v59 = vpop.f32.mrf.mxu1  ;;  %11469 = vmatmul.msk.bf16.gmra.mxu0 %vm15689_vm11, %v15816_v29 }
 0x1f4   :  { %v15934_v6 = vadd.f32 %v2094_v41, %v2066_v23 }
 0x1f5   :  { %11473 = vmatmul.msk.bf16.gmra.mxu1 %vm199_vm0, %v15860_v42 }
 0x1f6   :  { %20013 = vst [vmem:[#allocation53_spill] sm:$0xff] %v15934_v6 }
 0x1f7   :  { %v15943_v57 = vpop.f32.mrf.mxu0 }
 0x1f8   :  { %v2567_v43 = vpop.f32.mrf.mxu3  ;;  %20015 = vst [vmem:[#allocation55_spill] sm:$0xff] %v15943_v57 }
 0x1f9   :  { %v15941_v14 = vpop.f32.mrf.mxu2  ;;  %v2568_v23 = vadd.f32 %v2567_v43, %v15870_v25 }
 0x1fa   :  { %20014 = vst [vmem:[#allocation54_spill] sm:$0xff] %v15941_v14  ;;  %v15945_v8 = vpop.f32.mrf.mxu1  ;;  %v14600_v14 = vld [vmem:[#allocation2 + $0x18] sm:$0xff] }
 0x1fe   :  { %11463 = vmatmul.msk.bf16.gmra.mxu2 %vm15689_vm11, %v15680_v35 }
 0x1ff   :  { %v15950_v1 = vpop.f32.mrf.mxu0 }
 0x200   :  { %v2569_v4 = vpop.f32.mrf.mxu3 }
 0x201   :  { %v2070_v30 = vpop.f32.mrf.mxu2 }
 0x202   :  { %v2071_v58 = vadd.f32 %v2070_v30, %v2042_v55  ;;  %v15952_v29 = vpop.f32.mrf.mxu1 }
 0x204   :  { %v15954_v47 = vadd.f32 %v2099_v46, %v2071_v58  ;;  %v15968_v46 = vld [vmem:[#allocation8] sm:$0x7]  ;;  %v2570_v58 = vadd.f32 %v2569_v4, %v15883_v62  ;;  %v20018_v4 = vld [vmem:[#allocation32_spill] sm:$0xff] }
 0x206   :  { %20016 = vst [vmem:[#allocation56_spill] sm:$0xff] %v15954_v47 }
 0x207   :  { %v15958_v27 = vpop.f32.mrf.mxu0 }
 0x208   :  { %v2572_v41 = vpop.f32.mrf.mxu3 }
 0x209   :  { %v15956_v42 = vpop.f32.mrf.mxu2 }
 0x20a   :  { %20017 = vst [vmem:[#allocation57_spill] sm:$0xff] %v15956_v42  ;;  %v15960_v2 = vpop.f32.mrf.mxu1  ;;  %v15972_v42 = vperm.slane %v15968_v46, 0 }
 0x20f   :  { %v15963_v55 = vpop.f32.mrf.mxu0 }
 0x210   :  { %v2574_v36 = vpop.f32.mrf.mxu3 }
 0x211   :  { %v2596_v56 = vpop.f32.mrf.mxu2 }
 0x212   :  { %v2597_v35 = vadd.f32 %v2596_v56, %v2568_v23  ;;  %v15965_v30 = vpop.f32.mrf.mxu1 }
 0x214   :  { %v2790_v57 = vadd.f32 %v2597_v35, %v15707_v13  ;;  %v2573_v35 = vadd.f32 %v2572_v41, %v15890_v15 }
 0x216   :  { %v2822_v23 = vadd.f32 %v15972_v42, %v2790_v57 }
 0x217   :  { %v15974_v25 = vpop.f32.mrf.mxu0 }
 0x218   :  { %v2577_v7 = vpop.f32.mrf.mxu3  ;;  %v15982_v62 = vadd.f32 %v14600_v14, %v2822_v23  ;;  %v2575_v14 = vadd.f32 %v2574_v36, %v15906_v54 }
 0x219   :  { %v2598_v16 = vpop.f32.mrf.mxu2 }
 0x21a   :  { %v2599_v47 = vadd.f32 %v2598_v16, %v2570_v58  ;;  %v15976_v43 = vpop.f32.mrf.mxu1 }
 0x21c   :  { %v2793_v56 = vadd.f32 %v2599_v47, %v15728_v10 }
 0x21e   :  { %v2825_v13 = vadd.f32 %v15972_v42, %v2793_v56 }
 0x21f   :  { %v15989_v34 = vpop.f32.mrf.mxu0 }
 0x220   :  { %v15985_v6 = vadd.f32 %v2825_v13, %v20018_v4  ;;  %v2579_v61 = vpop.f32.mrf.mxu3 }
 0x221   :  { %v2601_v16 = vpop.f32.mrf.mxu2 }
 0x222   :  { %v2870_v58 = vadd.f32 %v15985_v6, %v15982_v62  ;;  %v2602_v49 = vadd.f32 %v2601_v16, %v2573_v35  ;;  %v15991_v57 = vpop.f32.mrf.mxu1 }
 0x224   :  { %v2796_v10 = vadd.f32 %v2602_v49, %v15751_v51  ;;  %v2578_v49 = vadd.f32 %v2577_v7, %v15913_v33 }
 0x226   :  { %v2828_v15 = vadd.f32 %v15972_v42, %v2796_v10 }
 0x227   :  { %v16000_v35 = vpop.f32.mrf.mxu0 }
 0x228   :  { %v15997_v47 = vadd.f32 %v2828_v15, %v15195_v11  ;;  %v2582_v13 = vpop.f32.mrf.mxu3 }
 0x229   :  { %v2603_v41 = vpop.f32.mrf.mxu2 }
 0x22a   :  { %v2871_v23 = vadd.f32 %v2870_v58, %v15997_v47  ;;  %v2604_v56 = vadd.f32 %v2603_v41, %v2575_v14  ;;  %v16002_v4 = vpop.f32.mrf.mxu1 }
 0x22c   :  { %v2799_v16 = vadd.f32 %v2604_v56, %v15772_v31  ;;  %v2580_v56 = vadd.f32 %v2579_v61, %v15927_v22 }
 0x22e   :  { %v2831_v51 = vadd.f32 %v15972_v42, %v2799_v16 }
 0x22f   :  { %v16011_v15 = vpop.f32.mrf.mxu0 }
 0x230   :  { %v16008_v36 = vadd.f32 %v2831_v51, %v15198_v12  ;;  %v2584_v58 = vpop.f32.mrf.mxu3 }
 0x231   :  { %v2606_v11 = vpop.f32.mrf.mxu2 }
 0x232   :  { %v2872_v54 = vadd.f32 %v2871_v23, %v16008_v36  ;;  %v2607_v10 = vadd.f32 %v2606_v11, %v2578_v49  ;;  %v16013_v14 = vpop.f32.mrf.mxu1  ;;  %v2655_v49 = vadd.f32 %v15952_v29, %v15950_v1  ;;  %v16038_v1 = vperm.slane %v15968_v46, 1 }
 0x234   :  { %v2802_v41 = vadd.f32 %v2607_v10, %v15800_v26 }
 0x236   :  { %v2834_v31 = vadd.f32 %v15972_v42, %v2802_v41 }
 0x237   :  { %v16022_v51 = vpop.f32.mrf.mxu0 }
 0x238   :  { %v16019_v33 = vadd.f32 %v2834_v31, %v15289_v20  ;;  %v2683_v23 = vpop.f32.mrf.mxu3  ;;  %v2583_v20 = vadd.f32 %v2582_v13, %v15932_v59  ;;  %v14947_v59 = vmov 64.0  }
 0x239   :  { %v2608_v12 = vpop.f32.mrf.mxu2  ;;  %v2684_v26 = vadd.f32 %v2683_v23, %v2655_v49  ;;  %14388 = vrcp.f32 %v14947_v59  ;;  %v2585_v49 = vadd.f32 %v2584_v58, %v15945_v8 }
 0x23a   :  { %v2873_v7 = vadd.f32 %v2872_v54, %v16019_v33  ;;  %v2609_v16 = vadd.f32 %v2608_v12, %v2580_v56  ;;  %v16027_v10 = vpop.f32.mrf.mxu1  ;;  %v2657_v54 = vadd.f32 %v15960_v2, %v15958_v27 }
 0x23b   :  { %v2791_v31 = vadd.f32 %v2684_v26, %v15788_v52 }
 0x23c   :  { %v2805_v11 = vadd.f32 %v2609_v16, %v15814_v53 }
 0x23d   :  { %v2823_v13 = vadd.f32 %v16038_v1, %v2791_v31 }
 0x23e   :  { %v2837_v61 = vadd.f32 %v15972_v42, %v2805_v11  ;;  %v14601_v11 = vld [vmem:[#allocation2 + $0x20] sm:$0xff] }
 0x23f   :  { %v16052_v26 = vadd.f32 %v14601_v11, %v2823_v13 }
 0x240   :  { %v16032_v22 = vadd.f32 %v2837_v61, %v15292_v5  ;;  %v2685_v56 = vpop.f32.mrf.mxu3  ;;  %v2741_v5 = vpop.f32.mrf.mxu0 }
 0x241   :  { %v2611_v41 = vpop.f32.mrf.mxu2  ;;  %v2686_v12 = vadd.f32 %v2685_v56, %v2657_v54 }
 0x242   :  { %v2874_v53 = vadd.f32 %v2873_v7, %v16032_v22  ;;  %v2612_v29 = vadd.f32 %v2611_v41, %v2583_v20  ;;  %v2770_v23 = vpop.f32.mrf.mxu1 }
 0x243   :  { %v2794_v27 = vadd.f32 %v2686_v12, %v15806_v19  ;;  %v14389_v19 = vpop.eup %14388  ;;  %v14602_v12 = vld [vmem:[#allocation2 + $0xc0] sm:$0xff] }
 0x244   :  { %v2808_v16 = vadd.f32 %v2612_v29, %v15835_v45  ;;  %v2660_v45 = vadd.f32 %v15965_v30, %v15963_v55  ;;  %v2918_v29 = vmul.f32 64.0, %v14389_v19  ;;  %vm2922_vm12 = vweird.f32 %v14389_v19 }
 0x245   :  { %v2826_v52 = vadd.f32 %v16038_v1, %v2794_v27 }
 0x246   :  { %v2840_v2 = vadd.f32 %v15972_v42, %v2808_v16  ;;  %v2919_v59 = vsub.f32 1.0, %v2918_v29 }
 0x247   :  { %v16055_v20 = vadd.f32 %v2826_v52, %v15104_v39 }
 0x248   :  { %v16048_v7 = vadd.f32 %v2840_v2, %v15331_v17  ;;  %v2688_v31 = vpop.f32.mrf.mxu3  ;;  %v2743_v56 = vpop.f32.mrf.mxu0  ;;  %v2920_v11 = vmul.f32 %v14389_v19, %v2919_v59 }
 0x249   :  { %v2613_v61 = vpop.f32.mrf.mxu2  ;;  %v2883_v8 = vadd.f32 %v16055_v20, %v16052_v26  ;;  %v2689_v17 = vadd.f32 %v2688_v31, %v2660_v45 }
 0x24a   :  { %v2875_v54 = vadd.f32 %v2874_v53, %v16048_v7  ;;  %v2614_v41 = vadd.f32 %v2613_v61, %v2585_v49  ;;  %v2662_v53 = vadd.f32 %v15976_v43, %v15974_v25  ;;  %v2772_v2 = vpop.f32.mrf.mxu1  ;;  %v2029_v25 = vadd.f32 %v15868_v24, %v15621_v0 }
 0x24b   :  { %v2797_v55 = vadd.f32 %v2689_v17, %v15822_v32 }
 0x24c   :  { %v2811_v58 = vadd.f32 %v2614_v41, %v15843_v40  ;;  %v2058_v31 = vadd.f32 %v15901_v38, %v2029_v25 }
 0x24d   :  { %v2829_v39 = vadd.f32 %v16038_v1, %v2797_v55 }
 0x24e   :  { %v2843_v30 = vadd.f32 %v15972_v42, %v2811_v58 }
 0x24f   :  { %v16067_v13 = vadd.f32 %v2829_v39, %v15125_v63 }
 0x250   :  { %v2867_v16 = vadd.f32 %v14602_v12, %v2843_v30  ;;  %v2690_v49 = vpop.f32.mrf.mxu3  ;;  %v2746_v17 = vpop.f32.mrf.mxu0 }
 0x251   :  { %v2712_v27 = vpop.f32.mrf.mxu2  ;;  %v2884_v32 = vadd.f32 %v2883_v8, %v16067_v13  ;;  %v2691_v42 = vadd.f32 %v2690_v49, %v2662_v53  ;;  %v2921_v8 = vadd.f32 %v14389_v19, %v2920_v11  ;;  %v20021_v49 = vld [vmem:[#allocation29_spill] sm:$0xff] }
 0x252   :  { %v2876_v40 = vadd.f32 %v2875_v54, %v2867_v16  ;;  %v2742_v52 = vadd.f32 %v2741_v5, %v2712_v27  ;;  %v2665_v5 = vadd.f32 %v15991_v57, %v15989_v34  ;;  %v2775_v39 = vpop.f32.mrf.mxu1  ;;  %v2087_v57 = vadd.f32 %v15880_v21, %v2058_v31 }
 0x253   :  { %v2800_v41 = vadd.f32 %v2691_v42, %v15839_v37  ;;  %v20019_v37 = vld [vmem:[#allocation35_spill] sm:$0xff] }
 0x254   :  { %v2877_v45 = vrot.slane %v2876_v40, 4  ;;  %v2771_v61 = vadd.f32 %v2770_v23, %v2742_v52  ;;  %v16079_v23 = vperm.slane %v15968_v46, 2 }
 0x255   :  { %v2832_v63 = vadd.f32 %v16038_v1, %v2800_v41 }
 0x256   :  { %v2878_v43 = vadd.f32 %v2877_v45, %v2876_v40  ;;  %v2792_v58 = vadd.f32 %v2771_v61, %v15892_v48  ;;  %v16086_v48 = vsel %vm2922_vm12, %v14389_v19, %v2921_v8  ;;  %v20023_v45 = vld [vmem:[#allocation38_spill] sm:$0xff] }
 0x257   :  { %v16082_v29 = vadd.f32 %v2832_v63, %v20019_v37  ;;  %20020 = vst [vmem:[#allocation32_spill] sm:$0xff] %v16086_v48 }
 0x258   :  { %v2879_v54 = vrot.slane %v2878_v43, 2  ;;  %v2693_v30 = vpop.f32.mrf.mxu3  ;;  %v2824_v46 = vadd.f32 %v16079_v23, %v2792_v58  ;;  %v2748_v25 = vpop.f32.mrf.mxu0  ;;  %v20025_v58 = vld [vmem:[#allocation30_spill] sm:$0xff] }
 0x259   :  { %v2714_v0 = vpop.f32.mrf.mxu2  ;;  %v2885_v38 = vadd.f32 %v2884_v32, %v16082_v29  ;;  %v2694_v34 = vadd.f32 %v2693_v30, %v2665_v5  ;;  %v20022_v32 = vunpack.c.l.bf16 %v20021_v49 }
 0x25a   :  { %v2880_v24 = vadd.f32 %v2879_v54, %v2878_v43  ;;  %v2744_v55 = vadd.f32 %v2743_v56, %v2714_v0  ;;  %v2777_v8 = vpop.f32.mrf.mxu1 }
 0x25b   :  { %v2803_v59 = vadd.f32 %v2694_v34, %v15852_v9  ;;  %v16094_v42 = vadd.f32 %v2824_v46, %v20022_v32 }
 0x25c   :  { %v2881_v12 = vrot.slane %v2880_v24, 1  ;;  %v2773_v53 = vadd.f32 %v2772_v2, %v2744_v55 }
 0x25d   :  { %v2835_v52 = vadd.f32 %v16038_v1, %v2803_v59 }
 0x25e   :  { %v2882_v27 = vadd.f32 %v2881_v12, %v2880_v24  ;;  %v2795_v40 = vadd.f32 %v2773_v53, %v2087_v57  ;;  %v2670_v12 = vadd.f32 %v16013_v14, %v16011_v15 }
 0x25f   :  { %v16098_v2 = vadd.f32 %v2835_v52, %v20023_v45 }
 0x260   :  { %v2924_v56 = vmul.f32 %v16086_v48, %v2882_v27  ;;  %v2827_v21 = vadd.f32 %v16079_v23, %v2795_v40  ;;  %v2695_v43 = vpop.f32.mrf.mxu3  ;;  %v2751_v32 = vpop.f32.mrf.mxu0 }
 0x261   :  { %v2717_v19 = vpop.f32.mrf.mxu2  ;;  %v2886_v0 = vadd.f32 %v2885_v38, %v16098_v2 }
 0x262   :  { %v16101_v11 = vsub.f32 %v15982_v62, %v2924_v56  ;;  %v16104_v9 = vsub.f32 %v15985_v6, %v2924_v56  ;;  %v16107_v61 = vsub.f32 %v15997_v47, %v2924_v56  ;;  %v16110_v41 = vsub.f32 %v16008_v36, %v2924_v56  ;;  %v20024_v36 = vld [vmem:[#allocation48_spill] sm:$0xff] }
 0x263   :  { %v16113_v63 = vsub.f32 %v16019_v33, %v2924_v56  ;;  %v16116_v31 = vsub.f32 %v16032_v22, %v2924_v56  ;;  %v16119_v62 = vsub.f32 %v16048_v7, %v2924_v56  ;;  %v16121_v5 = vsub.f32 %v2867_v16, %v2924_v56 }
 0x264   :  { %v2951_v6 = vmul.f32 %v16101_v11, %v16101_v11  ;;  %v2954_v47 = vmul.f32 %v16104_v9, %v16104_v9  ;;  %v2034_v54 = vadd.f32 %v15888_v18, %v20024_v36  ;;  %v2667_v33 = vadd.f32 %v16002_v4, %v16000_v35 }
 0x265   :  { %v2957_v22 = vmul.f32 %v16107_v61, %v16107_v61  ;;  %v20026_v16 = vunpack.c.l.bf16 %v20025_v58  ;;  %v2747_v24 = vadd.f32 %v2746_v17, %v2717_v19  ;;  %v2896_v18 = vsel %vm199_vm0, %v16094_v42, 0.0 }
 0x266   :  { %v2975_v7 = vadd.f32 %v2954_v47, %v2951_v6  ;;  %v2063_v55 = vadd.f32 %v15922_v60, %v2034_v54  ;;  %v2696_v30 = vadd.f32 %v2695_v43, %v2667_v33  ;;  %v2960_v35 = vmul.f32 %v16110_v41, %v16110_v41  ;;  %v2780_v54 = vpop.f32.mrf.mxu1 }
 0x267   :  { %v16135_v37 = vadd.f32 %v2827_v21, %v20026_v16  ;;  %v2776_v57 = vadd.f32 %v2775_v39, %v2747_v24  ;;  %v2963_v60 = vmul.f32 %v16113_v63, %v16113_v63  ;;  %v2966_v15 = vmul.f32 %v16116_v31, %v16116_v31  ;;  %v20027_v21 = vld [vmem:[#allocation39_spill] sm:$0xff] }
 0x268   :  { %v2976_v4 = vadd.f32 %v2975_v7, %v2957_v22  ;;  %v2806_v17 = vadd.f32 %v2696_v30, %v15865_v28  ;;  %v2698_v40 = vpop.f32.mrf.mxu3  ;;  %v2092_v52 = vadd.f32 %v15903_v44, %v2063_v55  ;;  %v2969_v19 = vmul.f32 %v16119_v62, %v16119_v62  ;;  %v20030_v24 = vld [vmem:[#allocation43_spill] sm:$0xff]  ;;  %v20031_v30 = vld [vmem:[#allocation34_spill] sm:$0xff] }
 0x269   :  { %v2897_v34 = vsel %vm199_vm0, %v16135_v37, 0.0  ;;  %v2719_v38 = vpop.f32.mrf.mxu2  ;;  %v2798_v59 = vadd.f32 %v2776_v57, %v15915_v3  ;;  %v2699_v39 = vadd.f32 %v2698_v40, %v2670_v12  ;;  %v2972_v22 = vmul.f32 %v16121_v5, %v16121_v5 }
 0x26a   :  { %v2898_v53 = vadd.f32 %v2897_v34, %v2896_v18  ;;  %v2977_v46 = vadd.f32 %v2976_v4, %v2960_v35  ;;  %v2749_v27 = vadd.f32 %v2748_v25, %v2719_v38  ;;  %v2838_v56 = vadd.f32 %v16038_v1, %v2806_v17  ;;  %v20028_v25 = vld [vmem:[#allocation33_spill] sm:$0xff] }
 0x26b   :  { %v2830_v28 = vadd.f32 %v16079_v23, %v2798_v59  ;;  %v2809_v3 = vadd.f32 %v2699_v39, %v15875_v50  ;;  %v20029_v43 = vunpack.c.l.bf16 %v20028_v25  ;;  %v2672_v58 = vadd.f32 %v16027_v10, %v16022_v51  ;;  %v20034_v59 = vld [vmem:[#allocation50_spill] sm:$0xff] }
 0x26c   :  { %v2978_v14 = vadd.f32 %v2977_v46, %v2963_v60  ;;  %v2778_v49 = vadd.f32 %v2777_v8, %v2749_v27  ;;  %v16157_v45 = vadd.f32 %v2838_v56, %v20027_v21  ;;  %v20032_v35 = vunpack.c.l.bf16 %v20031_v30  ;;  %v20035_v27 = vld [vmem:[#allocation45_spill] sm:$0xff] }
 0x26d   :  { %v16164_v6 = vadd.f32 %v2830_v28, %v20029_v43  ;;  %v2841_v33 = vadd.f32 %v16038_v1, %v2809_v3  ;;  %v2039_v40 = vadd.f32 %v20035_v27, %v20034_v59  ;;  %v20036_v56 = vld [vmem:[#allocation53_spill] sm:$0xff]  ;;  %v20037_v28 = vld [vmem:[#allocation54_spill] sm:$0xff] }
 0x26e   :  { %v2979_v44 = vadd.f32 %v2978_v14, %v2966_v15  ;;  %v2801_v47 = vadd.f32 %v2778_v49, %v2092_v52  ;;  %v2887_v36 = vadd.f32 %v2886_v0, %v16157_v45  ;;  %v2753_v15 = vpop.f32.mrf.mxu0  ;;  %v2782_v3 = vpop.f32.mrf.mxu1 }
 0x26f   :  { %v2899_v50 = vsel %vm199_vm0, %v16164_v6, 0.0  ;;  %v16176_v55 = vadd.f32 %v2841_v33, %v20030_v24  ;;  %v2068_v49 = vadd.f32 %v20037_v28, %v2039_v40  ;;  %v20044_v28 = vld [vmem:[#allocation51_spill] sm:$0xff] }
 0x270   :  { %v2980_v8 = vadd.f32 %v2979_v44, %v2969_v19  ;;  %v2833_v7 = vadd.f32 %v16079_v23, %v2801_v47  ;;  %v2900_v16 = vadd.f32 %v2899_v50, %v2898_v53  ;;  %v2700_v57 = vpop.f32.mrf.mxu3  ;;  %v20033_v53 = vld [vmem:[#allocation44_spill] sm:$0xff] }
 0x271   :  { %v2722_v0 = vpop.f32.mrf.mxu2  ;;  %v2888_v12 = vadd.f32 %v2887_v36, %v16176_v55  ;;  %v2701_v17 = vadd.f32 %v2700_v57, %v2672_v58  ;;  %v14603_v19 = vld [vmem:[#allocation2 + $0xc8] sm:$0xff] }
 0x272   :  { %v2981_v18 = vadd.f32 %v2980_v8, %v2972_v22  ;;  %v16180_v4 = vadd.f32 %v2833_v7, %v20032_v35  ;;  %v2752_v34 = vadd.f32 %v2751_v32, %v2722_v0  ;;  %v20038_v47 = vld [vmem:[#allocation36_spill] sm:$0xff]  ;;  %v20040_v8 = vld [vmem:[#allocation46_spill] sm:$0xff] }
 0x273   :  { %v2812_v46 = vadd.f32 %v2701_v17, %v20033_v53  ;;  %v20039_v36 = vunpack.c.l.bf16 %v20038_v47  ;;  %v2097_v50 = vadd.f32 %v20040_v8, %v2068_v49  ;;  %v20045_v49 = vld [vmem:[#allocation52_spill] sm:$0xff] }
 0x274   :  { %v2982_v38 = vrot.slane %v2981_v18, 4  ;;  %v2901_v60 = vsel %vm199_vm0, %v16180_v4, 0.0  ;;  %v2781_v51 = vadd.f32 %v2780_v54, %v2752_v34 }
 0x275   :  { %v2902_v10 = vadd.f32 %v2901_v60, %v2900_v16  ;;  %v2844_v14 = vadd.f32 %v16038_v1, %v2812_v46  ;;  %v20041_v60 = vld [vmem:[#allocation37_spill] sm:$0xff] }
 0x276   :  { %v2983_v52 = vadd.f32 %v2982_v38, %v2981_v18  ;;  %v2804_v39 = vadd.f32 %v2781_v51, %v20036_v56  ;;  %v2756_v57 = vpop.f32.mrf.mxu0  ;;  %v20042_v51 = vunpack.c.l.bf16 %v20041_v60  ;;  %v2785_v27 = vpop.f32.mrf.mxu1  ;;  %v16249_v60 = vld [vmem:[#allocation9] sm:$0x7] }
 0x277   :  { %v2868_v44 = vadd.f32 %v14603_v19, %v2844_v14 }
 0x278   :  { %v2984_v32 = vrot.slane %v2983_v52, 2  ;;  %v2836_v21 = vadd.f32 %v16079_v23, %v2804_v39  ;;  %v20043_v39 = vld [vmem:[#allocation56_spill] sm:$0xff] }
 0x279   :  { %v2724_v25 = vpop.f32.mrf.mxu2  ;;  %v2889_v22 = vadd.f32 %v2888_v12, %v2868_v44 }
 0x27a   :  { %v2985_v43 = vadd.f32 %v2984_v32, %v2983_v52  ;;  %v16194_v54 = vadd.f32 %v2836_v21, %v20039_v36  ;;  %v2754_v33 = vadd.f32 %v2753_v15, %v2724_v25  ;;  %v2044_v32 = vadd.f32 %v20045_v49, %v20044_v28  ;;  %v20047_v36 = vld [vmem:[#allocation40_spill] sm:$0xff] }
 0x27b   :  { %v2890_v24 = vrot.slane %v2889_v22, 4 }
 0x27c   :  { %v2986_v7 = vrot.slane %v2985_v43, 1  ;;  %v2903_v1 = vsel %vm199_vm0, %v16194_v54, 0.0  ;;  %v2783_v58 = vadd.f32 %v2782_v3, %v2754_v33  ;;  %v20048_v33 = vunpack.c.l.bf16 %v20047_v36 }
 0x27d   :  { %v2904_v16 = vadd.f32 %v2903_v1, %v2902_v10  ;;  %v2891_v30 = vadd.f32 %v2890_v24, %v2889_v22 }
 0x27e   :  { %v2987_v0 = vadd.f32 %v2986_v7, %v2985_v43  ;;  %v2807_v18 = vadd.f32 %v2783_v58, %v2097_v50  ;;  %v20046_v43 = vld [vmem:[#allocation57_spill] sm:$0xff]  ;;  %v2758_v8 = vpop.f32.mrf.mxu0 }
 0x27f   :  { %v2892_v17 = vrot.slane %v2891_v30, 2  ;;  %v2073_v47 = vadd.f32 %v20046_v43, %v2044_v32 }
 0x280   :  { %v3022_v35 = vmul.f32 %v2987_v0, %v16086_v48  ;;  %v2839_v34 = vadd.f32 %v16079_v23, %v2807_v18 }
 0x281   :  { %v2727_v38 = vpop.f32.mrf.mxu2  ;;  %v2893_v59 = vadd.f32 %v2892_v17, %v2891_v30 }
 0x282   :  { %v3025_v12 = vadd.f32 1e-05, %v3022_v35  ;;  %v16203_v53 = vadd.f32 %v2839_v34, %v20042_v51  ;;  %v2757_v46 = vadd.f32 %v2756_v57, %v2727_v38  ;;  %v16251_v51 = vld [vmem:[#allocation11] sm:$0x7] }
 0x283   :  { %v2894_v52 = vrot.slane %v2893_v59, 1 }
 0x284   :  { %14390 = vrsqrt.f32 %v3025_v12  ;;  %v2905_v10 = vsel %vm199_vm0, %v16203_v53, 0.0  ;;  %v2786_v40 = vadd.f32 %v2785_v27, %v2757_v46  ;;  %vm3034_vm14 = vweird.f32 %v3025_v12 }
 0x285   :  { %v2906_v56 = vadd.f32 %v2905_v10, %v2904_v16  ;;  %v2895_v14 = vadd.f32 %v2894_v52, %v2893_v59  ;;  %v3084_v52 = vperm.slane %v16249_v60, 0 }
 0x286   :  { %v2810_v15 = vadd.f32 %v2786_v40, %v20043_v39  ;;  %v3116_v39 = vperm.slane %v16251_v51, 0 }
 0x287   :  { %v2925_v3 = vmul.f32 %v16086_v48, %v2895_v14 }
 0x288   :  { %v2842_v21 = vadd.f32 %v16079_v23, %v2810_v15 }
 0x289   :  { %v2729_v19 = vpop.f32.mrf.mxu2  ;;  %v16218_v7 = vsub.f32 %v16052_v26, %v2925_v3  ;;  %v16221_v1 = vsub.f32 %v16055_v20, %v2925_v3  ;;  %v16224_v16 = vsub.f32 %v16067_v13, %v2925_v3  ;;  %v16227_v24 = vsub.f32 %v16082_v29, %v2925_v3  ;;  %v20049_v29 = vld [vmem:[#allocation55_spill] sm:$0xff] }
 0x28a   :  { %v14391_v25 = vpop.eup %14390  ;;  %v16215_v22 = vadd.f32 %v2842_v21, %v20048_v33  ;;  %v2759_v58 = vadd.f32 %v2758_v8, %v2729_v19  ;;  %v16230_v0 = vsub.f32 %v16098_v2, %v2925_v3  ;;  %v16233_v18 = vsub.f32 %v16157_v45, %v2925_v3  ;;  %v2787_v2 = vpop.f32.mrf.mxu1 }
 0x28b   :  { %v3029_v50 = vmul.f32 %v14391_v25, %v3025_v12  ;;  %v16236_v26 = vsub.f32 %v16176_v55, %v2925_v3  ;;  %v16238_v35 = vsub.f32 %v2868_v44, %v2925_v3  ;;  %v2952_v20 = vmul.f32 %v16218_v7, %v16218_v7 }
 0x28c   :  { %v2955_v13 = vmul.f32 %v16221_v1, %v16221_v1  ;;  %v2102_v34 = vadd.f32 %v20049_v29, %v2073_v47  ;;  %v2958_v45 = vmul.f32 %v16224_v16, %v16224_v16  ;;  %v2907_v55 = vsel %vm199_vm0, %v16215_v22, 0.0 }
 0x28d   :  { %v3030_v30 = vmul.f32 %v14391_v25, %v3029_v50  ;;  %v2788_v38 = vadd.f32 %v2787_v2, %v2759_v58  ;;  %vm3035_vm13 = vweird.f32 %v14391_v25  ;;  %v16253_v46 = vadd.f32 %v2907_v55, %v2906_v56 }
 0x28e   :  { %v2988_v17 = vadd.f32 %v2955_v13, %v2952_v20  ;;  %v2961_v59 = vmul.f32 %v16227_v24, %v16227_v24  ;;  %vm3036_vm15 = vmor %vm3034_vm14, %vm3035_vm13  ;;  %v2964_v28 = vmul.f32 %v16230_v0, %v16230_v0  ;;  %v16263_v56 = vmul.f32 %v16233_v18, %v16233_v18 }
 0x28f   :  { %v3031_v57 = vmul.f32 0.5, %v3030_v30  ;;  %v2813_v10 = vadd.f32 %v2788_v38, %v2102_v34 }
 0x290   :  { %v2989_v27 = vadd.f32 %v2988_v17, %v2958_v45 }
 0x291   :  { %v3032_v44 = vsub.f32 1.5, %v3031_v57  ;;  %v2845_v49 = vadd.f32 %v16079_v23, %v2813_v10 }
 0x292   :  { %v2990_v15 = vadd.f32 %v2989_v27, %v2961_v59 }
 0x293   :  { %v3033_v40 = vmul.f32 %v14391_v25, %v3032_v44 }
 0x295   :  { %v3037_v14 = vsel %vm3036_vm15, %v14391_v25, %v3033_v40 }
 0x296   :  { %v3058_v32 = vmul.f32 %v3037_v14, %v16101_v11  ;;  %v3061_v12 = vmul.f32 %v3037_v14, %v16104_v9  ;;  %v3064_v21 = vmul.f32 %v3037_v14, %v16107_v61  ;;  %v3067_v3 = vmul.f32 %v3037_v14, %v16110_v41 }
 0x297   :  { %v3070_v19 = vmul.f32 %v3037_v14, %v16113_v63  ;;  %v3073_v25 = vmul.f32 %v3037_v14, %v16116_v31  ;;  %v3076_v43 = vmul.f32 %v3037_v14, %v16119_v62  ;;  %v3079_v47 = vmul.f32 %v3037_v14, %v16121_v5 }
 0x298   :  { %v3090_v36 = vmul.f32 %v3084_v52, %v3058_v32  ;;  %v3093_v33 = vmul.f32 %v3084_v52, %v3061_v12  ;;  %v3096_v8 = vmul.f32 %v3084_v52, %v3064_v21  ;;  %v3099_v23 = vmul.f32 %v3084_v52, %v3067_v3 }
 0x299   :  { %v3102_v50 = vmul.f32 %v3084_v52, %v3070_v19  ;;  %v3105_v11 = vmul.f32 %v3084_v52, %v3073_v25  ;;  %v3108_v58 = vmul.f32 %v3084_v52, %v3076_v43  ;;  %v3111_v9 = vmul.f32 %v3084_v52, %v3079_v47  ;;  %v20050_v43 = vld [vmem:[#allocation41_spill] sm:$0xff] }
 0x29a   :  { %v16274_v30 = vadd.f32 %v3116_v39, %v3090_v36  ;;  %v16276_v61 = vadd.f32 %v3116_v39, %v3093_v33  ;;  %v16278_v41 = vadd.f32 %v3116_v39, %v3096_v8  ;;  %v16280_v63 = vadd.f32 %v3116_v39, %v3099_v23 }
 0x29b   :  { %v16282_v31 = vadd.f32 %v3116_v39, %v3102_v50  ;;  %v16284_v62 = vadd.f32 %v3116_v39, %v3105_v11  ;;  %v16286_v5 = vadd.f32 %v3116_v39, %v3108_v58  ;;  %v16288_v20 = vadd.f32 %v3116_v39, %v3111_v9 }
 0x29c   :  { %v3146_v13 = vmul.f32 %v16274_v30, %v16274_v30  ;;  %v3149_v29 = vmul.f32 %v16276_v61, %v16276_v61  ;;  %v3152_v34 = vmul.f32 %v16278_v41, %v16278_v41  ;;  %v3155_v57 = vmul.f32 %v16280_v63, %v16280_v63 }
 0x29d   :  { %v3158_v2 = vmul.f32 %v16282_v31, %v16282_v31  ;;  %v3161_v45 = vmul.f32 %v16284_v62, %v16284_v62  ;;  %v3164_v17 = vmul.f32 %v16286_v5, %v16286_v5  ;;  %v3167_v55 = vmul.f32 %v16288_v20, %v16288_v20 }
 0x29e   :  { %v3170_v38 = vmul.f32 %v3146_v13, %v16274_v30  ;;  %v3173_v44 = vmul.f32 %v3149_v29, %v16276_v61  ;;  %v3176_v59 = vmul.f32 %v3152_v34, %v16278_v41  ;;  %v3179_v27 = vmul.f32 %v3155_v57, %v16280_v63 }
 0x29f   :  { %v3182_v10 = vmul.f32 %v3158_v2, %v16282_v31  ;;  %v3185_v40 = vmul.f32 %v3161_v45, %v16284_v62  ;;  %v3188_v52 = vmul.f32 %v3164_v17, %v16286_v5  ;;  %v3191_v39 = vmul.f32 %v3167_v55, %v16288_v20 }
 0x2a0   :  { %v3194_v14 = vmul.f32 0.044715, %v3170_v38  ;;  %v3197_v32 = vmul.f32 0.044715, %v3173_v44  ;;  %v3200_v12 = vmul.f32 0.044715, %v3176_v59  ;;  %v2991_v21 = vadd.f32 %v2990_v15, %v2964_v28 }
 0x2a1   :  { %v3203_v3 = vmul.f32 0.044715, %v3179_v27  ;;  %v3206_v19 = vmul.f32 0.044715, %v3182_v10  ;;  %v3209_v25 = vmul.f32 0.044715, %v3185_v40  ;;  %v20051_v47 = vunpack.c.l.bf16 %v20050_v43 }
 0x2a2   :  { %v3212_v33 = vmul.f32 0.044715, %v3188_v52  ;;  %v3215_v8 = vmul.f32 0.044715, %v3191_v39  ;;  %v3218_v23 = vadd.f32 %v3194_v14, %v16274_v30  ;;  %v3221_v50 = vadd.f32 %v3197_v32, %v16276_v61  ;;  %v11560_v27 = vld [vmem:[#allocation12 + $0xa8] sm:$0xf] }
 0x2a3   :  { %v16316_v36 = vadd.f32 %v2845_v49, %v20051_v47  ;;  %v3224_v11 = vadd.f32 %v3200_v12, %v16278_v41  ;;  %v3227_v58 = vadd.f32 %v3203_v3, %v16280_v63  ;;  %v3230_v9 = vadd.f32 %v3206_v19, %v16282_v31  ;;  %v13956_v10 = vld [vmem:[#allocation12 + $0xb0] sm:$0xf0]  ;;  %v13955_v14 = vld [vmem:[#allocation12 + $0xac] sm:$0xf]  ;;  %v13953_v43 = vld [vmem:[#allocation12 + $0x98] sm:$0xf0] }
 0x2a4   :  { %v3233_v15 = vadd.f32 %v3209_v25, %v16284_v62  ;;  %v3236_v28 = vadd.f32 %v3212_v33, %v16286_v5  ;;  %v3242_v13 = vmul.f32 0.7978846, %v3218_v23  ;;  %v3245_v29 = vmul.f32 0.7978846, %v3221_v50  ;;  %v11548_v25 = vld [vmem:[#allocation12 + $0x90] sm:$0xf] }
 0x2a5   :  { %v2970_v49 = vmul.f32 %v16236_v26, %v16236_v26  ;;  %v3239_v34 = vadd.f32 %v3215_v8, %v16288_v20  ;;  %v3248_v57 = vmul.f32 0.7978846, %v3224_v11  ;;  %v3251_v2 = vmul.f32 0.7978846, %v3227_v58  ;;  %v11550_v23 = vld [vmem:[#allocation12 + $0x9c] sm:$0xf0] }
 0x2a6   :  { %v2992_v45 = vadd.f32 %v2991_v21, %v16263_v56  ;;  %v3254_v17 = vmul.f32 0.7978846, %v3230_v9  ;;  %v3257_v55 = vmul.f32 0.7978846, %v3233_v15  ;;  %14392 = vtanh.f32 %v3242_v13  ;;  %v11562_v56 = vld [vmem:[#allocation12 + $0xb4] sm:$0xf0] }
 0x2a7   :  { %14394 = vtanh.f32 %v3245_v29  ;;  %v2973_v38 = vmul.f32 %v16238_v35, %v16238_v35  ;;  %v2909_v59 = vsel %vm199_vm0, %v16316_v36, 0.0  ;;  %v3260_v40 = vmul.f32 0.7978846, %v3236_v28 }
 0x2a8   :  { %v2993_v44 = vadd.f32 %v2992_v45, %v2970_v49  ;;  %14396 = vtanh.f32 %v3248_v57  ;;  %v2910_v52 = vadd.f32 %v2909_v59, %v16253_v46  ;;  %v11561_v39 = vor.u32 %v13956_v10, %v11560_v27  ;;  %v13952_v46 = vld [vmem:[#allocation12 + $0x94] sm:$0xf] }
 0x2a9   :  { %v3263_v32 = vmul.f32 0.7978846, %v3239_v34  ;;  %14398 = vtanh.f32 %v3251_v2  ;;  %v11565_v21 = vor.u32 %v13955_v14, %v11562_v56  ;;  %v11549_v8 = vor.u32 %v13953_v43, %v11548_v25 }
 0x2aa   :  { %v2994_v12 = vadd.f32 %v2993_v44, %v2973_v38  ;;  %14400 = vtanh.f32 %v3254_v17  ;;  %v2911_v3 = vrot.slane %v2910_v52, 4  ;;  %4158 = vmatpush.bf16.msrb.mxu3 %v11561_v39  ;;  %v11553_v9 = vor.u32 %v13952_v46, %v11550_v23  ;;  %v11536_v38 = vld [vmem:[#allocation12 + $0x78] sm:$0xf]  ;;  %v13949_v39 = vld [vmem:[#allocation12 + $0x7c] sm:$0xf] }
 0x2ab   :  { %14402 = vtanh.f32 %v3257_v55  ;;  %4245 = vmatpush.bf16.msrb.mxu1 %v11565_v21 }
 0x2ac   :  { %v2995_v19 = vrot.slane %v2994_v12, 4  ;;  %v14393_v47 = vpop.eup %14392  ;;  %14404 = vtanh.f32 %v3260_v40  ;;  %v2912_v33 = vadd.f32 %v2911_v3, %v2910_v52  ;;  %v13950_v52 = vld [vmem:[#allocation12 + $0x80] sm:$0xf0]  ;;  %v11538_v3 = vld [vmem:[#allocation12 + $0x84] sm:$0xf0] }
 0x2ad   :  { %v14395_v50 = vpop.eup %14394  ;;  %14406 = vtanh.f32 %v3263_v32  ;;  %v3290_v11 = vadd.f32 1.0, %v14393_v47 }
 0x2ae   :  { %v2996_v58 = vadd.f32 %v2995_v19, %v2994_v12  ;;  %v14397_v15 = vpop.eup %14396  ;;  %v3293_v28 = vadd.f32 1.0, %v14395_v50  ;;  %v2913_v13 = vrot.slane %v2912_v33, 2  ;;  %4159 = vmatpush.bf16.msrb.mxu3 %v11549_v8  ;;  %v11524_v8 = vld [vmem:[#allocation12 + $0x60] sm:$0xf] }
 0x2af   :  { %v14399_v29 = vpop.eup %14398  ;;  %v3296_v49 = vadd.f32 1.0, %v14397_v15  ;;  %v3314_v34 = vmul.f32 0.5, %v3290_v11  ;;  %4246 = vmatpush.bf16.msrb.mxu1 %v11553_v9  ;;  %v13947_v11 = vld [vmem:[#allocation12 + $0x68] sm:$0xf0]  ;;  %v11537_v15 = vor.u32 %v13950_v52, %v11536_v38  ;;  %v11512_v38 = vld [vmem:[#allocation12 + $0x48] sm:$0xf] }
 0x2b0   :  { %v2997_v57 = vrot.slane %v2996_v58, 2  ;;  %v14401_v2 = vpop.eup %14400  ;;  %v3299_v45 = vadd.f32 1.0, %v14399_v29  ;;  %v3317_v17 = vmul.f32 0.5, %v3293_v28  ;;  %v2914_v55 = vadd.f32 %v2913_v13, %v2912_v33 }
 0x2b1   :  { %v14403_v44 = vpop.eup %14402  ;;  %v3302_v59 = vadd.f32 1.0, %v14401_v2  ;;  %v3320_v27 = vmul.f32 0.5, %v3296_v49  ;;  %v3338_v10 = vmul.f32 %v3314_v34, %v16274_v30  ;;  %v11541_v29 = vor.u32 %v13949_v39, %v11538_v3 }
 0x2b2   :  { %v2998_v40 = vadd.f32 %v2997_v57, %v2996_v58  ;;  %v14405_v14 = vpop.eup %14404  ;;  %v3305_v56 = vadd.f32 1.0, %v14403_v44  ;;  %v3323_v32 = vmul.f32 0.5, %v3299_v45  ;;  %v3341_v12 = vmul.f32 %v3317_v17, %v16276_v61  ;;  %4160 = vmatpush.bf16.msrb.mxu3 %v11537_v15  ;;  %v11490_v15 = vld [vmem:[#allocation12 + $0x24] sm:$0xf0] }
 0x2b3   :  { %v2915_v21 = vrot.slane %v2914_v55, 1  ;;  %v14407_v19 = vpop.eup %14406  ;;  %v3308_v25 = vadd.f32 1.0, %v14405_v14  ;;  %v3326_v43 = vmul.f32 0.5, %v3302_v59  ;;  %v3344_v47 = vmul.f32 %v3320_v27, %v16278_v41  ;;  %3362 = vst [vmem:[#allocation2 + $0x18] sm:$0xff] %v3338_v10  ;;  %4247 = vmatpush.bf16.msrb.mxu1 %v11541_v29  ;;  %v13943_v27 = vld [vmem:[#allocation12 + $0x4c] sm:$0xf] }
 0x2b4   :  { %v2999_v33 = vrot.slane %v2998_v40, 1  ;;  %v3311_v46 = vadd.f32 1.0, %v14407_v19  ;;  %v3329_v30 = vmul.f32 0.5, %v3305_v56  ;;  %v3347_v23 = vmul.f32 %v3323_v32, %v16280_v63  ;;  %3365 = vst [vmem:[#allocation2 + $0x30] sm:$0xff] %v3341_v12  ;;  %v11514_v14 = vld [vmem:[#allocation12 + $0x54] sm:$0xf0] }
 0x2b5   :  { %v2916_v50 = vadd.f32 %v2915_v21, %v2914_v55  ;;  %v3332_v58 = vmul.f32 0.5, %v3308_v25  ;;  %v3350_v61 = vmul.f32 %v3326_v43, %v16282_v31  ;;  %3368 = vst [vmem:[#allocation2 + $0x48] sm:$0xff] %v3344_v47  ;;  %v11525_v34 = vor.u32 %v13947_v11, %v11524_v8  ;;  %v11526_v55 = vld [vmem:[#allocation12 + $0x6c] sm:$0xf0]  ;;  %v13941_v32 = vld [vmem:[#allocation12 + $0x38] sm:$0xf0] }
 0x2b6   :  { %v3000_v9 = vadd.f32 %v2999_v33, %v2998_v40  ;;  %v3335_v28 = vmul.f32 0.5, %v3311_v46  ;;  %v3353_v13 = vmul.f32 %v3329_v30, %v16284_v62  ;;  %3371 = vst [vmem:[#allocation2 + $0x60] sm:$0xff] %v3347_v23  ;;  %v11500_v56 = vld [vmem:[#allocation12 + $0x30] sm:$0xf]  ;;  %v16391_v25 = vperm.slane %v16249_v60, 1 }
 0x2b7   :  { %v2926_v41 = vmul.f32 %v16086_v48, %v2916_v50  ;;  %v3356_v49 = vmul.f32 %v3332_v58, %v16286_v5  ;;  %3374 = vst [vmem:[#allocation2 + $0x78] sm:$0xff] %v3350_v61  ;;  %4161 = vmatpush.bf16.msrb.mxu3 %v11525_v34  ;;  %v13940_v47 = vld [vmem:[#allocation12 + $0x34] sm:$0xf]  ;;  %v16396_v8 = vperm.slane %v16251_v51, 1  ;;  %v11517_v30 = vor.u32 %v13943_v27, %v11514_v14  ;;  %v11502_v50 = vld [vmem:[#allocation12 + $0x3c] sm:$0xf0] }
 0x2b8   :  { %v3023_v63 = vmul.f32 %v3000_v9, %v16086_v48  ;;  %v3359_v57 = vmul.f32 %v3335_v28, %v16288_v20  ;;  %3377 = vst [vmem:[#allocation2 + $0x90] sm:$0xff] %v3353_v13  ;;  %v11501_v23 = vor.u32 %v13941_v32, %v11500_v56  ;;  %v11488_v11 = vld [vmem:[#allocation12 + $0x18] sm:$0xf]  ;;  %v13938_v61 = vld [vmem:[#allocation12 + $0x20] sm:$0xf0] }
 0x2b9   :  { %v16345_v31 = vsub.f32 %v16094_v42, %v2926_v41  ;;  %v16348_v2 = vsub.f32 %v16135_v37, %v2926_v41  ;;  %v16351_v62 = vsub.f32 %v16164_v6, %v2926_v41  ;;  %3380 = vst [vmem:[#allocation2 + $0xa8] sm:$0xff] %v3356_v49  ;;  %v16356_v5 = vsub.f32 %v16180_v4, %v2926_v41  ;;  %v16401_v9 = vld [vmem:[#allocation12 + $0x1c] sm:$0xf]  ;;  %v11476_v34 = vld [vmem:[#allocation12] sm:$0xf] }
 0x2ba   :  { %v16353_v45 = vadd.f32 1e-05, %v3023_v63  ;;  %v16359_v17 = vsub.f32 %v16194_v54, %v2926_v41  ;;  %v16362_v20 = vsub.f32 %v16203_v53, %v2926_v41  ;;  %3383 = vst [vmem:[#allocation2 + $0xc0] sm:$0xff] %v3359_v57  ;;  %v16365_v42 = vsub.f32 %v16215_v22, %v2926_v41  ;;  %v13946_v53 = vld [vmem:[#allocation12 + $0x64] sm:$0xf] }
 0x2bb   :  { %v16368_v37 = vsub.f32 %v16316_v36, %v2926_v41  ;;  %v2953_v6 = vmul.f32 %v16345_v31, %v16345_v31  ;;  %v2956_v4 = vmul.f32 %v16348_v2, %v16348_v2  ;;  %v2959_v54 = vmul.f32 %v16351_v62, %v16351_v62  ;;  %v13944_v22 = vld [vmem:[#allocation12 + $0x50] sm:$0xf0]  ;;  %v13935_v57 = vld [vmem:[#allocation12 + $0x8] sm:$0xf0] }
 0x2bc   :  { %14408 = vrsqrt.f32 %v16353_v45  ;;  %v2962_v36 = vmul.f32 %v16356_v5, %v16356_v5  ;;  %v2965_v10 = vmul.f32 %v16359_v17, %v16359_v17  ;;  %v2968_v40 = vmul.f32 %v16362_v20, %v16362_v20 }
 0x2bd   :  { %v3001_v44 = vsel %vm199_vm0, %v2953_v6, 0.0  ;;  %v3002_v59 = vsel %vm199_vm0, %v2956_v4, 0.0  ;;  %v2971_v52 = vmul.f32 %v16365_v42, %v16365_v42  ;;  %v2974_v12 = vmul.f32 %v16368_v37, %v16368_v37  ;;  %v3479_v6 = vld [vmem:[#allocation2] sm:$0xf0] }
 0x2be   :  { %v3003_v39 = vadd.f32 %v3002_v59, %v3001_v44  ;;  %v3004_v21 = vsel %vm199_vm0, %v2959_v54, 0.0  ;;  %v11529_v3 = vor.u32 %v13946_v53, %v11526_v55  ;;  %v11513_v19 = vor.u32 %v13944_v22, %v11512_v38  ;;  %v16410_v53 = vld [vmem:[#allocation12 + $0x4] sm:$0xf]  ;;  %v16412_v55 = vld [vmem:[#allocation12 + $0xc] sm:$0xf0]  ;;  %v3482_v38 = vld [vmem:[#allocation2 + $0x18] sm:$0xff] }
 0x2bf   :  { %v3006_v46 = vsel %vm199_vm0, %v2962_v36, 0.0  ;;  %v3008_v28 = vsel %vm199_vm0, %v2965_v10, 0.0  ;;  %v3010_v51 = vsel %vm199_vm0, %v2968_v40, 0.0  ;;  %v3012_v13 = vsel %vm199_vm0, %v2971_v52, 0.0  ;;  %v3485_v22 = vld [vmem:[#allocation2 + $0x30] sm:$0xff]  ;;  %v3488_v44 = vld [vmem:[#allocation2 + $0x48] sm:$0xff] }
 0x2c0   :  { %v3005_v43 = vadd.f32 %v3004_v21, %v3003_v39  ;;  %4248 = vmatpush.bf16.msrb.mxu1 %v11529_v3  ;;  %4162 = vmatpush.bf16.msrb.mxu3 %v11513_v19  ;;  %v3014_v41 = vsel %vm199_vm0, %v2974_v12, 0.0  ;;  %vm3044_vm1 = vweird.f32 %v16353_v45  ;;  %v11505_v63 = vor.u32 %v13940_v47, %v11502_v50  ;;  %v3491_v52 = vld [vmem:[#allocation2 + $0x60] sm:$0xff]  ;;  %v16414_v39 = vld [vmem:[#allocation2 + $0x78] sm:$0xff]  ;;  %v16426_v50 = vld [vmem:[#allocation2 + $0x90] sm:$0xff] }
 0x2c1   :  { %v11489_v4 = vor.u32 %v13938_v61, %v11488_v11  ;;  %v11493_v54 = vor.u32 %v16401_v9, %v11490_v15  ;;  %v3550_v36 = vrot.slane %v3479_v6, 4  ;;  %v3551_v10 = vrot.slane %v3482_v38, 4  ;;  %v3649_v12 = vld [vmem:[#allocation2 + $0x18] sm:$0xf0] }
 0x2c2   :  { %v16393_v33 = vpop.eup %14408  ;;  %v3007_v60 = vadd.f32 %v3006_v46, %v3005_v43  ;;  %v3559_v40 = vrot.slane %v3485_v22, 4  ;;  %v3565_v14 = vrot.slane %v3488_v44, 4  ;;  %v3571_v56 = vrot.slane %v3491_v52, 4  ;;  %v20052_v9 = vld [vmem:[#allocation31_spill] sm:$0xff] }
 0x2c3   :  { %v3039_v58 = vmul.f32 %v16393_v33, %v16353_v45  ;;  %vm3045_vm4 = vweird.f32 %v16393_v33  ;;  %v3577_v32 = vrot.slane %v16414_v39, 4  ;;  %v3552_v19 = vsel %vm3549_vm2, %v3550_v36, %v3551_v10 }
 0x2c4   :  { %v3009_v49 = vadd.f32 %v3008_v28, %v3007_v60  ;;  %4249 = vmatpush.bf16.msrb.mxu1 %v11517_v30  ;;  %4163 = vmatpush.bf16.msrb.mxu3 %v11501_v23  ;;  %v3560_v43 = vsel %vm3549_vm2, %v3551_v10, %v3559_v40  ;;  %v11477_v47 = vor.u32 %v13935_v57, %v11476_v34  ;;  %v3683_v23 = vrot.slane %v3649_v12, 4  ;;  %vm3046_vm5 = vmor %vm3044_vm1, %vm3045_vm4 }
 0x2c5   :  { %v3040_v29 = vmul.f32 %v16393_v33, %v3039_v58  ;;  %v16421_v46 = vsel %vm3549_vm2, %v3559_v40, %v3565_v14  ;;  %v16424_v30 = vsel %vm3549_vm2, %v3565_v14, %v3571_v56  ;;  %v11481_v60 = vor.u32 %v16410_v53, %v16412_v55 }
 0x2c6   :  { %v3011_v27 = vadd.f32 %v3010_v51, %v3009_v49  ;;  %v16436_v61 = vsel %vm3549_vm2, %v3571_v56, %v3577_v32  ;;  %vm301_vm6 = vcmp.ge.s32.totalorder %v20052_v9, 4  ;;  %v16443_v15 = vpack.c.bf16 %v3560_v43, %v3552_v19 }
 0x2c7   :  { %v3041_v59 = vmul.f32 0.5, %v3040_v29  ;;  %v3684_v28 = vsel %vm3549_vm2, %v3683_v23, %v3559_v40  ;;  %v16448_v51 = vpack.c.bf16 %v16436_v61, %v16424_v30  ;;  %v3583_v45 = vrot.slane %v16426_v50, 4  ;;  %vm16471_vm7 = vmpackc.low %vm14946_vm3, %vm301_vm6  ;;  %v11656_v23 = vld [vmem:[#allocation12 + $0x168] sm:$0xf] }
 0x2c8   :  { %v3013_v3 = vadd.f32 %v3012_v13, %v3011_v27  ;;  %4250 = vmatpush.bf16.msrb.mxu1 %v11505_v63  ;;  %4164 = vmatpush.bf16.msrb.mxu3 %v11489_v4  ;;  %v16453_v29 = vpack.c.bf16 %v16421_v46, %v3684_v28 }
 0x2c9   :  { %v3042_v21 = vsub.f32 1.5, %v3041_v59  ;;  %20053 = vst [vmem:[#allocation35_spill] sm:$0xff] %v16448_v51  ;;  %v13957_v51 = vld [vmem:[#allocation12 + $0xb8] sm:$0xf0] }
 0x2ca   :  { %v16429_v58 = vadd.f32 %v3014_v41, %v3013_v3  ;;  %20054 = vst [vmem:[#allocation29_spill] sm:$0xff] %v16453_v29 }
 0x2cb   :  { %v3043_v11 = vmul.f32 %v16393_v33, %v3042_v21 }
 0x2cc   :  { %v3016_v41 = vrot.slane %v16429_v58, 4  ;;  %4251 = vmatpush.bf16.msrb.mxu1 %v11493_v54  ;;  %4165 = vmatpush.bf16.msrb.mxu3 %v11477_v47 }
 0x2cd   :  { %v3047_v13 = vsel %vm3046_vm5, %v16393_v33, %v3043_v11  ;;  %v13980_v11 = vld [vmem:[#allocation12 + $0x170] sm:$0xf0] }
 0x2ce   :  { %v3059_v49 = vmul.f32 %v3047_v13, %v16218_v7  ;;  %v3062_v63 = vmul.f32 %v3047_v13, %v16221_v1  ;;  %v3065_v34 = vmul.f32 %v3047_v13, %v16224_v16  ;;  %v3068_v57 = vmul.f32 %v3047_v13, %v16227_v24  ;;  %v13889_v24 = vld [vmem:[#allocation12 + $0x25c] sm:$0xf] }
 0x2cf   :  { %v3071_v6 = vmul.f32 %v3047_v13, %v16230_v0  ;;  %v3074_v33 = vmul.f32 %v3047_v13, %v16233_v18  ;;  %v3077_v4 = vmul.f32 %v3047_v13, %v16236_v26  ;;  %v3080_v53 = vmul.f32 %v3047_v13, %v16238_v35  ;;  %11716 = vmatmul.msk.bf16.vlgmr.msrb.gmra.mxu3 %vm16471_vm7, %v16443_v15 }
 0x2d0   :  { %v3091_v55 = vmul.f32 %v16391_v25, %v3059_v49  ;;  %v3094_v7 = vmul.f32 %v16391_v25, %v3062_v63  ;;  %v3097_v1 = vmul.f32 %v16391_v25, %v3065_v34  ;;  %v3100_v16 = vmul.f32 %v16391_v25, %v3068_v57  ;;  %4252 = vmatpush.bf16.msrb.mxu1 %v11481_v60 }
 0x2d1   :  { %v3103_v0 = vmul.f32 %v16391_v25, %v3071_v6  ;;  %v3106_v18 = vmul.f32 %v16391_v25, %v3074_v33  ;;  %v3109_v26 = vmul.f32 %v16391_v25, %v3077_v4  ;;  %v3112_v35 = vmul.f32 %v16391_v25, %v3080_v53  ;;  %v11644_v33 = vld [vmem:[#allocation12 + $0x150] sm:$0xf] }
 0x2d2   :  { %v16480_v54 = vadd.f32 %v16396_v8, %v3091_v55  ;;  %v16483_v38 = vadd.f32 %v16396_v8, %v3094_v7  ;;  %v16486_v22 = vadd.f32 %v16396_v8, %v3097_v1  ;;  %v16489_v36 = vadd.f32 %v16396_v8, %v3100_v16 }
 0x2d3   :  { %v16492_v44 = vadd.f32 %v16396_v8, %v3103_v0  ;;  %v16495_v59 = vadd.f32 %v16396_v8, %v3106_v18  ;;  %v16498_v25 = vadd.f32 %v16396_v8, %v3109_v26  ;;  %v16501_v27 = vadd.f32 %v16396_v8, %v3112_v35  ;;  %11732 = vmatmul.msk.bf16.vlgmr.msrb.gmra.mxu1 %vm16471_vm7, %v16443_v15  ;;  %v13977_v26 = vld [vmem:[#allocation12 + $0x158] sm:$0xf0] }
 0x2d4   :  { %v3147_v10 = vmul.f32 %v16480_v54, %v16480_v54  ;;  %v3150_v40 = vmul.f32 %v16483_v38, %v16483_v38  ;;  %v3153_v52 = vmul.f32 %v16486_v22, %v16486_v22  ;;  %v3156_v14 = vmul.f32 %v16489_v36, %v16489_v36 }
 0x2d5   :  { %v3159_v8 = vmul.f32 %v16492_v44, %v16492_v44  ;;  %v3162_v56 = vmul.f32 %v16495_v59, %v16495_v59  ;;  %v3165_v12 = vmul.f32 %v16498_v25, %v16498_v25  ;;  %v3168_v21 = vmul.f32 %v16501_v27, %v16501_v27 }
 0x2d6   :  { %v3171_v3 = vmul.f32 %v3147_v10, %v16480_v54  ;;  %v3174_v19 = vmul.f32 %v3150_v40, %v16483_v38  ;;  %v3177_v43 = vmul.f32 %v3153_v52, %v16486_v22  ;;  %v3180_v47 = vmul.f32 %v3156_v14, %v16489_v36  ;;  %v3500_v52 = vld [vmem:[#allocation2 + $0xa8] sm:$0xff] }
 0x2d7   :  { %v3183_v60 = vmul.f32 %v3159_v8, %v16492_v44  ;;  %v3186_v28 = vmul.f32 %v3162_v56, %v16495_v59  ;;  %v3189_v13 = vmul.f32 %v3165_v12, %v16498_v25  ;;  %v3192_v49 = vmul.f32 %v3168_v21, %v16501_v27  ;;  %v13974_v12 = vld [vmem:[#allocation12 + $0x140] sm:$0xf0] }
 0x2d8   :  { %v3195_v63 = vmul.f32 0.044715, %v3171_v3  ;;  %v3198_v34 = vmul.f32 0.044715, %v3174_v19  ;;  %v3201_v57 = vmul.f32 0.044715, %v3177_v43  ;;  %v3017_v6 = vadd.f32 %v3016_v41, %v16429_v58 }
 0x2d9   :  { %v3204_v4 = vmul.f32 0.044715, %v3180_v47  ;;  %v3207_v53 = vmul.f32 0.044715, %v3183_v60  ;;  %v3210_v55 = vmul.f32 0.044715, %v3186_v28  ;;  %v11657_v7 = vor.u32 %v13980_v11, %v11656_v23 }
 0x2da   :  { %v3213_v1 = vmul.f32 0.044715, %v3189_v13  ;;  %v3216_v16 = vmul.f32 0.044715, %v3192_v49  ;;  %v3219_v0 = vadd.f32 %v3195_v63, %v16480_v54  ;;  %v3222_v18 = vadd.f32 %v3198_v34, %v16483_v38  ;;  %v11632_v41 = vld [vmem:[#allocation12 + $0x138] sm:$0xf] }
 0x2db   :  { %v3225_v35 = vadd.f32 %v3201_v57, %v16486_v22  ;;  %v3228_v10 = vadd.f32 %v3204_v4, %v16489_v36  ;;  %v3231_v40 = vadd.f32 %v3207_v53, %v16492_v44  ;;  %v3234_v58 = vadd.f32 %v3210_v55, %v16495_v59  ;;  %4187 = vmatpush.bf16.msrb.mxu2 %v11657_v7  ;;  %v11620_v49 = vld [vmem:[#allocation12 + $0x120] sm:$0xf]  ;;  %v13971_v63 = vld [vmem:[#allocation12 + $0x128] sm:$0xf0] }
 0x2dc   :  { %v3237_v14 = vadd.f32 %v3213_v1, %v16498_v25  ;;  %v3243_v8 = vmul.f32 0.7978846, %v3219_v0  ;;  %v3246_v56 = vmul.f32 0.7978846, %v3222_v18  ;;  %v3240_v21 = vadd.f32 %v3216_v16, %v16501_v27  ;;  %v13965_v16 = vld [vmem:[#allocation12 + $0xf8] sm:$0xf0] }
 0x2dd   :  { %v3249_v3 = vmul.f32 0.7978846, %v3225_v35  ;;  %v3252_v19 = vmul.f32 0.7978846, %v3228_v10  ;;  %v11645_v43 = vor.u32 %v13977_v26, %v11644_v33  ;;  %v3255_v47 = vmul.f32 0.7978846, %v3231_v40 }
 0x2de   :  { %14410 = vtanh.f32 %v3243_v8  ;;  %v16542_v23 = vrot.slane %v3500_v52, 4  ;;  %v3258_v11 = vmul.f32 0.7978846, %v3234_v58  ;;  %v3018_v60 = vrot.slane %v3017_v6, 2  ;;  %v20059_v8 = vld [vmem:[#allocation42_spill] sm:$0xff] }
 0x2df   :  { %14412 = vtanh.f32 %v3246_v56  ;;  %4188 = vmatpush.bf16.msrb.mxu2 %v11645_v43  ;;  %v11633_v28 = vor.u32 %v13974_v12, %v11632_v41  ;;  %v3261_v13 = vmul.f32 0.7978846, %v3237_v14  ;;  %v16549_v34 = vsel %vm3549_vm2, %v3577_v32, %v3583_v45  ;;  %v13979_v56 = vld [vmem:[#allocation12 + $0x16c] sm:$0xf] }
 0x2e0   :  { %20057 = vst [vmem:[#allocation38_spill] sm:$0xff] %v16542_v23  ;;  %14414 = vtanh.f32 %v3249_v3  ;;  %v3264_v57 = vmul.f32 0.7978846, %v3240_v21  ;;  %v3019_v33 = vadd.f32 %v3018_v60, %v3017_v6  ;;  %v16553_v4 = vpack.c.bf16 %v16424_v30, %v16421_v46  ;;  %v11608_v46 = vld [vmem:[#allocation12 + $0x108] sm:$0xf] }
 0x2e1   :  { %14416 = vtanh.f32 %v3252_v19  ;;  %v16559_v53 = vsel %vm3549_vm2, %v3583_v45, %v16542_v23  ;;  %v11621_v39 = vor.u32 %v13971_v63, %v11620_v49  ;;  %v13968_v30 = vld [vmem:[#allocation12 + $0x110] sm:$0xf0]  ;;  %v11596_v45 = vld [vmem:[#allocation12 + $0xf0] sm:$0xf]  ;;  %vm305_vm8 = vcmp.ge.s32.totalorder %v20059_v8, 4 }
 0x2e2   :  { %14418 = vtanh.f32 %v3255_v47  ;;  %v3020_v55 = vrot.slane %v3019_v33, 1  ;;  %4171 = vmatmul.bf16.gmra.mxu3 %v16553_v4  ;;  %v16564_v32 = vpack.c.bf16 %v16559_v53, %v16549_v34  ;;  %v11609_v58 = vor.u32 %v13968_v30, %v11608_v46  ;;  %vm16598_vm9 = vmpackc.low %vm14946_vm3, %vm305_vm8  ;;  %v12184_v8 = vld [vmem:[#allocation12 + $0x510] sm:$0xf] }
 0x2e3   :  { %14420 = vtanh.f32 %v3258_v11  ;;  %4189 = vmatpush.bf16.msrb.mxu2 %v11633_v28  ;;  %4258 = vmatmul.bf16.gmra.mxu1 %v16553_v4  ;;  %v11597_v12 = vor.u32 %v13965_v16, %v11596_v45  ;;  %v11658_v11 = vld [vmem:[#allocation12 + $0x174] sm:$0xf0] }
 0x2e4   :  { %20058 = vst [vmem:[#allocation48_spill] sm:$0xff] %v16564_v32  ;;  %v14411_v6 = vpop.eup %14410  ;;  %14422 = vtanh.f32 %v3261_v13  ;;  %v3021_v1 = vadd.f32 %v3020_v55, %v3019_v33  ;;  %v11661_v63 = vor.u32 %v13979_v56, %v11658_v11  ;;  %v13981_v33 = vld [vmem:[#allocation12 + $0x178] sm:$0xf0]  ;;  %v11640_v11 = vld [vmem:[#allocation12 + $0x140] sm:$0xf] }
 0x2e5   :  { %v14413_v7 = vpop.eup %14412  ;;  %14424 = vtanh.f32 %v3264_v57  ;;  %v3291_v50 = vadd.f32 1.0, %v14411_v6  ;;  %v11664_v57 = vld [vmem:[#allocation12 + $0x170] sm:$0xf] }
 0x2e6   :  { %v14415_v0 = vpop.eup %14414  ;;  %v3294_v18 = vadd.f32 1.0, %v14413_v7  ;;  %v3024_v40 = vmul.f32 %v3021_v1, %v16086_v48  ;;  %4274 = vmatpush.bf16.msra.mxu3 %v11661_v63  ;;  %v11665_v16 = vor.u32 %v13981_v33, %v11664_v57  ;;  %v11568_v32 = vld [vmem:[#allocation12 + $0xb0] sm:$0xf] }
 0x2e7   :  { %v14417_v26 = vpop.eup %14416  ;;  %v3297_v35 = vadd.f32 1.0, %v14415_v0  ;;  %v3315_v10 = vmul.f32 0.5, %v3291_v50  ;;  %4190 = vmatpush.bf16.msrb.mxu2 %v11621_v39  ;;  %v11646_v50 = vld [vmem:[#allocation12 + $0x15c] sm:$0xf0] }
 0x2e8   :  { %v14419_v41 = vpop.eup %14418  ;;  %v3300_v52 = vadd.f32 1.0, %v14417_v26  ;;  %v3318_v14 = vmul.f32 0.5, %v3294_v18  ;;  %v16572_v47 = vadd.f32 1e-05, %v3024_v40  ;;  %v11652_v18 = vld [vmem:[#allocation12 + $0x158] sm:$0xf]  ;;  %4361 = vmatpush.bf16.msra.mxu1 %v11665_v16 }
 0x2e9   :  { %v14421_v21 = vpop.eup %14420  ;;  %v3303_v3 = vadd.f32 1.0, %v14419_v41  ;;  %v3321_v19 = vmul.f32 0.5, %v3297_v35  ;;  %v16570_v43 = vmul.f32 %v3315_v10, %v16480_v54  ;;  %v11584_v54 = vld [vmem:[#allocation12 + $0xd8] sm:$0xf]  ;;  %v13962_v40 = vld [vmem:[#allocation12 + $0xe0] sm:$0xf0] }
 0x2ea   :  { %v14423_v60 = vpop.eup %14422  ;;  %v3306_v28 = vadd.f32 1.0, %v14421_v21  ;;  %v3324_v13 = vmul.f32 0.5, %v3300_v52  ;;  %v16575_v49 = vmul.f32 %v3318_v14, %v16483_v38  ;;  %14426 = vrsqrt.f32 %v16572_v47  ;;  %v13976_v38 = vld [vmem:[#allocation12 + $0x154] sm:$0xf]  ;;  %v13959_v14 = vld [vmem:[#allocation12 + $0xc8] sm:$0xf0] }
 0x2eb   :  { %v14425_v55 = vpop.eup %14424  ;;  %v3309_v39 = vadd.f32 1.0, %v14423_v60  ;;  %v3327_v6 = vmul.f32 0.5, %v3303_v3  ;;  %v16578_v46 = vmul.f32 %v3321_v19, %v16486_v22  ;;  %3363 = vst [vmem:[#allocation2 + $0x20] sm:$0xff] %v16570_v43  ;;  %4191 = vmatpush.bf16.msrb.mxu2 %v11609_v58  ;;  %v11649_v0 = vor.u32 %v13976_v38, %v11646_v50  ;;  %v13978_v22 = vld [vmem:[#allocation12 + $0x160] sm:$0xf0] }
 0x2ec   :  { %v3312_v30 = vadd.f32 1.0, %v14425_v55  ;;  %v3330_v7 = vmul.f32 0.5, %v3306_v28  ;;  %v16583_v45 = vmul.f32 %v3324_v13, %v16489_v36  ;;  %v11572_v58 = vld [vmem:[#allocation12 + $0xc0] sm:$0xf]  ;;  %v3554_v41 = vrot.slane %v16570_v43, 4 }
 0x2ed   :  { %20060 = vst [vmem:[#allocation30_spill] sm:$0xff] %v16578_v46  ;;  %v3333_v1 = vmul.f32 0.5, %v3309_v39  ;;  %v16586_v35 = vmul.f32 %v3327_v6, %v16492_v44  ;;  %v11653_v44 = vor.u32 %v13978_v22, %v11652_v18  ;;  %v3561_v56 = vrot.slane %v16575_v49, 4  ;;  %4275 = vmatpush.bf16.msra.mxu3 %v11649_v0  ;;  %v13973_v19 = vld [vmem:[#allocation12 + $0x13c] sm:$0xf] }
 0x2ee   :  { %20061 = vst [vmem:[#allocation39_spill] sm:$0xff] %v16583_v45  ;;  %v3336_v26 = vmul.f32 0.5, %v3312_v30  ;;  %v16589_v10 = vmul.f32 %v3330_v7, %v16495_v59  ;;  %v3480_v59 = vld [vmem:[#allocation2 + $0x8] sm:$0xf0]  ;;  %v3567_v21 = vrot.slane %v16578_v46, 4  ;;  %v16607_v28 = vpack.c.bf16 %v16549_v34, %v16436_v61 }
 0x2ef   :  { %20062 = vst [vmem:[#allocation33_spill] sm:$0xff] %v16586_v35  ;;  %v16593_v52 = vmul.f32 %v3333_v1, %v16498_v25  ;;  %4192 = vmatpush.bf16.msrb.mxu2 %v11597_v12  ;;  %v11585_v25 = vor.u32 %v13962_v40, %v11584_v54  ;;  %v11634_v43 = vld [vmem:[#allocation12 + $0x144] sm:$0xf0]  ;;  %v13975_v13 = vld [vmem:[#allocation12 + $0x148] sm:$0xf0]  ;;  %v3553_v63 = vrot.slane %v3480_v59, 4  ;;  %v11573_v33 = vor.u32 %v13959_v14, %v11572_v58 }
 0x2f0   :  { %20063 = vst [vmem:[#allocation43_spill] sm:$0xff] %v16589_v10  ;;  %v3360_v3 = vmul.f32 %v3336_v26, %v16501_v27  ;;  %v14427_v60 = vpop.eup %14426  ;;  %v11637_v12 = vor.u32 %v13973_v19, %v11634_v43  ;;  %v3503_v55 = vld [vmem:[#allocation2 + $0xc0] sm:$0xf]  ;;  %v3562_v27 = vsel %vm3549_vm2, %v3554_v41, %v3561_v56  ;;  %v3573_v39 = vrot.slane %v16583_v45, 4  ;;  %4362 = vmatpush.bf16.msra.mxu1 %v11653_v44  ;;  %v11622_v38 = vld [vmem:[#allocation12 + $0x12c] sm:$0xf0] }
 0x2f1   :  { %20064 = vst [vmem:[#allocation34_spill] sm:$0xff] %v16593_v52  ;;  %v3049_v57 = vmul.f32 %v14427_v60, %v16572_v47  ;;  %v11641_v6 = vor.u32 %v13975_v13, %v11640_v11  ;;  %v3579_v61 = vrot.slane %v16586_v35, 4  ;;  %v3585_v34 = vrot.slane %v16589_v10, 4  ;;  %v13970_v7 = vld [vmem:[#allocation12 + $0x124] sm:$0xf] }
 0x2f2   :  { %3384 = vst [vmem:[#allocation2 + $0xc8] sm:$0xff] %v3360_v3  ;;  %11719 = vmatmul.msk.bf16.gmra.mxu3 %vm16598_vm9, %v16607_v28  ;;  %v16618_v54 = vrot.slane %v16593_v52, 4  ;;  %v11628_v50 = vld [vmem:[#allocation12 + $0x128] sm:$0xf]  ;;  %v3555_v1 = vsel %vm3549_vm2, %v3553_v63, %v3554_v41  ;;  %v3574_v16 = vsel %vm3549_vm2, %v3567_v21, %v3573_v39  ;;  %v11625_v0 = vor.u32 %v13970_v7, %v11622_v38  ;;  %v13972_v18 = vld [vmem:[#allocation12 + $0x130] sm:$0xf0] }
 0x2f3   :  { %v3050_v30 = vmul.f32 %v14427_v60, %v3049_v57  ;;  %4193 = vmatpush.bf16.msrb.mxu2 %v11585_v25  ;;  %4276 = vmatpush.bf16.msra.mxu3 %v11637_v12  ;;  %v3595_v22 = vrot.slane %v3503_v55, 4  ;;  %v16626_v26 = vsel %vm3549_vm2, %v3573_v39, %v3579_v61  ;;  %v3650_v40 = vld [vmem:[#allocation2 + $0x20] sm:$0xf0]  ;;  %v16629_v58 = vsel %vm3549_vm2, %v3579_v61, %v3585_v34  ;;  %v13967_v11 = vld [vmem:[#allocation12 + $0x10c] sm:$0xf] }
 0x2f4   :  { %11735 = vmatmul.msk.bf16.gmra.mxu1 %vm16598_vm9, %v16607_v28  ;;  %v3685_v14 = vrot.slane %v3650_v40, 4  ;;  %v16632_v41 = vpack.c.bf16 %v16626_v26, %v3574_v16  ;;  %v11629_v59 = vor.u32 %v13972_v18, %v11628_v50  ;;  %v16634_v3 = vpack.c.bf16 %v3562_v27, %v3555_v1  ;;  %v11610_v12 = vld [vmem:[#allocation12 + $0x114] sm:$0xf0]  ;;  %v11616_v55 = vld [vmem:[#allocation12 + $0x110] sm:$0xf] }
 0x2f5   :  { %v3051_v44 = vmul.f32 0.5, %v3050_v30  ;;  %4363 = vmatpush.bf16.msra.mxu1 %v11641_v6  ;;  %v3568_v25 = vsel %vm3549_vm2, %v3561_v56, %v3567_v21  ;;  %v16639_v19 = vsel %vm3549_vm2, %v3585_v34, %v16618_v54  ;;  %vm3055_vm10 = vweird.f32 %v14427_v60  ;;  %v13969_v27 = vld [vmem:[#allocation12 + $0x118] sm:$0xf0] }
 0x2f6   :  { %20067 = vst [vmem:[#allocation44_spill] sm:$0xff] %v16632_v41  ;;  %v3686_v13 = vsel %vm3549_vm2, %v3685_v14, %v3561_v56  ;;  %v16644_v63 = vpack.c.bf16 %v16639_v19, %v16629_v58  ;;  %v3596_v57 = vsel %vm3549_vm2, %v16542_v23, %v3595_v22  ;;  %v11613_v21 = vor.u32 %v13967_v11, %v11610_v12  ;;  %v14605_v30 = vld [vmem:[#allocation11] sm:$0x7]  ;;  %v13991_v23 = vld [vmem:[#allocation12 + $0x1cc] sm:$0xf] }
 0x2f7   :  { %v3052_v43 = vsub.f32 1.5, %v3051_v44  ;;  %4194 = vmatpush.bf16.msrb.mxu2 %v11573_v33  ;;  %4277 = vmatpush.bf16.msra.mxu3 %v11625_v0  ;;  %v16648_v39 = vpack.c.bf16 %v3568_v25, %v3686_v13  ;;  %vm3054_vm11 = vweird.f32 %v16572_v47  ;;  %v14604_v33 = vld [vmem:[#allocation9] sm:$0x7]  ;;  %v11617_v56 = vor.u32 %v13969_v27, %v11616_v55 }
 0x2f8   :  { %20068 = vst [vmem:[#allocation50_spill] sm:$0xff] %v16644_v63  ;;  %vm3056_vm12 = vmor %vm3054_vm11, %vm3055_vm10  ;;  %v3086_v61 = vperm.slane %v14604_v33, 2  ;;  %v3118_v7 = vperm.slane %v14605_v30, 2  ;;  %v16655_v38 = vpack.c.bf16 %v3596_v57, %v16559_v53  ;;  %v16657_v50 = vpack.c.bf16 %v3574_v16, %v3568_v25 }
 0x2f9   :  { %v3053_v6 = vmul.f32 %v14427_v60, %v3052_v43  ;;  %4364 = vmatpush.bf16.msra.mxu1 %v11629_v59 }
 0x2fa   :  { %11722 = vmatmul.msk.bf16.vlgmr.msrb.gmra.mxu2 %vm16471_vm7, %v16634_v3 }
 0x2fb   :  { %v3057_v34 = vsel %vm3056_vm12, %v14427_v60, %v3053_v6  ;;  %4278 = vmatpush.bf16.msra.mxu3 %v11613_v21 }
 0x2fc   :  { %v3060_v47 = vmul.f32 %v3057_v34, %v16345_v31  ;;  %v3063_v1 = vmul.f32 %v3057_v34, %v16348_v2  ;;  %v3066_v0 = vmul.f32 %v3057_v34, %v16351_v62  ;;  %v3069_v18 = vmul.f32 %v3057_v34, %v16356_v5 }
 0x2fd   :  { %v3072_v22 = vmul.f32 %v3057_v34, %v16359_v17  ;;  %v3075_v60 = vmul.f32 %v3057_v34, %v16362_v20  ;;  %v3078_v40 = vmul.f32 %v3057_v34, %v16365_v42  ;;  %v3081_v53 = vmul.f32 %v3057_v34, %v16368_v37  ;;  %4365 = vmatpush.bf16.msra.mxu1 %v11617_v56  ;;  %v11704_v56 = vld [vmem:[#allocation12 + $0x1c8] sm:$0xf]  ;;  %v13992_v34 = vld [vmem:[#allocation12 + $0x1d0] sm:$0xf0] }
 0x2fe   :  { %v3092_v44 = vmul.f32 %v3086_v61, %v3060_v47  ;;  %v3095_v14 = vmul.f32 %v3086_v61, %v3063_v1  ;;  %v3098_v16 = vmul.f32 %v3086_v61, %v3066_v0  ;;  %v3101_v59 = vmul.f32 %v3086_v61, %v3069_v18  ;;  %v11692_v0 = vld [vmem:[#allocation12 + $0x1b0] sm:$0xf]  ;;  %v13989_v18 = vld [vmem:[#allocation12 + $0x1b8] sm:$0xf0] }
 0x2ff   :  { %v3104_v31 = vmul.f32 %v3086_v61, %v3072_v22  ;;  %v3107_v25 = vmul.f32 %v3086_v61, %v3075_v60  ;;  %v3110_v2 = vmul.f32 %v3086_v61, %v3078_v40  ;;  %v3113_v43 = vmul.f32 %v3086_v61, %v3081_v53 }
 0x300   :  { %v16667_v62 = vadd.f32 %v3118_v7, %v3092_v44  ;;  %v16669_v5 = vadd.f32 %v3118_v7, %v3095_v14  ;;  %v16671_v17 = vadd.f32 %v3118_v7, %v3098_v16  ;;  %v16673_v20 = vadd.f32 %v3118_v7, %v3101_v59 }
 0x301   :  { %v16675_v42 = vadd.f32 %v3118_v7, %v3104_v31  ;;  %v16677_v37 = vadd.f32 %v3118_v7, %v3107_v25  ;;  %v16679_v11 = vadd.f32 %v3118_v7, %v3110_v2  ;;  %v16681_v12 = vadd.f32 %v3118_v7, %v3113_v43 }
 0x302   :  { %v3148_v13 = vmul.f32 %v16667_v62, %v16667_v62  ;;  %v3151_v57 = vmul.f32 %v16669_v5, %v16669_v5  ;;  %v3154_v21 = vmul.f32 %v16671_v17, %v16671_v17  ;;  %v3157_v55 = vmul.f32 %v16673_v20, %v16673_v20  ;;  %4181 = vmatmul.bf16.gmra.mxu3 %v16655_v38 }
 0x303   :  { %v3160_v27 = vmul.f32 %v16675_v42, %v16675_v42  ;;  %v3163_v6 = vmul.f32 %v16677_v37, %v16677_v37  ;;  %v3166_v33 = vmul.f32 %v16679_v11, %v16679_v11  ;;  %v3169_v61 = vmul.f32 %v16681_v12, %v16681_v12 }
 0x304   :  { %v3172_v30 = vmul.f32 %v3148_v13, %v16667_v62  ;;  %v3175_v7 = vmul.f32 %v3151_v57, %v16669_v5  ;;  %v3178_v47 = vmul.f32 %v3154_v21, %v16671_v17  ;;  %v3181_v1 = vmul.f32 %v3157_v55, %v16673_v20  ;;  %4268 = vmatmul.bf16.gmra.mxu1 %v16655_v38 }
 0x305   :  { %v3184_v22 = vmul.f32 %v3160_v27, %v16675_v42  ;;  %v3187_v60 = vmul.f32 %v3163_v6, %v16677_v37  ;;  %v3190_v40 = vmul.f32 %v3166_v33, %v16679_v11  ;;  %v3193_v53 = vmul.f32 %v3169_v61, %v16681_v12  ;;  %v13964_v27 = vld [vmem:[#allocation12 + $0xf4] sm:$0xf]  ;;  %v11598_v6 = vld [vmem:[#allocation12 + $0xfc] sm:$0xf0] }
 0x306   :  { %v3196_v44 = vmul.f32 0.044715, %v3172_v30  ;;  %v3199_v14 = vmul.f32 0.044715, %v3175_v7  ;;  %v3202_v16 = vmul.f32 0.044715, %v3178_v47  ;;  %v11705_v59 = vor.u32 %v13992_v34, %v11704_v56 }
 0x307   :  { %v3205_v31 = vmul.f32 0.044715, %v3181_v1  ;;  %v3208_v25 = vmul.f32 0.044715, %v3184_v22  ;;  %v3211_v2 = vmul.f32 0.044715, %v3187_v60  ;;  %v11693_v43 = vor.u32 %v13989_v18, %v11692_v0 }
 0x308   :  { %v3214_v13 = vmul.f32 0.044715, %v3190_v40  ;;  %v3217_v57 = vmul.f32 0.044715, %v3193_v53  ;;  %v3220_v21 = vadd.f32 %v3196_v44, %v16667_v62  ;;  %v3223_v55 = vadd.f32 %v3199_v14, %v16669_v5  ;;  %4220 = vmatpush.bf16.msra.mxu0 %v11705_v59  ;;  %v11680_v34 = vld [vmem:[#allocation12 + $0x198] sm:$0xf] }
 0x309   :  { %v3226_v33 = vadd.f32 %v3202_v16, %v16671_v17  ;;  %v3229_v61 = vadd.f32 %v3205_v31, %v16673_v20  ;;  %v3232_v30 = vadd.f32 %v3208_v25, %v16675_v42  ;;  %v3235_v56 = vadd.f32 %v3211_v2, %v16677_v37  ;;  %v13986_v7 = vld [vmem:[#allocation12 + $0x1a0] sm:$0xf0]  ;;  %v11604_v47 = vld [vmem:[#allocation12 + $0xf8] sm:$0xf]  ;;  %v13961_v60 = vld [vmem:[#allocation12 + $0xdc] sm:$0xf] }
 0x30a   :  { %v13966_v1 = vld [vmem:[#allocation12 + $0x100] sm:$0xf0]  ;;  %v3238_v0 = vadd.f32 %v3214_v13, %v16679_v11  ;;  %v3244_v18 = vmul.f32 0.7978846, %v3220_v21  ;;  %v3247_v22 = vmul.f32 0.7978846, %v3223_v55  ;;  %4200 = vmatmul.bf16.gmra.mxu2 %v16657_v50  ;;  %v3241_v53 = vadd.f32 %v3217_v57, %v16681_v12 }
 0x30b   :  { %v11586_v40 = vld [vmem:[#allocation12 + $0xe4] sm:$0xf0]  ;;  %v3250_v44 = vmul.f32 0.7978846, %v3226_v33  ;;  %v3253_v14 = vmul.f32 0.7978846, %v3229_v61  ;;  %v11681_v48 = vor.u32 %v13986_v7, %v11680_v34  ;;  %v11601_v55 = vor.u32 %v13964_v27, %v11598_v6 }
 0x30c   :  { %v11668_v16 = vld [vmem:[#allocation12 + $0x180] sm:$0xf]  ;;  %v13983_v59 = vld [vmem:[#allocation12 + $0x188] sm:$0xf0]  ;;  %v3256_v2 = vmul.f32 0.7978846, %v3232_v30  ;;  %14428 = vtanh.f32 %v3244_v18  ;;  %4221 = vmatpush.bf16.msra.mxu0 %v11693_v43  ;;  %v11605_v57 = vor.u32 %v13966_v1, %v11604_v47  ;;  %v11589_v41 = vor.u32 %v13961_v60, %v11586_v40 }
 0x30d   :  { %v11592_v31 = vld [vmem:[#allocation12 + $0xe0] sm:$0xf]  ;;  %v13963_v25 = vld [vmem:[#allocation12 + $0xe8] sm:$0xf0]  ;;  %v11706_v13 = vld [vmem:[#allocation12 + $0x1d4] sm:$0xf0]  ;;  %14430 = vtanh.f32 %v3247_v22  ;;  %4279 = vmatpush.bf16.msra.mxu3 %v11601_v55  ;;  %v11669_v43 = vor.u32 %v13983_v59, %v11668_v16 }
 0x30e   :  { %v3259_v21 = vmul.f32 0.7978846, %v3235_v56  ;;  %v3262_v29 = vmul.f32 0.7978846, %v3238_v0  ;;  %14432 = vtanh.f32 %v3250_v44  ;;  %v13988_v33 = vld [vmem:[#allocation12 + $0x1b4] sm:$0xf]  ;;  %v11709_v30 = vor.u32 %v13991_v23, %v11706_v13  ;;  %4366 = vmatpush.bf16.msra.mxu1 %v11605_v57 }
 0x30f   :  { %v11694_v61 = vld [vmem:[#allocation12 + $0x1bc] sm:$0xf0]  ;;  %v3265_v63 = vmul.f32 0.7978846, %v3241_v53  ;;  %14434 = vtanh.f32 %v3253_v14  ;;  %v11593_v34 = vor.u32 %v13963_v25, %v11592_v31  ;;  %v13958_v56 = vld [vmem:[#allocation12 + $0xc4] sm:$0xf]  ;;  %v11569_v0 = vor.u32 %v13957_v51, %v11568_v32 }
 0x310   :  { %14436 = vtanh.f32 %v3256_v2  ;;  %4222 = vmatpush.bf16.msra.mxu0 %v11681_v48  ;;  %v11574_v7 = vld [vmem:[#allocation12 + $0xcc] sm:$0xf0]  ;;  %4307 = vmatpush.bf16.msra.mxu2 %v11709_v30  ;;  %v11580_v27 = vld [vmem:[#allocation12 + $0xc8] sm:$0xf]  ;;  %v13960_v6 = vld [vmem:[#allocation12 + $0xd0] sm:$0xf0]  ;;  %v11697_v47 = vor.u32 %v13988_v33, %v11694_v61  ;;  %v16723_v13 = vpack.c.bf16 %v16629_v58, %v16626_v26 }
 0x311   :  { %14438 = vtanh.f32 %v3259_v21  ;;  %v11556_v18 = vld [vmem:[#allocation12 + $0x98] sm:$0xf]  ;;  %v13954_v22 = vld [vmem:[#allocation12 + $0xa0] sm:$0xf0]  ;;  %4280 = vmatpush.bf16.msra.mxu3 %v11589_v41  ;;  %v11577_v48 = vor.u32 %v13958_v56, %v11574_v7  ;;  %v11581_v44 = vor.u32 %v13960_v6, %v11580_v27  ;;  %v11544_v21 = vld [vmem:[#allocation12 + $0x80] sm:$0xf] }
 0x312   :  { %v14429_v1 = vpop.eup %14428  ;;  %14440 = vtanh.f32 %v3262_v29  ;;  %4367 = vmatpush.bf16.msra.mxu1 %v11593_v34  ;;  %v11557_v51 = vor.u32 %v13954_v22, %v11556_v18  ;;  %v13951_v55 = vld [vmem:[#allocation12 + $0x88] sm:$0xf0]  ;;  %v13985_v34 = vld [vmem:[#allocation12 + $0x19c] sm:$0xf]  ;;  %v11682_v56 = vld [vmem:[#allocation12 + $0x1a4] sm:$0xf0] }
 0x313   :  { %v14431_v53 = vpop.eup %14430  ;;  %14442 = vtanh.f32 %v3265_v63  ;;  %v3292_v23 = vadd.f32 1.0, %v14429_v1  ;;  %v11685_v26 = vor.u32 %v13985_v34, %v11682_v56  ;;  %v11532_v58 = vld [vmem:[#allocation12 + $0x68] sm:$0xf] }
 0x314   :  { %v14433_v60 = vpop.eup %14432  ;;  %v3295_v40 = vadd.f32 1.0, %v14431_v53  ;;  %4223 = vmatpush.bf16.msra.mxu0 %v11669_v43  ;;  %4308 = vmatpush.bf16.msra.mxu2 %v11697_v47  ;;  %v11545_v43 = vor.u32 %v13951_v55, %v11544_v21  ;;  %v3481_v53 = vld [vmem:[#allocation2 + $0x10] sm:$0xf0] }
 0x315   :  { %v14435_v14 = vpop.eup %14434  ;;  %v3298_v16 = vadd.f32 1.0, %v14433_v60  ;;  %v3316_v59 = vmul.f32 0.5, %v3292_v23  ;;  %4281 = vmatpush.bf16.msra.mxu3 %v11577_v48 }
 0x316   :  { %v14437_v32 = vpop.eup %14436  ;;  %v3301_v29 = vadd.f32 1.0, %v14435_v14  ;;  %v3319_v31 = vmul.f32 0.5, %v3295_v40  ;;  %4368 = vmatpush.bf16.msra.mxu1 %v11581_v44 }
 0x317   :  { %v14439_v25 = vpop.eup %14438  ;;  %v3304_v2 = vadd.f32 1.0, %v14437_v32  ;;  %v3322_v63 = vmul.f32 0.5, %v3298_v16  ;;  %v16719_v41 = vmul.f32 %v3316_v59, %v16667_v62 }
 0x318   :  { %4332 = vmatpush.bf16.msrb.mxu0 %v11569_v0  ;;  %v14441_v57 = vpop.eup %14440  ;;  %v3307_v33 = vadd.f32 1.0, %v14439_v25  ;;  %v3325_v61 = vmul.f32 0.5, %v3301_v29  ;;  %v16726_v30 = vmul.f32 %v3319_v31, %v16669_v5  ;;  %11738 = vmatmul.msk.bf16.vlgmr.msra.gmra.mxu3 %vm16471_vm7, %v16634_v3 }
 0x319   :  { %20069 = vst [vmem:[#allocation45_spill] sm:$0xff] %v16719_v41  ;;  %v14443_v7 = vpop.eup %14442  ;;  %v3310_v62 = vadd.f32 1.0, %v14441_v57  ;;  %v3328_v27 = vmul.f32 0.5, %v3304_v2  ;;  %v16729_v6 = vmul.f32 %v3322_v63, %v16671_v17  ;;  %v13948_v17 = vld [vmem:[#allocation12 + $0x70] sm:$0xf0]  ;;  %11754 = vmatmul.msk.bf16.vlgmr.msra.gmra.mxu1 %vm16471_vm7, %v16634_v3  ;;  %4309 = vmatpush.bf16.msra.mxu2 %v11685_v26 }
 0x31a   :  { %20070 = vst [vmem:[#allocation53_spill] sm:$0xff] %v16726_v30  ;;  %v3313_v0 = vadd.f32 1.0, %v14443_v7  ;;  %v3331_v47 = vmul.f32 0.5, %v3307_v33  ;;  %v16734_v5 = vmul.f32 %v3325_v61, %v16673_v20  ;;  %11725 = vmatmul.msk.bf16.gmra.mxu2 %vm16598_vm9, %v16723_v13  ;;  %v3504_v3 = vld [vmem:[#allocation2 + $0xc8] sm:$0xf] }
 0x31b   :  { %20071 = vst [vmem:[#allocation54_spill] sm:$0xff] %v16729_v6  ;;  %v3334_v1 = vmul.f32 0.5, %v3310_v62  ;;  %v16745_v18 = vmul.f32 %v3328_v27, %v16675_v42  ;;  %v11533_v42 = vor.u32 %v13948_v17, %v11532_v58  ;;  %v3597_v16 = vrot.slane %v3504_v3, 4  ;;  %v20077_v62 = vld [vmem:[#allocation47_spill] sm:$0xff]  ;;  %v11520_v58 = vld [vmem:[#allocation12 + $0x50] sm:$0xf] }
 0x31c   :  { %3364 = vst.msk [vmem:[#allocation2 + $0x28] sm:$0xff] %vm199_vm0, %v16719_v41  ;;  %4333 = vmatpush.bf16.msrb.mxu0 %v11557_v51  ;;  %v3337_v20 = vmul.f32 0.5, %v3313_v0  ;;  %v16753_v22 = vmul.f32 %v3331_v47, %v16677_v37  ;;  %v3556_v37 = vrot.slane %v3481_v53, 4  ;;  %vm312_vm13 = vcmp.lt.s32.totalorder %v20077_v62, 28  ;;  %v13945_v0 = vld [vmem:[#allocation12 + $0x58] sm:$0xf0] }
 0x31d   :  { %20072 = vst [vmem:[#allocation36_spill] sm:$0xff] %v16734_v5  ;;  %v16758_v23 = vmul.f32 %v3334_v1, %v16679_v11  ;;  %v3598_v33 = vsel %vm3549_vm2, %v16618_v54, %v3597_v16  ;;  %v13982_v47 = vld [vmem:[#allocation12 + $0x184] sm:$0xf]  ;;  %v11670_v53 = vld [vmem:[#allocation12 + $0x18c] sm:$0xf0]  ;;  %vm17078_vm14 = vmpackc.low %vm312_vm13, %vm14946_vm3 }
 0x31e   :  { %3367 = vst.msk [vmem:[#allocation2 + $0x40] sm:$0xff] %vm199_vm0, %v16726_v30  ;;  %v16763_v48 = vmul.f32 %v3337_v20, %v16681_v12  ;;  %v16791_v17 = vpack.c.bf16 %v3598_v33, %v16639_v19  ;;  %v11521_v20 = vor.u32 %v13945_v0, %v11520_v58  ;;  %v13993_v16 = vld [vmem:[#allocation12 + $0x1d8] sm:$0xf0]  ;;  %v11980_v33 = vld [vmem:[#allocation12 + $0x390] sm:$0xf] }
 0x31f   :  { %20073 = vst [vmem:[#allocation46_spill] sm:$0xff] %v16745_v18  ;;  %v13987_v58 = vld [vmem:[#allocation12 + $0x1a8] sm:$0xf0]  ;;  %v11968_v0 = vld [vmem:[#allocation12 + $0x378] sm:$0xf] }
 0x320   :  { %3370 = vst.msk [vmem:[#allocation2 + $0x58] sm:$0xff] %vm199_vm0, %v16729_v6  ;;  %4334 = vmatpush.bf16.msrb.mxu0 %v11545_v43 }
 0x321   :  { %20074 = vst [vmem:[#allocation37_spill] sm:$0xff] %v16753_v22 }
 0x322   :  { %3373 = vst.msk [vmem:[#allocation2 + $0x70] sm:$0xff] %vm199_vm0, %v16734_v5 }
 0x323   :  { %20075 = vst [vmem:[#allocation56_spill] sm:$0xff] %v16758_v23  ;;  %v3484_v11 = vld [vmem:[#allocation2 + $0x28] sm:$0xff] }
 0x324   :  { %3376 = vst.msk [vmem:[#allocation2 + $0x88] sm:$0xff] %vm199_vm0, %v16745_v18  ;;  %v3651_v60 = vld [vmem:[#allocation2 + $0x28] sm:$0xf0]  ;;  %v3557_v44 = vrot.slane %v3484_v11, 4  ;;  %4335 = vmatpush.bf16.msrb.mxu0 %v11533_v42  ;;  %v11508_v42 = vld [vmem:[#allocation12 + $0x38] sm:$0xf] }
 0x325   :  { %20076 = vst [vmem:[#allocation51_spill] sm:$0xff] %v16763_v48  ;;  %v3487_v40 = vld [vmem:[#allocation2 + $0x40] sm:$0xff]  ;;  %v3687_v14 = vrot.slane %v3651_v60, 4 }
 0x326   :  { %3379 = vst.msk [vmem:[#allocation2 + $0xa0] sm:$0xff] %vm199_vm0, %v16753_v22  ;;  %v3563_v12 = vrot.slane %v3487_v40, 4  ;;  %v3558_v51 = vsel %vm3549_vm2, %v3556_v37, %v3557_v44  ;;  %v11673_v37 = vor.u32 %v13982_v47, %v11670_v53  ;;  %v13942_v11 = vld [vmem:[#allocation12 + $0x40] sm:$0xf0]  ;;  %v13936_v47 = vld [vmem:[#allocation12 + $0x10] sm:$0xf0] }
 0x327   :  { %3382 = vst.msk [vmem:[#allocation2 + $0xb8] sm:$0xff] %vm199_vm0, %v16758_v23  ;;  %v3490_v59 = vld [vmem:[#allocation2 + $0x58] sm:$0xff]  ;;  %v3627_v25 = vsel %vm301_vm6, %v3558_v51, 0.0  ;;  %v11848_v53 = vld [vmem:[#allocation12 + $0x288] sm:$0xf]  ;;  %vm6490_vm6 = vcmask 1040384  }
 0x328   :  { %3385 = vst.msk [vmem:[#allocation2 + $0xd0] sm:$0xff] %vm199_vm0, %v16763_v48  ;;  %v3569_v29 = vrot.slane %v3490_v59, 4  ;;  %v3564_v31 = vsel %vm3549_vm2, %v3557_v44, %v3563_v12  ;;  %v3688_v63 = vsel %vm3549_vm2, %v3687_v14, %v3563_v12  ;;  %4287 = vmatmul.bf16.gmra.mxu3 %v16657_v50  ;;  %4336 = vmatpush.bf16.msrb.mxu0 %v11521_v20  ;;  %v11712_v14 = vld [vmem:[#allocation12 + $0x1d0] sm:$0xf] }
 0x329   :  { %v3493_v32 = vld [vmem:[#allocation2 + $0x70] sm:$0xff]  ;;  %v16776_v55 = vpack.c.bf16 %v3564_v31, %v3627_v25  ;;  %4374 = vmatmul.bf16.gmra.mxu1 %v16657_v50  ;;  %v11509_v44 = vor.u32 %v13942_v11, %v11508_v42  ;;  %4310 = vmatpush.bf16.msra.mxu2 %v11673_v37  ;;  %v11713_v51 = vor.u32 %v13993_v16, %v11712_v14  ;;  %v11496_v50 = vld [vmem:[#allocation12 + $0x20] sm:$0xf]  ;;  %v13939_v25 = vld [vmem:[#allocation12 + $0x28] sm:$0xf0] }
 0x32a   :  { %v3575_v2 = vrot.slane %v3493_v32, 4  ;;  %v3570_v57 = vsel %vm3549_vm2, %v3563_v12, %v3569_v29  ;;  %4210 = vmatmul.bf16.gmra.mxu2 %v16791_v17  ;;  %v11992_v12 = vld [vmem:[#allocation12 + $0x3a8] sm:$0xf]  ;;  %v13932_v32 = vld [vmem:[#allocation12 + $0x3b0] sm:$0xf0] }
 0x32b   :  { %v3496_v21 = vld [vmem:[#allocation2 + $0x88] sm:$0xff]  ;;  %v16781_v34 = vpack.c.bf16 %v3570_v57, %v3688_v63  ;;  %11726 = vmatmul.msk.bf16.vlgmr.msra.gmra.mxu0 %vm199_vm0, %v16776_v55  ;;  %4394 = vmatpush.bf16.msrb.mxu3 %v11713_v51  ;;  %v11497_v63 = vor.u32 %v13939_v25, %v11496_v50  ;;  %v11676_v11 = vld [vmem:[#allocation12 + $0x188] sm:$0xf]  ;;  %v11956_v16 = vld [vmem:[#allocation12 + $0x360] sm:$0xf] }
 0x32c   :  { %v3581_v43 = vrot.slane %v3496_v21, 4  ;;  %v3576_v27 = vsel %vm3549_vm2, %v3569_v29, %v3575_v2  ;;  %v11993_v29 = vor.u32 %v13932_v32, %v11992_v12  ;;  %4337 = vmatpush.bf16.msrb.mxu0 %v11509_v44  ;;  %v13990_v21 = vld [vmem:[#allocation12 + $0x1c0] sm:$0xf0]  ;;  %v13984_v44 = vld [vmem:[#allocation12 + $0x190] sm:$0xf0] }
 0x32d   :  { %v3499_v61 = vld [vmem:[#allocation2 + $0xa0] sm:$0xff]  ;;  %v16814_v31 = vpack.c.bf16 %v3576_v27, %v3570_v57  ;;  %v13923_v12 = vld [vmem:[#allocation12 + $0x368] sm:$0xf0]  ;;  %v11677_v51 = vor.u32 %v13984_v44, %v11676_v11  ;;  %v11836_v50 = vld [vmem:[#allocation12 + $0x270] sm:$0xf] }
 0x32e   :  { %v3587_v56 = vrot.slane %v3499_v61, 4  ;;  %v3502_v7 = vld [vmem:[#allocation2 + $0xb8] sm:$0xff]  ;;  %v16788_v26 = vsel %vm3549_vm2, %v3575_v2, %v3581_v43  ;;  %4813 = vmatpush.bf16.msrb.mxu1 %v11993_v29  ;;  %v11700_v2 = vld [vmem:[#allocation12 + $0x1b8] sm:$0xf]  ;;  %v13926_v57 = vld [vmem:[#allocation12 + $0x380] sm:$0xf0]  ;;  %v11957_v32 = vor.u32 %v13923_v12, %v11956_v16 }
 0x32f   :  { %v16796_v3 = vrot.slane %v3502_v7, 4  ;;  %v3721_v60 = vsel %vm312_vm13, %v16788_v26, 0.0  ;;  %v13929_v61 = vld [vmem:[#allocation12 + $0x398] sm:$0xf0]  ;;  %v11688_v7 = vld [vmem:[#allocation12 + $0x1a0] sm:$0xf]  ;;  %v11969_v37 = vor.u32 %v13926_v57, %v11968_v0 }
 0x330   :  { %v16794_v1 = vsel %vm3549_vm2, %v3581_v43, %v3587_v56  ;;  %v16807_v40 = vpack.c.bf16 %v3721_v60, %v3576_v27  ;;  %v11701_v43 = vor.u32 %v13990_v21, %v11700_v2  ;;  %v11484_v27 = vld [vmem:[#allocation12 + $0x8] sm:$0xf]  ;;  %4338 = vmatpush.bf16.msrb.mxu0 %v11497_v63  ;;  %v11689_v42 = vor.u32 %v13987_v58, %v11688_v7  ;;  %v13896_v60 = vld [vmem:[#allocation12 + $0x290] sm:$0xf0]  ;;  %v13893_v25 = vld [vmem:[#allocation12 + $0x278] sm:$0xf0] }
 0x331   :  { %v16805_v19 = vsel %vm3549_vm2, %v3587_v56, %v16796_v3  ;;  %v11981_v56 = vor.u32 %v13929_v61, %v11980_v33  ;;  %v11485_v20 = vor.u32 %v13936_v47, %v11484_v27  ;;  %v11849_v14 = vor.u32 %v13896_v60, %v11848_v53  ;;  %v11944_v2 = vld [vmem:[#allocation12 + $0x348] sm:$0xf]  ;;  %v13920_v21 = vld [vmem:[#allocation12 + $0x350] sm:$0xf0]  ;;  %v11824_v33 = vld [vmem:[#allocation12 + $0x258] sm:$0xf] }
 0x332   :  { %v16812_v59 = vpack.c.bf16 %v16805_v19, %v16794_v1  ;;  %4395 = vmatpush.bf16.msrb.mxu3 %v11701_v43  ;;  %v11837_v63 = vor.u32 %v13893_v25, %v11836_v50  ;;  %v13890_v61 = vld [vmem:[#allocation12 + $0x260] sm:$0xf0]  ;;  %v11945_v43 = vor.u32 %v13920_v21, %v11944_v2  ;;  %v13917_v7 = vld [vmem:[#allocation12 + $0x338] sm:$0xf0]  ;;  %v13887_v53 = vld [vmem:[#allocation12 + $0x248] sm:$0xf0] }
 0x333   :  { %4814 = vmatpush.bf16.msrb.mxu1 %v11981_v56  ;;  %4751 = vmatpush.bf16.msrb.mxu2 %v11849_v14  ;;  %v11932_v56 = vld [vmem:[#allocation12 + $0x330] sm:$0xf]  ;;  %v13914_v11 = vld [vmem:[#allocation12 + $0x320] sm:$0xf0]  ;;  %v11800_v60 = vld [vmem:[#allocation12 + $0x228] sm:$0xf]  ;;  %v16851_v14 = vpack.c.bf16 %v16726_v30, %v16719_v41 }
 0x334   :  { %4339 = vmatpush.bf16.msrb.mxu0 %v11485_v20  ;;  %v11933_v58 = vor.u32 %v13917_v7, %v11932_v56  ;;  %v13884_v44 = vld [vmem:[#allocation12 + $0x230] sm:$0xf0]  ;;  %v11908_v12 = vld [vmem:[#allocation12 + $0x300] sm:$0xf]  ;;  %v11850_v50 = vld [vmem:[#allocation12 + $0x294] sm:$0xf0] }
 0x335   :  { %v11856_v25 = vld [vmem:[#allocation12 + $0x290] sm:$0xf]  ;;  %v13897_v21 = vld [vmem:[#allocation12 + $0x298] sm:$0xf0] }
 0x336   :  { %4396 = vmatpush.bf16.msrb.mxu3 %v11689_v42  ;;  %v11920_v42 = vld [vmem:[#allocation12 + $0x318] sm:$0xf]  ;;  %v11788_v56 = vld [vmem:[#allocation12 + $0x210] sm:$0xf]  ;;  %v13881_v7 = vld [vmem:[#allocation12 + $0x218] sm:$0xf0] }
 0x337   :  { %4815 = vmatpush.bf16.msrb.mxu1 %v11969_v37  ;;  %4752 = vmatpush.bf16.msrb.mxu2 %v11837_v63  ;;  %v12000_v30 = vld [vmem:[#allocation12 + $0x3b0] sm:$0xf] }
 0x338   :  { %11741 = vmatmul.msk.bf16.gmra.mxu3 %vm16598_vm9, %v16723_v13  ;;  %4780 = vmatpush.bf16.msra.mxu0 %v11945_v43 }
 0x339   :  { %11757 = vmatmul.msk.bf16.gmra.mxu1 %vm16598_vm9, %v16723_v13  ;;  %v3639_v13 = vsel %vm305_vm8, %v16788_v26, 0.0  ;;  %v3505_v26 = vld [vmem:[#allocation2 + $0xd0] sm:$0xf] }
 0x33a   :  { %11742 = vmatmul.msk.bf16.vlgmr.msra.gmra.mxu2 %vm199_vm0, %v16776_v55  ;;  %4397 = vmatpush.bf16.msrb.mxu3 %v11677_v51  ;;  %v16830_v29 = vpack.c.bf16 %v16794_v1, %v3639_v13  ;;  %v11825_v1 = vor.u32 %v13890_v61, %v11824_v33  ;;  %v3599_v0 = vrot.slane %v3505_v26, 4  ;;  %v13911_v51 = vld [vmem:[#allocation12 + $0x308] sm:$0xf0]  ;;  %v11857_v61 = vor.u32 %v13897_v21, %v11856_v25 }
 0x33b   :  { %11727 = vmatmul.msk.bf16.gmra.mxu0 %vm199_vm0, %v16814_v31  ;;  %4816 = vmatpush.bf16.msrb.mxu1 %v11957_v32  ;;  %v11801_v32 = vor.u32 %v13884_v44, %v11800_v60  ;;  %v13895_v13 = vld [vmem:[#allocation12 + $0x28c] sm:$0xf]  ;;  %v11909_v2 = vor.u32 %v13911_v51, %v11908_v12  ;;  %v11789_v26 = vor.u32 %v13881_v7, %v11788_v56  ;;  %v13878_v12 = vld [vmem:[#allocation12 + $0x200] sm:$0xf0]  ;;  %v11826_v51 = vld [vmem:[#allocation12 + $0x264] sm:$0xf0] }
 0x33c   :  { %4753 = vmatpush.bf16.msrb.mxu2 %v11825_v1  ;;  %4781 = vmatpush.bf16.msra.mxu0 %v11933_v58  ;;  %v3600_v27 = vsel %vm3549_vm2, %v16796_v3, %v3599_v0  ;;  %v11853_v63 = vor.u32 %v13895_v13, %v11850_v50  ;;  %v11896_v1 = vld [vmem:[#allocation12 + $0x2e8] sm:$0xf]  ;;  %v13908_v58 = vld [vmem:[#allocation12 + $0x2f0] sm:$0xf0]  ;;  %v13891_v13 = vld [vmem:[#allocation12 + $0x268] sm:$0xf0] }
 0x33d   :  { %v16843_v47 = vpack.c.bf16 %v3600_v27, %v16805_v19  ;;  %v11921_v19 = vor.u32 %v13914_v11, %v11920_v42  ;;  %v13892_v0 = vld [vmem:[#allocation12 + $0x274] sm:$0xf]  ;;  %v11897_v27 = vor.u32 %v13908_v58, %v11896_v1  ;;  %v13894_v42 = vld [vmem:[#allocation12 + $0x280] sm:$0xf0]  ;;  %v11764_v50 = vld [vmem:[#allocation12 + $0x1e0] sm:$0xf] }
 0x33e   :  { %4838 = vmatpush.bf16.msra.mxu3 %v11853_v63  ;;  %v13875_v25 = vld [vmem:[#allocation12 + $0x1e8] sm:$0xf0]  ;;  %v11829_v63 = vor.u32 %v13889_v24, %v11826_v51  ;;  %v11814_v1 = vld [vmem:[#allocation12 + $0x24c] sm:$0xf0]  ;;  %v11820_v58 = vld [vmem:[#allocation12 + $0x248] sm:$0xf] }
 0x33f   :  { %4925 = vmatpush.bf16.msra.mxu1 %v11857_v61  ;;  %v13905_v61 = vld [vmem:[#allocation12 + $0x2d8] sm:$0xf0]  ;;  %v11765_v7 = vor.u32 %v13875_v25, %v11764_v50  ;;  %v11872_v51 = vld [vmem:[#allocation12 + $0x2b8] sm:$0xf] }
 0x340   :  { %4782 = vmatpush.bf16.msra.mxu0 %v11921_v19  ;;  %v11776_v19 = vld [vmem:[#allocation12 + $0x1f8] sm:$0xf]  ;;  %v14606_v50 = vld [vmem:[#allocation2 + $0x18] sm:$0xff] }
 0x341   :  { %v14607_v25 = vld [vmem:[#allocation2 + $0x30] sm:$0xff] }
 0x344   :  { %4783 = vmatpush.bf16.msra.mxu0 %v11909_v2  ;;  %v11884_v2 = vld [vmem:[#allocation12 + $0x2d0] sm:$0xf] }
 0x348   :  { %4297 = vmatmul.bf16.gmra.mxu3 %v16791_v17  ;;  %4784 = vmatpush.bf16.msra.mxu0 %v11897_v27 }
 0x349   :  { %4384 = vmatmul.bf16.gmra.mxu1 %v16791_v17  ;;  %v11812_v17 = vld [vmem:[#allocation12 + $0x240] sm:$0xf] }
 0x34a   :  { %11743 = vmatmul.msk.bf16.gmra.mxu2 %vm199_vm0, %v16814_v31  ;;  %v11813_v37 = vor.u32 %v13887_v53, %v11812_v17  ;;  %v11838_v17 = vld [vmem:[#allocation12 + $0x27c] sm:$0xf0]  ;;  %v11844_v53 = vld [vmem:[#allocation12 + $0x278] sm:$0xf] }
 0x34b   :  { %11728 = vmatmul.msk.bf16.gmra.mxu0 %vm199_vm0, %v16830_v29  ;;  %v11841_v60 = vor.u32 %v13892_v0, %v11838_v17  ;;  %v11845_v44 = vor.u32 %v13894_v42, %v11844_v53  ;;  %v13888_v0 = vld [vmem:[#allocation12 + $0x250] sm:$0xf0]  ;;  %v13883_v53 = vld [vmem:[#allocation12 + $0x22c] sm:$0xf] }
 0x34c   :  { %4754 = vmatpush.bf16.msrb.mxu2 %v11813_v37  ;;  %v16872_v37 = vpack.c.bf16 %v16734_v5, %v16729_v6  ;;  %v11821_v17 = vor.u32 %v13888_v0, %v11820_v58  ;;  %v11778_v58 = vld [vmem:[#allocation12 + $0x204] sm:$0xf0]  ;;  %v11784_v0 = vld [vmem:[#allocation12 + $0x200] sm:$0xf]  ;;  %v14034_v5 = vld [vmem:[#allocation12 + $0x500] sm:$0xf0] }
 0x34d   :  { %4839 = vmatpush.bf16.msra.mxu3 %v11841_v60  ;;  %4926 = vmatpush.bf16.msra.mxu1 %v11845_v44  ;;  %v11802_v60 = vld [vmem:[#allocation12 + $0x234] sm:$0xf0]  ;;  %v11808_v44 = vld [vmem:[#allocation12 + $0x230] sm:$0xf] }
 0x34e   :  { %v12124_v6 = vld [vmem:[#allocation12 + $0x498] sm:$0xf] }
 0x350   :  { %v16838_v57 = vpop.f32.mrf.mxu1  ;;  %4755 = vmatpush.bf16.msrb.mxu2 %v11801_v32  ;;  %v11832_v32 = vld [vmem:[#allocation12 + $0x260] sm:$0xf] }
 0x351   :  { %v11833_v21 = vor.u32 %v13891_v13, %v11832_v32  ;;  %4840 = vmatpush.bf16.msra.mxu3 %v11829_v63  ;;  %v13902_v32 = vld [vmem:[#allocation12 + $0x2c0] sm:$0xf0]  ;;  %v13880_v13 = vld [vmem:[#allocation12 + $0x214] sm:$0xf] }
 0x352   :  { %v16845_v20 = vpop.f32.mrf.mxu3  ;;  %v11873_v63 = vor.u32 %v13902_v32, %v11872_v51  ;;  %v13874_v51 = vld [vmem:[#allocation12 + $0x1e4] sm:$0xf]  ;;  %v11946_v32 = vld [vmem:[#allocation12 + $0x354] sm:$0xf0] }
 0x353   :  { %4927 = vmatpush.bf16.msra.mxu1 %v11833_v21  ;;  %v11790_v21 = vld [vmem:[#allocation12 + $0x21c] sm:$0xf0] }
 0x354   :  { %4756 = vmatpush.bf16.msrb.mxu2 %v11789_v26  ;;  %v11885_v26 = vor.u32 %v13905_v61, %v11884_v2  ;;  %v16889_v2 = vpack.c.bf16 %v14607_v25, %v14606_v50  ;;  %v11796_v61 = vld [vmem:[#allocation12 + $0x218] sm:$0xf]  ;;  %v11772_v25 = vld [vmem:[#allocation12 + $0x1e8] sm:$0xf] }
 0x356   :  { %4785 = vmatpush.bf16.msra.mxu0 %v11885_v26  ;;  %v11793_v26 = vor.u32 %v13880_v13, %v11790_v21  ;;  %v11766_v13 = vld [vmem:[#allocation12 + $0x1ec] sm:$0xf0]  ;;  %v13876_v21 = vld [vmem:[#allocation12 + $0x1f0] sm:$0xf0] }
 0x357   :  { %4928 = vmatpush.bf16.msra.mxu1 %v11821_v17  ;;  %v13879_v17 = vld [vmem:[#allocation12 + $0x208] sm:$0xf0] }
 0x358   :  { %v16853_v16 = vpop.f32.mrf.mxu1  ;;  %11758 = vmatmul.msk.bf16.vlgmr.msrb.gmra.mxu3 %vm199_vm0, %v16776_v55 }
 0x359   :  { %12002 = vmatmul.msk.bf16.vlgmr.msrb.gmra.mxu1 %vm199_vm0, %v16851_v14 }
 0x35a   :  { %11744 = vmatmul.msk.bf16.gmra.mxu2 %vm199_vm0, %v16830_v29  ;;  %v16861_v33 = vpop.f32.mrf.mxu3  ;;  %4786 = vmatpush.bf16.msra.mxu0 %v11873_v63  ;;  %v11769_v63 = vor.u32 %v13874_v51, %v11766_v13 }
 0x35b   :  { %11729 = vmatmul.msk.bf16.gmra.mxu0 %vm199_vm0, %v16843_v47 }
 0x360   :  { %v16863_v55 = vpop.f32.mrf.mxu1 }
 0x365   :  { %v16865_v43 = vpop.f32.mrf.mxu3 }
 0x368   :  { %v16874_v11 = vpop.f32.mrf.mxu1  ;;  %11759 = vmatmul.msk.bf16.gmra.mxu3 %vm199_vm0, %v16814_v31  ;;  %v13886_v31 = vld [vmem:[#allocation12 + $0x244] sm:$0xf] }
 0x369   :  { %12003 = vmatmul.msk.bf16.gmra.mxu1 %vm199_vm0, %v16872_v37  ;;  %v11817_v27 = vor.u32 %v13886_v31, %v11814_v1  ;;  %v13882_v31 = vld [vmem:[#allocation12 + $0x220] sm:$0xf0] }
 0x36a   :  { %11745 = vmatmul.msk.bf16.gmra.mxu2 %vm199_vm0, %v16843_v47  ;;  %v11797_v1 = vor.u32 %v13882_v31, %v11796_v61 }
 0x36b   :  { %11748 = vmatmul.msk.bf16.vlgmr.msrb.gmra.mxu0 %vm16471_vm7, %v16443_v15  ;;  %v11777_v15 = vor.u32 %v13878_v12, %v11776_v19  ;;  %v13885_v19 = vld [vmem:[#allocation12 + $0x238] sm:$0xf0]  ;;  %4841 = vmatpush.bf16.msra.mxu3 %v11817_v27  ;;  %v11805_v12 = vor.u32 %v13883_v53, %v11802_v60  ;;  %v11860_v53 = vld [vmem:[#allocation12 + $0x2a0] sm:$0xf]  ;;  %v13899_v60 = vld [vmem:[#allocation12 + $0x2a8] sm:$0xf0] }
 0x36c   :  { %v11809_v24 = vor.u32 %v13885_v19, %v11808_v44  ;;  %v11861_v44 = vor.u32 %v13899_v60, %v11860_v53  ;;  %v13919_v19 = vld [vmem:[#allocation12 + $0x34c] sm:$0xf]  ;;  %v14609_v60 = vld [vmem:[#allocation2 + $0x60] sm:$0xff] }
 0x36d   :  { %v16882_v56 = vpop.f32.mrf.mxu3  ;;  %4757 = vmatpush.bf16.msrb.mxu2 %v11777_v15  ;;  %v11949_v50 = vor.u32 %v13919_v19, %v11946_v32  ;;  %v14608_v53 = vld [vmem:[#allocation2 + $0x48] sm:$0xff]  ;;  %v11922_v32 = vld [vmem:[#allocation12 + $0x324] sm:$0xf0] }
 0x36e   :  { %4929 = vmatpush.bf16.msra.mxu1 %v11809_v24  ;;  %v11785_v24 = vor.u32 %v13879_v17, %v11784_v0  ;;  %4787 = vmatpush.bf16.msra.mxu0 %v11861_v44  ;;  %v11934_v0 = vld [vmem:[#allocation12 + $0x33c] sm:$0xf0]  ;;  %v13931_v17 = vld [vmem:[#allocation12 + $0x3ac] sm:$0xf]  ;;  %v16915_v44 = vpack.c.bf16 %v14609_v60, %v14608_v53 }
 0x36f   :  { %4842 = vmatpush.bf16.msra.mxu3 %v11805_v12  ;;  %v11982_v60 = vld [vmem:[#allocation12 + $0x39c] sm:$0xf0] }
 0x371   :  { %v16884_v42 = vpop.f32.mrf.mxu1  ;;  %4758 = vmatpush.bf16.msrb.mxu2 %v11765_v7  ;;  %v16893_v7 = vpack.c.bf16 %v16753_v22, %v16745_v18  ;;  %v13915_v22 = vld [vmem:[#allocation12 + $0x328] sm:$0xf0]  ;;  %v12172_v18 = vld [vmem:[#allocation12 + $0x4f8] sm:$0xf] }
 0x372   :  { %4930 = vmatpush.bf16.msra.mxu1 %v11797_v1 }
 0x373   :  { %4843 = vmatpush.bf16.msra.mxu3 %v11793_v26  ;;  %v11773_v26 = vor.u32 %v13876_v21, %v11772_v25 }
 0x375   :  { %v16886_v15 = vpop.f32.mrf.mxu3  ;;  %4867 = vmatpush.bf16.msra.mxu2 %v11949_v50 }
 0x376   :  { %4931 = vmatpush.bf16.msra.mxu1 %v11785_v24  ;;  %v16919_v24 = vpack.c.bf16 %v16763_v48, %v16758_v23  ;;  %v14037_v48 = vld [vmem:[#allocation12 + $0x518] sm:$0xf0] }
 0x378   :  { %11760 = vmatmul.msk.bf16.gmra.mxu3 %vm199_vm0, %v16830_v29 }
 0x379   :  { %v16897_v27 = vpop.f32.mrf.mxu1  ;;  %12004 = vmatmul.msk.bf16.gmra.mxu1 %vm199_vm0, %v16893_v7 }
 0x37a   :  { %4759 = vmatmul.bf16.vlgmr.msrb.gmra.mxu2 %v16889_v2  ;;  %4932 = vmatpush.bf16.msra.mxu1 %v11773_v26  ;;  %v11910_v26 = vld [vmem:[#allocation12 + $0x30c] sm:$0xf0] }
 0x37b   :  { %4345 = vmatmul.bf16.gmra.mxu0 %v16553_v4  ;;  %v13877_v4 = vld [vmem:[#allocation12 + $0x1fc] sm:$0xf] }
 0x37c   :  { %v11781_v12 = vor.u32 %v13877_v4, %v11778_v58 }
 0x37d   :  { %v4196_v29 = vpop.f32.mrf.mxu2  ;;  %v16905_v31 = vpop.f32.mrf.mxu3 }
 0x37e   :  { %v16903_v61 = vadd.f32 %v4196_v29, %v16845_v20  ;;  %4844 = vmatpush.bf16.msra.mxu3 %v11781_v12  ;;  %v13916_v20 = vld [vmem:[#allocation12 + $0x334] sm:$0xf]  ;;  %v11994_v12 = vld [vmem:[#allocation12 + $0x3b4] sm:$0xf0] }
 0x37f   :  { %v11937_v19 = vor.u32 %v13916_v20, %v11934_v0  ;;  %v14610_v0 = vld [vmem:[#allocation2 + $0x78] sm:$0xff] }
 0x381   :  { %v16907_v1 = vpop.f32.mrf.mxu1  ;;  %4868 = vmatpush.bf16.msra.mxu2 %v11937_v19 }
 0x382   :  { %4845 = vmatpush.bf16.msra.mxu3 %v11769_v63  ;;  %v13910_v63 = vld [vmem:[#allocation12 + $0x304] sm:$0xf] }
 0x385   :  { %v4198_v4 = vpop.f32.mrf.mxu2  ;;  %v16921_v51 = vpop.f32.mrf.mxu3 }
 0x386   :  { %v16910_v58 = vadd.f32 %v4198_v4, %v16861_v33  ;;  %v11997_v33 = vor.u32 %v13931_v17, %v11994_v12  ;;  %v13928_v4 = vld [vmem:[#allocation12 + $0x394] sm:$0xf]  ;;  %v13907_v12 = vld [vmem:[#allocation12 + $0x2ec] sm:$0xf] }
 0x387   :  { %v14611_v17 = vld [vmem:[#allocation2 + $0x90] sm:$0xff]  ;;  %v11985_v19 = vor.u32 %v13928_v4, %v11982_v60 }
 0x388   :  { %11761 = vmatmul.msk.bf16.gmra.mxu3 %vm199_vm0, %v16843_v47  ;;  %4900 = vmatpush.bf16.msrb.mxu0 %v11997_v33  ;;  %v16941_v53 = vpack.c.bf16 %v14611_v17, %v14610_v0  ;;  %v11898_v33 = vld [vmem:[#allocation12 + $0x2f4] sm:$0xf0] }
 0x389   :  { %12005 = vmatmul.msk.bf16.gmra.mxu1 %vm199_vm0, %v16919_v24  ;;  %v16928_v29 = vpop.f32.mrf.mxu1 }
 0x38a   :  { %4764 = vmatmul.bf16.gmra.mxu2 %v16915_v44 }
 0x38b   :  { %11751 = vmatmul.msk.bf16.gmra.mxu0 %vm16598_vm9, %v16607_v28  ;;  %v13913_v28 = vld [vmem:[#allocation12 + $0x31c] sm:$0xf]  ;;  %vm6624_vm9 = vcmask 1046528  }
 0x38c   :  { %v11925_v50 = vor.u32 %v13913_v28, %v11922_v32  ;;  %4901 = vmatpush.bf16.msrb.mxu0 %v11985_v19  ;;  %v11901_v32 = vor.u32 %v13907_v12, %v11898_v33  ;;  %v11886_v12 = vld [vmem:[#allocation12 + $0x2dc] sm:$0xf0] }
 0x38d   :  { %v4201_v36 = vpop.f32.mrf.mxu2  ;;  %v16933_v25 = vpop.f32.mrf.mxu3 }
 0x38e   :  { %v16931_v13 = vadd.f32 %v4201_v36, %v16865_v43  ;;  %4869 = vmatpush.bf16.msra.mxu2 %v11925_v50  ;;  %v11913_v43 = vor.u32 %v13910_v63, %v11910_v26  ;;  %v11952_v36 = vld [vmem:[#allocation12 + $0x350] sm:$0xf]  ;;  %v13921_v50 = vld [vmem:[#allocation12 + $0x358] sm:$0xf0]  ;;  %v14040_v63 = vld [vmem:[#allocation12 + $0x530] sm:$0xf0] }
 0x38f   :  { %v11953_v26 = vor.u32 %v13921_v50, %v11952_v36  ;;  %v11970_v50 = vld [vmem:[#allocation12 + $0x384] sm:$0xf0] }
 0x391   :  { %4954 = vmatpush.bf16.msrb.mxu3 %v11953_v26  ;;  %v14614_v26 = vld [vmem:[#allocation2 + $0xc0] sm:$0xff] }
 0x392   :  { %4870 = vmatpush.bf16.msra.mxu2 %v11913_v43  ;;  %v14612_v43 = vld [vmem:[#allocation2 + $0x20] sm:$0xff] }
 0x393   :  { %v16957_v60 = vpack.c.bf16 %v16575_v49, %v14612_v43  ;;  %v13918_v43 = vld [vmem:[#allocation12 + $0x340] sm:$0xf0] }
 0x395   :  { %v4203_v47 = vpop.f32.mrf.mxu2 }
 0x396   :  { %v16936_v21 = vadd.f32 %v4203_v47, %v16882_v56  ;;  %v16939_v20 = vpop.f32.mrf.mxu1  ;;  %v12196_v47 = vld [vmem:[#allocation12 + $0x528] sm:$0xf]  ;;  %4871 = vmatpush.bf16.msra.mxu2 %v11901_v32  ;;  %v13925_v32 = vld [vmem:[#allocation12 + $0x37c] sm:$0xf] }
 0x397   :  { %v12197_v4 = vor.u32 %v14040_v63, %v12196_v47  ;;  %v11940_v47 = vld [vmem:[#allocation12 + $0x338] sm:$0xf]  ;;  %v14613_v63 = vld [vmem:[#allocation2 + $0xa8] sm:$0xff] }
 0x398   :  { %4846 = vmatmul.bf16.vlgmr.msra.gmra.mxu3 %v16889_v2  ;;  %v11941_v23 = vor.u32 %v13918_v43, %v11940_v47  ;;  %v11916_v43 = vld [vmem:[#allocation12 + $0x308] sm:$0xf] }
 0x399   :  { %4933 = vmatmul.bf16.vlgmr.msra.gmra.mxu1 %v16889_v2 }
 0x39a   :  { %4769 = vmatmul.bf16.gmra.mxu2 %v16941_v53  ;;  %5466 = vmatpush.bf16.msrb.mxu1 %v12197_v4  ;;  %v16967_v4 = vpack.c.bf16 %v14614_v26, %v14613_v63  ;;  %v13898_v63 = vld [vmem:[#allocation12 + $0x2a4] sm:$0xf]  ;;  %v11862_v26 = vld [vmem:[#allocation12 + $0x2ac] sm:$0xf0] }
 0x39b   :  { %4355 = vmatmul.bf16.gmra.mxu0 %v16655_v38  ;;  %v16946_v38 = vpop.f32.mrf.mxu3  ;;  %4955 = vmatpush.bf16.msrb.mxu3 %v11941_v23  ;;  %v14031_v23 = vld [vmem:[#allocation12 + $0x4e8] sm:$0xf0] }
 0x39d   :  { %v4206_v56 = vpop.f32.mrf.mxu2 }
 0x39e   :  { %v16949_v28 = vadd.f32 %v4206_v56, %v16886_v15  ;;  %v16951_v0 = vpop.f32.mrf.mxu1  ;;  %v13904_v56 = vld [vmem:[#allocation12 + $0x2d4] sm:$0xf] }
 0x39f   :  { %v11889_v36 = vor.u32 %v13904_v56, %v11886_v12  ;;  %v11874_v56 = vld [vmem:[#allocation12 + $0x2c4] sm:$0xf0]  ;;  %v11928_v12 = vld [vmem:[#allocation12 + $0x320] sm:$0xf] }
 0x3a1   :  { %4872 = vmatpush.bf16.msra.mxu2 %v11889_v36 }
 0x3a3   :  { %v16959_v15 = vpop.f32.mrf.mxu3 }
 0x3a5   :  { %v4208_v19 = vpop.f32.mrf.mxu2 }
 0x3a6   :  { %v16962_v33 = vadd.f32 %v4208_v19, %v16905_v31  ;;  %v12185_v31 = vor.u32 %v14037_v48, %v12184_v8  ;;  %v13901_v19 = vld [vmem:[#allocation12 + $0x2bc] sm:$0xf] }
 0x3a7   :  { %v11877_v9 = vor.u32 %v13901_v19, %v11874_v56  ;;  %v12160_v56 = vld [vmem:[#allocation12 + $0x4e0] sm:$0xf] }
 0x3a8   :  { %v4225_v2 = vpop.f32.mrf.mxu0  ;;  %4851 = vmatmul.bf16.gmra.mxu3 %v16915_v44  ;;  %5467 = vmatpush.bf16.msrb.mxu1 %v12185_v31 }
 0x3a9   :  { %v16954_v17 = vadd.f32 %v4225_v2, %v16903_v61  ;;  %v16965_v61 = vpop.f32.mrf.mxu1  ;;  %v11973_v2 = vor.u32 %v13925_v32, %v11970_v50  ;;  %4938 = vmatmul.bf16.gmra.mxu1 %v16915_v44  ;;  %v11929_v32 = vor.u32 %v13915_v22, %v11928_v12  ;;  %v12173_v50 = vor.u32 %v14034_v5, %v12172_v18  ;;  %v11904_v22 = vld [vmem:[#allocation12 + $0x2f0] sm:$0xf]  ;;  %v14028_v12 = vld [vmem:[#allocation12 + $0x4d0] sm:$0xf0] }
 0x3aa   :  { %4774 = vmatmul.bf16.gmra.mxu2 %v16967_v4  ;;  %v11865_v44 = vor.u32 %v13898_v63, %v11862_v26  ;;  %v12161_v18 = vor.u32 %v14031_v23, %v12160_v56  ;;  %v16987_v26 = vpack.c.bf16 %v16583_v45, %v16578_v46  ;;  %v11892_v56 = vld [vmem:[#allocation12 + $0x2d8] sm:$0xf]  ;;  %v14019_v45 = vld [vmem:[#allocation12 + $0x488] sm:$0xf0] }
 0x3ab   :  { %4788 = vmatmul.bf16.vlgmr.msra.gmra.mxu0 %v16957_v60  ;;  %v16975_v48 = vpop.f32.mrf.mxu3  ;;  %4873 = vmatpush.bf16.msra.mxu2 %v11877_v9  ;;  %v12148_v9 = vld [vmem:[#allocation12 + $0x4c8] sm:$0xf] }
 0x3ac   :  { %4902 = vmatpush.bf16.msrb.mxu0 %v11973_v2  ;;  %v13912_v2 = vld [vmem:[#allocation12 + $0x310] sm:$0xf0]  ;;  %4956 = vmatpush.bf16.msrb.mxu3 %v11929_v32 }
 0x3ad   :  { %v4211_v47 = vpop.f32.mrf.mxu2  ;;  %5468 = vmatpush.bf16.msrb.mxu1 %v12173_v50  ;;  %v11917_v5 = vor.u32 %v13912_v2, %v11916_v43  ;;  %v11958_v2 = vld [vmem:[#allocation12 + $0x36c] sm:$0xf0] }
 0x3ae   :  { %v16978_v19 = vadd.f32 %v4211_v47, %v16921_v51  ;;  %v12149_v47 = vor.u32 %v14028_v12, %v12148_v9  ;;  %v11880_v12 = vld [vmem:[#allocation12 + $0x2c0] sm:$0xf] }
 0x3af   :  { %4874 = vmatpush.bf16.msra.mxu2 %v11865_v44  ;;  %v13922_v44 = vld [vmem:[#allocation12 + $0x364] sm:$0xf] }
 0x3b0   :  { %v4227_v36 = vpop.f32.mrf.mxu0  ;;  %4957 = vmatpush.bf16.msrb.mxu3 %v11917_v5  ;;  %v13906_v5 = vld [vmem:[#allocation12 + $0x2e0] sm:$0xf0] }
 0x3b1   :  { %v16973_v8 = vadd.f32 %v4227_v36, %v16910_v58  ;;  %v16980_v31 = vpop.f32.mrf.mxu1  ;;  %v13909_v58 = vld [vmem:[#allocation12 + $0x2f8] sm:$0xf0]  ;;  %5469 = vmatpush.bf16.msrb.mxu1 %v12161_v18  ;;  %v12136_v18 = vld [vmem:[#allocation12 + $0x4b0] sm:$0xf] }
 0x3b2   :  { %v11905_v51 = vor.u32 %v13909_v58, %v11904_v22  ;;  %v14025_v22 = vld [vmem:[#allocation12 + $0x4b8] sm:$0xf0]  ;;  %v11893_v58 = vor.u32 %v13906_v5, %v11892_v56 }
 0x3b3   :  { %v16989_v32 = vpop.f32.mrf.mxu3  ;;  %v12137_v9 = vor.u32 %v14025_v22, %v12136_v18  ;;  %v11868_v18 = vld [vmem:[#allocation12 + $0x2a8] sm:$0xf]  ;;  %v13900_v22 = vld [vmem:[#allocation12 + $0x2b0] sm:$0xf0] }
 0x3b4   :  { %4958 = vmatpush.bf16.msrb.mxu3 %v11905_v51  ;;  %v4284_v51 = vadd.f32 %v16946_v38, %v16838_v57 }
 0x3b5   :  { %v4213_v50 = vpop.f32.mrf.mxu2  ;;  %5470 = vmatpush.bf16.msrb.mxu1 %v12149_v47 }
 0x3b6   :  { %v16992_v43 = vadd.f32 %v4213_v50, %v16933_v25  ;;  %v14022_v25 = vld [vmem:[#allocation12 + $0x4a0] sm:$0xf0] }
 0x3b8   :  { %v4230_v36 = vpop.f32.mrf.mxu0  ;;  %4856 = vmatmul.bf16.gmra.mxu3 %v16941_v53 }
 0x3b9   :  { %v16983_v63 = vadd.f32 %v4230_v36, %v16931_v13  ;;  %v16995_v23 = vpop.f32.mrf.mxu1  ;;  %v11961_v13 = vor.u32 %v13922_v44, %v11958_v2  ;;  %v13903_v36 = vld [vmem:[#allocation12 + $0x2c8] sm:$0xf0]  ;;  %4943 = vmatmul.bf16.gmra.mxu1 %v16941_v53  ;;  %4959 = vmatpush.bf16.msrb.mxu3 %v11893_v58  ;;  %v12125_v44 = vor.u32 %v14022_v25, %v12124_v6  ;;  %v13933_v53 = vld [vmem:[#allocation12 + $0x3b8] sm:$0xf0] }
 0x3ba   :  { %4875 = vmatmul.bf16.vlgmr.msra.gmra.mxu2 %v16957_v60  ;;  %5471 = vmatpush.bf16.msrb.mxu1 %v12137_v9  ;;  %v11881_v50 = vor.u32 %v13903_v36, %v11880_v12  ;;  %v12001_v57 = vor.u32 %v13933_v53, %v12000_v30  ;;  %v11869_v6 = vor.u32 %v13900_v22, %v11868_v18  ;;  %v11988_v53 = vld [vmem:[#allocation12 + $0x398] sm:$0xf] }
 0x3bb   :  { %4793 = vmatmul.bf16.gmra.mxu0 %v16987_v26  ;;  %v17005_v56 = vpop.f32.mrf.mxu3  ;;  %v17018_v36 = vpack.c.bf16 %v16589_v10, %v16586_v35  ;;  %v13995_v10 = vld [vmem:[#allocation12 + $0x3c8] sm:$0xf0]  ;;  %v12208_v35 = vld [vmem:[#allocation12 + $0x540] sm:$0xf] }
 0x3bc   :  { %4903 = vmatpush.bf16.msrb.mxu0 %v11961_v13  ;;  %v12112_v13 = vld [vmem:[#allocation12 + $0x480] sm:$0xf]  ;;  %4987 = vmatpush.bf16.msrb.mxu2 %v12001_v57  ;;  %v12088_v57 = vld [vmem:[#allocation12 + $0x450] sm:$0xf] }
 0x3bd   :  { %v4312_v5 = vpop.f32.mrf.mxu2  ;;  %4960 = vmatpush.bf16.msrb.mxu3 %v11881_v50  ;;  %v12113_v58 = vor.u32 %v14019_v45, %v12112_v13  ;;  %v12100_v45 = vld [vmem:[#allocation12 + $0x468] sm:$0xf]  ;;  %v13930_v13 = vld [vmem:[#allocation12 + $0x3a0] sm:$0xf0] }
 0x3be   :  { %v17007_v41 = vadd.f32 %v4312_v5, %v4284_v51  ;;  %5472 = vmatpush.bf16.msrb.mxu1 %v12125_v44 }
 0x3c0   :  { %v4232_v47 = vpop.f32.mrf.mxu0 }
 0x3c1   :  { %v17003_v2 = vadd.f32 %v4232_v47, %v16936_v21  ;;  %v17009_v38 = vpop.f32.mrf.mxu1  ;;  %v4286_v21 = vadd.f32 %v16959_v15, %v16853_v16  ;;  %4961 = vmatpush.bf16.msrb.mxu3 %v11869_v6  ;;  %v14016_v47 = vld [vmem:[#allocation12 + $0x470] sm:$0xf0] }
 0x3c2   :  { %5473 = vmatpush.bf16.msrb.mxu1 %v12113_v58  ;;  %v12101_v16 = vor.u32 %v14016_v47, %v12100_v45  ;;  %v11989_v58 = vor.u32 %v13930_v13, %v11988_v53 }
 0x3c3   :  { %v4295_v30 = vpop.f32.mrf.mxu3 }
 0x3c4   :  { %5437 = vmatpush.bf16.msra.mxu0 %v12101_v16  ;;  %4988 = vmatpush.bf16.msrb.mxu2 %v11989_v58 }
 0x3c5   :  { %v4314_v25 = vpop.f32.mrf.mxu2 }
 0x3c6   :  { %v17020_v51 = vadd.f32 %v4314_v25, %v4286_v21  ;;  %v14013_v21 = vld [vmem:[#allocation12 + $0x458] sm:$0xf0] }
 0x3c8   :  { %v4235_v9 = vpop.f32.mrf.mxu0  ;;  %4861 = vmatmul.bf16.gmra.mxu3 %v16967_v4 }
 0x3c9   :  { %v17014_v12 = vadd.f32 %v4235_v9, %v16949_v28  ;;  %v17023_v50 = vpop.f32.mrf.mxu1  ;;  %4948 = vmatmul.bf16.gmra.mxu1 %v16967_v4  ;;  %v4289_v28 = vadd.f32 %v16975_v48, %v16863_v55  ;;  %v12089_v4 = vor.u32 %v14013_v21, %v12088_v57  ;;  %v4291_v55 = vadd.f32 %v16989_v32, %v16874_v11  ;;  %v14615_v9 = vld [vmem:[#allocation2 + $0xc8] sm:$0xff]  ;;  %v11976_v21 = vld [vmem:[#allocation12 + $0x380] sm:$0xf] }
 0x3ca   :  { %4880 = vmatmul.bf16.gmra.mxu2 %v16987_v26  ;;  %v17043_v25 = vpack.c.bf16 %v14615_v9, %v16593_v52  ;;  %v14007_v9 = vld [vmem:[#allocation12 + $0x428] sm:$0xf0] }
 0x3cb   :  { %4798 = vmatmul.bf16.gmra.mxu0 %v17018_v36  ;;  %v4298_v5 = vpop.f32.mrf.mxu3 }
 0x3cc   :  { %5438 = vmatpush.bf16.msra.mxu0 %v12089_v4  ;;  %v13927_v4 = vld [vmem:[#allocation12 + $0x388] sm:$0xf0] }
 0x3cd   :  { %v4317_v18 = vpop.f32.mrf.mxu2 }
 0x3ce   :  { %v17033_v22 = vadd.f32 %v4317_v18, %v4289_v28  ;;  %v14010_v18 = vld [vmem:[#allocation12 + $0x440] sm:$0xf0] }
 0x3d0   :  { %v4237_v15 = vpop.f32.mrf.mxu0 }
 0x3d1   :  { %v17031_v44 = vadd.f32 %v4237_v15, %v16962_v33  ;;  %v17035_v6 = vpop.f32.mrf.mxu1  ;;  %v12076_v15 = vld [vmem:[#allocation12 + $0x438] sm:$0xf] }
 0x3d2   :  { %v12077_v32 = vor.u32 %v14010_v18, %v12076_v15 }
 0x3d3   :  { %v4300_v45 = vpop.f32.mrf.mxu3 }
 0x3d4   :  { %v17046_v16 = vadd.f32 %v4300_v45, %v16928_v29  ;;  %5439 = vmatpush.bf16.msra.mxu0 %v12077_v32  ;;  %v4294_v29 = vadd.f32 %v17005_v56, %v16884_v42  ;;  %v4296_v42 = vadd.f32 %v4295_v30, %v16897_v27  ;;  %v20080_v30 = vld [vmem:[#allocation44_spill] sm:$0xff] }
 0x3d5   :  { %v4319_v47 = vpop.f32.mrf.mxu2 }
 0x3d6   :  { %v17048_v28 = vadd.f32 %v4319_v47, %v4291_v55  ;;  %v12064_v55 = vld [vmem:[#allocation12 + $0x420] sm:$0xf] }
 0x3d7   :  { %v12065_v45 = vor.u32 %v14007_v9, %v12064_v55  ;;  %v11964_v9 = vld [vmem:[#allocation12 + $0x368] sm:$0xf] }
 0x3d8   :  { %v4240_v48 = vpop.f32.mrf.mxu0  ;;  %4962 = vmatmul.bf16.vlgmr.msrb.gmra.mxu3 %v16957_v60 }
 0x3d9   :  { %v17040_v33 = vadd.f32 %v4240_v48, %v16978_v19  ;;  %v17051_v11 = vpop.f32.mrf.mxu1  ;;  %5474 = vmatmul.bf16.vlgmr.msrb.gmra.mxu1 %v16648_v39  ;;  %v11977_v48 = vor.u32 %v13927_v4, %v11976_v21  ;;  %5440 = vmatpush.bf16.msra.mxu0 %v12065_v45  ;;  %v13924_v45 = vld [vmem:[#allocation12 + $0x370] sm:$0xf0] }
 0x3da   :  { %4885 = vmatmul.bf16.gmra.mxu2 %v17018_v36 }
 0x3db   :  { %4803 = vmatmul.bf16.gmra.mxu0 %v17043_v25  ;;  %v4399_v13 = vpop.f32.mrf.mxu3  ;;  %4989 = vmatpush.bf16.msrb.mxu2 %v11977_v48 }
 0x3dd   :  { %v4322_v57 = vpop.f32.mrf.mxu2 }
 0x3de   :  { %v17061_v58 = vadd.f32 %v4322_v57, %v4294_v29  ;;  %v12052_v29 = vld [vmem:[#allocation12 + $0x408] sm:$0xf] }
 0x3e0   :  { %v4242_v19 = vpop.f32.mrf.mxu0 }
 0x3e1   :  { %v17059_v53 = vadd.f32 %v4242_v19, %v16992_v43  ;;  %v17063_v60 = vpop.f32.mrf.mxu1  ;;  %v14004_v19 = vld [vmem:[#allocation12 + $0x410] sm:$0xf0] }
 0x3e3   :  { %v4401_v47 = vpop.f32.mrf.mxu3 }
 0x3e5   :  { %v4324_v15 = vpop.f32.mrf.mxu2 }
 0x3e6   :  { %v17067_v18 = vadd.f32 %v4324_v15, %v4296_v42  ;;  %v14001_v15 = vld [vmem:[#allocation12 + $0x3f8] sm:$0xf0] }
 0x3e8   :  { %v4341_v56 = vpop.f32.mrf.mxu0  ;;  %4967 = vmatmul.bf16.gmra.mxu3 %v16987_v26 }
 0x3e9   :  { %v4371_v43 = vadd.f32 %v16939_v20, %v4341_v56  ;;  %v17073_v57 = vpop.f32.mrf.mxu1  ;;  %v12053_v20 = vor.u32 %v14004_v19, %v12052_v29  ;;  %12262 = vmatmul.msk.bf16.gmra.mxu1 %vm17078_vm14, %v20080_v30  ;;  %v11965_v56 = vor.u32 %v13924_v45, %v11964_v9  ;;  %v12028_v45 = vld [vmem:[#allocation12 + $0x3d8] sm:$0xf] }
 0x3ea   :  { %4890 = vmatmul.bf16.gmra.mxu2 %v17043_v25 }
 0x3eb   :  { %v17069_v32 = vadd.f32 %v4399_v13, %v4371_v43  ;;  %12006 = vmatmul.msk.bf16.vlgmr.msrb.gmra.mxu0 %vm199_vm0, %v16851_v14  ;;  %v4299_v13 = vadd.f32 %v4298_v5, %v16907_v1  ;;  %v4404_v55 = vpop.f32.mrf.mxu3  ;;  %v12040_v43 = vld [vmem:[#allocation12 + $0x3f0] sm:$0xf]  ;;  %4990 = vmatpush.bf16.msrb.mxu2 %v11965_v56  ;;  %v14052_v1 = vld [vmem:[#allocation12 + $0x590] sm:$0xf0]  ;;  %v14051_v5 = vld [vmem:[#allocation12 + $0x58c] sm:$0xf] }
 0x3ec   :  { %5441 = vmatpush.bf16.msra.mxu0 %v12053_v20  ;;  %v12041_v19 = vor.u32 %v14001_v15, %v12040_v43  ;;  %v12244_v20 = vld [vmem:[#allocation12 + $0x588] sm:$0xf]  ;;  %v13998_v56 = vld [vmem:[#allocation12 + $0x3e0] sm:$0xf0]  ;;  %v12232_v43 = vld [vmem:[#allocation12 + $0x570] sm:$0xf] }
 0x3ed   :  { %v4327_v48 = vpop.f32.mrf.mxu2  ;;  %v12245_v62 = vor.u32 %v14052_v1, %v12244_v20  ;;  %v14048_v20 = vld [vmem:[#allocation12 + $0x574] sm:$0xf]  ;;  %v12234_v1 = vld [vmem:[#allocation12 + $0x57c] sm:$0xf0] }
 0x3ee   :  { %v17089_v42 = vadd.f32 %v4327_v48, %v4299_v13 }
 0x3ef   :  { %5499 = vmatpush.bf16.msra.mxu3 %v12245_v62  ;;  %v12029_v62 = vor.u32 %v13998_v56, %v12028_v45 }
 0x3f0   :  { %v4343_v21 = vpop.f32.mrf.mxu0  ;;  %5442 = vmatpush.bf16.msra.mxu0 %v12041_v19  ;;  %v14049_v19 = vld [vmem:[#allocation12 + $0x578] sm:$0xf0] }
 0x3f1   :  { %v4373_v4 = vadd.f32 %v16951_v0, %v4343_v21  ;;  %v17093_v29 = vpop.f32.mrf.mxu1  ;;  %v12246_v0 = vld [vmem:[#allocation12 + $0x594] sm:$0xf0] }
 0x3f2   :  { %v12249_v21 = vor.u32 %v14051_v5, %v12246_v0  ;;  %v12220_v5 = vld [vmem:[#allocation12 + $0x558] sm:$0xf]  ;;  %v14046_v0 = vld [vmem:[#allocation12 + $0x560] sm:$0xf0] }
 0x3f3   :  { %v17091_v26 = vadd.f32 %v4401_v47, %v4373_v4  ;;  %v4406_v47 = vpop.f32.mrf.mxu3 }
 0x3f4   :  { %5586 = vmatpush.bf16.msra.mxu1 %v12249_v21  ;;  %v20082_v21 = vld [vmem:[#allocation50_spill] sm:$0xff]  ;;  %5443 = vmatpush.bf16.msra.mxu0 %v12029_v62 }
 0x3f5   :  { %20081 = vst [vmem:[#allocation52_spill] sm:$0xff] %v17091_v26  ;;  %v4329_v4 = vpop.f32.mrf.mxu2 }
 0x3f6   :  { %v17097_v48 = vadd.f32 %v4329_v4, %v17046_v16  ;;  %v14045_v16 = vld [vmem:[#allocation12 + $0x55c] sm:$0xf]  ;;  %v12221_v4 = vor.u32 %v14046_v0, %v12220_v5  ;;  %v14015_v5 = vld [vmem:[#allocation12 + $0x46c] sm:$0xf] }
 0x3f8   :  { %v4346_v52 = vpop.f32.mrf.mxu0  ;;  %4972 = vmatmul.bf16.gmra.mxu3 %v17018_v36 }
 0x3f9   :  { %v4376_v13 = vadd.f32 %v16965_v61, %v4346_v52  ;;  %v17103_v15 = vpop.f32.mrf.mxu1  ;;  %v12233_v52 = vor.u32 %v14049_v19, %v12232_v43  ;;  %v12237_v61 = vor.u32 %v14048_v20, %v12234_v1  ;;  %5484 = vmatmul.bf16.gmra.mxu1 %v20082_v21  ;;  %v3653_v20 = vld [vmem:[#allocation2 + $0xc8] sm:$0xff]  ;;  %v3656_v1 = vld [vmem:[#allocation2 + $0xe0] sm:$0xf] }
 0x3fa   :  { %12010 = vmatmul.msk.bf16.vlgmr.msrb.gmra.mxu2 %vm199_vm0, %v16851_v14  ;;  %v12016_v14 = vld [vmem:[#allocation12 + $0x3c0] sm:$0xf]  ;;  %v3691_v46 = vrot.slane %v3653_v20, 4 }
 0x3fb   :  { %v17099_v9 = vadd.f32 %v4404_v55, %v4376_v13  ;;  %12007 = vmatmul.msk.bf16.gmra.mxu0 %vm199_vm0, %v16872_v37  ;;  %v12222_v55 = vld [vmem:[#allocation12 + $0x564] sm:$0xf0]  ;;  %5500 = vmatpush.bf16.msra.mxu3 %v12233_v52  ;;  %v4409_v43 = vpop.f32.mrf.mxu3  ;;  %v12017_v52 = vor.u32 %v13995_v10, %v12016_v14  ;;  %v20083_v10 = vld [vmem:[#allocation49_spill] sm:$0xff] }
 0x3fc   :  { %5587 = vmatpush.bf16.msra.mxu1 %v12237_v61  ;;  %v12225_v45 = vor.u32 %v14045_v16, %v12222_v55  ;;  %v14043_v61 = vld [vmem:[#allocation12 + $0x548] sm:$0xf0]  ;;  %v14042_v55 = vld [vmem:[#allocation12 + $0x544] sm:$0xf]  ;;  %vm316_vm15 = vcmp.lt.s32.totalorder %v20083_v10, 28 }
 0x3fd   :  { %v4760_v19 = vpop.f32.mrf.mxu2  ;;  %v12209_v0 = vor.u32 %v14043_v61, %v12208_v35  ;;  %5444 = vmatpush.bf16.msra.mxu0 %v12017_v52  ;;  %v3692_v35 = vsel %vm3549_vm2, %v16618_v54, %v3691_v46  ;;  %v14012_v52 = vld [vmem:[#allocation12 + $0x454] sm:$0xf]  ;;  %v12090_v61 = vld [vmem:[#allocation12 + $0x45c] sm:$0xf0]  ;;  %vm17134_vm1 = vmpackc.low %vm316_vm15, %vm14946_vm3 }
 0x3fe   :  { %v17111_v36 = vadd.f32 %v4760_v19, %v16954_v17  ;;  %v3697_v17 = vrot.slane %v3656_v1, 4 }
 0x3ff   :  { %5501 = vmatpush.bf16.msra.mxu3 %v12221_v4 }
 0x400   :  { %v4348_v13 = vpop.f32.mrf.mxu0  ;;  %5588 = vmatpush.bf16.msra.mxu1 %v12225_v45  ;;  %v3698_v14 = vsel %vm3549_vm2, %v3691_v46, %v3697_v17  ;;  %v12093_v46 = vor.u32 %v14012_v52, %v12090_v61 }
 0x401   :  { %v4378_v56 = vadd.f32 %v16980_v31, %v4348_v13  ;;  %v17115_v62 = vpop.f32.mrf.mxu1  ;;  %v12102_v31 = vld [vmem:[#allocation12 + $0x474] sm:$0xf0]  ;;  %v12210_v13 = vld [vmem:[#allocation12 + $0x54c] sm:$0xf0] }
 0x402   :  { %v12105_v16 = vor.u32 %v14015_v5, %v12102_v31  ;;  %v17138_v31 = vpack.c.bf16 %v3698_v14, %v3692_v35  ;;  %v12186_v35 = vld [vmem:[#allocation12 + $0x51c] sm:$0xf0] }
 0x403   :  { %v17113_v26 = vadd.f32 %v4406_v47, %v4378_v56  ;;  %v12213_v47 = vor.u32 %v14042_v55, %v12210_v13  ;;  %5502 = vmatpush.bf16.msra.mxu3 %v12209_v0  ;;  %v4411_v4 = vpop.f32.mrf.mxu3 }
 0x404   :  { %5524 = vmatpush.bf16.msra.mxu2 %v12105_v16 }
 0x405   :  { %5589 = vmatpush.bf16.msra.mxu1 %v12213_v47  ;;  %v4762_v45 = vpop.f32.mrf.mxu2 }
 0x406   :  { %v17123_v20 = vadd.f32 %v4762_v45, %v16973_v8  ;;  %v12198_v8 = vld [vmem:[#allocation12 + $0x534] sm:$0xf0] }
 0x408   :  { %v4351_v56 = vpop.f32.mrf.mxu0  ;;  %4977 = vmatmul.bf16.gmra.mxu3 %v17043_v25  ;;  %5525 = vmatpush.bf16.msra.mxu2 %v12093_v46  ;;  %v14009_v25 = vld [vmem:[#allocation12 + $0x43c] sm:$0xf]  ;;  %v14006_v46 = vld [vmem:[#allocation12 + $0x424] sm:$0xf] }
 0x409   :  { %v4381_v19 = vadd.f32 %v16995_v23, %v4351_v56  ;;  %v14039_v23 = vld [vmem:[#allocation12 + $0x52c] sm:$0xf]  ;;  %v17129_v5 = vpop.f32.mrf.mxu1  ;;  %12265 = vmatmul.msk.bf16.gmra.mxu1 %vm17134_vm1, %v17138_v31  ;;  %v12078_v56 = vld [vmem:[#allocation12 + $0x444] sm:$0xf0] }
 0x40a   :  { %12011 = vmatmul.msk.bf16.gmra.mxu2 %vm199_vm0, %v16872_v37  ;;  %v12081_v45 = vor.u32 %v14009_v25, %v12078_v56 }
 0x40b   :  { %v17125_v1 = vadd.f32 %v4409_v43, %v4381_v19  ;;  %12008 = vmatmul.msk.bf16.gmra.mxu0 %vm199_vm0, %v16893_v7  ;;  %v12201_v43 = vor.u32 %v14039_v23, %v12198_v8  ;;  %v4414_v55 = vpop.f32.mrf.mxu3  ;;  %v14036_v19 = vld [vmem:[#allocation12 + $0x514] sm:$0xf]  ;;  %v12066_v8 = vld [vmem:[#allocation12 + $0x42c] sm:$0xf0] }
 0x40c   :  { %v12189_v14 = vor.u32 %v14036_v19, %v12186_v35  ;;  %5526 = vmatpush.bf16.msra.mxu2 %v12081_v45 }
 0x40d   :  { %5553 = vmatpush.bf16.msrb.mxu0 %v12201_v43  ;;  %v4765_v13 = vpop.f32.mrf.mxu2  ;;  %v14033_v43 = vld [vmem:[#allocation12 + $0x4fc] sm:$0xf] }
 0x40e   :  { %v17148_v17 = vadd.f32 %v4765_v13, %v16983_v63  ;;  %v12174_v13 = vld [vmem:[#allocation12 + $0x504] sm:$0xf0] }
 0x410   :  { %v4353_v0 = vpop.f32.mrf.mxu0 }
 0x411   :  { %v4383_v16 = vadd.f32 %v17009_v38, %v4353_v0  ;;  %v17152_v37 = vpop.f32.mrf.mxu1  ;;  %5554 = vmatpush.bf16.msrb.mxu0 %v12189_v14  ;;  %v14003_v14 = vld [vmem:[#allocation12 + $0x40c] sm:$0xf] }
 0x413   :  { %v17150_v47 = vadd.f32 %v4411_v4, %v4383_v16  ;;  %v4416_v61 = vpop.f32.mrf.mxu3  ;;  %v12069_v16 = vor.u32 %v14006_v46, %v12066_v8  ;;  %v12162_v46 = vld [vmem:[#allocation12 + $0x4ec] sm:$0xf0] }
 0x414   :  { %v12108_v8 = vld [vmem:[#allocation12 + $0x470] sm:$0xf] }
 0x415   :  { %20086 = vst [vmem:[#allocation57_spill] sm:$0xff] %v17150_v47  ;;  %v4767_v23 = vpop.f32.mrf.mxu2  ;;  %5527 = vmatpush.bf16.msra.mxu2 %v12069_v16 }
 0x416   :  { %v17156_v63 = vadd.f32 %v4767_v23, %v17003_v2 }
 0x418   :  { %v4356_v52 = vpop.f32.mrf.mxu0  ;;  %12266 = vmatmul.msk.bf16.vlgmr.msra.gmra.mxu3 %vm199_vm0, %v16781_v34 }
 0x419   :  { %v4386_v38 = vadd.f32 %v17023_v50, %v4356_v52  ;;  %v4934_v0 = vpop.f32.mrf.mxu1  ;;  %v12177_v50 = vor.u32 %v14033_v43, %v12174_v13  ;;  %12282 = vmatmul.msk.bf16.vlgmr.msra.gmra.mxu1 %vm199_vm0, %v16781_v34  ;;  %v14030_v52 = vld [vmem:[#allocation12 + $0x4e4] sm:$0xf]  ;;  %v14017_v43 = vld [vmem:[#allocation12 + $0x478] sm:$0xf0]  ;;  %v14000_v13 = vld [vmem:[#allocation12 + $0x3f4] sm:$0xf] }
 0x41a   :  { %v17163_v25 = vadd.f32 %v4934_v0, %v17069_v32  ;;  %12012 = vmatmul.msk.bf16.gmra.mxu2 %vm199_vm0, %v16893_v7  ;;  %v12054_v7 = vld [vmem:[#allocation12 + $0x414] sm:$0xf0]  ;;  %v12109_v0 = vor.u32 %v14017_v43, %v12108_v8  ;;  %v13997_v8 = vld [vmem:[#allocation12 + $0x3dc] sm:$0xf]  ;;  %v12030_v43 = vld [vmem:[#allocation12 + $0x3e4] sm:$0xf0] }
 0x41b   :  { %v17158_v4 = vadd.f32 %v4414_v55, %v4386_v38  ;;  %12009 = vmatmul.msk.bf16.gmra.mxu0 %vm199_vm0, %v16919_v24  ;;  %v4847_v56 = vpop.f32.mrf.mxu3  ;;  %v12057_v23 = vor.u32 %v14003_v14, %v12054_v7  ;;  %v14027_v14 = vld [vmem:[#allocation12 + $0x4cc] sm:$0xf]  ;;  %v12150_v7 = vld [vmem:[#allocation12 + $0x4d4] sm:$0xf0] }
 0x41c   :  { %5555 = vmatpush.bf16.msrb.mxu0 %v12177_v50  ;;  %v17173_v32 = vadd.f32 %v4847_v56, %v17007_v41  ;;  %5611 = vmatpush.bf16.msrb.mxu3 %v12109_v0  ;;  %v12042_v50 = vld [vmem:[#allocation12 + $0x3fc] sm:$0xf0]  ;;  %v12033_v0 = vor.u32 %v13997_v8, %v12030_v43  ;;  %v14008_v43 = vld [vmem:[#allocation12 + $0x430] sm:$0xf0] }
 0x41d   :  { %v4770_v19 = vpop.f32.mrf.mxu2  ;;  %5528 = vmatpush.bf16.msra.mxu2 %v12057_v23  ;;  %v12045_v56 = vor.u32 %v14000_v13, %v12042_v50 }
 0x41e   :  { %v17176_v45 = vadd.f32 %v4770_v19, %v17014_v12  ;;  %v20088_v19 = vld [vmem:[#allocation29_spill] sm:$0xff] }
 0x420   :  { %v4358_v2 = vpop.f32.mrf.mxu0 }
 0x421   :  { %v4388_v55 = vadd.f32 %v17035_v6, %v4358_v2  ;;  %v17180_v38 = vpop.f32.mrf.mxu1  ;;  %v12165_v6 = vor.u32 %v14030_v52, %v12162_v46  ;;  %v12096_v52 = vld [vmem:[#allocation12 + $0x458] sm:$0xf]  ;;  %5529 = vmatpush.bf16.msra.mxu2 %v12045_v56  ;;  %v14014_v46 = vld [vmem:[#allocation12 + $0x460] sm:$0xf0] }
 0x422   :  { %v13994_v56 = vld [vmem:[#allocation12 + $0x3c4] sm:$0xf] }
 0x423   :  { %v17178_v35 = vadd.f32 %v4416_v61, %v4388_v55  ;;  %5556 = vmatpush.bf16.msrb.mxu0 %v12165_v6  ;;  %v4849_v61 = vpop.f32.mrf.mxu3 }
 0x424   :  { %v17186_v2 = vadd.f32 %v4849_v61, %v17020_v51  ;;  %v12097_v51 = vor.u32 %v14014_v46, %v12096_v52  ;;  %v12072_v46 = vld [vmem:[#allocation12 + $0x428] sm:$0xf] }
 0x425   :  { %20087 = vst [vmem:[#allocation40_spill] sm:$0xff] %v17178_v35  ;;  %v4772_v16 = vpop.f32.mrf.mxu2  ;;  %5530 = vmatpush.bf16.msra.mxu2 %v12033_v0  ;;  %v12060_v0 = vld [vmem:[#allocation12 + $0x410] sm:$0xf]  ;;  %v12024_v35 = vld [vmem:[#allocation12 + $0x3c8] sm:$0xf] }
 0x426   :  { %v17189_v55 = vadd.f32 %v4772_v16, %v17031_v44  ;;  %v14011_v44 = vld [vmem:[#allocation12 + $0x448] sm:$0xf0]  ;;  %5612 = vmatpush.bf16.msrb.mxu3 %v12097_v51  ;;  %v12073_v51 = vor.u32 %v14008_v43, %v12072_v46 }
 0x428   :  { %v4789_v41 = vpop.f32.mrf.mxu0  ;;  %12267 = vmatmul.msk.bf16.gmra.mxu3 %vm199_vm0, %v16807_v40 }
 0x429   :  { %v17183_v12 = vadd.f32 %v4789_v41, %v17111_v36  ;;  %v4939_v23 = vpop.f32.mrf.mxu1  ;;  %v12153_v36 = vor.u32 %v14027_v14, %v12150_v7  ;;  %v12084_v41 = vld [vmem:[#allocation12 + $0x440] sm:$0xf]  ;;  %12283 = vmatmul.msk.bf16.gmra.mxu1 %vm199_vm0, %v16807_v40  ;;  %v12018_v14 = vld [vmem:[#allocation12 + $0x3cc] sm:$0xf0] }
 0x42a   :  { %v17193_v6 = vadd.f32 %v4939_v23, %v17099_v9  ;;  %12013 = vmatmul.msk.bf16.gmra.mxu2 %vm199_vm0, %v16919_v24  ;;  %v12085_v16 = vor.u32 %v14011_v44, %v12084_v41  ;;  %v12021_v52 = vor.u32 %v13994_v56, %v12018_v14  ;;  %v14024_v23 = vld [vmem:[#allocation12 + $0x4b4] sm:$0xf]  ;;  %v14005_v41 = vld [vmem:[#allocation12 + $0x418] sm:$0xf0]  ;;  %v20089_v56 = vld [vmem:[#allocation35_spill] sm:$0xff] }
 0x42b   :  { %5445 = vmatmul.bf16.vlgmr.msra.gmra.mxu0 %v20088_v19  ;;  %v4852_v13 = vpop.f32.mrf.mxu3  ;;  %v14021_v14 = vld [vmem:[#allocation12 + $0x49c] sm:$0xf] }
 0x42c   :  { %5557 = vmatpush.bf16.msrb.mxu0 %v12153_v36  ;;  %v17205_v7 = vadd.f32 %v4852_v13, %v17033_v22  ;;  %v12138_v36 = vld [vmem:[#allocation12 + $0x4bc] sm:$0xf0]  ;;  %5613 = vmatpush.bf16.msrb.mxu3 %v12085_v16  ;;  %v12061_v22 = vor.u32 %v14005_v41, %v12060_v0  ;;  %v3657_v0 = vld [vmem:[#allocation2 + $0xe8] sm:$0xf] }
 0x42d   :  { %v4775_v50 = vpop.f32.mrf.mxu2  ;;  %5531 = vmatpush.bf16.msra.mxu2 %v12021_v52  ;;  %v12126_v52 = vld [vmem:[#allocation12 + $0x4a4] sm:$0xf0] }
 0x42e   :  { %v17208_v24 = vadd.f32 %v4775_v50, %v17040_v33  ;;  %v12129_v46 = vor.u32 %v14021_v14, %v12126_v52  ;;  %v3699_v52 = vrot.slane %v3657_v0, 4 }
 0x430   :  { %v4791_v61 = vpop.f32.mrf.mxu0  ;;  %5614 = vmatpush.bf16.msrb.mxu3 %v12073_v51  ;;  %v13999_v51 = vld [vmem:[#allocation12 + $0x3e8] sm:$0xf0] }
 0x431   :  { %v17202_v9 = vadd.f32 %v4791_v61, %v17123_v20  ;;  %v17210_v8 = vpop.f32.mrf.mxu1  ;;  %v12141_v20 = vor.u32 %v14024_v23, %v12138_v36  ;;  %v12048_v23 = vld [vmem:[#allocation12 + $0x3f8] sm:$0xf] }
 0x433   :  { %5558 = vmatpush.bf16.msrb.mxu0 %v12141_v20  ;;  %v4854_v61 = vpop.f32.mrf.mxu3 }
 0x434   :  { %v17216_v50 = vadd.f32 %v4854_v61, %v17048_v28  ;;  %5615 = vmatpush.bf16.msrb.mxu3 %v12061_v22  ;;  %v12036_v28 = vld [vmem:[#allocation12 + $0x3e0] sm:$0xf] }
 0x435   :  { %v4777_v13 = vpop.f32.mrf.mxu2 }
 0x436   :  { %v17219_v16 = vadd.f32 %v4777_v13, %v17059_v53  ;;  %v3654_v53 = vld [vmem:[#allocation2 + $0xd0] sm:$0xff] }
 0x437   :  { %5559 = vmatpush.bf16.msrb.mxu0 %v12129_v46  ;;  %v3693_v14 = vrot.slane %v3654_v53, 4 }
 0x438   :  { %v4794_v44 = vpop.f32.mrf.mxu0  ;;  %12268 = vmatmul.msk.bf16.gmra.mxu3 %vm199_vm0, %v16812_v59 }
 0x439   :  { %v17213_v33 = vadd.f32 %v4794_v44, %v17148_v17  ;;  %v4944_v36 = vpop.f32.mrf.mxu1  ;;  %v14002_v17 = vld [vmem:[#allocation12 + $0x400] sm:$0xf0]  ;;  %12284 = vmatmul.msk.bf16.gmra.mxu1 %vm199_vm0, %v16812_v59  ;;  %v12037_v44 = vor.u32 %v13999_v51, %v12036_v28  ;;  %v13996_v28 = vld [vmem:[#allocation12 + $0x3d0] sm:$0xf0]  ;;  %v14041_v51 = vld [vmem:[#allocation12 + $0x538] sm:$0xf0] }
 0x43a   :  { %v17225_v20 = vadd.f32 %v4944_v36, %v17125_v1  ;;  %v12049_v43 = vor.u32 %v14002_v17, %v12048_v23  ;;  %5532 = vmatmul.bf16.vlgmr.msra.gmra.mxu2 %v20088_v19  ;;  %v14018_v36 = vld [vmem:[#allocation12 + $0x484] sm:$0xf]  ;;  %v12114_v17 = vld [vmem:[#allocation12 + $0x48c] sm:$0xf0] }
 0x43b   :  { %12256 = vmatmul.msk.bf16.gmra.mxu0 %vm17078_vm14, %v20089_v56  ;;  %v4857_v22 = vpop.f32.mrf.mxu3 }
 0x43c   :  { %5616 = vmatpush.bf16.msrb.mxu3 %v12049_v43  ;;  %v17236_v13 = vadd.f32 %v4857_v22, %v17061_v58  ;;  %v12117_v43 = vor.u32 %v14018_v36, %v12114_v17  ;;  %v3700_v58 = vsel %vm3549_vm2, %v3693_v14, %v3699_v52  ;;  %v3694_v22 = vsel %vm3549_vm2, %v16796_v3, %v3693_v14  ;;  %v12192_v36 = vld [vmem:[#allocation12 + $0x518] sm:$0xf]  ;;  %v14038_v17 = vld [vmem:[#allocation12 + $0x520] sm:$0xf0]  ;;  %v14053_v3 = vld [vmem:[#allocation12 + $0x598] sm:$0xf0] }
 0x43d   :  { %v4876_v61 = vpop.f32.mrf.mxu2 }
 0x43e   :  { %v17239_v23 = vadd.f32 %v4876_v61, %v17173_v32  ;;  %5560 = vmatpush.bf16.msrb.mxu0 %v12117_v43 }
 0x440   :  { %v4796_v41 = vpop.f32.mrf.mxu0  ;;  %5617 = vmatpush.bf16.msrb.mxu3 %v12037_v44  ;;  %v3733_v44 = vsel %vm316_vm15, %v3700_v58, 0.0 }
 0x441   :  { %v17233_v1 = vadd.f32 %v4796_v41, %v17156_v63  ;;  %v17241_v46 = vpop.f32.mrf.mxu1  ;;  %v12204_v63 = vld [vmem:[#allocation12 + $0x530] sm:$0xf]  ;;  %v12025_v41 = vor.u32 %v13996_v28, %v12024_v35  ;;  %v17258_v28 = vpack.c.bf16 %v3733_v44, %v3694_v22  ;;  %v12180_v22 = vld [vmem:[#allocation12 + $0x500] sm:$0xf]  ;;  %v14035_v44 = vld [vmem:[#allocation12 + $0x508] sm:$0xf0] }
 0x442   :  { %v12205_v47 = vor.u32 %v14041_v51, %v12204_v63  ;;  %v12193_v63 = vor.u32 %v14038_v17, %v12192_v36 }
 0x443   :  { %v4859_v0 = vpop.f32.mrf.mxu3 }
 0x444   :  { %5640 = vmatpush.bf16.msrb.mxu2 %v12205_v47  ;;  %5618 = vmatpush.bf16.msrb.mxu3 %v12025_v41  ;;  %v17252_v35 = vadd.f32 %v4859_v0, %v17067_v18  ;;  %v20090_v47 = vld [vmem:[#allocation48_spill] sm:$0xff] }
 0x445   :  { %v4878_v61 = vpop.f32.mrf.mxu2  ;;  %v3652_v18 = vld [vmem:[#allocation2 + $0xc0] sm:$0xff] }
 0x446   :  { %v17255_v52 = vadd.f32 %v4878_v61, %v17186_v2  ;;  %v3655_v2 = vld [vmem:[#allocation2 + $0xd8] sm:$0xf] }
 0x447   :  { %v3695_v36 = vrot.slane %v3655_v2, 4  ;;  %v12168_v2 = vld [vmem:[#allocation12 + $0x4e8] sm:$0xf] }
 0x448   :  { %v4799_v53 = vpop.f32.mrf.mxu0  ;;  %12269 = vmatmul.msk.bf16.gmra.mxu3 %vm199_vm0, %v17258_v28  ;;  %5641 = vmatpush.bf16.msrb.mxu2 %v12193_v63 }
 0x449   :  { %v17245_v32 = vadd.f32 %v4799_v53, %v17176_v45  ;;  %v12252_v45 = vld [vmem:[#allocation12 + $0x590] sm:$0xf]  ;;  %v4949_v43 = vpop.f32.mrf.mxu1  ;;  %12285 = vmatmul.msk.bf16.gmra.mxu1 %vm199_vm0, %v17258_v28  ;;  %v3689_v53 = vrot.slane %v3652_v18, 4 }
 0x44a   :  { %v17261_v14 = vadd.f32 %v4949_v43, %v17158_v4  ;;  %v12253_v51 = vor.u32 %v14053_v3, %v12252_v45  ;;  %12272 = vmatmul.msk.bf16.gmra.mxu2 %vm17078_vm14, %v20089_v56  ;;  %v12181_v45 = vor.u32 %v14035_v44, %v12180_v22  ;;  %v20091_v43 = vld [vmem:[#allocation38_spill] sm:$0xff]  ;;  %v14050_v22 = vld [vmem:[#allocation12 + $0x580] sm:$0xf0] }
 0x44b   :  { %5455 = vmatmul.bf16.gmra.mxu0 %v20090_v47  ;;  %v4862_v4 = vpop.f32.mrf.mxu3  ;;  %v3690_v63 = vsel %vm3549_vm2, %v20091_v43, %v3689_v53  ;;  %v3696_v3 = vsel %vm3549_vm2, %v3689_v53, %v3695_v36  ;;  %v12240_v53 = vld [vmem:[#allocation12 + $0x578] sm:$0xf]  ;;  %v12156_v36 = vld [vmem:[#allocation12 + $0x4d0] sm:$0xf] }
 0x44c   :  { %5673 = vmatpush.bf16.msra.mxu0 %v12253_v51  ;;  %v4863_v61 = vadd.f32 %v4862_v4, %v17089_v42  ;;  %5642 = vmatpush.bf16.msrb.mxu2 %v12181_v45  ;;  %v17283_v18 = vpack.c.bf16 %v3696_v3, %v3690_v63  ;;  %v14032_v4 = vld [vmem:[#allocation12 + $0x4f0] sm:$0xf0]  ;;  %v14029_v45 = vld [vmem:[#allocation12 + $0x4d8] sm:$0xf0] }
 0x44d   :  { %v4881_v0 = vpop.f32.mrf.mxu2  ;;  %v12157_v3 = vor.u32 %v14029_v45, %v12156_v36  ;;  %v12120_v45 = vld [vmem:[#allocation12 + $0x488] sm:$0xf] }
 0x44e   :  { %v17275_v17 = vadd.f32 %v4881_v0, %v17205_v7  ;;  %v12169_v0 = vor.u32 %v14032_v4, %v12168_v2  ;;  %v12144_v4 = vld [vmem:[#allocation12 + $0x4b8] sm:$0xf] }
 0x450   :  { %v4801_v41 = vpop.f32.mrf.mxu0  ;;  %5643 = vmatpush.bf16.msrb.mxu2 %v12169_v0  ;;  %v12228_v0 = vld [vmem:[#allocation12 + $0x560] sm:$0xf] }
 0x451   :  { %v17271_v58 = vadd.f32 %v4801_v41, %v17189_v55 }
 0x453   :  { %v4864_v41 = vpop.f32.mrf.mxu3 }
 0x454   :  { %v4865_v42 = vadd.f32 %v4864_v41, %v17097_v48  ;;  %5644 = vmatpush.bf16.msrb.mxu2 %v12157_v3  ;;  %v14020_v3 = vld [vmem:[#allocation12 + $0x490] sm:$0xf0] }
 0x455   :  { %v4883_v10 = vpop.f32.mrf.mxu2 }
 0x456   :  { %v17287_v7 = vadd.f32 %v4883_v10, %v17216_v50 }
 0x458   :  { %v4804_v55 = vpop.f32.mrf.mxu0  ;;  %5619 = vmatmul.bf16.vlgmr.msrb.gmra.mxu3 %v20088_v19 }
 0x459   :  { %v17281_v51 = vadd.f32 %v4804_v55, %v17208_v24  ;;  %v12241_v24 = vor.u32 %v14050_v22, %v12240_v53  ;;  %v14026_v53 = vld [vmem:[#allocation12 + $0x4c0] sm:$0xf0] }
 0x45a   :  { %5542 = vmatmul.bf16.gmra.mxu2 %v20090_v47  ;;  %v12145_v22 = vor.u32 %v14026_v53, %v12144_v4 }
 0x45b   :  { %12259 = vmatmul.msk.bf16.gmra.mxu0 %vm17134_vm1, %v17283_v18  ;;  %v4963_v50 = vpop.f32.mrf.mxu3 }
 0x45c   :  { %5674 = vmatpush.bf16.msra.mxu0 %v12241_v24  ;;  %v4964_v43 = vadd.f32 %v4963_v50, %v17163_v25  ;;  %v14047_v25 = vld [vmem:[#allocation12 + $0x568] sm:$0xf0]  ;;  %v12132_v24 = vld [vmem:[#allocation12 + $0x4a0] sm:$0xf]  ;;  %5645 = vmatpush.bf16.msrb.mxu2 %v12145_v22 }
 0x45d   :  { %v4886_v44 = vpop.f32.mrf.mxu2 }
 0x45e   :  { %v4887_v63 = vadd.f32 %v4886_v44, %v17236_v13  ;;  %v14023_v13 = vld [vmem:[#allocation12 + $0x4a8] sm:$0xf0] }
 0x460   :  { %v4806_v48 = vpop.f32.mrf.mxu0 }
 0x461   :  { %v17295_v10 = vadd.f32 %v4806_v48, %v17219_v16  ;;  %v12229_v48 = vor.u32 %v14047_v25, %v12228_v0 }
 0x463   :  { %v17302_v41 = vpop.f32.mrf.mxu3  ;;  %5675 = vmatpush.bf16.msra.mxu0 %v12229_v48 }
 0x465   :  { %v4888_v2 = vpop.f32.mrf.mxu2 }
 0x466   :  { %v4889_v16 = vadd.f32 %v4888_v2, %v17252_v35 }
 0x468   :  { %v4905_v55 = vpop.f32.mrf.mxu0  ;;  %12288 = vmatmul.msk.bf16.gmra.mxu3 %vm17078_vm14, %v20089_v56  ;;  %v12121_v56 = vor.u32 %v14020_v3, %v12120_v45 }
 0x469   :  { %v17300_v19 = vadd.f32 %v4905_v55, %v17239_v23  ;;  %v12133_v23 = vor.u32 %v14023_v13, %v12132_v24  ;;  %v14044_v24 = vld [vmem:[#allocation12 + $0x550] sm:$0xf0] }
 0x46a   :  { %12275 = vmatmul.msk.bf16.gmra.mxu2 %vm17134_vm1, %v17283_v18 }
 0x46b   :  { %5561 = vmatmul.bf16.vlgmr.msrb.gmra.mxu0 %v16648_v39  ;;  %v4968_v44 = vpop.f32.mrf.mxu3  ;;  %5646 = vmatpush.bf16.msrb.mxu2 %v12133_v23 }
 0x46c   :  { %v4969_v55 = vadd.f32 %v4968_v44, %v17193_v6  ;;  %v17326_v6 = vpop.f32.mrf.mxu1 }
 0x46d   :  { %v4891_v36 = vpop.f32.mrf.mxu2 }
 0x46e   :  { %v4892_v2 = vadd.f32 %v4891_v36, %v4863_v61 }
 0x46f   :  { %5647 = vmatpush.bf16.msrb.mxu2 %v12121_v56 }
 0x470   :  { %v4907_v35 = vpop.f32.mrf.mxu0 }
 0x471   :  { %v17313_v50 = vadd.f32 %v4907_v35, %v17255_v52  ;;  %v12216_v52 = vld [vmem:[#allocation12 + $0x548] sm:$0xf] }
 0x472   :  { %v12217_v13 = vor.u32 %v14044_v24, %v12216_v52 }
 0x473   :  { %v17319_v0 = vpop.f32.mrf.mxu3 }
 0x474   :  { %5676 = vmatpush.bf16.msra.mxu0 %v12217_v13 }
 0x475   :  { %v4893_v22 = vpop.f32.mrf.mxu2 }
 0x476   :  { %v4894_v25 = vadd.f32 %v4893_v22, %v4865_v42 }
 0x478   :  { %v4910_v4 = vpop.f32.mrf.mxu0  ;;  %5629 = vmatmul.bf16.gmra.mxu3 %v20090_v47 }
 0x479   :  { %v17317_v53 = vadd.f32 %v4910_v4, %v17275_v17 }
 0x47a   :  { %5648 = vmatmul.bf16.vlgmr.msrb.gmra.mxu2 %v16648_v39  ;;  %v5475_v39 = vpop.f32.mrf.mxu1 }
 0x47b   :  { %12278 = vmatmul.msk.bf16.gmra.mxu0 %vm17078_vm14, %v20080_v30  ;;  %v4973_v48 = vpop.f32.mrf.mxu3 }
 0x47c   :  { %v4974_v23 = vadd.f32 %v4973_v48, %v17225_v20 }
 0x47d   :  { %v4992_v42 = vpop.f32.mrf.mxu2 }
 0x47e   :  { %v17332_v35 = vadd.f32 %v4992_v42, %v4964_v43 }
 0x480   :  { %v4912_v61 = vpop.f32.mrf.mxu0 }
 0x481   :  { %v17329_v17 = vadd.f32 %v4912_v61, %v17287_v7 }
 0x482   :  { %v5477_v4 = vpop.f32.mrf.mxu1 }
 0x483   :  { %v17336_v45 = vpop.f32.mrf.mxu3 }
 0x485   :  { %v17338_v47 = vpop.f32.mrf.mxu2 }
 0x488   :  { %v4915_v44 = vpop.f32.mrf.mxu0  ;;  %12291 = vmatmul.msk.bf16.gmra.mxu3 %vm17134_vm1, %v17283_v18 }
 0x489   :  { %v17334_v36 = vadd.f32 %v4915_v44, %v4887_v63 }
 0x48a   :  { %12294 = vmatmul.msk.bf16.gmra.mxu2 %vm17078_vm14, %v20080_v30  ;;  %v5480_v27 = vpop.f32.mrf.mxu1 }
 0x48b   :  { %5571 = vmatmul.bf16.gmra.mxu0 %v20082_v21  ;;  %v4978_v43 = vpop.f32.mrf.mxu3 }
 0x48c   :  { %v4979_v3 = vadd.f32 %v4978_v43, %v17261_v14  ;;  %v17370_v43 = vld [vmem:[#allocation14] sm:$0x7] }
 0x48d   :  { %v4997_v63 = vpop.f32.mrf.mxu2 }
 0x48e   :  { %v17350_v56 = vadd.f32 %v4997_v63, %v4969_v55 }
 0x490   :  { %v4917_v20 = vpop.f32.mrf.mxu0 }
 0x491   :  { %v17347_v7 = vadd.f32 %v4917_v20, %v4889_v16 }
 0x493   :  { %v17354_v24 = vpop.f32.mrf.mxu3 }
 0x495   :  { %v17356_v18 = vpop.f32.mrf.mxu2 }
 0x498   :  { %v4920_v22 = vpop.f32.mrf.mxu0 }
 0x499   :  { %v17352_v52 = vadd.f32 %v4920_v22, %v4892_v2  ;;  %v5482_v2 = vpop.f32.mrf.mxu1 }
 0x49a   :  { %5658 = vmatmul.bf16.gmra.mxu2 %v20082_v21  ;;  %v4819_v21 = vadd.f32 %v17051_v11, %v17183_v12 }
 0x49b   :  { %12281 = vmatmul.msk.bf16.gmra.mxu0 %vm17134_vm1, %v17138_v31  ;;  %v5504_v14 = vpop.f32.mrf.mxu3 }
 0x49d   :  { %v5002_v55 = vpop.f32.mrf.mxu2 }
 0x49e   :  { %v17364_v13 = vadd.f32 %v5002_v55, %v4974_v23 }
 0x4a0   :  { %v4922_v30 = vpop.f32.mrf.mxu0 }
 0x4a1   :  { %v17362_v16 = vadd.f32 %v4922_v30, %v4894_v25 }
 0x4a3   :  { %v5506_v42 = vpop.f32.mrf.mxu3 }
 0x4a5   :  { %v17366_v44 = vpop.f32.mrf.mxu2 }
 0x4a8   :  { %v5446_v61 = vpop.f32.mrf.mxu0 }
 0x4a9   :  { %v5476_v48 = vadd.f32 %v5475_v39, %v5446_v61  ;;  %v17378_v39 = vperm.slane %v17370_v43, 0 }
 0x4aa   :  { %12297 = vmatmul.msk.bf16.gmra.mxu2 %vm17134_vm1, %v17138_v31 }
 0x4ab   :  { %12298 = vmatmul.msk.bf16.vlgmr.msra.gmra.mxu0 %vm199_vm0, %v16781_v34  ;;  %v5505_v20 = vadd.f32 %v5504_v14, %v5476_v48  ;;  %v5509_v22 = vpop.f32.mrf.mxu3  ;;  %v4821_v34 = vadd.f32 %v17063_v60, %v17202_v9  ;;  %v5485_v14 = vpop.f32.mrf.mxu1  ;;  %v14616_v48 = vld [vmem:[#allocation2 + $0x18] sm:$0xff]  ;;  %v4824_v60 = vadd.f32 %v17073_v57, %v17213_v33  ;;  %v4826_v57 = vadd.f32 %v17093_v29, %v17233_v1 }
 0x4ad   :  { %v5698_v23 = vadd.f32 %v5505_v20, %v4819_v21  ;;  %v5007_v30 = vpop.f32.mrf.mxu2  ;;  %v14617_v21 = vld [vmem:[#allocation2 + $0x30] sm:$0xff] }
 0x4ae   :  { %v17380_v55 = vadd.f32 %v5007_v30, %v4979_v3 }
 0x4af   :  { %v5730_v54 = vadd.f32 %v17378_v39, %v5698_v23 }
 0x4b0   :  { %v5448_v25 = vpop.f32.mrf.mxu0 }
 0x4b1   :  { %v5478_v63 = vadd.f32 %v5477_v4, %v5448_v25  ;;  %v17386_v20 = vadd.f32 %v14616_v48, %v5730_v54  ;;  %v14618_v54 = vld [vmem:[#allocation2 + $0x48] sm:$0xff] }
 0x4b3   :  { %v5507_v61 = vadd.f32 %v5506_v42, %v5478_v63  ;;  %v5511_v3 = vpop.f32.mrf.mxu3  ;;  %v5487_v23 = vpop.f32.mrf.mxu1 }
 0x4b5   :  { %v5701_v31 = vadd.f32 %v5507_v61, %v4821_v34  ;;  %v17390_v30 = vpop.f32.mrf.mxu2 }
 0x4b7   :  { %v5733_v11 = vadd.f32 %v17378_v39, %v5701_v31 }
 0x4b8   :  { %v5451_v12 = vpop.f32.mrf.mxu0 }
 0x4b9   :  { %v17388_v4 = vadd.f32 %v14617_v21, %v5733_v11  ;;  %v5481_v25 = vadd.f32 %v5480_v27, %v5451_v12 }
 0x4bb   :  { %v5778_v9 = vadd.f32 %v17388_v4, %v17386_v20  ;;  %v5510_v42 = vadd.f32 %v5509_v22, %v5481_v25  ;;  %12299 = vmatmul.msk.bf16.gmra.mxu0 %vm199_vm0, %v16807_v40  ;;  %v5514_v12 = vpop.f32.mrf.mxu3  ;;  %v5490_v21 = vpop.f32.mrf.mxu1 }
 0x4bd   :  { %v5704_v63 = vadd.f32 %v5510_v42, %v4824_v60  ;;  %v5533_v11 = vpop.f32.mrf.mxu2  ;;  %v14619_v60 = vld [vmem:[#allocation2 + $0x60] sm:$0xff] }
 0x4bf   :  { %v5736_v34 = vadd.f32 %v17378_v39, %v5704_v63 }
 0x4c0   :  { %v5453_v61 = vpop.f32.mrf.mxu0 }
 0x4c1   :  { %v17399_v27 = vadd.f32 %v14618_v54, %v5736_v34  ;;  %v5483_v31 = vadd.f32 %v5482_v2, %v5453_v61  ;;  %v4829_v2 = vadd.f32 %v17103_v15, %v17245_v32  ;;  %v4831_v15 = vadd.f32 %v17115_v62, %v17271_v58 }
 0x4c3   :  { %v5779_v33 = vadd.f32 %v5778_v9, %v17399_v27  ;;  %v5512_v22 = vadd.f32 %v5511_v3, %v5483_v31  ;;  %v5516_v29 = vpop.f32.mrf.mxu3  ;;  %v5492_v31 = vpop.f32.mrf.mxu1 }
 0x4c5   :  { %v5707_v48 = vadd.f32 %v5512_v22, %v4826_v57  ;;  %v5535_v34 = vpop.f32.mrf.mxu2  ;;  %v14620_v57 = vld [vmem:[#allocation2 + $0x78] sm:$0xff] }
 0x4c7   :  { %v5739_v40 = vadd.f32 %v17378_v39, %v5707_v48 }
 0x4c8   :  { %v5456_v25 = vpop.f32.mrf.mxu0 }
 0x4c9   :  { %v17405_v42 = vadd.f32 %v14619_v60, %v5739_v40  ;;  %v5486_v63 = vadd.f32 %v5485_v14, %v5456_v25  ;;  %v14621_v60 = vld [vmem:[#allocation2 + $0x90] sm:$0xff] }
 0x4cb   :  { %v5780_v61 = vadd.f32 %v5779_v33, %v17405_v42  ;;  %v5515_v54 = vadd.f32 %v5514_v12, %v5486_v63  ;;  %12300 = vmatmul.msk.bf16.gmra.mxu0 %vm199_vm0, %v16812_v59  ;;  %v5519_v40 = vpop.f32.mrf.mxu3 }
 0x4cd   :  { %v5710_v1 = vadd.f32 %v5515_v54, %v4829_v2  ;;  %v5538_v48 = vpop.f32.mrf.mxu2 }
 0x4cf   :  { %v5742_v3 = vadd.f32 %v17378_v39, %v5710_v1  ;;  %v5591_v1 = vpop.f32.mrf.mxu1 }
 0x4d0   :  { %v5458_v9 = vpop.f32.mrf.mxu0 }
 0x4d1   :  { %v17413_v22 = vadd.f32 %v14620_v57, %v5742_v3  ;;  %v5488_v14 = vadd.f32 %v5487_v23, %v5458_v9  ;;  %v4834_v23 = vadd.f32 %v17129_v5, %v17281_v51  ;;  %v14622_v57 = vld [vmem:[#allocation2 + $0xa8] sm:$0xff] }
 0x4d3   :  { %v5781_v32 = vadd.f32 %v5780_v61, %v17413_v22  ;;  %v5517_v12 = vadd.f32 %v5516_v29, %v5488_v14  ;;  %v5521_v29 = vpop.f32.mrf.mxu3 }
 0x4d5   :  { %v5713_v33 = vadd.f32 %v5517_v12, %v4831_v15  ;;  %v17419_v54 = vpop.f32.mrf.mxu2 }
 0x4d7   :  { %v5745_v59 = vadd.f32 %v17378_v39, %v5713_v33  ;;  %v5593_v51 = vpop.f32.mrf.mxu1 }
 0x4d8   :  { %v5461_v25 = vpop.f32.mrf.mxu0 }
 0x4d9   :  { %v5769_v63 = vadd.f32 %v14621_v60, %v5745_v59  ;;  %v5491_v2 = vadd.f32 %v5490_v21, %v5461_v25  ;;  %v4836_v21 = vadd.f32 %v17152_v37, %v17295_v10  ;;  %v14623_v59 = vld [vmem:[#allocation2 + $0xc0] sm:$0xff] }
 0x4db   :  { %v5782_v3 = vadd.f32 %v5781_v32, %v5769_v63  ;;  %v5520_v9 = vadd.f32 %v5519_v40, %v5491_v2  ;;  %12301 = vmatmul.msk.bf16.gmra.mxu0 %vm199_vm0, %v17258_v28 }
 0x4dd   :  { %v5716_v62 = vadd.f32 %v5520_v9, %v4834_v23  ;;  %v17428_v5 = vpop.f32.mrf.mxu2 }
 0x4df   :  { %v5748_v58 = vadd.f32 %v17378_v39, %v5716_v62 }
 0x4e0   :  { %v5463_v61 = vpop.f32.mrf.mxu0 }
 0x4e1   :  { %v5772_v14 = vadd.f32 %v14622_v57, %v5748_v58  ;;  %v5493_v15 = vadd.f32 %v5492_v31, %v5463_v61  ;;  %v5596_v31 = vpop.f32.mrf.mxu1 }
 0x4e3   :  { %v5783_v12 = vadd.f32 %v5782_v3, %v5772_v14  ;;  %v5522_v33 = vadd.f32 %v5521_v29, %v5493_v15 }
 0x4e5   :  { %v5719_v32 = vadd.f32 %v5522_v33, %v4836_v21  ;;  %v17431_v9 = vpop.f32.mrf.mxu2 }
 0x4e7   :  { %v5751_v40 = vadd.f32 %v17378_v39, %v5719_v32  ;;  %v17435_v39 = vperm.slane %v17370_v43, 1 }
 0x4e8   :  { %v5562_v28 = vpop.f32.mrf.mxu0 }
 0x4e9   :  { %v5775_v25 = vadd.f32 %v14623_v59, %v5751_v40  ;;  %v5563_v23 = vadd.f32 %v5562_v28, %v5533_v11  ;;  %v5598_v40 = vpop.f32.mrf.mxu1  ;;  %v20092_v28 = vld [vmem:[#allocation32_spill] sm:$0xff] }
 0x4eb   :  { %v5784_v60 = vadd.f32 %v5783_v12, %v5775_v25  ;;  %v5592_v10 = vadd.f32 %v5591_v1, %v5563_v23 }
 0x4ed   :  { %v5785_v2 = vrot.slane %v5784_v60, 4  ;;  %v5699_v15 = vadd.f32 %v5592_v10, %v17300_v19  ;;  %v17439_v32 = vpop.f32.mrf.mxu2 }
 0x4ef   :  { %v5786_v62 = vadd.f32 %v5785_v2, %v5784_v60 }
 0x4f0   :  { %v5564_v58 = vpop.f32.mrf.mxu0 }
 0x4f1   :  { %v5787_v37 = vrot.slane %v5786_v62, 2  ;;  %v5565_v3 = vadd.f32 %v5564_v58, %v5535_v34  ;;  %v5731_v34 = vadd.f32 %v17435_v39, %v5699_v15 }
 0x4f3   :  { %v5788_v61 = vadd.f32 %v5787_v37, %v5786_v62  ;;  %v5594_v29 = vadd.f32 %v5593_v51, %v5565_v3 }
 0x4f5   :  { %v5789_v57 = vrot.slane %v5788_v61, 1  ;;  %v5702_v21 = vadd.f32 %v5594_v29, %v17313_v50  ;;  %v5550_v29 = vpop.f32.mrf.mxu2 }
 0x4f7   :  { %v5790_v12 = vadd.f32 %v5789_v57, %v5788_v61  ;;  %v5734_v11 = vadd.f32 %v17435_v39, %v5702_v21  ;;  %v5601_v57 = vpop.f32.mrf.mxu1 }
 0x4f8   :  { %v5567_v33 = vpop.f32.mrf.mxu0 }
 0x4f9   :  { %v5825_v1 = vmul.f32 %v5790_v12, %v20092_v28  ;;  %v17444_v51 = vadd.f32 %v5734_v11, %v16575_v49  ;;  %v5568_v19 = vadd.f32 %v5567_v33, %v5538_v48 }
 0x4fb   :  { %v17447_v59 = vsub.f32 %v17386_v20, %v5825_v1  ;;  %v17450_v50 = vsub.f32 %v17388_v4, %v5825_v1  ;;  %v17453_v60 = vsub.f32 %v17399_v27, %v5825_v1  ;;  %v17456_v2 = vsub.f32 %v17405_v42, %v5825_v1  ;;  %v14624_v27 = vld [vmem:[#allocation2 + $0x20] sm:$0xff] }
 0x4fc   :  { %v17459_v23 = vsub.f32 %v17413_v22, %v5825_v1  ;;  %v17461_v62 = vsub.f32 %v5769_v63, %v5825_v1  ;;  %v17463_v49 = vsub.f32 %v5772_v14, %v5825_v1  ;;  %v17465_v48 = vsub.f32 %v5775_v25, %v5825_v1  ;;  %v20093_v1 = vld [vmem:[#allocation30_spill] sm:$0xff] }
 0x4fd   :  { %v5852_v20 = vmul.f32 %v17447_v59, %v17447_v59  ;;  %v5855_v4 = vmul.f32 %v17450_v50, %v17450_v50  ;;  %v17471_v58 = vadd.f32 %v14624_v27, %v5731_v34  ;;  %v5858_v42 = vmul.f32 %v17453_v60, %v17453_v60 }
 0x4fe   :  { %v5597_v14 = vadd.f32 %v5596_v31, %v5568_v19  ;;  %v5861_v25 = vmul.f32 %v17456_v2, %v17456_v2  ;;  %v5864_v15 = vmul.f32 %v17459_v23, %v17459_v23  ;;  %v5867_v31 = vmul.f32 %v17461_v62, %v17461_v62 }
 0x4ff   :  { %v5876_v22 = vadd.f32 %v5855_v4, %v5852_v20  ;;  %v5791_v63 = vadd.f32 %v17444_v51, %v17471_v58 }
 0x500   :  { %v5569_v37 = vpop.f32.mrf.mxu0  ;;  %v5705_v3 = vadd.f32 %v5597_v14, %v17317_v53 }
 0x501   :  { %v5877_v10 = vadd.f32 %v5876_v22, %v5858_v42  ;;  %v5570_v61 = vadd.f32 %v5569_v37, %v17419_v54  ;;  %v5870_v54 = vmul.f32 %v17463_v49, %v17463_v49  ;;  %v20094_v22 = vld [vmem:[#allocation39_spill] sm:$0xff] }
 0x502   :  { %v5737_v12 = vadd.f32 %v17435_v39, %v5705_v3  ;;  %v5649_v3 = vpop.f32.mrf.mxu2 }
 0x503   :  { %v5878_v21 = vadd.f32 %v5877_v10, %v5861_v25  ;;  %v5599_v11 = vadd.f32 %v5598_v40, %v5570_v61  ;;  %v5873_v40 = vmul.f32 %v17465_v48, %v17465_v48  ;;  %v5603_v61 = vpop.f32.mrf.mxu1 }
 0x504   :  { %v17487_v34 = vadd.f32 %v5737_v12, %v20093_v1  ;;  %v20095_v1 = vld [vmem:[#allocation33_spill] sm:$0xff] }
 0x505   :  { %v5879_v33 = vadd.f32 %v5878_v21, %v5864_v15  ;;  %v5708_v53 = vadd.f32 %v5599_v11, %v17329_v17  ;;  %v5620_v21 = vpop.f32.mrf.mxu3 }
 0x506   :  { %v5792_v20 = vadd.f32 %v5791_v63, %v17487_v34 }
 0x507   :  { %v5880_v19 = vadd.f32 %v5879_v33, %v5867_v31  ;;  %v5740_v4 = vadd.f32 %v17435_v39, %v5708_v53 }
 0x508   :  { %v5572_v27 = vpop.f32.mrf.mxu0 }
 0x509   :  { %v5881_v42 = vadd.f32 %v5880_v19, %v5870_v54  ;;  %v17497_v14 = vadd.f32 %v5740_v4, %v20094_v22  ;;  %v5573_v37 = vadd.f32 %v5572_v27, %v17428_v5 }
 0x50a   :  { %v5651_v27 = vpop.f32.mrf.mxu2 }
 0x50b   :  { %v5882_v25 = vadd.f32 %v5881_v42, %v5873_v40  ;;  %v5793_v17 = vadd.f32 %v5792_v20, %v17497_v14  ;;  %v5602_v10 = vadd.f32 %v5601_v57, %v5573_v37 }
 0x50d   :  { %v5883_v15 = vrot.slane %v5882_v25, 4  ;;  %v5711_v63 = vadd.f32 %v5602_v10, %v17334_v36  ;;  %v5606_v36 = vpop.f32.mrf.mxu1  ;;  %v5622_v22 = vpop.f32.mrf.mxu3  ;;  %v20096_v10 = vld [vmem:[#allocation43_spill] sm:$0xff] }
 0x50f   :  { %v5884_v12 = vadd.f32 %v5883_v15, %v5882_v25  ;;  %v5743_v11 = vadd.f32 %v17435_v39, %v5711_v63 }
 0x510   :  { %v5574_v31 = vpop.f32.mrf.mxu0 }
 0x511   :  { %v5885_v33 = vrot.slane %v5884_v12, 2  ;;  %v17504_v53 = vadd.f32 %v5743_v11, %v20095_v1  ;;  %v5575_v5 = vadd.f32 %v5574_v31, %v17431_v9 }
 0x512   :  { %v5654_v31 = vpop.f32.mrf.mxu2 }
 0x513   :  { %v5886_v54 = vadd.f32 %v5885_v33, %v5884_v12  ;;  %v5794_v19 = vadd.f32 %v5793_v17, %v17504_v53  ;;  %v5604_v57 = vadd.f32 %v5603_v61, %v5575_v5  ;;  %v20097_v33 = vld [vmem:[#allocation34_spill] sm:$0xff] }
 0x515   :  { %v5887_v20 = vrot.slane %v5886_v54, 1  ;;  %v5714_v4 = vadd.f32 %v5604_v57, %v17347_v7  ;;  %v5625_v57 = vpop.f32.mrf.mxu3 }
 0x517   :  { %v5888_v40 = vadd.f32 %v5887_v20, %v5886_v54  ;;  %v5746_v42 = vadd.f32 %v17435_v39, %v5714_v4  ;;  %v5608_v54 = vpop.f32.mrf.mxu1 }
 0x518   :  { %v5577_v37 = vpop.f32.mrf.mxu0 }
 0x519   :  { %v5923_v25 = vmul.f32 %v5888_v40, %v20092_v28  ;;  %v17512_v15 = vadd.f32 %v5746_v42, %v20096_v10  ;;  %v5578_v9 = vadd.f32 %v5577_v37, %v17439_v32  ;;  %v20098_v42 = vld [vmem:[#allocation52_spill] sm:$0xff]  ;;  %v4942_v37 = vadd.f32 %v17210_v8, %v17113_v26  ;;  %v12444_v26 = vld [vmem:[#allocation18 + $0x118] sm:$0xf]  ;;  %v14191_v8 = vld [vmem:[#allocation18 + $0x128] sm:$0xf0] }
 0x51b   :  { %v5926_v63 = vadd.f32 1e-05, %v5923_v25  ;;  %v5795_v17 = vadd.f32 %v5794_v19, %v17512_v15  ;;  %v5607_v61 = vadd.f32 %v5606_v36, %v5578_v9  ;;  %v17530_v9 = vld [vmem:[#allocation17] sm:$0x7] }
 0x51d   :  { %14444 = vrsqrt.f32 %v5926_v63  ;;  %v5717_v7 = vadd.f32 %v5607_v61, %v17352_v52  ;;  %v4937_v52 = vadd.f32 %v17180_v38, %v20098_v42  ;;  %v5650_v61 = vadd.f32 %v5649_v3, %v5620_v21  ;;  %v12446_v21 = vld [vmem:[#allocation18 + $0x12c] sm:$0xf0] }
 0x51e   :  { %v4971_v38 = vadd.f32 %v17319_v0, %v4942_v37  ;;  %v12445_v3 = vor.u32 %v14191_v8, %v12444_v26  ;;  %vm5935_vm4 = vweird.f32 %v5926_v63  ;;  %v6017_v42 = vperm.slane %v17530_v9, 0 }
 0x51f   :  { %v5749_v12 = vadd.f32 %v17435_v39, %v5717_v7  ;;  %v20099_v7 = vld [vmem:[#allocation57_spill] sm:$0xff]  ;;  %v17552_v37 = vadd.f32 %v5651_v27, %v5622_v22 }
 0x520   :  { %v5579_v11 = vpop.f32.mrf.mxu0  ;;  %7388 = vmatpush.bf16.msrb.mxu1 %v12445_v3 }
 0x521   :  { %v17519_v1 = vadd.f32 %v5749_v12, %v20097_v33  ;;  %v5580_v5 = vadd.f32 %v5579_v11, %v5550_v29  ;;  %v17528_v29 = vld [vmem:[#allocation15] sm:$0x7]  ;;  %v17534_v12 = vadd.f32 %v17241_v46, %v20099_v7  ;;  %v14625_v11 = vld [vmem:[#allocation2 + $0xc8] sm:$0xff]  ;;  %v17544_v46 = vadd.f32 %v17356_v18, %v4971_v38 }
 0x522   :  { %v17557_v18 = vadd.f32 %v5654_v31, %v5625_v57 }
 0x523   :  { %v14445_v20 = vpop.eup %14444  ;;  %v5796_v32 = vadd.f32 %v5795_v17, %v17519_v1  ;;  %v5609_v4 = vadd.f32 %v5608_v54, %v5580_v5 }
 0x524   :  { %v5930_v40 = vmul.f32 %v14445_v20, %v5926_v63  ;;  %vm5936_vm2 = vweird.f32 %v14445_v20  ;;  %v14186_v63 = vld [vmem:[#allocation18 + $0x100] sm:$0xf0] }
 0x525   :  { %v5720_v19 = vadd.f32 %v5609_v4, %v17362_v16  ;;  %v4966_v16 = vadd.f32 %v17302_v41, %v4937_v52  ;;  %v5656_v4 = vpop.f32.mrf.mxu2  ;;  %v5627_v52 = vpop.f32.mrf.mxu3  ;;  %vm5937_vm5 = vmor %vm5935_vm4, %vm5936_vm2 }
 0x526   :  { %v5931_v36 = vmul.f32 %v14445_v20, %v5930_v40 }
 0x527   :  { %v5752_v25 = vadd.f32 %v17435_v39, %v5720_v19  ;;  %v14189_v39 = vld [vmem:[#allocation18 + $0x11c] sm:$0xf]  ;;  %v17541_v40 = vadd.f32 %v17338_v47, %v4966_v16  ;;  %v17555_v47 = vperm.slane %v17370_v43, 2 }
 0x528   :  { %v5932_v10 = vmul.f32 0.5, %v5931_v36  ;;  %v5678_v17 = vpop.f32.mrf.mxu0  ;;  %v12449_v0 = vor.u32 %v14189_v39, %v12446_v21  ;;  %v5985_v36 = vperm.slane %v17528_v29, 0 }
 0x529   :  { %v17538_v33 = vadd.f32 %v14625_v11, %v5752_v25  ;;  %v5679_v54 = vadd.f32 %v5678_v17, %v5650_v61  ;;  %v12424_v25 = vld [vmem:[#allocation18 + $0xf0] sm:$0xf] }
 0x52a   :  { %v5933_v5 = vsub.f32 1.5, %v5932_v10  ;;  %7475 = vmatpush.bf16.msrb.mxu0 %v12449_v0  ;;  %v12425_v7 = vor.u32 %v14186_v63, %v12424_v25 }
 0x52b   :  { %v17547_v41 = vadd.f32 %v5796_v32, %v17538_v33  ;;  %v17559_v32 = vadd.f32 %v5656_v4, %v5627_v52  ;;  %v5700_v17 = vadd.f32 %v5679_v54, %v17332_v35 }
 0x52c   :  { %v5934_v19 = vmul.f32 %v14445_v20, %v5933_v5  ;;  %7389 = vmatpush.bf16.msrb.mxu1 %v12425_v7 }
 0x52d   :  { %v5798_v61 = vrot.slane %v17547_v41, 4 }
 0x52e   :  { %v5938_v10 = vsel %vm5937_vm5, %v14445_v20, %v5934_v19 }
 0x52f   :  { %v5959_v16 = vmul.f32 %v5938_v10, %v17447_v59  ;;  %v5962_v27 = vmul.f32 %v5938_v10, %v17450_v50  ;;  %v5965_v43 = vmul.f32 %v5938_v10, %v17453_v60  ;;  %v5968_v22 = vmul.f32 %v5938_v10, %v17456_v2 }
 0x530   :  { %v5971_v31 = vmul.f32 %v5938_v10, %v17459_v23  ;;  %v5974_v57 = vmul.f32 %v5938_v10, %v17461_v62  ;;  %v5977_v38 = vmul.f32 %v5938_v10, %v17463_v49  ;;  %v5980_v20 = vmul.f32 %v5938_v10, %v17465_v48  ;;  %v5680_v11 = vpop.f32.mrf.mxu0 }
 0x531   :  { %v5991_v35 = vmul.f32 %v5985_v36, %v5959_v16  ;;  %v5994_v26 = vmul.f32 %v5985_v36, %v5962_v27  ;;  %v5997_v8 = vmul.f32 %v5985_v36, %v5965_v43  ;;  %v6000_v59 = vmul.f32 %v5985_v36, %v5968_v22 }
 0x532   :  { %v6003_v39 = vmul.f32 %v5985_v36, %v5971_v31  ;;  %v6006_v50 = vmul.f32 %v5985_v36, %v5974_v57  ;;  %v6009_v5 = vmul.f32 %v5985_v36, %v5977_v38  ;;  %v6012_v60 = vmul.f32 %v5985_v36, %v5980_v20 }
 0x533   :  { %v17571_v54 = vadd.f32 %v6017_v42, %v5991_v35  ;;  %v17573_v2 = vadd.f32 %v6017_v42, %v5994_v26  ;;  %v17575_v23 = vadd.f32 %v6017_v42, %v5997_v8  ;;  %v17577_v62 = vadd.f32 %v6017_v42, %v6000_v59 }
 0x534   :  { %v17579_v49 = vadd.f32 %v6017_v42, %v6003_v39  ;;  %v17581_v48 = vadd.f32 %v6017_v42, %v6006_v50  ;;  %v17583_v4 = vadd.f32 %v6017_v42, %v6009_v5  ;;  %v17585_v3 = vadd.f32 %v6017_v42, %v6012_v60 }
 0x535   :  { %v6047_v21 = vmul.f32 %v17571_v54, %v17571_v54  ;;  %v6050_v0 = vmul.f32 %v17573_v2, %v17573_v2  ;;  %v6053_v19 = vmul.f32 %v17575_v23, %v17575_v23  ;;  %v6056_v36 = vmul.f32 %v17577_v62, %v17577_v62 }
 0x536   :  { %v6059_v52 = vmul.f32 %v17579_v49, %v17579_v49  ;;  %v6062_v25 = vmul.f32 %v17581_v48, %v17581_v48  ;;  %v6065_v42 = vmul.f32 %v17583_v4, %v17583_v4  ;;  %v6068_v63 = vmul.f32 %v17585_v3, %v17585_v3 }
 0x537   :  { %v6071_v10 = vmul.f32 %v6047_v21, %v17571_v54  ;;  %v6074_v7 = vmul.f32 %v6050_v0, %v17573_v2  ;;  %v6077_v16 = vmul.f32 %v6053_v19, %v17575_v23  ;;  %v6080_v27 = vmul.f32 %v6056_v36, %v17577_v62 }
 0x538   :  { %v6083_v43 = vmul.f32 %v6059_v52, %v17579_v49  ;;  %v6086_v22 = vmul.f32 %v6062_v25, %v17581_v48  ;;  %v6089_v31 = vmul.f32 %v6065_v42, %v17583_v4  ;;  %v6092_v57 = vmul.f32 %v6068_v63, %v17585_v3  ;;  %v5683_v38 = vpop.f32.mrf.mxu0 }
 0x539   :  { %v6095_v20 = vmul.f32 0.044715, %v6071_v10  ;;  %v6098_v35 = vmul.f32 0.044715, %v6074_v7  ;;  %v6101_v26 = vmul.f32 0.044715, %v6077_v16  ;;  %v5732_v8 = vadd.f32 %v17555_v47, %v5700_v17 }
 0x53a   :  { %v6104_v59 = vmul.f32 0.044715, %v6080_v27  ;;  %v6107_v39 = vmul.f32 0.044715, %v6083_v43  ;;  %v6110_v50 = vmul.f32 0.044715, %v6086_v22  ;;  %v5799_v5 = vadd.f32 %v5798_v61, %v17547_v41 }
 0x53b   :  { %v6113_v60 = vmul.f32 0.044715, %v6089_v31  ;;  %v6116_v21 = vmul.f32 0.044715, %v6092_v57  ;;  %v6119_v0 = vadd.f32 %v6095_v20, %v17571_v54  ;;  %v6122_v19 = vadd.f32 %v6098_v35, %v17573_v2  ;;  %v14184_v17 = vld [vmem:[#allocation18 + $0xf4] sm:$0xf]  ;;  %v17625_v57 = vpop.f32.mrf.mxu2 }
 0x53c   :  { %v6125_v36 = vadd.f32 %v6101_v26, %v17575_v23  ;;  %v6128_v52 = vadd.f32 %v6104_v59, %v17577_v62  ;;  %v6131_v25 = vadd.f32 %v6107_v39, %v17579_v49  ;;  %v6134_v42 = vadd.f32 %v6110_v50, %v17581_v48  ;;  %v12426_v7 = vld [vmem:[#allocation18 + $0x104] sm:$0xf0]  ;;  %v17627_v50 = vpop.f32.mrf.mxu3 }
 0x53d   :  { %v6137_v63 = vadd.f32 %v6113_v60, %v17583_v4  ;;  %v6140_v10 = vadd.f32 %v6116_v21, %v17585_v3  ;;  %v6143_v41 = vmul.f32 0.7978846, %v6119_v0  ;;  %v6146_v61 = vmul.f32 0.7978846, %v6122_v19  ;;  %v20100_v43 = vld [vmem:[#allocation45_spill] sm:$0xff] }
 0x53e   :  { %v6149_v16 = vmul.f32 0.7978846, %v6125_v36  ;;  %v6152_v27 = vmul.f32 0.7978846, %v6128_v52  ;;  %v17622_v22 = vadd.f32 %v5732_v8, %v20100_v43  ;;  %v5681_v31 = vadd.f32 %v5680_v11, %v17552_v37  ;;  %v12404_v20 = vld [vmem:[#allocation18 + $0xc8] sm:$0xf] }
 0x53f   :  { %v6155_v35 = vmul.f32 0.7978846, %v6131_v25  ;;  %v6158_v26 = vmul.f32 0.7978846, %v6134_v42  ;;  %v6161_v59 = vmul.f32 0.7978846, %v6137_v63  ;;  %14446 = vtanh.f32 %v6143_v41 }
 0x540   :  { %v6164_v39 = vmul.f32 0.7978846, %v6140_v10  ;;  %14448 = vtanh.f32 %v6146_v61  ;;  %v5800_v60 = vrot.slane %v5799_v5, 2  ;;  %v5703_v21 = vadd.f32 %v5681_v31, %v17541_v40  ;;  %v5685_v0 = vpop.f32.mrf.mxu0  ;;  %v14181_v19 = vld [vmem:[#allocation18 + $0xd8] sm:$0xf0] }
 0x541   :  { %14450 = vtanh.f32 %v6149_v16  ;;  %v5684_v8 = vadd.f32 %v5683_v38, %v17557_v18  ;;  %v12429_v37 = vor.u32 %v14184_v17, %v12426_v7  ;;  %v5686_v11 = vadd.f32 %v5685_v0, %v17559_v32  ;;  %v14179_v36 = vld [vmem:[#allocation18 + $0xcc] sm:$0xf]  ;;  %v12406_v52 = vld [vmem:[#allocation18 + $0xdc] sm:$0xf0]  ;;  %v14176_v41 = vld [vmem:[#allocation18 + $0xb0] sm:$0xf0] }
 0x542   :  { %14452 = vtanh.f32 %v6152_v27  ;;  %v5801_v25 = vadd.f32 %v5800_v60, %v5799_v5  ;;  %v5804_v42 = vsel %vm199_vm0, %v17622_v22, 0.0  ;;  %v5735_v63 = vadd.f32 %v17555_v47, %v5703_v21  ;;  %v12384_v10 = vld [vmem:[#allocation18 + $0xa0] sm:$0xf]  ;;  %v20101_v17 = vld [vmem:[#allocation53_spill] sm:$0xff] }
 0x543   :  { %14454 = vtanh.f32 %v6155_v35  ;;  %v5706_v40 = vadd.f32 %v5684_v8, %v17350_v56  ;;  %7476 = vmatpush.bf16.msrb.mxu0 %v12429_v37  ;;  %v5709_v18 = vadd.f32 %v5686_v11, %v17544_v46  ;;  %v12405_v38 = vor.u32 %v14181_v19, %v12404_v20  ;;  %v14174_v31 = vld [vmem:[#allocation18 + $0xa4] sm:$0xf]  ;;  %v12386_v56 = vld [vmem:[#allocation18 + $0xb4] sm:$0xf0]  ;;  %v20102_v19 = vld [vmem:[#allocation54_spill] sm:$0xff] }
 0x544   :  { %14456 = vtanh.f32 %v6158_v26  ;;  %v5802_v32 = vrot.slane %v5801_v25, 1  ;;  %v17638_v61 = vadd.f32 %v5735_v63, %v20101_v17  ;;  %v12409_v5 = vor.u32 %v14179_v36, %v12406_v52  ;;  %v5661_v52 = vpop.f32.mrf.mxu2 }
 0x545   :  { %v14447_v7 = vpop.eup %14446  ;;  %14458 = vtanh.f32 %v6161_v59  ;;  %v5738_v16 = vadd.f32 %v17555_v47, %v5706_v40  ;;  %v5741_v27 = vadd.f32 %v17555_v47, %v5709_v18  ;;  %7390 = vmatpush.bf16.msrb.mxu1 %v12405_v38  ;;  %v12385_v43 = vor.u32 %v14176_v41, %v12384_v10 }
 0x546   :  { %v14449_v35 = vpop.eup %14448  ;;  %14460 = vtanh.f32 %v6164_v39  ;;  %v6191_v46 = vadd.f32 1.0, %v14447_v7  ;;  %v5803_v20 = vadd.f32 %v5802_v32, %v5801_v25  ;;  %v5805_v26 = vsel %vm199_vm0, %v17638_v61, 0.0 }
 0x547   :  { %v14451_v60 = vpop.eup %14450  ;;  %v4976_v21 = vadd.f32 %v17336_v45, %v17534_v12  ;;  %v6194_v59 = vadd.f32 1.0, %v14449_v35  ;;  %v17646_v0 = vadd.f32 %v5805_v26, %v5804_v42  ;;  %v17649_v8 = vadd.f32 %v5738_v16, %v20102_v19  ;;  %7477 = vmatpush.bf16.msrb.mxu0 %v12409_v5  ;;  %v20103_v12 = vld [vmem:[#allocation36_spill] sm:$0xff]  ;;  %v5632_v5 = vpop.f32.mrf.mxu3 }
 0x548   :  { %v14453_v37 = vpop.eup %14452  ;;  %v6197_v11 = vadd.f32 1.0, %v14451_v60  ;;  %v6215_v36 = vmul.f32 0.5, %v6191_v46  ;;  %v5826_v39 = vmul.f32 %v5803_v20, %v20092_v28  ;;  %v12389_v25 = vor.u32 %v14174_v31, %v12386_v56  ;;  %v17652_v63 = vpop.f32.mrf.mxu0 }
 0x549   :  { %v14455_v10 = vpop.eup %14454  ;;  %v6200_v41 = vadd.f32 1.0, %v14453_v37  ;;  %v6218_v40 = vmul.f32 0.5, %v6194_v59  ;;  %v5807_v45 = vsel %vm199_vm0, %v17649_v8, 0.0  ;;  %v17657_v42 = vadd.f32 %v5741_v27, %v20103_v12  ;;  %7391 = vmatpush.bf16.msrb.mxu1 %v12385_v43  ;;  %v14166_v12 = vld [vmem:[#allocation18 + $0x60] sm:$0xf0] }
 0x54a   :  { %v14457_v18 = vpop.eup %14456  ;;  %v6203_v38 = vadd.f32 1.0, %v14455_v10  ;;  %v6221_v32 = vmul.f32 0.5, %v6197_v11  ;;  %v17660_v17 = vmul.f32 %v6215_v36, %v17571_v54  ;;  %v17663_v7 = vsub.f32 %v17471_v58, %v5826_v39  ;;  %v12364_v11 = vld [vmem:[#allocation18 + $0x78] sm:$0xf]  ;;  %v14171_v36 = vld [vmem:[#allocation18 + $0x88] sm:$0xf0] }
 0x54b   :  { %v14459_v16 = vpop.eup %14458  ;;  %v6206_v31 = vadd.f32 1.0, %v14457_v18  ;;  %v6224_v56 = vmul.f32 0.5, %v6200_v41  ;;  %v17666_v35 = vmul.f32 %v6218_v40, %v17573_v2  ;;  %v17669_v27 = vsub.f32 %v17444_v51, %v5826_v39  ;;  %7478 = vmatpush.bf16.msrb.mxu0 %v12389_v25  ;;  %v14169_v25 = vld [vmem:[#allocation18 + $0x7c] sm:$0xf]  ;;  %v12366_v10 = vld [vmem:[#allocation18 + $0x8c] sm:$0xf0] }
 0x54c   :  { %v14461_v43 = vpop.eup %14460  ;;  %v6209_v46 = vadd.f32 1.0, %v14459_v16  ;;  %v6227_v20 = vmul.f32 0.5, %v6203_v38  ;;  %v17672_v54 = vmul.f32 %v6221_v32, %v17575_v23  ;;  %6263 = vst [vmem:[#allocation2 + $0x18] sm:$0xff] %v17660_v17  ;;  %v17676_v58 = vsub.f32 %v17487_v34, %v5826_v39  ;;  %v12344_v40 = vld [vmem:[#allocation18 + $0x50] sm:$0xf] }
 0x54d   :  { %v6212_v26 = vadd.f32 1.0, %v14461_v43  ;;  %v6230_v60 = vmul.f32 0.5, %v6206_v31  ;;  %v17679_v2 = vmul.f32 %v6224_v56, %v17577_v62  ;;  %6266 = vst [vmem:[#allocation2 + $0x30] sm:$0xff] %v17666_v35  ;;  %v17683_v51 = vsub.f32 %v17497_v14, %v5826_v39  ;;  %v14164_v32 = vld [vmem:[#allocation18 + $0x54] sm:$0xf] }
 0x54e   :  { %v6233_v59 = vmul.f32 0.5, %v6209_v46  ;;  %v17686_v19 = vmul.f32 %v6227_v20, %v17579_v49  ;;  %6269 = vst [vmem:[#allocation2 + $0x48] sm:$0xff] %v17672_v54  ;;  %v17690_v23 = vsub.f32 %v17504_v53, %v5826_v39  ;;  %v17693_v34 = vsub.f32 %v17512_v15, %v5826_v39  ;;  %v12346_v16 = vld [vmem:[#allocation18 + $0x64] sm:$0xf0] }
 0x54f   :  { %v6236_v37 = vmul.f32 0.5, %v6212_v26  ;;  %v17696_v62 = vmul.f32 %v6230_v60, %v17581_v48  ;;  %6272 = vst [vmem:[#allocation2 + $0x60] sm:$0xff] %v17679_v2  ;;  %v17700_v14 = vsub.f32 %v17519_v1, %v5826_v39  ;;  %v17703_v49 = vsub.f32 %v17538_v33, %v5826_v39  ;;  %v5635_v43 = vpop.f32.mrf.mxu3 }
 0x550   :  { %v17706_v53 = vmul.f32 %v6233_v59, %v17583_v4  ;;  %6275 = vst [vmem:[#allocation2 + $0x78] sm:$0xff] %v17686_v19  ;;  %v5853_v15 = vmul.f32 %v17663_v7, %v17663_v7  ;;  %v5856_v48 = vmul.f32 %v17669_v27, %v17669_v27  ;;  %v5690_v1 = vpop.f32.mrf.mxu0  ;;  %v5005_v41 = vadd.f32 %v17366_v44, %v4976_v21  ;;  %v5664_v21 = vpop.f32.mrf.mxu2 }
 0x551   :  { %v17715_v33 = vmul.f32 %v6236_v37, %v17585_v3  ;;  %6278 = vst [vmem:[#allocation2 + $0x90] sm:$0xff] %v17696_v62  ;;  %v5660_v4 = vadd.f32 %v17625_v57, %v17627_v50  ;;  %v5809_v39 = vsel %vm199_vm0, %v17657_v42, 0.0  ;;  %v5859_v18 = vmul.f32 %v17676_v58, %v17676_v58 }
 0x552   :  { %6281 = vst [vmem:[#allocation2 + $0xa8] sm:$0xff] %v17706_v53  ;;  %v5889_v38 = vadd.f32 %v5856_v48, %v5853_v15  ;;  %v5808_v44 = vadd.f32 %v5807_v45, %v17646_v0  ;;  %v5662_v3 = vadd.f32 %v5661_v52, %v5632_v5  ;;  %v5862_v57 = vmul.f32 %v17683_v51, %v17683_v51  ;;  %v12324_v52 = vld [vmem:[#allocation18 + $0x28] sm:$0xf]  ;;  %v14161_v45 = vld [vmem:[#allocation18 + $0x38] sm:$0xf0] }
 0x553   :  { %6284 = vst [vmem:[#allocation2 + $0xc0] sm:$0xff] %v17715_v33  ;;  %v5689_v50 = vadd.f32 %v17652_v63, %v5660_v4  ;;  %v12365_v31 = vor.u32 %v14171_v36, %v12364_v11  ;;  %v12369_v56 = vor.u32 %v14169_v25, %v12366_v10  ;;  %v5865_v46 = vmul.f32 %v17690_v23, %v17690_v23  ;;  %v6420_v5 = vld [vmem:[#allocation2] sm:$0x80]  ;;  %v14159_v15 = vld [vmem:[#allocation18 + $0x2c] sm:$0xf] }
 0x554   :  { %v5890_v20 = vadd.f32 %v5889_v38, %v5859_v18  ;;  %v5810_v26 = vadd.f32 %v5809_v39, %v5808_v44  ;;  %v12345_v0 = vor.u32 %v14166_v12, %v12344_v40  ;;  %v12349_v59 = vor.u32 %v14164_v32, %v12346_v16  ;;  %v12326_v63 = vld [vmem:[#allocation18 + $0x3c] sm:$0xf0]  ;;  %v20104_v38 = vld [vmem:[#allocation46_spill] sm:$0xff] }
 0x555   :  { %v5712_v60 = vadd.f32 %v5689_v50, %v17364_v13  ;;  %7392 = vmatpush.bf16.msrb.mxu1 %v12365_v31  ;;  %7479 = vmatpush.bf16.msrb.mxu0 %v12369_v56  ;;  %v5691_v37 = vadd.f32 %v5690_v1, %v5662_v3  ;;  %v5868_v11 = vmul.f32 %v17693_v34, %v17693_v34  ;;  %v6491_v39 = vrot.slane %v6420_v5, 7  ;;  %v14154_v50 = vld [vmem:[#allocation18 + $0x4] sm:$0xf]  ;;  %v12306_v31 = vld [vmem:[#allocation18 + $0x14] sm:$0xf0] }
 0x556   :  { %v5891_v36 = vadd.f32 %v5890_v20, %v5862_v57  ;;  %v5665_v48 = vadd.f32 %v5664_v21, %v5635_v43  ;;  %v12325_v4 = vor.u32 %v14161_v45, %v12324_v52  ;;  %v12329_v12 = vor.u32 %v14159_v15, %v12326_v63  ;;  %v12304_v21 = vld [vmem:[#allocation18] sm:$0xf]  ;;  %v14156_v57 = vld [vmem:[#allocation18 + $0x10] sm:$0xf0]  ;;  %v20105_v20 = vld [vmem:[#allocation37_spill] sm:$0xff] }
 0x557   :  { %v5744_v25 = vadd.f32 %v17555_v47, %v5712_v60  ;;  %v5715_v10 = vadd.f32 %v5691_v37, %v5005_v41  ;;  %v6492_v18 = vrot.slane %v17660_v17, 7  ;;  %v6500_v1 = vrot.slane %v17666_v35, 7  ;;  %v20106_v5 = vld [vmem:[#allocation40_spill] sm:$0xff] }
 0x558   :  { %v5892_v40 = vadd.f32 %v5891_v36, %v5865_v46  ;;  %v5693_v13 = vpop.f32.mrf.mxu0  ;;  %v5871_v41 = vmul.f32 %v17700_v14, %v17700_v14  ;;  %v4952_v60 = vadd.f32 %v17326_v6, %v20106_v5  ;;  %v5666_v63 = vpop.f32.mrf.mxu2  ;;  %v12305_v36 = vor.u32 %v14156_v57, %v12304_v21  ;;  %v6590_v21 = vld [vmem:[#allocation2 + $0x18] sm:$0xfe] }
 0x559   :  { %v17739_v44 = vadd.f32 %v5744_v25, %v20104_v38  ;;  %7393 = vmatpush.bf16.msrb.mxu1 %v12345_v0  ;;  %7480 = vmatpush.bf16.msrb.mxu0 %v12349_v59  ;;  %v5747_v3 = vadd.f32 %v17555_v47, %v5715_v10  ;;  %v5694_v32 = vadd.f32 %v5693_v13, %v5665_v48  ;;  %v20107_v25 = vld [vmem:[#allocation31_spill] sm:$0xff] }
 0x55a   :  { %v5893_v16 = vadd.f32 %v5892_v40, %v5868_v11  ;;  %v6493_v56 = vsel %vm6490_vm6, %v6491_v39, %v6492_v18  ;;  %v6501_v43 = vsel %vm6490_vm6, %v6492_v18, %v6500_v1  ;;  %v5874_v59 = vmul.f32 %v17703_v49, %v17703_v49  ;;  %v5637_v39 = vpop.f32.mrf.mxu3  ;;  %v20108_v18 = vld [vmem:[#allocation56_spill] sm:$0xff] }
 0x55b   :  { %v5811_v46 = vsel %vm199_vm0, %v17739_v44, 0.0  ;;  %v17751_v0 = vadd.f32 %v5747_v3, %v20105_v20  ;;  %v5718_v52 = vadd.f32 %v5694_v32, %v17380_v55  ;;  %v17754_v45 = vpack.c.bf16 %v6501_v43, %v6493_v56  ;;  %v17796_v56 = vld [vmem:[#allocation2 + $0x90] sm:$0xff] }
 0x55c   :  { %v5894_v37 = vadd.f32 %v5893_v16, %v5871_v41  ;;  %v5812_v15 = vadd.f32 %v5811_v46, %v5810_v26  ;;  %v12309_v48 = vor.u32 %v14154_v50, %v12306_v31  ;;  %vm269_vm7 = vcmp.ge.s32.totalorder %v20107_v25, 1  ;;  %v17786_v16 = vld [vmem:[#allocation2 + $0x48] sm:$0xff]  ;;  %v17794_v31 = vld [vmem:[#allocation2 + $0x78] sm:$0xff] }
 0x55d   :  { %v5813_v11 = vsel %vm199_vm0, %v17751_v0, 0.0  ;;  %7394 = vmatpush.bf16.msrb.mxu1 %v12325_v4  ;;  %7481 = vmatpush.bf16.msrb.mxu0 %v12329_v12  ;;  %v5750_v55 = vadd.f32 %v17555_v47, %v5718_v52  ;;  %v4981_v40 = vadd.f32 %v17354_v24, %v4952_v60  ;;  %v5667_v13 = vadd.f32 %v5666_v63, %v5637_v39  ;;  %vm17779_vm8 = vmpackc.low %vm14946_vm3, %vm269_vm7  ;;  %v12372_v25 = vld [vmem:[#allocation18 + $0x80] sm:$0xf] }
 0x55e   :  { %v5895_v10 = vadd.f32 %v5894_v37, %v5874_v59  ;;  %v5814_v6 = vadd.f32 %v5813_v11, %v5812_v15  ;;  %v17770_v38 = vpack.c.bf16 %v17666_v35, %v17660_v17  ;;  %v17774_v3 = vpack.c.bf16 %v17679_v2, %v17672_v54  ;;  %v17788_v54 = vld [vmem:[#allocation2 + $0x60] sm:$0xff] }
 0x55f   :  { %v17766_v26 = vadd.f32 %v5750_v55, %v20108_v18  ;;  %v5010_v32 = vadd.f32 %v17390_v30, %v4981_v40  ;;  %v17792_v2 = vpack.c.bf16 %v17696_v62, %v17686_v19  ;;  %v17800_v30 = vpack.c.bf16 %v17715_v33, %v17706_v53  ;;  %v17812_v33 = vld [vmem:[#allocation2 + $0xa8] sm:$0xff]  ;;  %v20114_v11 = vld [vmem:[#allocation51_spill] sm:$0xff]  ;;  %v14231_v18 = vld [vmem:[#allocation18 + $0x268] sm:$0xf0] }
 0x560   :  { %20109 = vst [vmem:[#allocation55_spill] sm:$0xff] %v17770_v38  ;;  %v5896_v4 = vrot.slane %v5895_v10, 4  ;;  %v5695_v12 = vpop.f32.mrf.mxu0  ;;  %v6625_v46 = vrot.slane %v6590_v21, 1  ;;  %v6626_v19 = vrot.slane %v17666_v35, 1  ;;  %v6634_v62 = vrot.slane %v17786_v16, 1 }
 0x561   :  { %20110 = vst [vmem:[#allocation41_spill] sm:$0xff] %v17774_v3  ;;  %7395 = vmatpush.bf16.msrb.mxu1 %v12305_v36  ;;  %7482 = vmatpush.bf16.msrb.mxu0 %v12309_v48  ;;  %v5815_v17 = vsel %vm199_vm0, %v17766_v26, 0.0  ;;  %v5696_v41 = vadd.f32 %v5695_v12, %v5667_v13  ;;  %v6640_v52 = vrot.slane %v17788_v54, 1  ;;  %v6646_v5 = vrot.slane %v17794_v31, 1  ;;  %v12604_v13 = vld [vmem:[#allocation18 + $0x258] sm:$0xf] }
 0x562   :  { %v5897_v57 = vadd.f32 %v5896_v4, %v5895_v10  ;;  %v5816_v50 = vadd.f32 %v5815_v17, %v5814_v6  ;;  %20113 = vst [vmem:[#allocation44_spill] sm:$0xff] %v17812_v33  ;;  %v6652_v60 = vrot.slane %v17796_v56, 1  ;;  %v6627_v37 = vsel %vm6624_vm9, %v6625_v46, %v6626_v19  ;;  %v12606_v17 = vld [vmem:[#allocation18 + $0x26c] sm:$0xf0] }
 0x563   :  { %v5721_v43 = vadd.f32 %v5696_v41, %v5010_v32  ;;  %v6635_v15 = vsel %vm6624_vm9, %v6626_v19, %v6634_v62  ;;  %v6641_v63 = vsel %vm6624_vm9, %v6634_v62, %v6640_v52  ;;  %v19945_v6 = vrot.slane %v17812_v33, 1  ;;  %v14229_v32 = vld [vmem:[#allocation18 + $0x25c] sm:$0xf]  ;;  %v12612_v41 = vld [vmem:[#allocation18 + $0x260] sm:$0xf] }
 0x564   :  { %v5898_v20 = vrot.slane %v5897_v57, 2  ;;  %12704 = vmatmul.msk.bf16.vlgmr.msrb.gmra.mxu1 %vm17779_vm8, %v17754_v45  ;;  %12720 = vmatmul.msk.bf16.vlgmr.msrb.gmra.mxu0 %vm17779_vm8, %v17754_v45  ;;  %v17822_v48 = vpack.c.bf16 %v6635_v15, %v6627_v37  ;;  %v6653_v55 = vsel %vm6624_vm9, %v6646_v5, %v6652_v60  ;;  %v12605_v21 = vor.u32 %v14231_v18, %v12604_v13  ;;  %v14232_v19 = vld [vmem:[#allocation18 + $0x270] sm:$0xf0] }
 0x565   :  { %v5753_v53 = vadd.f32 %v17555_v47, %v5721_v43  ;;  %v6647_v47 = vsel %vm6624_vm9, %v6640_v52, %v6646_v5  ;;  %v6506_v43 = vrot.slane %v17786_v16, 7  ;;  %v6512_v46 = vrot.slane %v17788_v54, 7  ;;  %v12584_v5 = vld [vmem:[#allocation18 + $0x230] sm:$0xf]  ;;  %v14224_v37 = vld [vmem:[#allocation18 + $0x234] sm:$0xf] }
 0x566   :  { %v5899_v59 = vadd.f32 %v5898_v20, %v5897_v57  ;;  %20115 = vst [vmem:[#allocation50_spill] sm:$0xff] %v17822_v48  ;;  %v17826_v39 = vpack.c.bf16 %v6647_v47, %v6641_v63  ;;  %v6659_v57 = vsel %vm6624_vm9, %v6652_v60, %v19945_v6  ;;  %v12609_v20 = vor.u32 %v14229_v32, %v12606_v17  ;;  %v12586_v63 = vld [vmem:[#allocation18 + $0x244] sm:$0xf0]  ;;  %v12592_v54 = vld [vmem:[#allocation18 + $0x238] sm:$0xf] }
 0x567   :  { %v17820_v36 = vadd.f32 %v5753_v53, %v20114_v11  ;;  %v17836_v62 = vpack.c.bf16 %v6659_v57, %v6653_v55  ;;  %7417 = vmatpush.bf16.msra.mxu3 %v12605_v21  ;;  %v6507_v11 = vsel %vm6490_vm6, %v6500_v1, %v6506_v43  ;;  %v6513_v47 = vsel %vm6490_vm6, %v6506_v43, %v6512_v46  ;;  %v14221_v21 = vld [vmem:[#allocation18 + $0x218] sm:$0xf0]  ;;  %v14219_v32 = vld [vmem:[#allocation18 + $0x20c] sm:$0xf]  ;;  %v14222_v57 = vld [vmem:[#allocation18 + $0x220] sm:$0xf0] }
 0x568   :  { %v5900_v10 = vrot.slane %v5899_v59, 1  ;;  %20116 = vst [vmem:[#allocation29_spill] sm:$0xff] %v17826_v39  ;;  %7504 = vmatpush.bf16.msra.mxu1 %v12609_v20  ;;  %v6518_v55 = vrot.slane %v17794_v31, 7  ;;  %v6524_v18 = vrot.slane %v17796_v56, 7  ;;  %v17848_v17 = vpack.c.bf16 %v6513_v47, %v6507_v11  ;;  %v12572_v31 = vld [vmem:[#allocation18 + $0x210] sm:$0xf] }
 0x569   :  { %v5817_v40 = vsel %vm199_vm0, %v17820_v36, 0.0  ;;  %20117 = vst [vmem:[#allocation35_spill] sm:$0xff] %v17836_v62  ;;  %v12573_v20 = vor.u32 %v14222_v57, %v12572_v31  ;;  %v6444_v56 = vld [vmem:[#allocation2 + $0xc0] sm:$0x7f]  ;;  %v12552_v11 = vld [vmem:[#allocation18 + $0x1e8] sm:$0xf] }
 0x56a   :  { %v5901_v4 = vadd.f32 %v5900_v10, %v5899_v59  ;;  %v5818_v12 = vadd.f32 %v5817_v40, %v5816_v50  ;;  %v12613_v50 = vor.u32 %v14232_v19, %v12612_v41  ;;  %v14226_v59 = vld [vmem:[#allocation18 + $0x240] sm:$0xf0]  ;;  %v12589_v10 = vor.u32 %v14224_v37, %v12586_v63  ;;  %v14227_v40 = vld [vmem:[#allocation18 + $0x248] sm:$0xf0]  ;;  %v12566_v41 = vld [vmem:[#allocation18 + $0x21c] sm:$0xf0] }
 0x56b   :  { %v12585_v16 = vor.u32 %v14226_v59, %v12584_v5  ;;  %v12569_v43 = vor.u32 %v14219_v32, %v12566_v41  ;;  %v12544_v5 = vld [vmem:[#allocation18 + $0x1e0] sm:$0xf]  ;;  %v14216_v59 = vld [vmem:[#allocation18 + $0x1f0] sm:$0xf0]  ;;  %v14214_v37 = vld [vmem:[#allocation18 + $0x1e4] sm:$0xf] }
 0x56c   :  { %v5924_v52 = vmul.f32 %v5901_v4, %v20092_v28  ;;  %v5819_v53 = vrot.slane %v5818_v12, 4  ;;  %7591 = vmatpush.bf16.msra.mxu0 %v12613_v50  ;;  %v12593_v4 = vor.u32 %v14227_v40, %v12592_v54  ;;  %7505 = vmatpush.bf16.msra.mxu1 %v12589_v10  ;;  %v6525_v50 = vsel %vm6490_vm6, %v6518_v55, %v6524_v18  ;;  %v12546_v54 = vld [vmem:[#allocation18 + $0x1f4] sm:$0xf0]  ;;  %v14217_v47 = vld [vmem:[#allocation18 + $0x1f8] sm:$0xf0]  ;;  %v20118_v10 = vld [vmem:[#allocation42_spill] sm:$0xff] }
 0x56d   :  { %7418 = vmatpush.bf16.msra.mxu3 %v12585_v16  ;;  %v12545_v63 = vor.u32 %v14216_v59, %v12544_v5  ;;  %vm273_vm10 = vcmp.ge.s32.totalorder %v20118_v10, 1  ;;  %v14204_v62 = vld [vmem:[#allocation18 + $0x194] sm:$0xf]  ;;  %v12486_v39 = vld [vmem:[#allocation18 + $0x17c] sm:$0xf0] }
 0x56e   :  { %v17839_v15 = vadd.f32 1e-05, %v5924_v52  ;;  %v5820_v60 = vadd.f32 %v5819_v53, %v5818_v12  ;;  %v12564_v12 = vld [vmem:[#allocation18 + $0x208] sm:$0xf]  ;;  %v6530_v52 = vrot.slane %v17812_v33, 7  ;;  %v6519_v53 = vsel %vm6490_vm6, %v6512_v46, %v6518_v55  ;;  %vm17926_vm14 = vmpackc.low %vm14946_vm3, %vm273_vm10 }
 0x56f   :  { %v12565_v1 = vor.u32 %v14221_v21, %v12564_v12  ;;  %v12553_v46 = vor.u32 %v14217_v47, %v12552_v11  ;;  %v6536_v21 = vrot.slane %v6444_v56, 7  ;;  %v14211_v56 = vld [vmem:[#allocation18 + $0x1c8] sm:$0xf0]  ;;  %v12504_v33 = vld [vmem:[#allocation18 + $0x190] sm:$0xf] }
 0x570   :  { %14462 = vrsqrt.f32 %v17839_v15  ;;  %v5821_v13 = vrot.slane %v5820_v60, 2  ;;  %7592 = vmatpush.bf16.msra.mxu0 %v12593_v4  ;;  %7506 = vmatpush.bf16.msra.mxu1 %v12569_v43  ;;  %v17858_v4 = vpack.c.bf16 %v6525_v50, %v6519_v53  ;;  %v17861_v12 = vsel %vm6490_vm6, %v6524_v18, %v6530_v52 }
 0x571   :  { %7419 = vmatpush.bf16.msra.mxu3 %v12565_v1  ;;  %v17865_v1 = vperm.slane %v17530_v9, 1  ;;  %v17908_v59 = vsel %vm6490_vm6, %v6530_v52, %v6536_v21  ;;  %vm5945_vm12 = vweird.f32 %v17839_v15 }
 0x572   :  { %v5822_v35 = vadd.f32 %v5821_v13, %v5820_v60  ;;  %v12549_v13 = vor.u32 %v14214_v37, %v12546_v54  ;;  %v14209_v37 = vld [vmem:[#allocation18 + $0x1bc] sm:$0xf] }
 0x574   :  { %v5823_v19 = vrot.slane %v5822_v35, 1  ;;  %7401 = vmatmul.bf16.gmra.mxu1 %v17848_v17  ;;  %7488 = vmatmul.bf16.gmra.mxu0 %v17848_v17 }
 0x575   :  { %7593 = vmatpush.bf16.msra.mxu0 %v12573_v20  ;;  %7420 = vmatpush.bf16.msra.mxu3 %v12545_v63 }
 0x576   :  { %v14463_v60 = vpop.eup %14462  ;;  %v5824_v16 = vadd.f32 %v5823_v19, %v5822_v35  ;;  %v5986_v35 = vperm.slane %v17528_v29, 1  ;;  %7507 = vmatpush.bf16.msra.mxu1 %v12549_v13  ;;  %v12524_v19 = vld [vmem:[#allocation18 + $0x1b8] sm:$0xf] }
 0x577   :  { %v5940_v40 = vmul.f32 %v14463_v60, %v17839_v15  ;;  %vm5946_vm11 = vweird.f32 %v14463_v60  ;;  %v12525_v21 = vor.u32 %v14211_v56, %v12524_v19 }
 0x578   :  { %v5827_v55 = vmul.f32 %v5824_v16, %v20092_v28  ;;  %v12526_v16 = vld [vmem:[#allocation18 + $0x1cc] sm:$0xf0]  ;;  %vm5947_vm13 = vmor %vm5945_vm12, %vm5946_vm11 }
 0x579   :  { %v5941_v32 = vmul.f32 %v14463_v60, %v5940_v40  ;;  %7594 = vmatpush.bf16.msra.mxu0 %v12553_v46  ;;  %7421 = vmatpush.bf16.msra.mxu3 %v12525_v21 }
 0x57a   :  { %v17868_v41 = vsub.f32 %v17622_v22, %v5827_v55  ;;  %v17871_v31 = vsub.f32 %v17638_v61, %v5827_v55  ;;  %v17874_v57 = vsub.f32 %v17649_v8, %v5827_v55  ;;  %v17877_v18 = vsub.f32 %v17657_v42, %v5827_v55 }
 0x57b   :  { %v5942_v43 = vmul.f32 0.5, %v5941_v32  ;;  %v17880_v29 = vsub.f32 %v17739_v44, %v5827_v55  ;;  %v17883_v9 = vsub.f32 %v17751_v0, %v5827_v55  ;;  %v17886_v22 = vsub.f32 %v17766_v26, %v5827_v55 }
 0x57c   :  { %v17889_v61 = vsub.f32 %v17820_v36, %v5827_v55  ;;  %v5854_v8 = vmul.f32 %v17868_v41, %v17868_v41  ;;  %v5857_v42 = vmul.f32 %v17871_v31, %v17871_v31  ;;  %v5860_v20 = vmul.f32 %v17874_v57, %v17874_v57 }
 0x57d   :  { %v5943_v44 = vsub.f32 1.5, %v5942_v43  ;;  %v5863_v0 = vmul.f32 %v17877_v18, %v17877_v18  ;;  %v5866_v26 = vmul.f32 %v17880_v29, %v17880_v29  ;;  %v5869_v36 = vmul.f32 %v17883_v9, %v17883_v9 }
 0x57e   :  { %v5872_v53 = vmul.f32 %v17886_v22, %v17886_v22  ;;  %v5902_v50 = vsel %vm199_vm0, %v5854_v8, 0.0  ;;  %v5903_v5 = vsel %vm199_vm0, %v5857_v42, 0.0  ;;  %v5905_v11 = vsel %vm199_vm0, %v5860_v20, 0.0 }
 0x57f   :  { %v5944_v63 = vmul.f32 %v14463_v60, %v5943_v44  ;;  %v5904_v54 = vadd.f32 %v5903_v5, %v5902_v50  ;;  %v5907_v47 = vsel %vm199_vm0, %v5863_v0, 0.0  ;;  %v17915_v40 = vsel %vm199_vm0, %v5866_v26, 0.0 }
 0x580   :  { %v17918_v13 = vsel %vm199_vm0, %v5869_v36, 0.0  ;;  %v17921_v52 = vsel %vm199_vm0, %v5872_v53, 0.0  ;;  %v12529_v32 = vor.u32 %v14209_v37, %v12526_v16 }
 0x581   :  { %v5948_v46 = vsel %vm5947_vm13, %v14463_v60, %v5944_v63  ;;  %v5906_v55 = vadd.f32 %v5905_v11, %v5904_v54 }
 0x582   :  { %v5960_v43 = vmul.f32 %v5948_v46, %v17663_v7  ;;  %v5963_v8 = vmul.f32 %v5948_v46, %v17669_v27  ;;  %v5966_v42 = vmul.f32 %v5948_v46, %v17676_v58  ;;  %v5969_v20 = vmul.f32 %v5948_v46, %v17683_v51  ;;  %7508 = vmatpush.bf16.msra.mxu1 %v12529_v32 }
 0x583   :  { %v5972_v44 = vmul.f32 %v5948_v46, %v17690_v23  ;;  %v5975_v0 = vmul.f32 %v5948_v46, %v17693_v34  ;;  %v5978_v26 = vmul.f32 %v5948_v46, %v17700_v14  ;;  %v5981_v36 = vmul.f32 %v5948_v46, %v17703_v49 }
 0x584   :  { %v5992_v60 = vmul.f32 %v5986_v35, %v5960_v43  ;;  %v5995_v19 = vmul.f32 %v5986_v35, %v5963_v8  ;;  %v5998_v56 = vmul.f32 %v5986_v35, %v5966_v42  ;;  %v6001_v53 = vmul.f32 %v5986_v35, %v5969_v20  ;;  %12707 = vmatmul.msk.bf16.gmra.mxu1 %vm17926_vm14, %v17858_v4 }
 0x585   :  { %v6004_v7 = vmul.f32 %v5986_v35, %v5972_v44  ;;  %v6007_v27 = vmul.f32 %v5986_v35, %v5975_v0  ;;  %v6010_v58 = vmul.f32 %v5986_v35, %v5978_v26  ;;  %v6013_v51 = vmul.f32 %v5986_v35, %v5981_v36  ;;  %12723 = vmatmul.msk.bf16.gmra.mxu0 %vm17926_vm14, %v17858_v4  ;;  %v12532_v44 = vld [vmem:[#allocation18 + $0x1c0] sm:$0xf]  ;;  %v14212_v0 = vld [vmem:[#allocation18 + $0x1d0] sm:$0xf0] }
 0x586   :  { %v17945_v23 = vadd.f32 %v17865_v1, %v5992_v60  ;;  %v17948_v34 = vadd.f32 %v17865_v1, %v5995_v19  ;;  %v17951_v14 = vadd.f32 %v17865_v1, %v5998_v56  ;;  %v17954_v49 = vadd.f32 %v17865_v1, %v6001_v53 }
 0x587   :  { %v17957_v50 = vadd.f32 %v17865_v1, %v6004_v7  ;;  %v17960_v35 = vadd.f32 %v17865_v1, %v6007_v27  ;;  %v17963_v5 = vadd.f32 %v17865_v1, %v6010_v58  ;;  %v17966_v37 = vadd.f32 %v17865_v1, %v6013_v51 }
 0x588   :  { %v6048_v16 = vmul.f32 %v17945_v23, %v17945_v23  ;;  %v6051_v63 = vmul.f32 %v17948_v34, %v17948_v34  ;;  %v6054_v54 = vmul.f32 %v17951_v14, %v17951_v14  ;;  %v6057_v11 = vmul.f32 %v17954_v49, %v17954_v49 }
 0x589   :  { %v6060_v46 = vmul.f32 %v17957_v50, %v17957_v50  ;;  %v6063_v21 = vmul.f32 %v17960_v35, %v17960_v35  ;;  %v6066_v1 = vmul.f32 %v17963_v5, %v17963_v5  ;;  %v6069_v32 = vmul.f32 %v17966_v37, %v17966_v37 }
 0x58a   :  { %v6072_v43 = vmul.f32 %v6048_v16, %v17945_v23  ;;  %v6075_v8 = vmul.f32 %v6051_v63, %v17948_v34  ;;  %v6078_v42 = vmul.f32 %v6054_v54, %v17951_v14  ;;  %v6081_v20 = vmul.f32 %v6057_v11, %v17954_v49 }
 0x58b   :  { %v6084_v26 = vmul.f32 %v6060_v46, %v17957_v50  ;;  %v6087_v36 = vmul.f32 %v6063_v21, %v17960_v35  ;;  %v6090_v60 = vmul.f32 %v6066_v1, %v17963_v5  ;;  %v6093_v19 = vmul.f32 %v6069_v32, %v17966_v37  ;;  %v14206_v21 = vld [vmem:[#allocation18 + $0x1a0] sm:$0xf0] }
 0x58c   :  { %v6096_v56 = vmul.f32 0.044715, %v6072_v43  ;;  %v6099_v53 = vmul.f32 0.044715, %v6075_v8  ;;  %v6102_v7 = vmul.f32 0.044715, %v6078_v42  ;;  %v5908_v27 = vadd.f32 %v5907_v47, %v5906_v55 }
 0x58d   :  { %v6105_v58 = vmul.f32 0.044715, %v6081_v20  ;;  %v6108_v51 = vmul.f32 0.044715, %v6084_v26  ;;  %v6111_v16 = vmul.f32 0.044715, %v6087_v36  ;;  %v12533_v63 = vor.u32 %v14212_v0, %v12532_v44 }
 0x58e   :  { %v6114_v54 = vmul.f32 0.044715, %v6090_v60  ;;  %v6117_v11 = vmul.f32 0.044715, %v6093_v19  ;;  %v6120_v6 = vadd.f32 %v6096_v56, %v17945_v23  ;;  %v6123_v46 = vadd.f32 %v6099_v53, %v17948_v34  ;;  %v12506_v55 = vld [vmem:[#allocation18 + $0x1a4] sm:$0xf0] }
 0x58f   :  { %v6126_v1 = vadd.f32 %v6102_v7, %v17951_v14  ;;  %v6129_v32 = vadd.f32 %v6105_v58, %v17954_v49  ;;  %v6132_v43 = vadd.f32 %v6108_v51, %v17957_v50  ;;  %v6135_v47 = vadd.f32 %v6111_v16, %v17960_v35  ;;  %7595 = vmatpush.bf16.msra.mxu0 %v12533_v63  ;;  %v12512_v8 = vld [vmem:[#allocation18 + $0x198] sm:$0xf]  ;;  %v14207_v42 = vld [vmem:[#allocation18 + $0x1a8] sm:$0xf0]  ;;  %v12484_v36 = vld [vmem:[#allocation18 + $0x168] sm:$0xf] }
 0x590   :  { %v6138_v20 = vadd.f32 %v6114_v54, %v17963_v5  ;;  %v6144_v44 = vmul.f32 0.7978846, %v6120_v6  ;;  %v6147_v0 = vmul.f32 0.7978846, %v6123_v46  ;;  %v5875_v26 = vmul.f32 %v17889_v61, %v17889_v61  ;;  %v14201_v7 = vld [vmem:[#allocation18 + $0x178] sm:$0xf0] }
 0x591   :  { %v6141_v60 = vadd.f32 %v6117_v11, %v17966_v37  ;;  %v6150_v19 = vmul.f32 0.7978846, %v6126_v1  ;;  %v6153_v56 = vmul.f32 0.7978846, %v6129_v32  ;;  %v5910_v53 = vadd.f32 %v17915_v40, %v5908_v27  ;;  %v14199_v6 = vld [vmem:[#allocation18 + $0x16c] sm:$0xf] }
 0x592   :  { %v6156_v58 = vmul.f32 0.7978846, %v6132_v43  ;;  %v6159_v51 = vmul.f32 0.7978846, %v6135_v47  ;;  %14464 = vtanh.f32 %v6144_v44  ;;  %v18005_v16 = vpack.c.bf16 %v17908_v59, %v17861_v12  ;;  %v12492_v11 = vld [vmem:[#allocation18 + $0x170] sm:$0xf] }
 0x593   :  { %14466 = vtanh.f32 %v6147_v0  ;;  %v5912_v63 = vadd.f32 %v17918_v13, %v5910_v53  ;;  %v12505_v54 = vor.u32 %v14206_v21, %v12504_v33  ;;  %v12509_v46 = vor.u32 %v14204_v62, %v12506_v55  ;;  %v14202_v1 = vld [vmem:[#allocation18 + $0x180] sm:$0xf0]  ;;  %v12464_v13 = vld [vmem:[#allocation18 + $0x140] sm:$0xf]  ;;  %v14196_v21 = vld [vmem:[#allocation18 + $0x150] sm:$0xf0] }
 0x594   :  { %v6162_v32 = vmul.f32 0.7978846, %v6138_v20  ;;  %14468 = vtanh.f32 %v6150_v19  ;;  %v5915_v40 = vsel %vm199_vm0, %v5875_v26, 0.0  ;;  %7411 = vmatmul.bf16.gmra.mxu1 %v18005_v16  ;;  %v12513_v27 = vor.u32 %v14207_v42, %v12512_v8  ;;  %v14194_v47 = vld [vmem:[#allocation18 + $0x144] sm:$0xf] }
 0x595   :  { %v6165_v43 = vmul.f32 0.7978846, %v6141_v60  ;;  %14470 = vtanh.f32 %v6153_v56  ;;  %v5914_v12 = vadd.f32 %v17921_v52, %v5912_v63  ;;  %7498 = vmatmul.bf16.gmra.mxu0 %v18005_v16  ;;  %7422 = vmatpush.bf16.msra.mxu3 %v12505_v54  ;;  %v12485_v59 = vor.u32 %v14201_v7, %v12484_v36  ;;  %v12466_v20 = vld [vmem:[#allocation18 + $0x154] sm:$0xf0]  ;;  %v12472_v8 = vld [vmem:[#allocation18 + $0x148] sm:$0xf] }
 0x596   :  { %14472 = vtanh.f32 %v6156_v58  ;;  %7509 = vmatpush.bf16.msra.mxu1 %v12509_v46  ;;  %7596 = vmatpush.bf16.msra.mxu0 %v12513_v27  ;;  %v12489_v33 = vor.u32 %v14199_v6, %v12486_v39  ;;  %v12493_v62 = vor.u32 %v14202_v1, %v12492_v11  ;;  %v14197_v42 = vld [vmem:[#allocation18 + $0x158] sm:$0xf0]  ;;  %v12465_v36 = vor.u32 %v14196_v21, %v12464_v13  ;;  %v6421_v6 = vld [vmem:[#allocation2 + $0x8] sm:$0x80] }
 0x597   :  { %14474 = vtanh.f32 %v6159_v51  ;;  %v5916_v55 = vadd.f32 %v5915_v40, %v5914_v12  ;;  %v12469_v39 = vor.u32 %v14194_v47, %v12466_v20  ;;  %v12473_v56 = vor.u32 %v14197_v42, %v12472_v8 }
 0x598   :  { %v14465_v44 = vpop.eup %14464  ;;  %14476 = vtanh.f32 %v6162_v32 }
 0x599   :  { %v14467_v52 = vpop.eup %14466  ;;  %14478 = vtanh.f32 %v6165_v43  ;;  %v6192_v0 = vadd.f32 1.0, %v14465_v44  ;;  %v5917_v26 = vrot.slane %v5916_v55, 4  ;;  %7423 = vmatpush.bf16.msra.mxu3 %v12485_v59 }
 0x59a   :  { %v14469_v60 = vpop.eup %14468  ;;  %v6195_v19 = vadd.f32 1.0, %v14467_v52  ;;  %7510 = vmatpush.bf16.msra.mxu1 %v12489_v33  ;;  %7597 = vmatpush.bf16.msra.mxu0 %v12493_v62  ;;  %v6494_v62 = vrot.slane %v6421_v6, 7 }
 0x59b   :  { %v14471_v53 = vpop.eup %14470  ;;  %v6198_v7 = vadd.f32 1.0, %v14469_v60  ;;  %v6216_v58 = vmul.f32 0.5, %v6192_v0  ;;  %v5918_v51 = vadd.f32 %v5917_v26, %v5916_v55 }
 0x59c   :  { %v14473_v63 = vpop.eup %14472  ;;  %v6201_v54 = vadd.f32 1.0, %v14471_v53  ;;  %v6219_v46 = vmul.f32 0.5, %v6195_v19 }
 0x59d   :  { %v14475_v11 = vpop.eup %14474  ;;  %v6204_v1 = vadd.f32 1.0, %v14473_v63  ;;  %v6222_v32 = vmul.f32 0.5, %v6198_v7  ;;  %v6240_v40 = vmul.f32 %v6216_v58, %v17945_v23  ;;  %v5919_v27 = vrot.slane %v5918_v51, 2  ;;  %7424 = vmatpush.bf16.msra.mxu3 %v12465_v36 }
 0x59e   :  { %v14477_v43 = vpop.eup %14476  ;;  %v6207_v12 = vadd.f32 1.0, %v14475_v11  ;;  %v6225_v59 = vmul.f32 0.5, %v6201_v54  ;;  %v6243_v33 = vmul.f32 %v6219_v46, %v17948_v34  ;;  %7511 = vmatpush.bf16.msra.mxu1 %v12469_v39  ;;  %7598 = vmatpush.bf16.msra.mxu0 %v12473_v56 }
 0x59f   :  { %v14479_v13 = vpop.eup %14478  ;;  %v6210_v21 = vadd.f32 1.0, %v14477_v43  ;;  %v6228_v47 = vmul.f32 0.5, %v6204_v1  ;;  %v6246_v55 = vmul.f32 %v6222_v32, %v17951_v14  ;;  %6264 = vst [vmem:[#allocation2 + $0x20] sm:$0xff] %v6240_v40  ;;  %v5920_v20 = vadd.f32 %v5919_v27, %v5918_v51 }
 0x5a0   :  { %v6213_v8 = vadd.f32 1.0, %v14479_v13  ;;  %v6231_v42 = vmul.f32 0.5, %v6207_v12  ;;  %v6249_v23 = vmul.f32 %v6225_v59, %v17954_v49  ;;  %v6495_v44 = vrot.slane %v6240_v40, 7 }
 0x5a1   :  { %v6234_v52 = vmul.f32 0.5, %v6210_v21  ;;  %v6252_v0 = vmul.f32 %v6228_v47, %v17957_v50  ;;  %v5921_v26 = vrot.slane %v5920_v20, 1  ;;  %v6502_v34 = vrot.slane %v6243_v33, 7 }
 0x5a2   :  { %v6237_v36 = vmul.f32 0.5, %v6213_v8  ;;  %v6255_v60 = vmul.f32 %v6231_v42, %v17960_v35  ;;  %v6496_v19 = vsel %vm6490_vm6, %v6494_v62, %v6495_v44  ;;  %v6508_v39 = vrot.slane %v6246_v55, 7 }
 0x5a3   :  { %v18020_v14 = vmul.f32 %v6234_v52, %v17963_v5  ;;  %v5922_v56 = vadd.f32 %v5921_v26, %v5920_v20  ;;  %v6503_v53 = vsel %vm6490_vm6, %v6495_v44, %v6502_v34  ;;  %v6514_v7 = vrot.slane %v6249_v23, 7 }
 0x5a4   :  { %v6261_v49 = vmul.f32 %v6237_v36, %v17966_v37  ;;  %v18024_v58 = vpack.c.bf16 %v6503_v53, %v6496_v19  ;;  %v6509_v50 = vsel %vm6490_vm6, %v6502_v34, %v6508_v39  ;;  %v6520_v51 = vrot.slane %v6252_v0, 7 }
 0x5a5   :  { %20121 = vst [vmem:[#allocation48_spill] sm:$0xff] %v18020_v14  ;;  %v5925_v6 = vmul.f32 %v5922_v56, %v20092_v28  ;;  %v6515_v35 = vsel %vm6490_vm6, %v6508_v39, %v6514_v7  ;;  %v6526_v63 = vrot.slane %v6255_v60, 7  ;;  %v6532_v54 = vrot.slane %v18020_v14, 7 }
 0x5a6   :  { %6285 = vst [vmem:[#allocation2 + $0xc8] sm:$0xff] %v6261_v49  ;;  %12710 = vmatmul.msk.bf16.vlgmr.msra.gmra.mxu3 %vm17779_vm8, %v18024_v58  ;;  %12726 = vmatmul.msk.bf16.vlgmr.msra.gmra.mxu1 %vm17779_vm8, %v18024_v58  ;;  %v18036_v5 = vpack.c.bf16 %v6515_v35, %v6509_v50  ;;  %v6521_v37 = vsel %vm6490_vm6, %v6514_v7, %v6520_v51  ;;  %v6591_v28 = vld [vmem:[#allocation2 + $0x20] sm:$0xfe]  ;;  %v6629_v62 = vrot.slane %v6243_v33, 1  ;;  %v6636_v13 = vrot.slane %v6246_v55, 1 }
 0x5a7   :  { %v18039_v46 = vpack.c.bf16 %v6243_v33, %v6240_v40  ;;  %v5928_v11 = vadd.f32 1e-05, %v5925_v6  ;;  %12742 = vmatmul.msk.bf16.vlgmr.msra.gmra.mxu0 %vm17779_vm8, %v18024_v58  ;;  %v6527_v1 = vsel %vm6490_vm6, %v6520_v51, %v6526_v63  ;;  %v6533_v32 = vsel %vm6490_vm6, %v6526_v63, %v6532_v54  ;;  %v14626_v6 = vld [vmem:[#allocation15] sm:$0x7] }
 0x5a8   :  { %v18046_v27 = vpack.c.bf16 %v6249_v23, %v6246_v55  ;;  %v18048_v43 = vpack.c.bf16 %v6527_v1, %v6521_v37  ;;  %v18050_v12 = vpack.c.bf16 %v6255_v60, %v6252_v0  ;;  %v18053_v59 = vpack.c.bf16 %v6261_v49, %v18020_v14  ;;  %v14627_v37 = vld [vmem:[#allocation17] sm:$0x7] }
 0x5a9   :  { %v6628_v40 = vrot.slane %v6591_v28, 1  ;;  %14480 = vrsqrt.f32 %v5928_v11  ;;  %v6642_v21 = vrot.slane %v6249_v23, 1  ;;  %v6648_v47 = vrot.slane %v6252_v0, 1 }
 0x5aa   :  { %v6654_v20 = vrot.slane %v6255_v60, 1  ;;  %v19949_v8 = vrot.slane %v18020_v14, 1  ;;  %v6637_v44 = vsel %vm6624_vm9, %v6629_v62, %v6636_v13  ;;  %vm5955_vm1 = vweird.f32 %v5928_v11 }
 0x5ab   :  { %v6630_v42 = vsel %vm6624_vm9, %v6628_v40, %v6629_v62  ;;  %v6643_v26 = vsel %vm6624_vm9, %v6636_v13, %v6642_v21  ;;  %v6649_v34 = vsel %vm6624_vm9, %v6642_v21, %v6648_v47  ;;  %v5987_v35 = vperm.slane %v14626_v6, 2  ;;  %v14251_v6 = vld [vmem:[#allocation18 + $0x308] sm:$0xf0] }
 0x5ac   :  { %v18058_v52 = vpack.c.bf16 %v6637_v44, %v6630_v42  ;;  %v6655_v36 = vsel %vm6624_vm9, %v6648_v47, %v6654_v20  ;;  %v18063_v33 = vpack.c.bf16 %v6649_v34, %v6643_v26  ;;  %v6661_v55 = vsel %vm6624_vm9, %v6654_v20, %v19949_v8  ;;  %v14247_v8 = vld [vmem:[#allocation18 + $0x2e8] sm:$0xf0] }
 0x5ad   :  { %v6445_v19 = vld [vmem:[#allocation2 + $0xc8] sm:$0x7f]  ;;  %v18068_v0 = vpack.c.bf16 %v6661_v55, %v6655_v36 }
 0x5ae   :  { %20122 = vst [vmem:[#allocation38_spill] sm:$0xff] %v18058_v52  ;;  %v6538_v23 = vrot.slane %v6445_v19, 7  ;;  %v13046_v52 = vld [vmem:[#allocation18 + $0x53c] sm:$0xf0] }
 0x5af   :  { %20123 = vst [vmem:[#allocation32_spill] sm:$0xff] %v18063_v33  ;;  %v14481_v60 = vpop.eup %14480 }
 0x5b0   :  { %20124 = vst [vmem:[#allocation30_spill] sm:$0xff] %v18068_v0  ;;  %v5950_v39 = vmul.f32 %v14481_v60, %v5928_v11  ;;  %v6539_v56 = vsel %vm6490_vm6, %v6532_v54, %v6538_v23  ;;  %vm5956_vm15 = vweird.f32 %v14481_v60  ;;  %v6019_v54 = vperm.slane %v14627_v37, 2 }
 0x5b1   :  { %v18071_v53 = vpack.c.bf16 %v6539_v56, %v6533_v32  ;;  %vm5957_vm2 = vmor %vm5955_vm1, %vm5956_vm15 }
 0x5b2   :  { %v5951_v7 = vmul.f32 %v14481_v60, %v5950_v39 }
 0x5b4   :  { %v5952_v49 = vmul.f32 0.5, %v5951_v7 }
 0x5b6   :  { %v5953_v50 = vsub.f32 1.5, %v5952_v49  ;;  %7430 = vmatmul.bf16.gmra.mxu3 %v18036_v5  ;;  %7517 = vmatmul.bf16.gmra.mxu1 %v18036_v5 }
 0x5b7   :  { %7604 = vmatmul.bf16.gmra.mxu0 %v18036_v5 }
 0x5b8   :  { %v5954_v51 = vmul.f32 %v14481_v60, %v5953_v50 }
 0x5ba   :  { %v5958_v63 = vsel %vm5957_vm2, %v14481_v60, %v5954_v51  ;;  %v12684_v51 = vld [vmem:[#allocation18 + $0x2f8] sm:$0xf] }
 0x5bb   :  { %v5961_v28 = vmul.f32 %v5958_v63, %v17868_v41  ;;  %v5964_v1 = vmul.f32 %v5958_v63, %v17871_v31  ;;  %v5967_v32 = vmul.f32 %v5958_v63, %v17874_v57  ;;  %v5970_v40 = vmul.f32 %v5958_v63, %v17877_v18 }
 0x5bc   :  { %v5973_v62 = vmul.f32 %v5958_v63, %v17880_v29  ;;  %v5976_v13 = vmul.f32 %v5958_v63, %v17883_v9  ;;  %v5979_v11 = vmul.f32 %v5958_v63, %v17886_v22  ;;  %v5982_v21 = vmul.f32 %v5958_v63, %v17889_v61 }
 0x5bd   :  { %v5993_v47 = vmul.f32 %v5987_v35, %v5961_v28  ;;  %v5996_v20 = vmul.f32 %v5987_v35, %v5964_v1  ;;  %v5999_v42 = vmul.f32 %v5987_v35, %v5967_v32  ;;  %v6002_v44 = vmul.f32 %v5987_v35, %v5970_v40  ;;  %v12664_v28 = vld [vmem:[#allocation18 + $0x2d0] sm:$0xf]  ;;  %v14246_v1 = vld [vmem:[#allocation18 + $0x2e0] sm:$0xf0] }
 0x5be   :  { %v6005_v26 = vmul.f32 %v5987_v35, %v5973_v62  ;;  %v6008_v41 = vmul.f32 %v5987_v35, %v5976_v13  ;;  %v6011_v34 = vmul.f32 %v5987_v35, %v5979_v11  ;;  %v6014_v31 = vmul.f32 %v5987_v35, %v5982_v21 }
 0x5bf   :  { %v18084_v36 = vadd.f32 %v6019_v54, %v5993_v47  ;;  %v18086_v57 = vadd.f32 %v6019_v54, %v5996_v20  ;;  %v18088_v18 = vadd.f32 %v6019_v54, %v5999_v42  ;;  %v18090_v29 = vadd.f32 %v6019_v54, %v6002_v44 }
 0x5c0   :  { %v18092_v9 = vadd.f32 %v6019_v54, %v6005_v26  ;;  %v18094_v22 = vadd.f32 %v6019_v54, %v6008_v41  ;;  %v18096_v61 = vadd.f32 %v6019_v54, %v6011_v34  ;;  %v18098_v19 = vadd.f32 %v6019_v54, %v6014_v31  ;;  %v12644_v34 = vld [vmem:[#allocation18 + $0x2a8] sm:$0xf]  ;;  %v14241_v31 = vld [vmem:[#allocation18 + $0x2b8] sm:$0xf0] }
 0x5c1   :  { %v6049_v55 = vmul.f32 %v18084_v36, %v18084_v36  ;;  %v6052_v23 = vmul.f32 %v18086_v57, %v18086_v57  ;;  %v6055_v60 = vmul.f32 %v18088_v18, %v18088_v18  ;;  %v6058_v39 = vmul.f32 %v18090_v29, %v18090_v29 }
 0x5c2   :  { %v6061_v56 = vmul.f32 %v18092_v9, %v18092_v9  ;;  %v6064_v7 = vmul.f32 %v18094_v22, %v18094_v22  ;;  %v6067_v49 = vmul.f32 %v18096_v61, %v18096_v61  ;;  %v6070_v50 = vmul.f32 %v18098_v19, %v18098_v19 }
 0x5c3   :  { %v6073_v35 = vmul.f32 %v6049_v55, %v18084_v36  ;;  %v6076_v63 = vmul.f32 %v6052_v23, %v18086_v57  ;;  %v6079_v37 = vmul.f32 %v6055_v60, %v18088_v18  ;;  %v6082_v54 = vmul.f32 %v6058_v39, %v18090_v29 }
 0x5c4   :  { %v6085_v32 = vmul.f32 %v6061_v56, %v18092_v9  ;;  %v6088_v40 = vmul.f32 %v6064_v7, %v18094_v22  ;;  %v6091_v62 = vmul.f32 %v6067_v49, %v18096_v61  ;;  %v6094_v13 = vmul.f32 %v6070_v50, %v18098_v19  ;;  %v14249_v56 = vld [vmem:[#allocation18 + $0x2fc] sm:$0xf]  ;;  %v12686_v7 = vld [vmem:[#allocation18 + $0x30c] sm:$0xf0]  ;;  %v12692_v49 = vld [vmem:[#allocation18 + $0x300] sm:$0xf] }
 0x5c5   :  { %v6097_v11 = vmul.f32 0.044715, %v6073_v35  ;;  %v6100_v21 = vmul.f32 0.044715, %v6076_v63  ;;  %v6103_v47 = vmul.f32 0.044715, %v6079_v37  ;;  %v12685_v20 = vor.u32 %v14251_v6, %v12684_v51 }
 0x5c6   :  { %v6106_v42 = vmul.f32 0.044715, %v6082_v54  ;;  %v6109_v44 = vmul.f32 0.044715, %v6085_v32  ;;  %v6112_v26 = vmul.f32 0.044715, %v6088_v40  ;;  %v12665_v41 = vor.u32 %v14246_v1, %v12664_v28  ;;  %12713 = vmatmul.msk.bf16.gmra.mxu3 %vm17926_vm14, %v18048_v43  ;;  %12729 = vmatmul.msk.bf16.gmra.mxu1 %vm17926_vm14, %v18048_v43 }
 0x5c7   :  { %v6115_v55 = vmul.f32 0.044715, %v6091_v62  ;;  %v6118_v23 = vmul.f32 0.044715, %v6094_v13  ;;  %v6121_v60 = vadd.f32 %v6097_v11, %v18084_v36  ;;  %v6124_v39 = vadd.f32 %v6100_v21, %v18086_v57  ;;  %7450 = vmatpush.bf16.msra.mxu2 %v12685_v20  ;;  %12745 = vmatmul.msk.bf16.gmra.mxu0 %vm17926_vm14, %v18048_v43  ;;  %v14252_v63 = vld [vmem:[#allocation18 + $0x310] sm:$0xf0] }
 0x5c8   :  { %v6127_v50 = vadd.f32 %v6103_v47, %v18088_v18  ;;  %v6130_v51 = vadd.f32 %v6106_v42, %v18090_v29  ;;  %v6133_v6 = vadd.f32 %v6109_v44, %v18092_v9  ;;  %v6136_v35 = vadd.f32 %v6112_v26, %v18094_v22  ;;  %v14250_v37 = vld [vmem:[#allocation18 + $0x304] sm:$0xf]  ;;  %v12694_v54 = vld [vmem:[#allocation18 + $0x314] sm:$0xf0]  ;;  %v14244_v40 = vld [vmem:[#allocation18 + $0x2d4] sm:$0xf] }
 0x5c9   :  { %v6139_v28 = vadd.f32 %v6115_v55, %v18096_v61  ;;  %v6145_v1 = vmul.f32 0.7978846, %v6121_v60  ;;  %v6148_v32 = vmul.f32 0.7978846, %v6124_v39  ;;  %v6142_v62 = vadd.f32 %v6118_v23, %v18098_v19  ;;  %v12624_v21 = vld [vmem:[#allocation18 + $0x280] sm:$0xf] }
 0x5ca   :  { %v6151_v13 = vmul.f32 0.7978846, %v6127_v50  ;;  %v6154_v11 = vmul.f32 0.7978846, %v6130_v51  ;;  %v14236_v47 = vld [vmem:[#allocation18 + $0x290] sm:$0xf0]  ;;  %v12645_v44 = vor.u32 %v14241_v31, %v12644_v34  ;;  %v12689_v14 = vor.u32 %v14249_v56, %v12686_v7 }
 0x5cb   :  { %v12666_v20 = vld [vmem:[#allocation18 + $0x2e4] sm:$0xf0]  ;;  %v6157_v42 = vmul.f32 0.7978846, %v6133_v6  ;;  %14482 = vtanh.f32 %v6145_v1  ;;  %7451 = vmatpush.bf16.msra.mxu2 %v12665_v41  ;;  %v12672_v26 = vld [vmem:[#allocation18 + $0x2d8] sm:$0xf]  ;;  %v12693_v55 = vor.u32 %v14252_v63, %v12692_v49  ;;  %v12697_v23 = vor.u32 %v14250_v37, %v12694_v54 }
 0x5cc   :  { %v6160_v48 = vmul.f32 0.7978846, %v6136_v35  ;;  %14484 = vtanh.f32 %v6148_v32  ;;  %v14245_v60 = vld [vmem:[#allocation18 + $0x2dc] sm:$0xf]  ;;  %v12674_v39 = vld [vmem:[#allocation18 + $0x2ec] sm:$0xf0]  ;;  %7537 = vmatpush.bf16.msrb.mxu3 %v12689_v14  ;;  %v12669_v51 = vor.u32 %v14244_v40, %v12666_v20  ;;  %v12673_v6 = vor.u32 %v14247_v8, %v12672_v26 }
 0x5cd   :  { %v6163_v0 = vmul.f32 0.7978846, %v6139_v28  ;;  %14486 = vtanh.f32 %v6151_v13  ;;  %v6166_v50 = vmul.f32 0.7978846, %v6142_v62  ;;  %7624 = vmatpush.bf16.msrb.mxu1 %v12693_v55  ;;  %v14239_v1 = vld [vmem:[#allocation18 + $0x2ac] sm:$0xf]  ;;  %v12625_v41 = vor.u32 %v14236_v47, %v12624_v21  ;;  %7711 = vmatpush.bf16.msrb.mxu0 %v12697_v23 }
 0x5ce   :  { %14488 = vtanh.f32 %v6154_v11  ;;  %v12677_v34 = vor.u32 %v14245_v60, %v12674_v39  ;;  %v12646_v31 = vld [vmem:[#allocation18 + $0x2bc] sm:$0xf0]  ;;  %v14192_v7 = vld [vmem:[#allocation18 + $0x130] sm:$0xf0]  ;;  %v12652_v49 = vld [vmem:[#allocation18 + $0x2b0] sm:$0xf] }
 0x5cf   :  { %14490 = vtanh.f32 %v6157_v42  ;;  %7452 = vmatpush.bf16.msra.mxu2 %v12645_v44  ;;  %v12452_v56 = vld [vmem:[#allocation18 + $0x120] sm:$0xf]  ;;  %v14242_v35 = vld [vmem:[#allocation18 + $0x2c0] sm:$0xf0]  ;;  %v14240_v63 = vld [vmem:[#allocation18 + $0x2b4] sm:$0xf]  ;;  %v12649_v21 = vor.u32 %v14239_v1, %v12646_v31 }
 0x5d0   :  { %14492 = vtanh.f32 %v6160_v48  ;;  %v12453_v37 = vor.u32 %v14192_v7, %v12452_v56  ;;  %v12654_v14 = vld [vmem:[#allocation18 + $0x2c4] sm:$0xf0]  ;;  %v18141_v28 = vld [vmem:[#allocation18 + $0x284] sm:$0xf]  ;;  %v18143_v8 = vld [vmem:[#allocation18 + $0x294] sm:$0xf0]  ;;  %7538 = vmatpush.bf16.msrb.mxu3 %v12669_v51  ;;  %v12653_v26 = vor.u32 %v14242_v35, %v12652_v49 }
 0x5d1   :  { %v14483_v54 = vpop.eup %14482  ;;  %14494 = vtanh.f32 %v6163_v0  ;;  %7625 = vmatpush.bf16.msrb.mxu1 %v12673_v6  ;;  %v12432_v62 = vld [vmem:[#allocation18 + $0xf8] sm:$0xf]  ;;  %v14187_v13 = vld [vmem:[#allocation18 + $0x108] sm:$0xf0]  ;;  %7712 = vmatpush.bf16.msrb.mxu0 %v12677_v34  ;;  %v12632_v47 = vld [vmem:[#allocation18 + $0x288] sm:$0xf]  ;;  %v12657_v55 = vor.u32 %v14240_v63, %v12654_v14  ;;  %v12629_v6 = vor.u32 %v18141_v28, %v18143_v8 }
 0x5d2   :  { %v14485_v32 = vpop.eup %14484  ;;  %14496 = vtanh.f32 %v6166_v50  ;;  %v6193_v40 = vadd.f32 1.0, %v14483_v54  ;;  %v14237_v20 = vld [vmem:[#allocation18 + $0x298] sm:$0xf0]  ;;  %v14235_v60 = vld [vmem:[#allocation18 + $0x28c] sm:$0xf]  ;;  %v12433_v56 = vor.u32 %v14187_v13, %v12432_v62 }
 0x5d3   :  { %v14487_v11 = vpop.eup %14486  ;;  %v6196_v48 = vadd.f32 1.0, %v14485_v32  ;;  %7453 = vmatpush.bf16.msra.mxu2 %v12625_v41  ;;  %v12634_v39 = vld [vmem:[#allocation18 + $0x29c] sm:$0xf0]  ;;  %v12633_v7 = vor.u32 %v14237_v20, %v12632_v47  ;;  %v12412_v49 = vld [vmem:[#allocation18 + $0xd0] sm:$0xf] }
 0x5d4   :  { %v14489_v0 = vpop.eup %14488  ;;  %v6199_v42 = vadd.f32 1.0, %v14487_v11  ;;  %v6217_v44 = vmul.f32 0.5, %v6193_v40  ;;  %v14182_v35 = vld [vmem:[#allocation18 + $0xe0] sm:$0xf0]  ;;  %7539 = vmatpush.bf16.msrb.mxu3 %v12649_v21  ;;  %v12637_v28 = vor.u32 %v14235_v60, %v12634_v39  ;;  %v14177_v20 = vld [vmem:[#allocation18 + $0xb8] sm:$0xf0] }
 0x5d5   :  { %v14491_v23 = vpop.eup %14490  ;;  %v6202_v50 = vadd.f32 1.0, %v14489_v0  ;;  %v6220_v51 = vmul.f32 0.5, %v6196_v48  ;;  %7626 = vmatpush.bf16.msrb.mxu1 %v12653_v26  ;;  %7713 = vmatpush.bf16.msrb.mxu0 %v12657_v55  ;;  %v12413_v62 = vor.u32 %v14182_v35, %v12412_v49 }
 0x5d6   :  { %v14493_v41 = vpop.eup %14492  ;;  %v6205_v34 = vadd.f32 1.0, %v14491_v23  ;;  %v6223_v1 = vmul.f32 0.5, %v6199_v42  ;;  %v6241_v31 = vmul.f32 %v6217_v44, %v18084_v36  ;;  %7440 = vmatmul.bf16.gmra.mxu3 %v18071_v53  ;;  %7527 = vmatmul.bf16.gmra.mxu1 %v18071_v53  ;;  %v6422_v44 = vld [vmem:[#allocation2 + $0x10] sm:$0x80] }
 0x5d7   :  { %7562 = vmatpush.bf16.msrb.mxu2 %v12453_v37  ;;  %v14495_v63 = vpop.eup %14494  ;;  %v6208_v37 = vadd.f32 1.0, %v14493_v41  ;;  %v6226_v54 = vmul.f32 0.5, %v6202_v50  ;;  %v6244_v14 = vmul.f32 %v6220_v51, %v18086_v57  ;;  %7614 = vmatmul.bf16.gmra.mxu0 %v18071_v53 }
 0x5d8   :  { %v14497_v8 = vpop.eup %14496  ;;  %v6211_v32 = vadd.f32 1.0, %v14495_v63  ;;  %v6229_v40 = vmul.f32 0.5, %v6205_v34  ;;  %v6247_v36 = vmul.f32 %v6223_v1, %v18088_v18  ;;  %6265 = vst.msk [vmem:[#allocation2 + $0x28] sm:$0xff] %vm199_vm0, %v6241_v31  ;;  %v12392_v18 = vld [vmem:[#allocation18 + $0xa8] sm:$0xf]  ;;  %7540 = vmatpush.bf16.msrb.mxu3 %v12629_v6 }
 0x5d9   :  { %v6214_v13 = vadd.f32 1.0, %v14497_v8  ;;  %v6232_v11 = vmul.f32 0.5, %v6208_v37  ;;  %v6250_v48 = vmul.f32 %v6226_v54, %v18090_v29  ;;  %6268 = vst.msk [vmem:[#allocation2 + $0x40] sm:$0xff] %vm199_vm0, %v6244_v14  ;;  %v18156_v57 = vpack.c.bf16 %v6244_v14, %v6241_v31  ;;  %7627 = vmatpush.bf16.msrb.mxu1 %v12633_v7  ;;  %7714 = vmatpush.bf16.msrb.mxu0 %v12637_v28 }
 0x5da   :  { %v6235_v21 = vmul.f32 0.5, %v6211_v32  ;;  %v6253_v47 = vmul.f32 %v6229_v40, %v18092_v9  ;;  %6271 = vst.msk [vmem:[#allocation2 + $0x58] sm:$0xff] %vm199_vm0, %v6247_v36  ;;  %v12393_v55 = vor.u32 %v14177_v20, %v12392_v18  ;;  %v14172_v40 = vld [vmem:[#allocation18 + $0x90] sm:$0xf0]  ;;  %v12924_v18 = vld [vmem:[#allocation18 + $0x438] sm:$0xf] }
 0x5db   :  { %7563 = vmatpush.bf16.msrb.mxu2 %v12433_v56  ;;  %v6238_v0 = vmul.f32 0.5, %v6214_v13  ;;  %v6256_v42 = vmul.f32 %v6232_v11, %v18094_v22  ;;  %6274 = vst.msk [vmem:[#allocation2 + $0x70] sm:$0xff] %vm199_vm0, %v6250_v48  ;;  %v18162_v29 = vpack.c.bf16 %v6250_v48, %v6247_v36  ;;  %v6497_v22 = vrot.slane %v6422_v44, 7  ;;  %v20127_v36 = vld [vmem:[#allocation47_spill] sm:$0xff]  ;;  %v14190_v13 = vld [vmem:[#allocation18 + $0x124] sm:$0xf] }
 0x5dc   :  { %v6259_v26 = vmul.f32 %v6235_v21, %v18096_v61  ;;  %6277 = vst.msk [vmem:[#allocation2 + $0x88] sm:$0xff] %vm199_vm0, %v6253_v47  ;;  %vm280_vm4 = vcmp.lt.s32.totalorder %v20127_v36, 31  ;;  %v12454_v11 = vld [vmem:[#allocation18 + $0x134] sm:$0xf0]  ;;  %v12460_v21 = vld [vmem:[#allocation18 + $0x128] sm:$0xf] }
 0x5dd   :  { %v6262_v9 = vmul.f32 %v6238_v0, %v18098_v19  ;;  %6280 = vst.msk [vmem:[#allocation2 + $0xa0] sm:$0xff] %vm199_vm0, %v6256_v42  ;;  %v18168_v60 = vpack.c.bf16 %v6256_v42, %v6253_v47  ;;  %v12457_v48 = vor.u32 %v14190_v13, %v12454_v11  ;;  %v14193_v47 = vld [vmem:[#allocation18 + $0x138] sm:$0xf0]  ;;  %v14180_v13 = vld [vmem:[#allocation18 + $0xd4] sm:$0xf]  ;;  %vm18758_vm5 = vmpackc.low %vm280_vm4, %vm14946_vm3 }
 0x5de   :  { %6283 = vst.msk [vmem:[#allocation2 + $0xb8] sm:$0xff] %vm199_vm0, %v6259_v26  ;;  %v14119_v36 = vld [vmem:[#allocation18 + $0x52c] sm:$0xf] }
 0x5df   :  { %7564 = vmatpush.bf16.msrb.mxu2 %v12413_v62  ;;  %6286 = vst.msk [vmem:[#allocation2 + $0xd0] sm:$0xff] %vm199_vm0, %v6262_v9  ;;  %v6425_v39 = vld [vmem:[#allocation2 + $0x28] sm:$0xff]  ;;  %v18172_v23 = vpack.c.bf16 %v6262_v9, %v6259_v26  ;;  %v12373_v62 = vor.u32 %v14172_v40, %v12372_v25  ;;  %7649 = vmatpush.bf16.msra.mxu3 %v12457_v48  ;;  %v12352_v40 = vld [vmem:[#allocation18 + $0x58] sm:$0xf]  ;;  %v12414_v48 = vld [vmem:[#allocation18 + $0xe4] sm:$0xf0] }
 0x5e0   :  { %v6592_v61 = vld [vmem:[#allocation2 + $0x28] sm:$0xfe]  ;;  %v18174_v50 = vld [vmem:[#allocation2 + $0x40] sm:$0xff]  ;;  %v6498_v51 = vrot.slane %v6425_v39, 7 }
 0x5e1   :  { %20125 = vst [vmem:[#allocation39_spill] sm:$0xff] %v18172_v23  ;;  %v6631_v6 = vrot.slane %v6592_v61, 1  ;;  %v18176_v19 = vpop.f32.mrf.mxu1  ;;  %v18178_v56 = vpop.f32.mrf.mxu0  ;;  %v6504_v41 = vrot.slane %v18174_v50, 7  ;;  %v18181_v34 = vld [vmem:[#allocation2 + $0x58] sm:$0xff]  ;;  %v6632_v1 = vrot.slane %v18174_v50, 1 }
 0x5e2   :  { %v6499_v31 = vsel %vm6490_vm6, %v6497_v22, %v6498_v51  ;;  %v18185_v7 = vld [vmem:[#allocation2 + $0x70] sm:$0xff]  ;;  %v6638_v49 = vrot.slane %v18181_v34, 1  ;;  %v6510_v44 = vrot.slane %v18181_v34, 7  ;;  %v12904_v34 = vld [vmem:[#allocation18 + $0x410] sm:$0xf] }
 0x5e3   :  { %7565 = vmatpush.bf16.msrb.mxu2 %v12393_v55  ;;  %v6505_v35 = vsel %vm6490_vm6, %v6498_v51, %v6504_v41  ;;  %v6568_v63 = vsel %vm269_vm7, %v6499_v31, 0.0  ;;  %v6633_v37 = vsel %vm6624_vm9, %v6631_v6, %v6632_v1  ;;  %v6644_v8 = vrot.slane %v18185_v7, 1  ;;  %v18204_v32 = vld [vmem:[#allocation2 + $0x88] sm:$0xff]  ;;  %v14091_v22 = vld [vmem:[#allocation18 + $0x448] sm:$0xf0] }
 0x5e4   :  { %v18194_v54 = vpack.c.bf16 %v6505_v35, %v6568_v63  ;;  %v6639_v14 = vsel %vm6624_vm9, %v6632_v1, %v6638_v49  ;;  %v19954_v26 = vrot.slane %v18185_v7, 7  ;;  %v18218_v9 = vld [vmem:[#allocation2 + $0xa0] sm:$0xff]  ;;  %v12461_v55 = vor.u32 %v14193_v47, %v12460_v21  ;;  %v12434_v6 = vld [vmem:[#allocation18 + $0x10c] sm:$0xf0]  ;;  %v12440_v1 = vld [vmem:[#allocation18 + $0x100] sm:$0xf] }
 0x5e5   :  { %v18197_v28 = vpack.c.bf16 %v6639_v14, %v6633_v37  ;;  %v6645_v20 = vsel %vm6624_vm9, %v6638_v49, %v6644_v8  ;;  %v6650_v39 = vrot.slane %v18204_v32, 1  ;;  %v12925_v61 = vor.u32 %v14091_v22, %v12924_v18  ;;  %v14185_v51 = vld [vmem:[#allocation18 + $0xfc] sm:$0xf]  ;;  %v18221_v31 = vld [vmem:[#allocation2 + $0xb8] sm:$0xff]  ;;  %v14086_v63 = vld [vmem:[#allocation18 + $0x420] sm:$0xf0] }
 0x5e6   :  { %12714 = vmatmul.msk.bf16.vlgmr.msra.gmra.mxu2 %vm199_vm0, %v18194_v54  ;;  %12730 = vmatmul.msk.bf16.vlgmr.msrb.gmra.mxu3 %vm199_vm0, %v18194_v54  ;;  %20128 = vst [vmem:[#allocation43_spill] sm:$0xff] %v18221_v31  ;;  %v12437_v49 = vor.u32 %v14185_v51, %v12434_v6  ;;  %v14188_v35 = vld [vmem:[#allocation18 + $0x110] sm:$0xf0]  ;;  %v12905_v25 = vor.u32 %v14086_v63, %v12904_v34  ;;  %v12420_v21 = vld [vmem:[#allocation18 + $0xd8] sm:$0xf]  ;;  %v6656_v6 = vrot.slane %v18218_v9, 1 }
 0x5e7   :  { %20126 = vst [vmem:[#allocation33_spill] sm:$0xff] %v18197_v28  ;;  %12746 = vmatmul.msk.bf16.vlgmr.msrb.gmra.mxu1 %vm199_vm0, %v18194_v54  ;;  %12762 = vmatmul.msk.bf16.vlgmr.msrb.gmra.mxu0 %vm199_vm0, %v18194_v54  ;;  %v6651_v37 = vsel %vm6624_vm9, %v6644_v8, %v6650_v39  ;;  %v12441_v14 = vor.u32 %v14188_v35, %v12440_v1  ;;  %v14183_v47 = vld [vmem:[#allocation18 + $0xe8] sm:$0xf0]  ;;  %v12884_v22 = vld [vmem:[#allocation18 + $0x3e8] sm:$0xf]  ;;  %v19953_v1 = vrot.slane %v18221_v31, 1 }
 0x5e8   :  { %7566 = vmatpush.bf16.msrb.mxu2 %v12373_v62  ;;  %7736 = vmatpush.bf16.msra.mxu1 %v12461_v55  ;;  %v14167_v62 = vld [vmem:[#allocation18 + $0x68] sm:$0xf0]  ;;  %v12417_v18 = vor.u32 %v14180_v13, %v12414_v48  ;;  %v14081_v55 = vld [vmem:[#allocation18 + $0x3f8] sm:$0xf0]  ;;  %v6711_v51 = vsel %vm280_vm4, %v6651_v37, 0.0  ;;  %v12421_v8 = vor.u32 %v14183_v47, %v12420_v21  ;;  %v6657_v34 = vsel %vm6624_vm9, %v6650_v39, %v6656_v6 }
 0x5e9   :  { %v18212_v0 = vpop.f32.mrf.mxu1  ;;  %v18214_v42 = vpop.f32.mrf.mxu0  ;;  %8355 = vmatpush.bf16.msra.mxu0 %v12925_v61  ;;  %v12353_v11 = vor.u32 %v14167_v62, %v12352_v40  ;;  %7650 = vmatpush.bf16.msra.mxu3 %v12437_v49  ;;  %v18227_v61 = vpack.c.bf16 %v6711_v51, %v6645_v20  ;;  %v12885_v35 = vor.u32 %v14081_v55, %v12884_v22  ;;  %v12394_v40 = vld [vmem:[#allocation18 + $0xbc] sm:$0xf0]  ;;  %v12400_v39 = vld [vmem:[#allocation18 + $0xb0] sm:$0xf]  ;;  %v14178_v13 = vld [vmem:[#allocation18 + $0xc0] sm:$0xf0] }
 0x5ea   :  { %v6511_v37 = vsel %vm6490_vm6, %v6504_v41, %v6510_v44  ;;  %v6663_v20 = vsel %vm6624_vm9, %v6656_v6, %v19953_v1  ;;  %v14076_v50 = vld [vmem:[#allocation18 + $0x3d0] sm:$0xf0]  ;;  %v12401_v21 = vor.u32 %v14178_v13, %v12400_v39  ;;  %v12332_v47 = vld [vmem:[#allocation18 + $0x30] sm:$0xf]  ;;  %v14170_v55 = vld [vmem:[#allocation18 + $0x84] sm:$0xf] }
 0x5eb   :  { %20129 = vst [vmem:[#allocation34_spill] sm:$0xff] %v18227_v61  ;;  %v18244_v62 = vpack.c.bf16 %v6663_v20, %v6657_v34  ;;  %v12374_v51 = vld [vmem:[#allocation18 + $0x94] sm:$0xf0]  ;;  %v12380_v6 = vld [vmem:[#allocation18 + $0x88] sm:$0xf] }
 0x5ec   :  { %7737 = vmatpush.bf16.msra.mxu1 %v12441_v14  ;;  %7567 = vmatpush.bf16.msrb.mxu2 %v12353_v11  ;;  %v6517_v14 = vsel %vm6490_vm6, %v6510_v44, %v19954_v26  ;;  %v12864_v11 = vld [vmem:[#allocation18 + $0x3c0] sm:$0xf]  ;;  %v12844_v34 = vld [vmem:[#allocation18 + $0x398] sm:$0xf]  ;;  %v12312_v1 = vld [vmem:[#allocation18 + $0x8] sm:$0xf] }
 0x5ed   :  { %8356 = vmatpush.bf16.msra.mxu0 %v12905_v25  ;;  %7651 = vmatpush.bf16.msra.mxu3 %v12417_v18  ;;  %v14175_v25 = vld [vmem:[#allocation18 + $0xac] sm:$0xf]  ;;  %20130 = vst [vmem:[#allocation52_spill] sm:$0xff] %v18244_v62  ;;  %v18246_v48 = vpack.c.bf16 %v6517_v14, %v6511_v37  ;;  %v12865_v44 = vor.u32 %v14076_v50, %v12864_v11  ;;  %v14162_v18 = vld [vmem:[#allocation18 + $0x40] sm:$0xf0] }
 0x5ee   :  { %v12397_v41 = vor.u32 %v14175_v25, %v12394_v40  ;;  %v12333_v22 = vor.u32 %v14162_v18, %v12332_v47  ;;  %v14071_v37 = vld [vmem:[#allocation18 + $0x3a8] sm:$0xf0]  ;;  %v6522_v25 = vrot.slane %v18204_v32, 7  ;;  %v14165_v11 = vld [vmem:[#allocation18 + $0x5c] sm:$0xf] }
 0x5ef   :  { %v12845_v13 = vor.u32 %v14071_v37, %v12844_v34  ;;  %v12354_v50 = vld [vmem:[#allocation18 + $0x6c] sm:$0xf0]  ;;  %v14066_v18 = vld [vmem:[#allocation18 + $0x380] sm:$0xf0]  ;;  %v14157_v26 = vld [vmem:[#allocation18 + $0x18] sm:$0xf0] }
 0x5f0   :  { %7738 = vmatpush.bf16.msra.mxu1 %v12421_v8  ;;  %v12377_v8 = vor.u32 %v14170_v55, %v12374_v51  ;;  %7568 = vmatpush.bf16.msrb.mxu2 %v12333_v22  ;;  %v12824_v47 = vld [vmem:[#allocation18 + $0x370] sm:$0xf]  ;;  %v12357_v55 = vor.u32 %v14165_v11, %v12354_v50  ;;  %v14160_v62 = vld [vmem:[#allocation18 + $0x34] sm:$0xf]  ;;  %v12313_v40 = vor.u32 %v14157_v26, %v12312_v1  ;;  %v12340_v22 = vld [vmem:[#allocation18 + $0x38] sm:$0xf] }
 0x5f1   :  { %v18231_v49 = vpop.f32.mrf.mxu1  ;;  %v18233_v63 = vpop.f32.mrf.mxu0  ;;  %8357 = vmatpush.bf16.msra.mxu0 %v12885_v35  ;;  %7652 = vmatpush.bf16.msra.mxu3 %v12397_v41  ;;  %v14173_v35 = vld [vmem:[#allocation18 + $0x98] sm:$0xf0]  ;;  %v12360_v41 = vld [vmem:[#allocation18 + $0x60] sm:$0xf]  ;;  %v12825_v32 = vor.u32 %v14066_v18, %v12824_v47  ;;  %v12804_v37 = vld [vmem:[#allocation18 + $0x348] sm:$0xf] }
 0x5f2   :  { %v12381_v39 = vor.u32 %v14173_v35, %v12380_v6  ;;  %v14163_v6 = vld [vmem:[#allocation18 + $0x48] sm:$0xf0]  ;;  %v20131_v35 = vrot.slane %v18185_v7, 7  ;;  %v14061_v61 = vld [vmem:[#allocation18 + $0x358] sm:$0xf0] }
 0x5f3   :  { %v12805_v7 = vor.u32 %v14061_v61, %v12804_v37  ;;  %v14158_v18 = vld [vmem:[#allocation18 + $0x20] sm:$0xf0]  ;;  %v12594_v37 = vld [vmem:[#allocation18 + $0x24c] sm:$0xf0]  ;;  %v13066_v28 = vld [vmem:[#allocation18 + $0x564] sm:$0xf0] }
 0x5f4   :  { %7739 = vmatpush.bf16.msra.mxu1 %v12401_v21  ;;  %v14168_v21 = vld [vmem:[#allocation18 + $0x70] sm:$0xf0]  ;;  %v6523_v34 = vsel %vm6490_vm6, %v20131_v35, %v6522_v25  ;;  %7569 = vmatpush.bf16.msrb.mxu2 %v12313_v40  ;;  %v14155_v40 = vld [vmem:[#allocation18 + $0xc] sm:$0xf] }
 0x5f5   :  { %8358 = vmatpush.bf16.msra.mxu0 %v12865_v44  ;;  %7653 = vmatpush.bf16.msra.mxu3 %v12377_v8  ;;  %v12361_v51 = vor.u32 %v14168_v21, %v12360_v41  ;;  %v12334_v44 = vld [vmem:[#allocation18 + $0x44] sm:$0xf0]  ;;  %v6580_v1 = vsel %vm273_vm10, %v6523_v34, 0.0  ;;  %v12320_v21 = vld [vmem:[#allocation18 + $0x10] sm:$0xf] }
 0x5f6   :  { %12715 = vmatmul.msk.bf16.gmra.mxu2 %vm199_vm0, %v18246_v48  ;;  %12731 = vmatmul.msk.bf16.gmra.mxu3 %vm199_vm0, %v18246_v48  ;;  %v12337_v8 = vor.u32 %v14160_v62, %v12334_v44  ;;  %v12314_v62 = vld [vmem:[#allocation18 + $0x1c] sm:$0xf0]  ;;  %v12321_v10 = vor.u32 %v14158_v18, %v12320_v21  ;;  %v6446_v35 = vld [vmem:[#allocation2 + $0xd0] sm:$0x7f]  ;;  %v14225_v34 = vld [vmem:[#allocation18 + $0x23c] sm:$0xf] }
 0x5f7   :  { %12747 = vmatmul.msk.bf16.gmra.mxu1 %vm199_vm0, %v18246_v48  ;;  %12763 = vmatmul.msk.bf16.gmra.mxu0 %vm199_vm0, %v18246_v48  ;;  %v12317_v47 = vor.u32 %v14155_v40, %v12314_v62  ;;  %v12574_v18 = vld [vmem:[#allocation18 + $0x224] sm:$0xf0]  ;;  %v14099_v23 = vld [vmem:[#allocation18 + $0x48c] sm:$0xf] }
 0x5f8   :  { %7740 = vmatpush.bf16.msra.mxu1 %v12381_v39  ;;  %v12341_v39 = vor.u32 %v14163_v6, %v12340_v22 }
 0x5f9   :  { %v18256_v14 = vpop.f32.mrf.mxu1  ;;  %v18258_v20 = vpop.f32.mrf.mxu0  ;;  %8359 = vmatpush.bf16.msra.mxu0 %v12845_v13  ;;  %7654 = vmatpush.bf16.msra.mxu3 %v12357_v55  ;;  %v20132_v13 = vrot.slane %v18218_v9, 7  ;;  %v12784_v55 = vld [vmem:[#allocation18 + $0x320] sm:$0xf] }
 0x5fb   :  { %v6529_v26 = vsel %vm6490_vm6, %v6522_v25, %v20132_v13  ;;  %v14230_v25 = vld [vmem:[#allocation18 + $0x264] sm:$0xf]  ;;  %v12597_v13 = vor.u32 %v14225_v34, %v12594_v37  ;;  %v12534_v37 = vld [vmem:[#allocation18 + $0x1d4] sm:$0xf0] }
 0x5fc   :  { %7741 = vmatpush.bf16.msra.mxu1 %v12361_v51  ;;  %v18274_v41 = vpack.c.bf16 %v6529_v26, %v6580_v1  ;;  %v14056_v51 = vld [vmem:[#allocation18 + $0x330] sm:$0xf0]  ;;  %v20133_v1 = vrot.slane %v18218_v9, 7  ;;  %v14210_v34 = vld [vmem:[#allocation18 + $0x1c4] sm:$0xf] }
 0x5fd   :  { %8360 = vmatpush.bf16.msra.mxu0 %v12825_v32  ;;  %7655 = vmatpush.bf16.msra.mxu3 %v12337_v8  ;;  %v12785_v61 = vor.u32 %v14056_v51, %v12784_v55  ;;  %v12614_v32 = vld [vmem:[#allocation18 + $0x274] sm:$0xf0]  ;;  %v6534_v8 = vrot.slane %v18221_v31, 7  ;;  %v14124_v31 = vld [vmem:[#allocation18 + $0x554] sm:$0xf] }
 0x5fe   :  { %v12617_v44 = vor.u32 %v14230_v25, %v12614_v32 }
 0x600   :  { %7742 = vmatpush.bf16.msra.mxu1 %v12341_v39  ;;  %7678 = vmatpush.bf16.msra.mxu2 %v12617_v44  ;;  %v6540_v39 = vrot.slane %v6446_v35, 7 }
 0x601   :  { %v18265_v11 = vpop.f32.mrf.mxu1  ;;  %8361 = vmatpush.bf16.msra.mxu0 %v12805_v7  ;;  %7656 = vmatpush.bf16.msra.mxu3 %v12317_v47  ;;  %v6535_v7 = vsel %vm6490_vm6, %v20133_v1, %v6534_v8  ;;  %v14220_v47 = vld [vmem:[#allocation18 + $0x214] sm:$0xf] }
 0x602   :  { %v18272_v50 = vpop.f32.mrf.mxu0  ;;  %v6541_v40 = vsel %vm6490_vm6, %v6534_v8, %v6540_v39  ;;  %v12577_v9 = vor.u32 %v14220_v47, %v12574_v18  ;;  %v12620_v8 = vld [vmem:[#allocation18 + $0x268] sm:$0xf]  ;;  %v14233_v39 = vld [vmem:[#allocation18 + $0x278] sm:$0xf0]  ;;  %v13086_v47 = vld [vmem:[#allocation18 + $0x58c] sm:$0xf0] }
 0x603   :  { %v18297_v21 = vpack.c.bf16 %v6541_v40, %v6535_v7  ;;  %v12621_v1 = vor.u32 %v14233_v39, %v12620_v8  ;;  %v14131_v7 = vld [vmem:[#allocation18 + $0x588] sm:$0xf0]  ;;  %v14129_v40 = vld [vmem:[#allocation18 + $0x57c] sm:$0xf]  ;;  %v14126_v39 = vld [vmem:[#allocation18 + $0x560] sm:$0xf0] }
 0x604   :  { %7743 = vmatpush.bf16.msra.mxu1 %v12321_v10  ;;  %7679 = vmatpush.bf16.msra.mxu2 %v12597_v13  ;;  %v14215_v10 = vld [vmem:[#allocation18 + $0x1ec] sm:$0xf]  ;;  %v13084_v13 = vld [vmem:[#allocation18 + $0x578] sm:$0xf] }
 0x605   :  { %8362 = vmatpush.bf16.msra.mxu0 %v12785_v61  ;;  %20134 = vst [vmem:[#allocation57_spill] sm:$0xff] %v18297_v21  ;;  %v12554_v61 = vld [vmem:[#allocation18 + $0x1fc] sm:$0xf0]  ;;  %7765 = vmatpush.bf16.msrb.mxu3 %v12621_v1  ;;  %v12580_v1 = vld [vmem:[#allocation18 + $0x218] sm:$0xf] }
 0x606   :  { %12716 = vmatmul.msk.bf16.gmra.mxu2 %vm199_vm0, %v18274_v41  ;;  %12732 = vmatmul.msk.bf16.gmra.mxu3 %vm199_vm0, %v18274_v41  ;;  %v12557_v25 = vor.u32 %v14215_v10, %v12554_v61  ;;  %v13089_v10 = vor.u32 %v14129_v40, %v13086_v47  ;;  %v14223_v47 = vld [vmem:[#allocation18 + $0x228] sm:$0xf0] }
 0x607   :  { %12748 = vmatmul.msk.bf16.gmra.mxu1 %vm199_vm0, %v18274_v41  ;;  %12764 = vmatmul.msk.bf16.gmra.mxu0 %vm199_vm0, %v18274_v41 }
 0x608   :  { %7680 = vmatpush.bf16.msra.mxu2 %v12577_v9  ;;  %v13085_v9 = vor.u32 %v14131_v7, %v13084_v13  ;;  %v14205_v13 = vld [vmem:[#allocation18 + $0x19c] sm:$0xf]  ;;  %v12514_v7 = vld [vmem:[#allocation18 + $0x1ac] sm:$0xf0] }
 0x609   :  { %v18284_v22 = vpop.f32.mrf.mxu1  ;;  %8471 = vmatpush.bf16.msrb.mxu0 %v13089_v10  ;;  %v12517_v40 = vor.u32 %v14205_v13, %v12514_v7  ;;  %v12581_v10 = vor.u32 %v14223_v47, %v12580_v1  ;;  %v14116_v13 = vld [vmem:[#allocation18 + $0x510] sm:$0xf0]  ;;  %v14114_v7 = vld [vmem:[#allocation18 + $0x504] sm:$0xf]  ;;  %v13026_v1 = vld [vmem:[#allocation18 + $0x514] sm:$0xf0] }
 0x60a   :  { %v18286_v6 = vpop.f32.mrf.mxu0  ;;  %8384 = vmatpush.bf16.msrb.mxu1 %v13085_v9  ;;  %v13044_v9 = vld [vmem:[#allocation18 + $0x528] sm:$0xf] }
 0x60c   :  { %7681 = vmatpush.bf16.msra.mxu2 %v12557_v25 }
 0x611   :  { %v18289_v26 = vpop.f32.mrf.mxu1 }
 0x612   :  { %v18295_v62 = vpop.f32.mrf.mxu0 }
 0x616   :  { %12717 = vmatmul.msk.bf16.gmra.mxu2 %vm199_vm0, %v18297_v21  ;;  %12733 = vmatmul.msk.bf16.gmra.mxu3 %vm199_vm0, %v18297_v21 }
 0x617   :  { %12749 = vmatmul.msk.bf16.gmra.mxu1 %vm199_vm0, %v18297_v21  ;;  %12765 = vmatmul.msk.bf16.gmra.mxu0 %vm199_vm0, %v18297_v21  ;;  %v12966_v21 = vld [vmem:[#allocation18 + $0x49c] sm:$0xf0] }
 0x619   :  { %v18307_v55 = vpop.f32.mrf.mxu1 }
 0x61a   :  { %v18309_v51 = vpop.f32.mrf.mxu0 }
 0x623   :  { %v7513_v32 = vpop.f32.mrf.mxu1 }
 0x624   :  { %v18312_v44 = vadd.f32 %v7513_v32, %v18178_v56  ;;  %v18314_v35 = vpop.f32.mrf.mxu0  ;;  %v12537_v56 = vor.u32 %v14210_v34, %v12534_v37  ;;  %v12600_v32 = vld [vmem:[#allocation18 + $0x240] sm:$0xf]  ;;  %v14228_v34 = vld [vmem:[#allocation18 + $0x250] sm:$0xf0]  ;;  %v13064_v37 = vld [vmem:[#allocation18 + $0x550] sm:$0xf] }
 0x625   :  { %v12601_v8 = vor.u32 %v14228_v34, %v12600_v32  ;;  %v13065_v33 = vor.u32 %v14126_v39, %v13064_v37  ;;  %v13049_v34 = vor.u32 %v14119_v36, %v13046_v52  ;;  %v13024_v39 = vld [vmem:[#allocation18 + $0x500] sm:$0xf]  ;;  %v13029_v36 = vor.u32 %v14114_v7, %v13026_v1 }
 0x626   :  { %12736 = vmatmul.msk.bf16.vlgmr.msrb.gmra.mxu2 %vm17779_vm8, %v17754_v45  ;;  %12752 = vmatmul.msk.bf16.vlgmr.msra.gmra.mxu3 %vm17779_vm8, %v17754_v45  ;;  %v13025_v52 = vor.u32 %v14116_v13, %v13024_v39 }
 0x627   :  { %12768 = vmatmul.msk.bf16.vlgmr.msra.gmra.mxu1 %vm17779_vm8, %v17754_v45  ;;  %8363 = vmatmul.bf16.vlgmr.msra.gmra.mxu0 %v17770_v38  ;;  %v14101_v38 = vld [vmem:[#allocation18 + $0x498] sm:$0xf0] }
 0x628   :  { %7682 = vmatpush.bf16.msra.mxu2 %v12537_v56  ;;  %v13069_v56 = vor.u32 %v14124_v31, %v13066_v28  ;;  %7766 = vmatpush.bf16.msrb.mxu3 %v12601_v8  ;;  %v12560_v8 = vld [vmem:[#allocation18 + $0x1f0] sm:$0xf] }
 0x629   :  { %v18326_v18 = vpop.f32.mrf.mxu3  ;;  %8385 = vmatpush.bf16.msrb.mxu1 %v13065_v33  ;;  %v14218_v33 = vld [vmem:[#allocation18 + $0x200] sm:$0xf0] }
 0x62a   :  { %8472 = vmatpush.bf16.msrb.mxu0 %v13069_v56  ;;  %v12561_v56 = vor.u32 %v14218_v33, %v12560_v8  ;;  %v13006_v8 = vld [vmem:[#allocation18 + $0x4ec] sm:$0xf0] }
 0x62b   :  { %v7515_v61 = vpop.f32.mrf.mxu1 }
 0x62c   :  { %v18329_v45 = vadd.f32 %v7515_v61, %v18214_v42  ;;  %v18331_v25 = vpop.f32.mrf.mxu0  ;;  %v14121_v42 = vld [vmem:[#allocation18 + $0x538] sm:$0xf0]  ;;  %7683 = vmatpush.bf16.msra.mxu2 %v12517_v40  ;;  %7767 = vmatpush.bf16.msrb.mxu3 %v12581_v10  ;;  %v14200_v40 = vld [vmem:[#allocation18 + $0x174] sm:$0xf]  ;;  %v13004_v10 = vld [vmem:[#allocation18 + $0x4d8] sm:$0xf] }
 0x62d   :  { %v13045_v61 = vor.u32 %v14121_v42, %v13044_v9  ;;  %v12540_v9 = vld [vmem:[#allocation18 + $0x1c8] sm:$0xf]  ;;  %v14213_v42 = vld [vmem:[#allocation18 + $0x1d8] sm:$0xf0] }
 0x62e   :  { %8473 = vmatpush.bf16.msrb.mxu0 %v13049_v34  ;;  %v14111_v34 = vld [vmem:[#allocation18 + $0x4e8] sm:$0xf0] }
 0x62f   :  { %8386 = vmatpush.bf16.msrb.mxu1 %v13045_v61  ;;  %v12541_v61 = vor.u32 %v14213_v42, %v12540_v9  ;;  %v13005_v39 = vor.u32 %v14111_v34, %v13004_v10  ;;  %v14106_v9 = vld [vmem:[#allocation18 + $0x4c0] sm:$0xf0]  ;;  %v14104_v42 = vld [vmem:[#allocation18 + $0x4b4] sm:$0xf]  ;;  %v14195_v10 = vld [vmem:[#allocation18 + $0x14c] sm:$0xf] }
 0x630   :  { %7768 = vmatpush.bf16.msrb.mxu3 %v12561_v56  ;;  %v12520_v56 = vld [vmem:[#allocation18 + $0x1a0] sm:$0xf] }
 0x631   :  { %v18333_v32 = vpop.f32.mrf.mxu3  ;;  %v12474_v34 = vld [vmem:[#allocation18 + $0x15c] sm:$0xf0] }
 0x632   :  { %8474 = vmatpush.bf16.msrb.mxu0 %v13029_v36 }
 0x633   :  { %v7518_v37 = vpop.f32.mrf.mxu1  ;;  %8387 = vmatpush.bf16.msrb.mxu1 %v13025_v52  ;;  %v14208_v52 = vld [vmem:[#allocation18 + $0x1b0] sm:$0xf0] }
 0x634   :  { %v18336_v28 = vadd.f32 %v7518_v37, %v18233_v63  ;;  %v18338_v31 = vpop.f32.mrf.mxu0  ;;  %v12494_v63 = vld [vmem:[#allocation18 + $0x184] sm:$0xf0]  ;;  %v14109_v37 = vld [vmem:[#allocation18 + $0x4dc] sm:$0xf]  ;;  %7769 = vmatpush.bf16.msrb.mxu3 %v12541_v61 }
 0x635   :  { %v12497_v47 = vor.u32 %v14200_v40, %v12494_v63  ;;  %v13009_v13 = vor.u32 %v14109_v37, %v13006_v8  ;;  %v12984_v40 = vld [vmem:[#allocation18 + $0x4b0] sm:$0xf]  ;;  %v12521_v63 = vor.u32 %v14208_v52, %v12520_v56  ;;  %v12500_v37 = vld [vmem:[#allocation18 + $0x178] sm:$0xf]  ;;  %v12477_v8 = vor.u32 %v14195_v10, %v12474_v34  ;;  %v14094_v10 = vld [vmem:[#allocation18 + $0x464] sm:$0xf] }
 0x636   :  { %7575 = vmatmul.bf16.gmra.mxu2 %v17848_v17  ;;  %7662 = vmatmul.bf16.gmra.mxu3 %v17848_v17  ;;  %v12985_v36 = vor.u32 %v14106_v9, %v12984_v40  ;;  %v12969_v56 = vor.u32 %v14099_v23, %v12966_v21  ;;  %v12480_v9 = vld [vmem:[#allocation18 + $0x150] sm:$0xf]  ;;  %v12946_v34 = vld [vmem:[#allocation18 + $0x474] sm:$0xf0]  ;;  %v12700_v21 = vld [vmem:[#allocation18 + $0x308] sm:$0xf] }
 0x637   :  { %7749 = vmatmul.bf16.gmra.mxu1 %v17848_v17  ;;  %8368 = vmatmul.bf16.gmra.mxu0 %v17774_v3  ;;  %v12986_v3 = vld [vmem:[#allocation18 + $0x4c4] sm:$0xf0] }
 0x638   :  { %7684 = vmatpush.bf16.msra.mxu2 %v12497_v47  ;;  %8388 = vmatpush.bf16.msrb.mxu1 %v13005_v39  ;;  %v12989_v47 = vor.u32 %v14104_v42, %v12986_v3  ;;  %v12944_v42 = vld [vmem:[#allocation18 + $0x460] sm:$0xf] }
 0x639   :  { %v18344_v33 = vpop.f32.mrf.mxu3  ;;  %8475 = vmatpush.bf16.msrb.mxu0 %v13009_v13  ;;  %7770 = vmatpush.bf16.msrb.mxu3 %v12521_v63  ;;  %v14198_v63 = vld [vmem:[#allocation18 + $0x160] sm:$0xf0] }
 0x63b   :  { %v7520_v7 = vpop.f32.mrf.mxu1 }
 0x63c   :  { %v18347_v17 = vadd.f32 %v7520_v7, %v18258_v20  ;;  %v18349_v1 = vpop.f32.mrf.mxu0  ;;  %v14203_v20 = vld [vmem:[#allocation18 + $0x188] sm:$0xf0]  ;;  %v12964_v7 = vld [vmem:[#allocation18 + $0x488] sm:$0xf]  ;;  %8389 = vmatpush.bf16.msrb.mxu1 %v12985_v36  ;;  %7685 = vmatpush.bf16.msra.mxu2 %v12477_v8  ;;  %v14096_v36 = vld [vmem:[#allocation18 + $0x470] sm:$0xf0] }
 0x63d   :  { %v12501_v61 = vor.u32 %v14203_v20, %v12500_v37  ;;  %v12965_v39 = vor.u32 %v14101_v38, %v12964_v7  ;;  %8476 = vmatpush.bf16.msrb.mxu0 %v12989_v47  ;;  %v12481_v38 = vor.u32 %v14198_v63, %v12480_v9  ;;  %v12945_v23 = vor.u32 %v14096_v36, %v12944_v42  ;;  %v14253_v47 = vld [vmem:[#allocation18 + $0x318] sm:$0xf0]  ;;  %v12680_v9 = vld [vmem:[#allocation18 + $0x2e0] sm:$0xf]  ;;  %v14248_v63 = vld [vmem:[#allocation18 + $0x2f0] sm:$0xf0] }
 0x63e   :  { %v12701_v37 = vor.u32 %v14253_v47, %v12700_v21  ;;  %v13164_v21 = vld [vmem:[#allocation18 + $0x618] sm:$0xf]  ;;  %v14151_v47 = vld [vmem:[#allocation18 + $0x628] sm:$0xf0] }
 0x63f   :  { %7771 = vmatpush.bf16.msrb.mxu3 %v12501_v61 }
 0x640   :  { %8390 = vmatpush.bf16.msrb.mxu1 %v12965_v39  ;;  %7798 = vmatpush.bf16.msrb.mxu2 %v12701_v37  ;;  %v7427_v37 = vadd.f32 %v18326_v18, %v18176_v19 }
 0x641   :  { %v18351_v13 = vpop.f32.mrf.mxu3  ;;  %8477 = vmatpush.bf16.msrb.mxu0 %v12969_v56 }
 0x643   :  { %v7523_v52 = vpop.f32.mrf.mxu1  ;;  %7772 = vmatpush.bf16.msrb.mxu3 %v12481_v38 }
 0x644   :  { %v18354_v3 = vadd.f32 %v7523_v52, %v18272_v50  ;;  %v18356_v40 = vpop.f32.mrf.mxu0  ;;  %v12949_v50 = vor.u32 %v14094_v10, %v12946_v34  ;;  %8391 = vmatpush.bf16.msrb.mxu1 %v12945_v23 }
 0x646   :  { %12739 = vmatmul.msk.bf16.gmra.mxu2 %vm17926_vm14, %v17858_v4  ;;  %12755 = vmatmul.msk.bf16.gmra.mxu3 %vm17926_vm14, %v17858_v4 }
 0x647   :  { %12771 = vmatmul.msk.bf16.gmra.mxu1 %vm17926_vm14, %v17858_v4  ;;  %8373 = vmatmul.bf16.gmra.mxu0 %v17792_v2 }
 0x648   :  { %8478 = vmatpush.bf16.msrb.mxu0 %v12949_v50 }
 0x649   :  { %v18368_v8 = vpop.f32.mrf.mxu3 }
 0x64b   :  { %v7525_v20 = vpop.f32.mrf.mxu1 }
 0x64c   :  { %v18371_v7 = vadd.f32 %v7525_v20, %v18286_v6  ;;  %v18373_v61 = vpop.f32.mrf.mxu0  ;;  %v12681_v6 = vor.u32 %v14248_v63, %v12680_v9  ;;  %v13165_v20 = vor.u32 %v14151_v47, %v13164_v21  ;;  %v14238_v21 = vld [vmem:[#allocation18 + $0x2a0] sm:$0xf0]  ;;  %v13166_v47 = vld [vmem:[#allocation18 + $0x62c] sm:$0xf0] }
 0x64e   :  { %7799 = vmatpush.bf16.msrb.mxu2 %v12681_v6  ;;  %8417 = vmatpush.bf16.msra.mxu3 %v13165_v20 }
 0x651   :  { %v18375_v39 = vpop.f32.mrf.mxu3 }
 0x653   :  { %v7528_v56 = vpop.f32.mrf.mxu1 }
 0x654   :  { %v18378_v4 = vadd.f32 %v7528_v56, %v18295_v62  ;;  %v18380_v52 = vpop.f32.mrf.mxu0 }
 0x656   :  { %7585 = vmatmul.bf16.gmra.mxu2 %v18005_v16  ;;  %7672 = vmatmul.bf16.gmra.mxu3 %v18005_v16 }
 0x657   :  { %7759 = vmatmul.bf16.gmra.mxu1 %v18005_v16  ;;  %8378 = vmatmul.bf16.gmra.mxu0 %v17800_v30  ;;  %v12660_v16 = vld [vmem:[#allocation18 + $0x2b8] sm:$0xf] }
 0x659   :  { %v18386_v42 = vpop.f32.mrf.mxu3 }
 0x65b   :  { %v7530_v38 = vpop.f32.mrf.mxu1 }
 0x65c   :  { %v18389_v62 = vadd.f32 %v7530_v38, %v18309_v51  ;;  %v18391_v36 = vpop.f32.mrf.mxu0  ;;  %v14243_v51 = vld [vmem:[#allocation18 + $0x2c8] sm:$0xf0]  ;;  %v7429_v38 = vadd.f32 %v18333_v32, %v18212_v0  ;;  %v14149_v32 = vld [vmem:[#allocation18 + $0x61c] sm:$0xf] }
 0x65d   :  { %v13169_v20 = vor.u32 %v14149_v32, %v13166_v47  ;;  %v13152_v32 = vld [vmem:[#allocation18 + $0x5f8] sm:$0xf] }
 0x65f   :  { %8504 = vmatpush.bf16.msra.mxu1 %v13169_v20 }
 0x661   :  { %v7443_v10 = vpop.f32.mrf.mxu3 }
 0x662   :  { %v18394_v34 = vadd.f32 %v7443_v10, %v18307_v55  ;;  %v12661_v55 = vor.u32 %v14243_v51, %v12660_v16 }
 0x664   :  { %v18396_v23 = vpop.f32.mrf.mxu1  ;;  %v18398_v50 = vpop.f32.mrf.mxu0  ;;  %7800 = vmatpush.bf16.msrb.mxu2 %v12661_v55 }
 0x666   :  { %12758 = vmatmul.msk.bf16.vlgmr.msra.gmra.mxu2 %vm17779_vm8, %v18024_v58  ;;  %12774 = vmatmul.msk.bf16.vlgmr.msrb.gmra.mxu3 %vm17779_vm8, %v18024_v58 }
 0x667   :  { %8392 = vmatmul.bf16.vlgmr.msrb.gmra.mxu1 %v18039_v46  ;;  %8479 = vmatmul.bf16.vlgmr.msrb.gmra.mxu0 %v18039_v46 }
 0x669   :  { %v7455_v56 = vpop.f32.mrf.mxu2  ;;  %v7542_v9 = vpop.f32.mrf.mxu3 }
 0x66a   :  { %v18410_v63 = vadd.f32 %v7455_v56, %v7427_v37  ;;  %v18413_v24 = vadd.f32 %v7542_v9, %v18312_v44  ;;  %v12640_v44 = vld [vmem:[#allocation18 + $0x290] sm:$0xf]  ;;  %v13172_v37 = vld [vmem:[#allocation18 + $0x620] sm:$0xf]  ;;  %v14152_v56 = vld [vmem:[#allocation18 + $0x630] sm:$0xf0] }
 0x66b   :  { %v12641_v0 = vor.u32 %v14238_v21, %v12640_v44  ;;  %v13144_v9 = vld [vmem:[#allocation18 + $0x5f0] sm:$0xf]  ;;  %v13146_v21 = vld [vmem:[#allocation18 + $0x604] sm:$0xf0] }
 0x66c   :  { %20135 = vst [vmem:[#allocation45_spill] sm:$0xff] %v18413_v24  ;;  %v18415_v58 = vpop.f32.mrf.mxu1  ;;  %v18417_v6 = vpop.f32.mrf.mxu0  ;;  %v14147_v24 = vld [vmem:[#allocation18 + $0x608] sm:$0xf0] }
 0x66d   :  { %20136 = vst [vmem:[#allocation53_spill] sm:$0xff] %v18417_v6  ;;  %7801 = vmatpush.bf16.msrb.mxu2 %v12641_v0  ;;  %v13124_v0 = vld [vmem:[#allocation18 + $0x5c8] sm:$0xf] }
 0x671   :  { %v7457_v10 = vpop.f32.mrf.mxu2  ;;  %v7544_v16 = vpop.f32.mrf.mxu3 }
 0x672   :  { %v18421_v19 = vadd.f32 %v7457_v10, %v7429_v38  ;;  %v18424_v18 = vadd.f32 %v7544_v16, %v18329_v45  ;;  %v7432_v45 = vadd.f32 %v18344_v33, %v18231_v49  ;;  %v14146_v38 = vld [vmem:[#allocation18 + $0x600] sm:$0xf0]  ;;  %v14144_v33 = vld [vmem:[#allocation18 + $0x5f4] sm:$0xf] }
 0x673   :  { %v13149_v47 = vor.u32 %v14144_v33, %v13146_v21 }
 0x674   :  { %20137 = vst [vmem:[#allocation54_spill] sm:$0xff] %v18424_v18  ;;  %v18426_v51 = vpop.f32.mrf.mxu1  ;;  %v18428_v55 = vpop.f32.mrf.mxu0 }
 0x675   :  { %20138 = vst [vmem:[#allocation36_spill] sm:$0xff] %v18428_v55  ;;  %v13145_v55 = vor.u32 %v14146_v38, %v13144_v9  ;;  %v14139_v9 = vld [vmem:[#allocation18 + $0x5cc] sm:$0xf]  ;;  %v13126_v38 = vld [vmem:[#allocation18 + $0x5dc] sm:$0xf0]  ;;  %8505 = vmatpush.bf16.msra.mxu1 %v13149_v47 }
 0x676   :  { %7691 = vmatmul.bf16.gmra.mxu2 %v18036_v5  ;;  %7778 = vmatmul.bf16.gmra.mxu3 %v18036_v5  ;;  %v13173_v5 = vor.u32 %v14152_v56, %v13172_v37  ;;  %v14141_v37 = vld [vmem:[#allocation18 + $0x5d8] sm:$0xf0]  ;;  %v13153_v56 = vor.u32 %v14147_v24, %v13152_v32  ;;  %v13129_v20 = vor.u32 %v14139_v9, %v13126_v38  ;;  %v13104_v47 = vld [vmem:[#allocation18 + $0x5a0] sm:$0xf]  ;;  %v12926_v38 = vld [vmem:[#allocation18 + $0x44c] sm:$0xf0] }
 0x677   :  { %8397 = vmatmul.bf16.gmra.mxu1 %v18046_v27  ;;  %8484 = vmatmul.bf16.gmra.mxu0 %v18046_v27  ;;  %v14089_v9 = vld [vmem:[#allocation18 + $0x43c] sm:$0xf] }
 0x678   :  { %8591 = vmatpush.bf16.msra.mxu0 %v13173_v5  ;;  %8418 = vmatpush.bf16.msra.mxu3 %v13145_v55  ;;  %v7434_v55 = vadd.f32 %v18351_v13, %v18256_v14  ;;  %v13112_v13 = vld [vmem:[#allocation18 + $0x5a8] sm:$0xf] }
 0x679   :  { %v7460_v10 = vpop.f32.mrf.mxu2  ;;  %v7547_v16 = vpop.f32.mrf.mxu3  ;;  %8506 = vmatpush.bf16.msra.mxu1 %v13129_v20  ;;  %v12929_v20 = vor.u32 %v14089_v9, %v12926_v38 }
 0x67a   :  { %v18436_v18 = vadd.f32 %v7460_v10, %v7432_v45  ;;  %v18439_v6 = vadd.f32 %v7547_v16, %v18336_v28  ;;  %v13125_v45 = vor.u32 %v14141_v37, %v13124_v0  ;;  %v13132_v28 = vld [vmem:[#allocation18 + $0x5d0] sm:$0xf]  ;;  %v14142_v10 = vld [vmem:[#allocation18 + $0x5e0] sm:$0xf0]  ;;  %v14136_v0 = vld [vmem:[#allocation18 + $0x5b0] sm:$0xf0] }
 0x67b   :  { %v13133_v16 = vor.u32 %v14142_v10, %v13132_v28  ;;  %v14134_v37 = vld [vmem:[#allocation18 + $0x5a4] sm:$0xf]  ;;  %v13105_v14 = vor.u32 %v14136_v0, %v13104_v47  ;;  %v7437_v28 = vadd.f32 %v18368_v8, %v18265_v11  ;;  %8442 = vmatpush.bf16.msra.mxu2 %v12929_v20  ;;  %v14084_v47 = vld [vmem:[#allocation18 + $0x414] sm:$0xf]  ;;  %v12906_v0 = vld [vmem:[#allocation18 + $0x424] sm:$0xf0]  ;;  %v7439_v11 = vadd.f32 %v18375_v39, %v18284_v22 }
 0x67c   :  { %v18441_v44 = vpop.f32.mrf.mxu1  ;;  %v18443_v49 = vpop.f32.mrf.mxu0  ;;  %8592 = vmatpush.bf16.msra.mxu0 %v13153_v56  ;;  %8419 = vmatpush.bf16.msra.mxu3 %v13125_v45  ;;  %v7442_v39 = vadd.f32 %v18386_v42, %v18289_v26 }
 0x67d   :  { %20139 = vst [vmem:[#allocation46_spill] sm:$0xff] %v18443_v49 }
 0x680   :  { %8593 = vmatpush.bf16.msra.mxu0 %v13133_v16  ;;  %8420 = vmatpush.bf16.msra.mxu3 %v13105_v14 }
 0x681   :  { %v7462_v5 = vpop.f32.mrf.mxu2  ;;  %v7549_v49 = vpop.f32.mrf.mxu3 }
 0x682   :  { %v18447_v33 = vadd.f32 %v7462_v5, %v7434_v55  ;;  %v18450_v21 = vadd.f32 %v7549_v49, %v18347_v17  ;;  %v13106_v17 = vld [vmem:[#allocation18 + $0x5b4] sm:$0xf0]  ;;  %v14137_v49 = vld [vmem:[#allocation18 + $0x5b8] sm:$0xf0] }
 0x683   :  { %v13109_v56 = vor.u32 %v14134_v37, %v13106_v17  ;;  %v13113_v45 = vor.u32 %v14137_v49, %v13112_v13  ;;  %v12909_v37 = vor.u32 %v14084_v47, %v12906_v0 }
 0x684   :  { %v18452_v24 = vpop.f32.mrf.mxu1  ;;  %v18454_v32 = vpop.f32.mrf.mxu0 }
 0x685   :  { %8507 = vmatpush.bf16.msra.mxu1 %v13109_v56  ;;  %8594 = vmatpush.bf16.msra.mxu0 %v13113_v45  ;;  %v14079_v56 = vld [vmem:[#allocation18 + $0x3ec] sm:$0xf]  ;;  %v12886_v45 = vld [vmem:[#allocation18 + $0x3fc] sm:$0xf0] }
 0x686   :  { %12761 = vmatmul.msk.bf16.gmra.mxu2 %vm17926_vm14, %v18048_v43  ;;  %12777 = vmatmul.msk.bf16.gmra.mxu3 %vm17926_vm14, %v18048_v43  ;;  %v12889_v22 = vor.u32 %v14079_v56, %v12886_v45  ;;  %v12846_v56 = vld [vmem:[#allocation18 + $0x3ac] sm:$0xf0]  ;;  %v14092_v45 = vld [vmem:[#allocation18 + $0x450] sm:$0xf0] }
 0x687   :  { %8402 = vmatmul.bf16.gmra.mxu1 %v18050_v12  ;;  %8489 = vmatmul.bf16.gmra.mxu0 %v18050_v12 }
 0x688   :  { %8443 = vmatpush.bf16.msra.mxu2 %v12909_v37 }
 0x689   :  { %v7465_v10 = vpop.f32.mrf.mxu2  ;;  %v7552_v15 = vpop.f32.mrf.mxu3 }
 0x68a   :  { %v18466_v43 = vadd.f32 %v7465_v10, %v7437_v28  ;;  %v18469_v55 = vadd.f32 %v7552_v15, %v18354_v3  ;;  %v14074_v10 = vld [vmem:[#allocation18 + $0x3c4] sm:$0xf]  ;;  %v12866_v15 = vld [vmem:[#allocation18 + $0x3d4] sm:$0xf0] }
 0x68b   :  { %v12869_v47 = vor.u32 %v14074_v10, %v12866_v15 }
 0x68c   :  { %v18471_v16 = vpop.f32.mrf.mxu1  ;;  %v18473_v5 = vpop.f32.mrf.mxu0  ;;  %8444 = vmatpush.bf16.msra.mxu2 %v12889_v22  ;;  %v14090_v22 = vld [vmem:[#allocation18 + $0x444] sm:$0xf] }
 0x68d   :  { %20140 = vst [vmem:[#allocation37_spill] sm:$0xff] %v18473_v5 }
 0x690   :  { %8445 = vmatpush.bf16.msra.mxu2 %v12869_v47 }
 0x691   :  { %v7467_v8 = vpop.f32.mrf.mxu2  ;;  %v7554_v14 = vpop.f32.mrf.mxu3 }
 0x692   :  { %v18477_v17 = vadd.f32 %v7467_v8, %v7439_v11  ;;  %v18480_v13 = vadd.f32 %v7554_v14, %v18371_v7  ;;  %v14069_v14 = vld [vmem:[#allocation18 + $0x39c] sm:$0xf] }
 0x694   :  { %20141 = vst [vmem:[#allocation40_spill] sm:$0xff] %v18480_v13  ;;  %v18482_v3 = vpop.f32.mrf.mxu1  ;;  %v18484_v49 = vpop.f32.mrf.mxu0  ;;  %v14063_v13 = vld [vmem:[#allocation18 + $0x368] sm:$0xf0] }
 0x695   :  { %20142 = vst [vmem:[#allocation31_spill] sm:$0xff] %v18484_v49  ;;  %v14083_v49 = vld [vmem:[#allocation18 + $0x408] sm:$0xf0] }
 0x696   :  { %7701 = vmatmul.bf16.gmra.mxu2 %v18071_v53  ;;  %7788 = vmatmul.bf16.gmra.mxu3 %v18071_v53 }
 0x697   :  { %8407 = vmatmul.bf16.gmra.mxu1 %v18053_v59  ;;  %8494 = vmatmul.bf16.gmra.mxu0 %v18053_v59 }
 0x699   :  { %v7470_v7 = vpop.f32.mrf.mxu2  ;;  %v7557_v9 = vpop.f32.mrf.mxu3 }
 0x69a   :  { %v18492_v38 = vadd.f32 %v7470_v7, %v7442_v39  ;;  %v18495_v28 = vadd.f32 %v7557_v9, %v18378_v4  ;;  %v12934_v39 = vld [vmem:[#allocation18 + $0x454] sm:$0xf0]  ;;  %v12940_v7 = vld [vmem:[#allocation18 + $0x448] sm:$0xf]  ;;  %v14093_v9 = vld [vmem:[#allocation18 + $0x458] sm:$0xf0] }
 0x69b   :  { %v12937_v15 = vor.u32 %v14090_v22, %v12934_v39  ;;  %v12941_v47 = vor.u32 %v14093_v9, %v12940_v7  ;;  %v12914_v22 = vld [vmem:[#allocation18 + $0x42c] sm:$0xf0]  ;;  %v12920_v39 = vld [vmem:[#allocation18 + $0x420] sm:$0xf]  ;;  %v14088_v7 = vld [vmem:[#allocation18 + $0x430] sm:$0xf0] }
 0x69c   :  { %20143 = vst [vmem:[#allocation56_spill] sm:$0xff] %v18495_v28  ;;  %v18497_v20 = vpop.f32.mrf.mxu1  ;;  %v18499_v53 = vpop.f32.mrf.mxu0  ;;  %v14064_v9 = vld [vmem:[#allocation18 + $0x374] sm:$0xf] }
 0x69d   :  { %20144 = vst [vmem:[#allocation51_spill] sm:$0xff] %v18499_v53  ;;  %8616 = vmatpush.bf16.msrb.mxu1 %v12937_v15  ;;  %8703 = vmatpush.bf16.msrb.mxu0 %v12941_v47  ;;  %v12892_v15 = vld [vmem:[#allocation18 + $0x3f0] sm:$0xf]  ;;  %v14082_v53 = vld [vmem:[#allocation18 + $0x400] sm:$0xf0] }
 0x6a1   :  { %v7472_v0 = vpop.f32.mrf.mxu2  ;;  %v7559_v37 = vpop.f32.mrf.mxu3 }
 0x6a2   :  { %v18502_v26 = vadd.f32 %v7472_v0, %v18394_v34  ;;  %v18505_v42 = vadd.f32 %v7559_v37, %v18389_v62  ;;  %v12849_v62 = vor.u32 %v14069_v14, %v12846_v56  ;;  %v12932_v34 = vld [vmem:[#allocation18 + $0x440] sm:$0xf] }
 0x6a4   :  { %20145 = vst [vmem:[#allocation42_spill] sm:$0xff] %v18505_v42  ;;  %v18507_v11 = vpop.f32.mrf.mxu1  ;;  %v8364_v4 = vpop.f32.mrf.mxu0  ;;  %8446 = vmatpush.bf16.msra.mxu2 %v12849_v62  ;;  %v14085_v42 = vld [vmem:[#allocation18 + $0x41c] sm:$0xf] }
 0x6a5   :  { %v18510_v8 = vadd.f32 %v8364_v4, %v18410_v63  ;;  %v12933_v63 = vor.u32 %v14092_v45, %v12932_v34  ;;  %v12912_v34 = vld [vmem:[#allocation18 + $0x418] sm:$0xf]  ;;  %v14087_v45 = vld [vmem:[#allocation18 + $0x428] sm:$0xf0] }
 0x6a6   :  { %12778 = vmatmul.msk.bf16.vlgmr.msrb.gmra.mxu2 %vm199_vm0, %v18194_v54  ;;  %13182 = vmatmul.msk.bf16.vlgmr.msra.gmra.mxu3 %vm199_vm0, %v18156_v57  ;;  %v12913_v62 = vor.u32 %v14087_v45, %v12912_v34  ;;  %v12900_v45 = vld [vmem:[#allocation18 + $0x3f8] sm:$0xf] }
 0x6a7   :  { %13186 = vmatmul.msk.bf16.vlgmr.msra.gmra.mxu1 %vm199_vm0, %v18156_v57  ;;  %13190 = vmatmul.msk.bf16.vlgmr.msra.gmra.mxu0 %vm199_vm0, %v18156_v57 }
 0x6a8   :  { %8529 = vmatpush.bf16.msrb.mxu3 %v12933_v63  ;;  %v12921_v63 = vor.u32 %v14088_v7, %v12920_v39 }
 0x6a9   :  { %v7571_v54 = vpop.f32.mrf.mxu2  ;;  %v18520_v10 = vpop.f32.mrf.mxu3 }
 0x6aa   :  { %v7601_v0 = vadd.f32 %v18314_v35, %v7571_v54  ;;  %v12917_v35 = vor.u32 %v14085_v42, %v12914_v22  ;;  %v12826_v54 = vld [vmem:[#allocation18 + $0x384] sm:$0xf0]  ;;  %8704 = vmatpush.bf16.msrb.mxu0 %v12921_v63  ;;  %v12901_v22 = vor.u32 %v14083_v49, %v12900_v45  ;;  %v14075_v63 = vld [vmem:[#allocation18 + $0x3cc] sm:$0xf]  ;;  %v12874_v49 = vld [vmem:[#allocation18 + $0x3dc] sm:$0xf0] }
 0x6ab   :  { %v12829_v47 = vor.u32 %v14064_v9, %v12826_v54  ;;  %v14078_v54 = vld [vmem:[#allocation18 + $0x3e0] sm:$0xf0] }
 0x6ac   :  { %v18523_v37 = vpop.f32.mrf.mxu1  ;;  %v8366_v4 = vpop.f32.mrf.mxu0  ;;  %v18526_v14 = vadd.f32 %v18396_v23, %v7601_v0  ;;  %8530 = vmatpush.bf16.msrb.mxu3 %v12913_v62  ;;  %v14080_v23 = vld [vmem:[#allocation18 + $0x3f4] sm:$0xf]  ;;  %v12894_v0 = vld [vmem:[#allocation18 + $0x404] sm:$0xf0]  ;;  %8617 = vmatpush.bf16.msrb.mxu1 %v12917_v35  ;;  %v14077_v35 = vld [vmem:[#allocation18 + $0x3d8] sm:$0xf0] }
 0x6ad   :  { %v18529_v56 = vadd.f32 %v8366_v4, %v18421_v19  ;;  %v12893_v4 = vor.u32 %v14082_v53, %v12892_v15  ;;  %v12897_v34 = vor.u32 %v14080_v23, %v12894_v0  ;;  %8447 = vmatpush.bf16.msra.mxu2 %v12829_v47  ;;  %v12872_v53 = vld [vmem:[#allocation18 + $0x3c8] sm:$0xf]  ;;  %v14059_v15 = vld [vmem:[#allocation18 + $0x34c] sm:$0xf]  ;;  %v12806_v47 = vld [vmem:[#allocation18 + $0x35c] sm:$0xf0] }
 0x6ae   :  { %8705 = vmatpush.bf16.msrb.mxu0 %v12901_v22  ;;  %v12852_v23 = vld [vmem:[#allocation18 + $0x3a0] sm:$0xf]  ;;  %v14072_v0 = vld [vmem:[#allocation18 + $0x3b0] sm:$0xf0] }
 0x6af   :  { %v12853_v22 = vor.u32 %v14072_v0, %v12852_v23  ;;  %v12834_v0 = vld [vmem:[#allocation18 + $0x38c] sm:$0xf0] }
 0x6b0   :  { %8531 = vmatpush.bf16.msrb.mxu3 %v12893_v4  ;;  %8618 = vmatpush.bf16.msrb.mxu1 %v12897_v34  ;;  %v14070_v4 = vld [vmem:[#allocation18 + $0x3a4] sm:$0xf]  ;;  %v12854_v34 = vld [vmem:[#allocation18 + $0x3b4] sm:$0xf0] }
 0x6b1   :  { %v7573_v28 = vpop.f32.mrf.mxu2  ;;  %v18531_v19 = vpop.f32.mrf.mxu3 }
 0x6b2   :  { %v7603_v42 = vadd.f32 %v18331_v25, %v7573_v28  ;;  %v12873_v25 = vor.u32 %v14077_v35, %v12872_v53  ;;  %v12880_v28 = vld [vmem:[#allocation18 + $0x3d0] sm:$0xf]  ;;  %v12860_v53 = vld [vmem:[#allocation18 + $0x3a8] sm:$0xf]  ;;  %v14073_v35 = vld [vmem:[#allocation18 + $0x3b8] sm:$0xf0] }
 0x6b4   :  { %v18534_v39 = vpop.f32.mrf.mxu1  ;;  %v8369_v62 = vpop.f32.mrf.mxu0  ;;  %v18537_v7 = vadd.f32 %v18415_v58, %v7603_v42  ;;  %v12877_v58 = vor.u32 %v14075_v63, %v12874_v49  ;;  %8532 = vmatpush.bf16.msrb.mxu3 %v12873_v25  ;;  %v12861_v49 = vor.u32 %v14073_v35, %v12860_v53  ;;  %v12786_v53 = vld [vmem:[#allocation18 + $0x334] sm:$0xf0]  ;;  %v14062_v35 = vld [vmem:[#allocation18 + $0x360] sm:$0xf0] }
 0x6b5   :  { %v18540_v9 = vadd.f32 %v8369_v62, %v18436_v18  ;;  %v12881_v18 = vor.u32 %v14078_v54, %v12880_v28  ;;  %v12857_v62 = vor.u32 %v14070_v4, %v12854_v34 }
 0x6b6   :  { %12779 = vmatmul.msk.bf16.gmra.mxu2 %vm199_vm0, %v18246_v48  ;;  %13183 = vmatmul.msk.bf16.gmra.mxu3 %vm199_vm0, %v18162_v29  ;;  %v12809_v48 = vor.u32 %v14059_v15, %v12806_v47  ;;  %v14065_v47 = vld [vmem:[#allocation18 + $0x37c] sm:$0xf] }
 0x6b7   :  { %13187 = vmatmul.msk.bf16.gmra.mxu1 %vm199_vm0, %v18162_v29  ;;  %13191 = vmatmul.msk.bf16.gmra.mxu0 %vm199_vm0, %v18162_v29  ;;  %v12837_v4 = vor.u32 %v14065_v47, %v12834_v0 }
 0x6b8   :  { %8619 = vmatpush.bf16.msrb.mxu1 %v12877_v58  ;;  %8706 = vmatpush.bf16.msrb.mxu0 %v12881_v18  ;;  %v12832_v58 = vld [vmem:[#allocation18 + $0x378] sm:$0xf]  ;;  %v14067_v18 = vld [vmem:[#allocation18 + $0x388] sm:$0xf0] }
 0x6b9   :  { %v7576_v45 = vpop.f32.mrf.mxu2  ;;  %v18550_v42 = vpop.f32.mrf.mxu3  ;;  %8448 = vmatpush.bf16.msra.mxu2 %v12809_v48  ;;  %8533 = vmatpush.bf16.msrb.mxu3 %v12853_v22  ;;  %v12833_v23 = vor.u32 %v14067_v18, %v12832_v58  ;;  %v14068_v48 = vld [vmem:[#allocation18 + $0x390] sm:$0xf0]  ;;  %v12812_v22 = vld [vmem:[#allocation18 + $0x350] sm:$0xf]  ;;  %v12820_v18 = vld [vmem:[#allocation18 + $0x358] sm:$0xf] }
 0x6ba   :  { %v7606_v63 = vadd.f32 %v18338_v31, %v7576_v45  ;;  %v12840_v31 = vld [vmem:[#allocation18 + $0x380] sm:$0xf]  ;;  %v14054_v45 = vld [vmem:[#allocation18 + $0x324] sm:$0xf]  ;;  %v12821_v0 = vor.u32 %v14063_v13, %v12820_v18 }
 0x6bb   :  { %v12841_v34 = vor.u32 %v14068_v48, %v12840_v31  ;;  %v12794_v13 = vld [vmem:[#allocation18 + $0x33c] sm:$0xf0] }
 0x6bc   :  { %v18553_v28 = vpop.f32.mrf.mxu1  ;;  %v8371_v25 = vpop.f32.mrf.mxu0  ;;  %v18556_v54 = vadd.f32 %v18426_v51, %v7606_v63  ;;  %8620 = vmatpush.bf16.msrb.mxu1 %v12857_v62  ;;  %8707 = vmatpush.bf16.msrb.mxu0 %v12861_v49  ;;  %v12789_v51 = vor.u32 %v14054_v45, %v12786_v53  ;;  %v14060_v63 = vld [vmem:[#allocation18 + $0x354] sm:$0xf]  ;;  %v12813_v49 = vor.u32 %v14062_v35, %v12812_v22  ;;  %v14055_v53 = vld [vmem:[#allocation18 + $0x32c] sm:$0xf]  ;;  %v12800_v22 = vld [vmem:[#allocation18 + $0x330] sm:$0xf] }
 0x6bd   :  { %v18559_v15 = vadd.f32 %v8371_v25, %v18447_v33  ;;  %8534 = vmatpush.bf16.msrb.mxu3 %v12833_v23  ;;  %v12814_v33 = vld [vmem:[#allocation18 + $0x364] sm:$0xf0]  ;;  %v13092_v35 = vld [vmem:[#allocation18 + $0x580] sm:$0xf] }
 0x6be   :  { %v12817_v58 = vor.u32 %v14060_v63, %v12814_v33  ;;  %8449 = vmatpush.bf16.msra.mxu2 %v12789_v51  ;;  %v14058_v51 = vld [vmem:[#allocation18 + $0x340] sm:$0xf0]  ;;  %v14132_v63 = vld [vmem:[#allocation18 + $0x590] sm:$0xf0] }
 0x6bf   :  { %v13093_v33 = vor.u32 %v14132_v63, %v13092_v35  ;;  %v14122_v35 = vld [vmem:[#allocation18 + $0x540] sm:$0xf0] }
 0x6c0   :  { %8621 = vmatpush.bf16.msrb.mxu1 %v12837_v4  ;;  %8708 = vmatpush.bf16.msrb.mxu0 %v12841_v34  ;;  %v12792_v4 = vld [vmem:[#allocation18 + $0x328] sm:$0xf]  ;;  %v14057_v34 = vld [vmem:[#allocation18 + $0x338] sm:$0xf0] }
 0x6c1   :  { %v7578_v25 = vpop.f32.mrf.mxu2  ;;  %v18561_v62 = vpop.f32.mrf.mxu3  ;;  %8535 = vmatpush.bf16.msrb.mxu3 %v12813_v49 }
 0x6c2   :  { %v7608_v47 = vadd.f32 %v18349_v1, %v7578_v25  ;;  %v12793_v1 = vor.u32 %v14057_v34, %v12792_v4  ;;  %8558 = vmatpush.bf16.msrb.mxu2 %v13093_v33  ;;  %v14127_v4 = vld [vmem:[#allocation18 + $0x568] sm:$0xf0] }
 0x6c4   :  { %v18564_v31 = vpop.f32.mrf.mxu1  ;;  %v8374_v23 = vpop.f32.mrf.mxu0  ;;  %v18567_v48 = vadd.f32 %v18441_v44, %v7608_v47  ;;  %8622 = vmatpush.bf16.msrb.mxu1 %v12817_v58  ;;  %8709 = vmatpush.bf16.msrb.mxu0 %v12821_v0  ;;  %v12797_v44 = vor.u32 %v14055_v53, %v12794_v13 }
 0x6c5   :  { %v18570_v45 = vadd.f32 %v8374_v23, %v18466_v43  ;;  %v12801_v43 = vor.u32 %v14058_v51, %v12800_v22  ;;  %8536 = vmatpush.bf16.msrb.mxu3 %v12793_v1  ;;  %v13072_v23 = vld [vmem:[#allocation18 + $0x558] sm:$0xf] }
 0x6c6   :  { %12780 = vmatmul.msk.bf16.gmra.mxu2 %vm199_vm0, %v18274_v41  ;;  %13184 = vmatmul.msk.bf16.gmra.mxu3 %vm199_vm0, %v18168_v60  ;;  %v13073_v34 = vor.u32 %v14127_v4, %v13072_v23  ;;  %v13032_v23 = vld [vmem:[#allocation18 + $0x508] sm:$0xf]  ;;  %v14117_v4 = vld [vmem:[#allocation18 + $0x518] sm:$0xf0] }
 0x6c7   :  { %13188 = vmatmul.msk.bf16.gmra.mxu1 %vm199_vm0, %v18168_v60  ;;  %13192 = vmatmul.msk.bf16.gmra.mxu0 %vm199_vm0, %v18168_v60 }
 0x6c8   :  { %8623 = vmatpush.bf16.msrb.mxu1 %v12797_v44  ;;  %8710 = vmatpush.bf16.msrb.mxu0 %v12801_v43  ;;  %v20148_v44 = vld [vmem:[#allocation39_spill] sm:$0xff]  ;;  %v13052_v43 = vld [vmem:[#allocation18 + $0x530] sm:$0xf] }
 0x6c9   :  { %v7581_v41 = vpop.f32.mrf.mxu2  ;;  %v18580_v25 = vpop.f32.mrf.mxu3  ;;  %8559 = vmatpush.bf16.msrb.mxu2 %v13073_v34  ;;  %v13033_v34 = vor.u32 %v14117_v4, %v13032_v23  ;;  %v13504_v4 = vld [vmem:[#allocation18 + $0x898] sm:$0xf] }
 0x6ca   :  { %v7611_v49 = vadd.f32 %v18356_v40, %v7581_v41 }
 0x6cc   :  { %v18583_v58 = vpop.f32.mrf.mxu1  ;;  %v8376_v18 = vpop.f32.mrf.mxu0  ;;  %v18586_v47 = vadd.f32 %v18452_v24, %v7611_v49 }
 0x6cd   :  { %v18589_v0 = vadd.f32 %v8376_v18, %v18477_v17  ;;  %v20147_v17 = vld [vmem:[#allocation57_spill] sm:$0xff] }
 0x6d1   :  { %v7583_v53 = vpop.f32.mrf.mxu2  ;;  %v18591_v1 = vpop.f32.mrf.mxu3 }
 0x6d2   :  { %v7613_v13 = vadd.f32 %v18373_v61, %v7583_v53  ;;  %v13053_v61 = vor.u32 %v14122_v35, %v13052_v43  ;;  %v13012_v35 = vld [vmem:[#allocation18 + $0x4e0] sm:$0xf] }
 0x6d4   :  { %v18594_v40 = vpop.f32.mrf.mxu1  ;;  %v8379_v22 = vpop.f32.mrf.mxu0  ;;  %v18597_v51 = vadd.f32 %v18471_v16, %v7613_v13  ;;  %8560 = vmatpush.bf16.msrb.mxu2 %v13053_v61  ;;  %v14112_v61 = vld [vmem:[#allocation18 + $0x4f0] sm:$0xf0] }
 0x6d5   :  { %v18600_v24 = vadd.f32 %v8379_v22, %v18492_v38 }
 0x6d6   :  { %20146 = vst [vmem:[#allocation58_spill] sm:$0xff] %v18597_v51  ;;  %12781 = vmatmul.msk.bf16.gmra.mxu2 %vm199_vm0, %v20147_v17  ;;  %13185 = vmatmul.msk.bf16.gmra.mxu3 %vm199_vm0, %v20148_v44 }
 0x6d7   :  { %13189 = vmatmul.msk.bf16.gmra.mxu1 %vm199_vm0, %v20148_v44  ;;  %13193 = vmatmul.msk.bf16.gmra.mxu0 %vm199_vm0, %v20148_v44 }
 0x6d8   :  { %8561 = vmatpush.bf16.msrb.mxu2 %v13033_v34  ;;  %v14331_v34 = vld [vmem:[#allocation18 + $0x8a8] sm:$0xf0] }
 0x6d9   :  { %v7586_v16 = vpop.f32.mrf.mxu2  ;;  %v18610_v63 = vpop.f32.mrf.mxu3 }
 0x6da   :  { %v7616_v38 = vadd.f32 %v18380_v52, %v7586_v16  ;;  %v14130_v16 = vld [vmem:[#allocation18 + $0x584] sm:$0xf] }
 0x6dc   :  { %v18613_v33 = vpop.f32.mrf.mxu1  ;;  %v8381_v41 = vpop.f32.mrf.mxu0  ;;  %v18616_v49 = vadd.f32 %v18482_v3, %v7616_v38  ;;  %v13094_v38 = vld [vmem:[#allocation18 + $0x594] sm:$0xf0] }
 0x6dd   :  { %v18619_v18 = vadd.f32 %v8381_v41, %v18502_v26  ;;  %v20152_v26 = vld [vmem:[#allocation55_spill] sm:$0xff]  ;;  %v13100_v41 = vld [vmem:[#allocation18 + $0x588] sm:$0xf]  ;;  %v13097_v23 = vor.u32 %v14130_v16, %v13094_v38  ;;  %v13074_v38 = vld [vmem:[#allocation18 + $0x56c] sm:$0xf0] }
 0x6de   :  { %20149 = vst [vmem:[#allocation57_spill] sm:$0xff] %v18616_v49  ;;  %v14125_v16 = vld [vmem:[#allocation18 + $0x55c] sm:$0xf]  ;;  %v13060_v49 = vld [vmem:[#allocation18 + $0x538] sm:$0xf] }
 0x6df   :  { %8645 = vmatpush.bf16.msra.mxu3 %v13097_v23  ;;  %v14120_v23 = vld [vmem:[#allocation18 + $0x534] sm:$0xf] }
 0x6e1   :  { %v7588_v53 = vpop.f32.mrf.mxu2  ;;  %v18621_v13 = vpop.f32.mrf.mxu3 }
 0x6e2   :  { %v7618_v22 = vadd.f32 %v18391_v36, %v7588_v53  ;;  %v13013_v36 = vor.u32 %v14112_v61, %v13012_v35 }
 0x6e4   :  { %v8393_v17 = vpop.f32.mrf.mxu1  ;;  %v18624_v52 = vpop.f32.mrf.mxu0  ;;  %v18627_v43 = vadd.f32 %v18497_v20, %v7618_v22  ;;  %v14133_v20 = vld [vmem:[#allocation18 + $0x598] sm:$0xf0]  ;;  %8562 = vmatpush.bf16.msrb.mxu2 %v13013_v36  ;;  %v13080_v36 = vld [vmem:[#allocation18 + $0x560] sm:$0xf] }
 0x6e5   :  { %20150 = vst [vmem:[#allocation59_spill] sm:$0xff] %v18624_v52  ;;  %v18630_v3 = vadd.f32 %v8393_v17, %v18510_v8  ;;  %v13101_v22 = vor.u32 %v14133_v20, %v13100_v41  ;;  %v13505_v17 = vor.u32 %v14331_v34, %v13504_v4  ;;  %v13077_v41 = vor.u32 %v14125_v16, %v13074_v38  ;;  %v14128_v20 = vld [vmem:[#allocation18 + $0x570] sm:$0xf0]  ;;  %v13484_v4 = vld [vmem:[#allocation18 + $0x870] sm:$0xf] }
 0x6e6   :  { %20151 = vst [vmem:[#allocation60_spill] sm:$0xff] %v18627_v43  ;;  %8450 = vmatmul.bf16.vlgmr.msra.gmra.mxu2 %v20152_v26  ;;  %8537 = vmatmul.bf16.vlgmr.msrb.gmra.mxu3 %v20152_v26  ;;  %v13081_v34 = vor.u32 %v14128_v20, %v13080_v36  ;;  %v13464_v16 = vld [vmem:[#allocation18 + $0x848] sm:$0xf]  ;;  %v14321_v38 = vld [vmem:[#allocation18 + $0x858] sm:$0xf0] }
 0x6e7   :  { %8624 = vmatmul.bf16.vlgmr.msrb.gmra.mxu1 %v20152_v26  ;;  %8711 = vmatmul.bf16.vlgmr.msrb.gmra.mxu0 %v20152_v26 }
 0x6e8   :  { %8732 = vmatpush.bf16.msra.mxu1 %v13101_v22  ;;  %9484 = vmatpush.bf16.msra.mxu0 %v13505_v17  ;;  %v13054_v17 = vld [vmem:[#allocation18 + $0x544] sm:$0xf0] }
 0x6e9   :  { %v7687_v8 = vpop.f32.mrf.mxu2  ;;  %v7774_v53 = vpop.f32.mrf.mxu3  ;;  %8646 = vmatpush.bf16.msra.mxu3 %v13077_v41  ;;  %v13465_v41 = vor.u32 %v14321_v38, %v13464_v16  ;;  %v14113_v16 = vld [vmem:[#allocation18 + $0x4f8] sm:$0xf0] }
 0x6ea   :  { %v18637_v52 = vadd.f32 %v7687_v8, %v18520_v10  ;;  %v18640_v43 = vadd.f32 %v7774_v53, %v18507_v11  ;;  %v14326_v10 = vld [vmem:[#allocation18 + $0x880] sm:$0xf0]  ;;  %v12992_v11 = vld [vmem:[#allocation18 + $0x4b8] sm:$0xf]  ;;  %v14107_v53 = vld [vmem:[#allocation18 + $0x4c8] sm:$0xf0] }
 0x6eb   :  { %v13485_v8 = vor.u32 %v14326_v10, %v13484_v4  ;;  %v12993_v22 = vor.u32 %v14107_v53, %v12992_v11  ;;  %v14316_v11 = vld [vmem:[#allocation18 + $0x830] sm:$0xf0] }
 0x6ec   :  { %v8395_v26 = vpop.f32.mrf.mxu1  ;;  %v18642_v35 = vpop.f32.mrf.mxu0  ;;  %8733 = vmatpush.bf16.msra.mxu1 %v13081_v34  ;;  %v13040_v34 = vld [vmem:[#allocation18 + $0x510] sm:$0xf] }
 0x6ed   :  { %20153 = vst [vmem:[#allocation55_spill] sm:$0xff] %v18642_v35  ;;  %v18645_v61 = vadd.f32 %v8395_v26, %v18529_v56  ;;  %v14123_v35 = vld [vmem:[#allocation18 + $0x548] sm:$0xf0]  ;;  %9485 = vmatpush.bf16.msra.mxu0 %v13485_v8  ;;  %v13057_v26 = vor.u32 %v14120_v23, %v13054_v17  ;;  %8563 = vmatpush.bf16.msrb.mxu2 %v12993_v22  ;;  %v12972_v23 = vld [vmem:[#allocation18 + $0x490] sm:$0xf] }
 0x6ee   :  { %v13061_v51 = vor.u32 %v14123_v35, %v13060_v49  ;;  %v14115_v49 = vld [vmem:[#allocation18 + $0x50c] sm:$0xf]  ;;  %v13034_v35 = vld [vmem:[#allocation18 + $0x51c] sm:$0xf0]  ;;  %v14110_v22 = vld [vmem:[#allocation18 + $0x4e4] sm:$0xf] }
 0x6ef   :  { %8647 = vmatpush.bf16.msra.mxu3 %v13057_v26  ;;  %v20155_v8 = vld [vmem:[#allocation41_spill] sm:$0xff] }
 0x6f0   :  { %8734 = vmatpush.bf16.msra.mxu1 %v13061_v51  ;;  %v14102_v51 = vld [vmem:[#allocation18 + $0x4a0] sm:$0xf0]  ;;  %v13020_v26 = vld [vmem:[#allocation18 + $0x4e8] sm:$0xf] }
 0x6f1   :  { %v7689_v44 = vpop.f32.mrf.mxu2  ;;  %v7776_v56 = vpop.f32.mrf.mxu3  ;;  %9486 = vmatpush.bf16.msra.mxu0 %v13465_v41  ;;  %v12973_v17 = vor.u32 %v14102_v51, %v12972_v23  ;;  %v13000_v23 = vld [vmem:[#allocation18 + $0x4c0] sm:$0xf] }
 0x6f2   :  { %v18648_v5 = vadd.f32 %v7689_v44, %v18531_v19  ;;  %v18651_v36 = vadd.f32 %v7776_v56, %v18523_v37  ;;  %v13037_v37 = vor.u32 %v14115_v49, %v13034_v35  ;;  %v14118_v19 = vld [vmem:[#allocation18 + $0x520] sm:$0xf0]  ;;  %v13444_v44 = vld [vmem:[#allocation18 + $0x820] sm:$0xf]  ;;  %v13014_v56 = vld [vmem:[#allocation18 + $0x4f4] sm:$0xf0]  ;;  %v13021_v49 = vor.u32 %v14113_v16, %v13020_v26 }
 0x6f3   :  { %v13041_v53 = vor.u32 %v14118_v19, %v13040_v34  ;;  %v13424_v35 = vld [vmem:[#allocation18 + $0x7f8] sm:$0xf]  ;;  %8564 = vmatpush.bf16.msrb.mxu2 %v12973_v17  ;;  %v12952_v17 = vld [vmem:[#allocation18 + $0x468] sm:$0xf]  ;;  %v14100_v16 = vld [vmem:[#allocation18 + $0x494] sm:$0xf] }
 0x6f4   :  { %v8398_v20 = vpop.f32.mrf.mxu1  ;;  %v18653_v4 = vpop.f32.mrf.mxu0  ;;  %8648 = vmatpush.bf16.msra.mxu3 %v13037_v37 }
 0x6f5   :  { %20154 = vst [vmem:[#allocation61_spill] sm:$0xff] %v18653_v4  ;;  %v18656_v10 = vadd.f32 %v8398_v20, %v18540_v9  ;;  %v13445_v9 = vor.u32 %v14316_v11, %v13444_v44  ;;  %8735 = vmatpush.bf16.msra.mxu1 %v13041_v53  ;;  %v13017_v20 = vor.u32 %v14110_v22, %v13014_v56  ;;  %v14311_v4 = vld [vmem:[#allocation18 + $0x808] sm:$0xf0]  ;;  %v14105_v53 = vld [vmem:[#allocation18 + $0x4bc] sm:$0xf] }
 0x6f6   :  { %8455 = vmatmul.bf16.gmra.mxu2 %v20155_v8  ;;  %8542 = vmatmul.bf16.gmra.mxu3 %v20155_v8  ;;  %v13425_v37 = vor.u32 %v14311_v4, %v13424_v35  ;;  %v13404_v22 = vld [vmem:[#allocation18 + $0x7d0] sm:$0xf]  ;;  %v14306_v56 = vld [vmem:[#allocation18 + $0x7e0] sm:$0xf0]  ;;  %v14097_v4 = vld [vmem:[#allocation18 + $0x478] sm:$0xf0] }
 0x6f7   :  { %8629 = vmatmul.bf16.gmra.mxu1 %v20155_v8  ;;  %8716 = vmatmul.bf16.gmra.mxu0 %v20155_v8  ;;  %v13405_v26 = vor.u32 %v14306_v56, %v13404_v22  ;;  %v14095_v56 = vld [vmem:[#allocation18 + $0x46c] sm:$0xf] }
 0x6f8   :  { %9487 = vmatpush.bf16.msra.mxu0 %v13445_v9  ;;  %8649 = vmatpush.bf16.msra.mxu3 %v13017_v20  ;;  %v12994_v9 = vld [vmem:[#allocation18 + $0x4cc] sm:$0xf0]  ;;  %v12980_v20 = vld [vmem:[#allocation18 + $0x498] sm:$0xf] }
 0x6f9   :  { %v7692_v38 = vpop.f32.mrf.mxu2  ;;  %v7779_v41 = vpop.f32.mrf.mxu3  ;;  %8736 = vmatpush.bf16.msra.mxu1 %v13021_v49  ;;  %v12997_v51 = vor.u32 %v14105_v53, %v12994_v9  ;;  %v13384_v53 = vld [vmem:[#allocation18 + $0x7a8] sm:$0xf]  ;;  %v14301_v9 = vld [vmem:[#allocation18 + $0x7b8] sm:$0xf0] }
 0x6fa   :  { %v18663_v8 = vadd.f32 %v7692_v38, %v18550_v42  ;;  %v18666_v34 = vadd.f32 %v7779_v41, %v18534_v39  ;;  %v14108_v42 = vld [vmem:[#allocation18 + $0x4d0] sm:$0xf0]  ;;  %v12953_v38 = vor.u32 %v14097_v4, %v12952_v17  ;;  %v12974_v41 = vld [vmem:[#allocation18 + $0x4a4] sm:$0xf0]  ;;  %v12954_v17 = vld [vmem:[#allocation18 + $0x47c] sm:$0xf0] }
 0x6fb   :  { %v13001_v39 = vor.u32 %v14108_v42, %v13000_v23  ;;  %v12957_v4 = vor.u32 %v14095_v56, %v12954_v17 }
 0x6fc   :  { %v8400_v19 = vpop.f32.mrf.mxu1  ;;  %v18668_v44 = vpop.f32.mrf.mxu0  ;;  %9488 = vmatpush.bf16.msra.mxu0 %v13425_v37  ;;  %8650 = vmatpush.bf16.msra.mxu3 %v12997_v51  ;;  %v12977_v37 = vor.u32 %v14100_v16, %v12974_v41  ;;  %v13385_v51 = vor.u32 %v14301_v9, %v13384_v53  ;;  %v13364_v16 = vld [vmem:[#allocation18 + $0x780] sm:$0xf]  ;;  %v14296_v41 = vld [vmem:[#allocation18 + $0x790] sm:$0xf0] }
 0x6fd   :  { %20156 = vst [vmem:[#allocation41_spill] sm:$0xff] %v18668_v44  ;;  %v18671_v11 = vadd.f32 %v8400_v19, %v18559_v15  ;;  %v14103_v15 = vld [vmem:[#allocation18 + $0x4a8] sm:$0xf0]  ;;  %8737 = vmatpush.bf16.msra.mxu1 %v13001_v39  ;;  %8565 = vmatpush.bf16.msrb.mxu2 %v12953_v38  ;;  %v12960_v39 = vld [vmem:[#allocation18 + $0x470] sm:$0xf]  ;;  %v13365_v38 = vor.u32 %v14296_v41, %v13364_v16 }
 0x6fe   :  { %v12981_v19 = vor.u32 %v14103_v15, %v12980_v20  ;;  %v14150_v20 = vld [vmem:[#allocation18 + $0x624] sm:$0xf]  ;;  %v13174_v15 = vld [vmem:[#allocation18 + $0x634] sm:$0xf0] }
 0x700   :  { %9489 = vmatpush.bf16.msra.mxu0 %v13405_v26  ;;  %8651 = vmatpush.bf16.msra.mxu3 %v12977_v37 }
 0x701   :  { %v7694_v35 = vpop.f32.mrf.mxu2  ;;  %v7781_v49 = vpop.f32.mrf.mxu3  ;;  %8738 = vmatpush.bf16.msra.mxu1 %v12981_v19 }
 0x702   :  { %v18674_v44 = vadd.f32 %v7694_v35, %v18561_v62  ;;  %v18677_v23 = vadd.f32 %v7781_v49, %v18553_v28  ;;  %v14098_v62 = vld [vmem:[#allocation18 + $0x480] sm:$0xf0] }
 0x703   :  { %v12961_v28 = vor.u32 %v14098_v62, %v12960_v39 }
 0x704   :  { %v8403_v42 = vpop.f32.mrf.mxu1  ;;  %v18679_v22 = vpop.f32.mrf.mxu0  ;;  %9490 = vmatpush.bf16.msra.mxu0 %v13385_v51  ;;  %8652 = vmatpush.bf16.msra.mxu3 %v12957_v4  ;;  %v13154_v4 = vld [vmem:[#allocation18 + $0x60c] sm:$0xf0] }
 0x705   :  { %20157 = vst [vmem:[#allocation62_spill] sm:$0xff] %v18679_v22  ;;  %v18682_v26 = vadd.f32 %v8403_v42, %v18570_v45  ;;  %v13177_v45 = vor.u32 %v14150_v20, %v13174_v15  ;;  %8739 = vmatpush.bf16.msra.mxu1 %v12961_v28 }
 0x706   :  { %8460 = vmatmul.bf16.gmra.mxu2 %v17792_v2  ;;  %8547 = vmatmul.bf16.gmra.mxu3 %v17792_v2 }
 0x707   :  { %8634 = vmatmul.bf16.gmra.mxu1 %v17792_v2  ;;  %8721 = vmatmul.bf16.gmra.mxu0 %v17792_v2 }
 0x708   :  { %9491 = vmatpush.bf16.msra.mxu0 %v13365_v38  ;;  %8678 = vmatpush.bf16.msra.mxu2 %v13177_v45 }
 0x709   :  { %v7697_v35 = vpop.f32.mrf.mxu2  ;;  %v7784_v49 = vpop.f32.mrf.mxu3 }
 0x70a   :  { %v18689_v37 = vadd.f32 %v7697_v35, %v18580_v25  ;;  %v18692_v19 = vadd.f32 %v7784_v49, %v18564_v31  ;;  %v13134_v49 = vld [vmem:[#allocation18 + $0x5e4] sm:$0xf0] }
 0x70c   :  { %v8405_v53 = vpop.f32.mrf.mxu1  ;;  %v18694_v9 = vpop.f32.mrf.mxu0 }
 0x70d   :  { %20158 = vst [vmem:[#allocation63_spill] sm:$0xff] %v18694_v9  ;;  %v18697_v51 = vadd.f32 %v8405_v53, %v18589_v0  ;;  %v14145_v0 = vld [vmem:[#allocation18 + $0x5fc] sm:$0xf] }
 0x711   :  { %v7699_v2 = vpop.f32.mrf.mxu2  ;;  %v7786_v42 = vpop.f32.mrf.mxu3 }
 0x712   :  { %v18700_v56 = vadd.f32 %v7699_v2, %v18591_v1  ;;  %v18703_v17 = vadd.f32 %v7786_v42, %v18583_v58  ;;  %v13157_v1 = vor.u32 %v14145_v0, %v13154_v4  ;;  %v14153_v2 = vld [vmem:[#allocation18 + $0x638] sm:$0xf0] }
 0x714   :  { %v8408_v25 = vpop.f32.mrf.mxu1  ;;  %v18705_v39 = vpop.f32.mrf.mxu0  ;;  %8679 = vmatpush.bf16.msra.mxu2 %v13157_v1 }
 0x715   :  { %20159 = vst [vmem:[#allocation64_spill] sm:$0xff] %v18705_v39  ;;  %v18708_v31 = vadd.f32 %v8408_v25, %v18600_v24  ;;  %v14344_v39 = vld [vmem:[#allocation18 + $0x914] sm:$0xf] }
 0x716   :  { %8465 = vmatmul.bf16.gmra.mxu2 %v17800_v30  ;;  %8552 = vmatmul.bf16.gmra.mxu3 %v17800_v30 }
 0x717   :  { %8639 = vmatmul.bf16.gmra.mxu1 %v17800_v30  ;;  %8726 = vmatmul.bf16.gmra.mxu0 %v17800_v30 }
 0x719   :  { %v7702_v62 = vpop.f32.mrf.mxu2  ;;  %v7789_v58 = vpop.f32.mrf.mxu3 }
 0x71a   :  { %v18715_v16 = vadd.f32 %v7702_v62, %v18610_v63  ;;  %v18718_v24 = vadd.f32 %v7789_v58, %v18594_v40  ;;  %v14140_v40 = vld [vmem:[#allocation18 + $0x5d4] sm:$0xf] }
 0x71b   :  { %v13137_v53 = vor.u32 %v14140_v40, %v13134_v49  ;;  %v13114_v49 = vld [vmem:[#allocation18 + $0x5bc] sm:$0xf0] }
 0x71c   :  { %v8410_v41 = vpop.f32.mrf.mxu1  ;;  %v18720_v28 = vpop.f32.mrf.mxu0 }
 0x71d   :  { %20160 = vst [vmem:[#allocation65_spill] sm:$0xff] %v18720_v28  ;;  %v18723_v38 = vadd.f32 %v8410_v41, %v18619_v18  ;;  %v20163_v18 = vld [vmem:[#allocation38_spill] sm:$0xff]  ;;  %8680 = vmatpush.bf16.msra.mxu2 %v13137_v53 }
 0x721   :  { %v7704_v20 = vpop.f32.mrf.mxu2  ;;  %v7791_v15 = vpop.f32.mrf.mxu3 }
 0x722   :  { %v18726_v30 = vadd.f32 %v7704_v20, %v18621_v13  ;;  %v18729_v45 = vadd.f32 %v7791_v15, %v18613_v33  ;;  %v13180_v13 = vld [vmem:[#allocation18 + $0x628] sm:$0xf] }
 0x723   :  { %v13181_v42 = vor.u32 %v14153_v2, %v13180_v13  ;;  %v13584_v13 = vld [vmem:[#allocation18 + $0x938] sm:$0xf]  ;;  %v14351_v2 = vld [vmem:[#allocation18 + $0x948] sm:$0xf0] }
 0x724   :  { %v18731_v35 = vpop.f32.mrf.mxu1  ;;  %v18733_v63 = vpop.f32.mrf.mxu0 }
 0x725   :  { %20161 = vst [vmem:[#allocation66_spill] sm:$0xff] %v18731_v35  ;;  %8765 = vmatpush.bf16.msrb.mxu3 %v13181_v42  ;;  %v14349_v42 = vld [vmem:[#allocation18 + $0x93c] sm:$0xf] }
 0x726   :  { %20162 = vst [vmem:[#allocation67_spill] sm:$0xff] %v18733_v63  ;;  %8566 = vmatmul.bf16.vlgmr.msrb.gmra.mxu2 %v18039_v46  ;;  %8653 = vmatmul.bf16.vlgmr.msra.gmra.mxu3 %v18039_v46 }
 0x727   :  { %8740 = vmatmul.bf16.vlgmr.msra.gmra.mxu1 %v18039_v46  ;;  %9492 = vmatmul.bf16.vlgmr.msra.gmra.mxu0 %v20163_v18 }
 0x729   :  { %v7803_v33 = vpop.f32.mrf.mxu2  ;;  %v8422_v25 = vpop.f32.mrf.mxu3 }
 0x72a   :  { %v18740_v0 = vadd.f32 %v7803_v33, %v18640_v43  ;;  %v18743_v4 = vadd.f32 %v8422_v25, %v18630_v3  ;;  %v13585_v33 = vor.u32 %v14351_v2, %v13584_v13  ;;  %v13586_v25 = vld [vmem:[#allocation18 + $0x94c] sm:$0xf0]  ;;  %v14346_v2 = vld [vmem:[#allocation18 + $0x920] sm:$0xf0] }
 0x72b   :  { %v13564_v13 = vld [vmem:[#allocation18 + $0x910] sm:$0xf] }
 0x72c   :  { %v18745_v1 = vpop.f32.mrf.mxu1  ;;  %v18747_v62 = vpop.f32.mrf.mxu0  ;;  %9517 = vmatpush.bf16.msrb.mxu1 %v13585_v33  ;;  %v13565_v9 = vor.u32 %v14346_v2, %v13564_v13 }
 0x72d   :  { %20164 = vst [vmem:[#allocation38_spill] sm:$0xff] %v18745_v1  ;;  %v13312_v1 = vld [vmem:[#allocation18 + $0x710] sm:$0xf] }
 0x72e   :  { %20165 = vst [vmem:[#allocation68_spill] sm:$0xff] %v18747_v62  ;;  %v13589_v62 = vor.u32 %v14349_v42, %v13586_v25  ;;  %v13140_v42 = vld [vmem:[#allocation18 + $0x5d8] sm:$0xf]  ;;  %v14143_v25 = vld [vmem:[#allocation18 + $0x5e8] sm:$0xf0] }
 0x730   :  { %9604 = vmatpush.bf16.msrb.mxu0 %v13589_v62  ;;  %9518 = vmatpush.bf16.msrb.mxu1 %v13565_v9  ;;  %v13546_v62 = vld [vmem:[#allocation18 + $0x8fc] sm:$0xf0]  ;;  %v13120_v9 = vld [vmem:[#allocation18 + $0x5b0] sm:$0xf] }
 0x731   :  { %v7805_v46 = vpop.f32.mrf.mxu2  ;;  %v8424_v58 = vpop.f32.mrf.mxu3 }
 0x732   :  { %v18750_v41 = vadd.f32 %v7805_v46, %v18651_v36  ;;  %v18753_v20 = vadd.f32 %v8424_v58, %v18645_v61  ;;  %v14135_v36 = vld [vmem:[#allocation18 + $0x5ac] sm:$0xf]  ;;  %v20171_v61 = vld [vmem:[#allocation32_spill] sm:$0xff]  ;;  %v14148_v58 = vld [vmem:[#allocation18 + $0x610] sm:$0xf0] }
 0x733   :  { %v13117_v53 = vor.u32 %v14135_v36, %v13114_v49  ;;  %v13160_v46 = vld [vmem:[#allocation18 + $0x600] sm:$0xf] }
 0x734   :  { %v18762_v3 = vpop.f32.mrf.mxu1  ;;  %v18764_v40 = vpop.f32.mrf.mxu0  ;;  %v13161_v63 = vor.u32 %v14148_v58, %v13160_v46  ;;  %v13544_v58 = vld [vmem:[#allocation18 + $0x8e8] sm:$0xf] }
 0x735   :  { %20169 = vst [vmem:[#allocation47_spill] sm:$0xff] %v18762_v3  ;;  %8681 = vmatpush.bf16.msra.mxu2 %v13117_v53  ;;  %v13566_v53 = vld [vmem:[#allocation18 + $0x924] sm:$0xf0]  ;;  %v13244_v3 = vld [vmem:[#allocation18 + $0x690] sm:$0xf] }
 0x736   :  { %20170 = vst [vmem:[#allocation69_spill] sm:$0xff] %v18764_v40  ;;  %8571 = vmatmul.bf16.gmra.mxu2 %v18046_v27  ;;  %8658 = vmatmul.bf16.gmra.mxu3 %v18046_v27  ;;  %v13569_v46 = vor.u32 %v14344_v39, %v13566_v53  ;;  %v14138_v53 = vld [vmem:[#allocation18 + $0x5c0] sm:$0xf0] }
 0x737   :  { %8745 = vmatmul.bf16.gmra.mxu1 %v18046_v27  ;;  %13610 = vmatmul.msk.bf16.gmra.mxu0 %vm18758_vm5, %v20171_v61 }
 0x738   :  { %8766 = vmatpush.bf16.msrb.mxu3 %v13161_v63  ;;  %9605 = vmatpush.bf16.msrb.mxu0 %v13569_v46  ;;  %v14336_v46 = vld [vmem:[#allocation18 + $0x8d0] sm:$0xf0] }
 0x739   :  { %v7808_v15 = vpop.f32.mrf.mxu2  ;;  %v8427_v40 = vpop.f32.mrf.mxu3 }
 0x73a   :  { %v18773_v28 = vadd.f32 %v7808_v15, %v18666_v34  ;;  %v18776_v27 = vadd.f32 %v8427_v40, %v18656_v10  ;;  %v13141_v34 = vor.u32 %v14143_v25, %v13140_v42  ;;  %v14341_v15 = vld [vmem:[#allocation18 + $0x8f8] sm:$0xf0]  ;;  %v14339_v10 = vld [vmem:[#allocation18 + $0x8ec] sm:$0xf]  ;;  %v13524_v42 = vld [vmem:[#allocation18 + $0x8c0] sm:$0xf]  ;;  %v13121_v25 = vor.u32 %v14138_v53, %v13120_v9 }
 0x73b   :  { %v13545_v40 = vor.u32 %v14341_v15, %v13544_v58  ;;  %v13549_v63 = vor.u32 %v14339_v10, %v13546_v62  ;;  %v13344_v15 = vld [vmem:[#allocation18 + $0x758] sm:$0xf]  ;;  %v14291_v10 = vld [vmem:[#allocation18 + $0x768] sm:$0xf0] }
 0x73c   :  { %v18778_v36 = vpop.f32.mrf.mxu1  ;;  %v18780_v49 = vpop.f32.mrf.mxu0  ;;  %8767 = vmatpush.bf16.msrb.mxu3 %v13141_v34  ;;  %v13526_v34 = vld [vmem:[#allocation18 + $0x8d4] sm:$0xf0] }
 0x73d   :  { %20172 = vst [vmem:[#allocation32_spill] sm:$0xff] %v18778_v36  ;;  %9519 = vmatpush.bf16.msrb.mxu1 %v13545_v40  ;;  %9606 = vmatpush.bf16.msrb.mxu0 %v13549_v63  ;;  %v13345_v40 = vor.u32 %v14291_v10, %v13344_v15  ;;  %v6597_v53 = vld [vmem:[#allocation2 + $0xe0] sm:$0x1]  ;;  %v20179_v10 = vld [vmem:[#allocation48_spill] sm:$0xff] }
 0x73e   :  { %20173 = vst [vmem:[#allocation70_spill] sm:$0xff] %v18780_v49 }
 0x73f   :  { %9455 = vmatpush.bf16.msrb.mxu2 %v13345_v40  ;;  %v20180_v40 = vrot.slane %v20179_v10, 1 }
 0x740   :  { %8768 = vmatpush.bf16.msrb.mxu3 %v13121_v25  ;;  %v6672_v25 = vrot.slane %v6597_v53, 1 }
 0x741   :  { %v7810_v33 = vpop.f32.mrf.mxu2  ;;  %v8429_v49 = vpop.f32.mrf.mxu3 }
 0x742   :  { %v18783_v22 = vadd.f32 %v7810_v33, %v18677_v23  ;;  %v18786_v13 = vadd.f32 %v8429_v49, %v18671_v11  ;;  %v14334_v23 = vld [vmem:[#allocation18 + $0x8c4] sm:$0xf]  ;;  %v20176_v11 = vld [vmem:[#allocation30_spill] sm:$0xff]  ;;  %v13525_v49 = vor.u32 %v14336_v46, %v13524_v42 }
 0x743   :  { %v13529_v58 = vor.u32 %v14334_v23, %v13526_v34  ;;  %v13324_v23 = vld [vmem:[#allocation18 + $0x730] sm:$0xf]  ;;  %v14286_v34 = vld [vmem:[#allocation18 + $0x740] sm:$0xf0] }
 0x744   :  { %v18788_v39 = vpop.f32.mrf.mxu1  ;;  %v18790_v2 = vpop.f32.mrf.mxu0  ;;  %9520 = vmatpush.bf16.msrb.mxu1 %v13525_v49  ;;  %v13325_v15 = vor.u32 %v14286_v34, %v13324_v23 }
 0x745   :  { %20174 = vst [vmem:[#allocation71_spill] sm:$0xff] %v18788_v39  ;;  %9607 = vmatpush.bf16.msrb.mxu0 %v13529_v58 }
 0x746   :  { %20175 = vst [vmem:[#allocation72_spill] sm:$0xff] %v18790_v2  ;;  %8576 = vmatmul.bf16.gmra.mxu2 %v18050_v12  ;;  %8663 = vmatmul.bf16.gmra.mxu3 %v18050_v12 }
 0x747   :  { %8750 = vmatmul.bf16.gmra.mxu1 %v18050_v12  ;;  %9502 = vmatmul.bf16.gmra.mxu0 %v20176_v11  ;;  %v6594_v12 = vld [vmem:[#allocation2 + $0xc8] sm:$0xff] }
 0x748   :  { %v6666_v46 = vrot.slane %v6594_v12, 1  ;;  %9456 = vmatpush.bf16.msrb.mxu2 %v13325_v15  ;;  %v20181_v12 = vld [vmem:[#allocation49_spill] sm:$0xff] }
 0x749   :  { %v7813_v62 = vpop.f32.mrf.mxu2  ;;  %v8432_v63 = vpop.f32.mrf.mxu3  ;;  %vm284_vm6 = vcmp.lt.s32.totalorder %v20181_v12, 31  ;;  %v14319_v12 = vld [vmem:[#allocation18 + $0x84c] sm:$0xf] }
 0x74a   :  { %v18797_v33 = vadd.f32 %v7813_v62, %v18692_v19  ;;  %v18800_v9 = vadd.f32 %v8432_v63, %v18682_v26  ;;  %v6667_v62 = vsel %vm6624_vm9, %v20180_v40, %v6666_v46  ;;  %v6673_v63 = vsel %vm6624_vm9, %v6666_v46, %v6672_v25  ;;  %vm18820_vm7 = vmpackc.low %vm284_vm6, %vm14946_vm3  ;;  %v13304_v46 = vld [vmem:[#allocation18 + $0x708] sm:$0xf]  ;;  %v14281_v25 = vld [vmem:[#allocation18 + $0x718] sm:$0xf0] }
 0x74b   :  { %v13305_v34 = vor.u32 %v14281_v25, %v13304_v46 }
 0x74c   :  { %v18802_v2 = vpop.f32.mrf.mxu1  ;;  %v18804_v42 = vpop.f32.mrf.mxu0 }
 0x74d   :  { %20177 = vst [vmem:[#allocation30_spill] sm:$0xff] %v18802_v2  ;;  %9457 = vmatpush.bf16.msrb.mxu2 %v13305_v34 }
 0x74e   :  { %20178 = vst [vmem:[#allocation73_spill] sm:$0xff] %v18804_v42 }
 0x751   :  { %v7815_v49 = vpop.f32.mrf.mxu2  ;;  %v8434_v58 = vpop.f32.mrf.mxu3 }
 0x752   :  { %v18807_v19 = vadd.f32 %v7815_v49, %v18703_v17  ;;  %v18810_v26 = vadd.f32 %v8434_v58, %v18697_v51  ;;  %v18828_v51 = vpack.c.bf16 %v6673_v63, %v6667_v62  ;;  %v13284_v63 = vld [vmem:[#allocation18 + $0x6e0] sm:$0xf] }
 0x754   :  { %v18824_v17 = vpop.f32.mrf.mxu1  ;;  %v18826_v23 = vpop.f32.mrf.mxu0 }
 0x755   :  { %20184 = vst [vmem:[#allocation48_spill] sm:$0xff] %v18824_v17 }
 0x756   :  { %20185 = vst [vmem:[#allocation49_spill] sm:$0xff] %v18826_v23  ;;  %8581 = vmatmul.bf16.gmra.mxu2 %v18053_v59  ;;  %8668 = vmatmul.bf16.gmra.mxu3 %v18053_v59 }
 0x757   :  { %8755 = vmatmul.bf16.gmra.mxu1 %v18053_v59  ;;  %13613 = vmatmul.msk.bf16.gmra.mxu0 %vm18820_vm7, %v18828_v51  ;;  %v14276_v59 = vld [vmem:[#allocation18 + $0x6f0] sm:$0xf0] }
 0x758   :  { %v13285_v23 = vor.u32 %v14276_v59, %v13284_v63  ;;  %v14292_v63 = vld [vmem:[#allocation18 + $0x770] sm:$0xf0]  ;;  %v14290_v59 = vld [vmem:[#allocation18 + $0x764] sm:$0xf] }
 0x759   :  { %v7818_v15 = vpop.f32.mrf.mxu2  ;;  %v8437_v49 = vpop.f32.mrf.mxu3 }
 0x75a   :  { %v18837_v58 = vadd.f32 %v7818_v15, %v18718_v24  ;;  %v18840_v10 = vadd.f32 %v8437_v49, %v18708_v31  ;;  %9458 = vmatpush.bf16.msrb.mxu2 %v13285_v23  ;;  %v7717_v31 = vadd.f32 %v18398_v50, %v18637_v52  ;;  %v14289_v52 = vld [vmem:[#allocation18 + $0x75c] sm:$0xf]  ;;  %v13352_v23 = vld [vmem:[#allocation18 + $0x760] sm:$0xf] }
 0x75c   :  { %v18842_v40 = vpop.f32.mrf.mxu1  ;;  %v18844_v62 = vpop.f32.mrf.mxu0 }
 0x75d   :  { %20186 = vst [vmem:[#allocation74_spill] sm:$0xff] %v18842_v40  ;;  %v20190_v40 = vld [vmem:[#allocation45_spill] sm:$0xff] }
 0x75e   :  { %20187 = vst [vmem:[#allocation75_spill] sm:$0xff] %v18844_v62 }
 0x761   :  { %v7820_v42 = vpop.f32.mrf.mxu2  ;;  %v8439_v17 = vpop.f32.mrf.mxu3 }
 0x762   :  { %v18847_v46 = vadd.f32 %v7820_v42, %v18729_v45  ;;  %v18850_v25 = vadd.f32 %v8439_v17, %v18723_v38  ;;  %v13264_v45 = vld [vmem:[#allocation18 + $0x6b8] sm:$0xf]  ;;  %v14271_v42 = vld [vmem:[#allocation18 + $0x6c8] sm:$0xf0]  ;;  %v13346_v17 = vld [vmem:[#allocation18 + $0x76c] sm:$0xf0] }
 0x763   :  { %v20189_v38 = vld [vmem:[#allocation33_spill] sm:$0xff]  ;;  %v13265_v50 = vor.u32 %v14271_v42, %v13264_v45 }
 0x764   :  { %20188 = vst [vmem:[#allocation76_spill] sm:$0xff] %v18850_v25  ;;  %v8625_v24 = vpop.f32.mrf.mxu1  ;;  %v8712_v34 = vpop.f32.mrf.mxu0  ;;  %v20192_v45 = vld [vmem:[#allocation53_spill] sm:$0xff] }
 0x765   :  { %v18854_v15 = vadd.f32 %v8625_v24, %v7717_v31  ;;  %v18857_v49 = vadd.f32 %v8712_v34, %v18740_v0  ;;  %v13349_v0 = vor.u32 %v14289_v52, %v13346_v17  ;;  %v13354_v31 = vld [vmem:[#allocation18 + $0x774] sm:$0xf0]  ;;  %9459 = vmatpush.bf16.msrb.mxu2 %v13265_v50  ;;  %v7719_v42 = vadd.f32 %v20192_v45, %v18648_v5  ;;  %v14266_v5 = vld [vmem:[#allocation18 + $0x6a0] sm:$0xf0] }
 0x766   :  { %13194 = vmatmul.msk.bf16.vlgmr.msra.gmra.mxu2 %vm199_vm0, %v18156_v57  ;;  %13198 = vmatmul.msk.bf16.vlgmr.msrb.gmra.mxu3 %vm199_vm0, %v18156_v57  ;;  %v13353_v57 = vor.u32 %v14292_v63, %v13352_v23  ;;  %v13357_v62 = vor.u32 %v14290_v59, %v13354_v31  ;;  %v14284_v23 = vld [vmem:[#allocation18 + $0x734] sm:$0xf]  ;;  %v13326_v63 = vld [vmem:[#allocation18 + $0x744] sm:$0xf0]  ;;  %v14287_v31 = vld [vmem:[#allocation18 + $0x748] sm:$0xf0] }
 0x767   :  { %13614 = vmatmul.msk.bf16.vlgmr.msrb.gmra.mxu1 %vm199_vm0, %v20189_v38  ;;  %13630 = vmatmul.msk.bf16.vlgmr.msrb.gmra.mxu0 %vm199_vm0, %v20189_v38  ;;  %v13329_v59 = vor.u32 %v14284_v23, %v13326_v63 }
 0x768   :  { %9542 = vmatpush.bf16.msra.mxu3 %v13349_v0  ;;  %9629 = vmatpush.bf16.msra.mxu1 %v13353_v57  ;;  %v14279_v57 = vld [vmem:[#allocation18 + $0x70c] sm:$0xf] }
 0x769   :  { %v8451_v24 = vpop.f32.mrf.mxu2  ;;  %v8538_v34 = vpop.f32.mrf.mxu3  ;;  %9716 = vmatpush.bf16.msra.mxu0 %v13357_v62 }
 0x76a   :  { %v18868_v2 = vadd.f32 %v8451_v24, %v20190_v40  ;;  %v18871_v39 = vadd.f32 %v8538_v34, %v18526_v14  ;;  %v13332_v40 = vld [vmem:[#allocation18 + $0x738] sm:$0xf]  ;;  %v14285_v14 = vld [vmem:[#allocation18 + $0x73c] sm:$0xf]  ;;  %v13334_v24 = vld [vmem:[#allocation18 + $0x74c] sm:$0xf0] }
 0x76b   :  { %v13333_v0 = vor.u32 %v14287_v31, %v13332_v40  ;;  %v13337_v34 = vor.u32 %v14285_v14, %v13334_v24  ;;  %v14280_v40 = vld [vmem:[#allocation18 + $0x714] sm:$0xf]  ;;  %v13314_v31 = vld [vmem:[#allocation18 + $0x724] sm:$0xf0]  ;;  %v20194_v14 = vld [vmem:[#allocation36_spill] sm:$0xff] }
 0x76c   :  { %20191 = vst [vmem:[#allocation33_spill] sm:$0xff] %v18868_v2  ;;  %v8627_v52 = vpop.f32.mrf.mxu1  ;;  %v8714_v17 = vpop.f32.mrf.mxu0  ;;  %9543 = vmatpush.bf16.msra.mxu3 %v13329_v59  ;;  %v7722_v24 = vadd.f32 %v20194_v14, %v18663_v8  ;;  %v13317_v2 = vor.u32 %v14280_v40, %v13314_v31  ;;  %v13292_v8 = vld [vmem:[#allocation18 + $0x6e8] sm:$0xf]  ;;  %v13266_v14 = vld [vmem:[#allocation18 + $0x6cc] sm:$0xf0] }
 0x76d   :  { %v18875_v36 = vadd.f32 %v8627_v52, %v7719_v42  ;;  %v18878_v50 = vadd.f32 %v8714_v17, %v18750_v41  ;;  %v13245_v42 = vor.u32 %v14266_v5, %v13244_v3  ;;  %v13306_v52 = vld [vmem:[#allocation18 + $0x71c] sm:$0xf0]  ;;  %v14282_v41 = vld [vmem:[#allocation18 + $0x720] sm:$0xf0]  ;;  %v20193_v17 = vld [vmem:[#allocation54_spill] sm:$0xff]  ;;  %9630 = vmatpush.bf16.msra.mxu1 %v13333_v0  ;;  %9717 = vmatpush.bf16.msra.mxu0 %v13337_v34 }
 0x76e   :  { %v13309_v63 = vor.u32 %v14279_v57, %v13306_v52  ;;  %v13313_v5 = vor.u32 %v14282_v41, %v13312_v1  ;;  %v13286_v0 = vld [vmem:[#allocation18 + $0x6f4] sm:$0xf0]  ;;  %v20195_v34 = vld [vmem:[#allocation34_spill] sm:$0xff]  ;;  %v14277_v57 = vld [vmem:[#allocation18 + $0x6f8] sm:$0xf0] }
 0x76f   :  { %9460 = vmatpush.bf16.msrb.mxu2 %v13245_v42  ;;  %v13293_v42 = vor.u32 %v14277_v57, %v13292_v8  ;;  %v13224_v41 = vld [vmem:[#allocation18 + $0x668] sm:$0xf]  ;;  %v20197_v8 = vld [vmem:[#allocation46_spill] sm:$0xff] }
 0x770   :  { %9544 = vmatpush.bf16.msra.mxu3 %v13309_v63  ;;  %v7724_v57 = vadd.f32 %v20197_v8, %v18674_v44  ;;  %v13254_v44 = vld [vmem:[#allocation18 + $0x6ac] sm:$0xf0]  ;;  %v13226_v8 = vld [vmem:[#allocation18 + $0x67c] sm:$0xf0] }
 0x771   :  { %v8453_v62 = vpop.f32.mrf.mxu2  ;;  %v8540_v45 = vpop.f32.mrf.mxu3  ;;  %9631 = vmatpush.bf16.msra.mxu1 %v13313_v5  ;;  %9718 = vmatpush.bf16.msra.mxu0 %v13317_v2  ;;  %v14270_v2 = vld [vmem:[#allocation18 + $0x6c4] sm:$0xf] }
 0x772   :  { %v18881_v35 = vadd.f32 %v8453_v62, %v20193_v17  ;;  %v18884_v23 = vadd.f32 %v8540_v45, %v18537_v7  ;;  %v14274_v7 = vld [vmem:[#allocation18 + $0x6e4] sm:$0xf]  ;;  %v13294_v45 = vld [vmem:[#allocation18 + $0x6fc] sm:$0xf0]  ;;  %v14261_v17 = vld [vmem:[#allocation18 + $0x678] sm:$0xf0] }
 0x773   :  { %v13289_v1 = vor.u32 %v14274_v7, %v13286_v0  ;;  %v13225_v31 = vor.u32 %v14261_v17, %v13224_v41  ;;  %v13274_v0 = vld [vmem:[#allocation18 + $0x6d4] sm:$0xf0] }
 0x774   :  { %v8630_v59 = vpop.f32.mrf.mxu1  ;;  %v8717_v3 = vpop.f32.mrf.mxu0  ;;  %v13277_v41 = vor.u32 %v14270_v2, %v13274_v0 }
 0x775   :  { %v18888_v25 = vadd.f32 %v8630_v59, %v7722_v24  ;;  %v18891_v62 = vadd.f32 %v8717_v3, %v18773_v28  ;;  %v14275_v28 = vld [vmem:[#allocation18 + $0x6ec] sm:$0xf]  ;;  %9545 = vmatpush.bf16.msra.mxu3 %v13289_v1  ;;  %v13272_v24 = vld [vmem:[#allocation18 + $0x6c0] sm:$0xf]  ;;  %v14272_v59 = vld [vmem:[#allocation18 + $0x6d0] sm:$0xf0]  ;;  %9461 = vmatpush.bf16.msrb.mxu2 %v13225_v31 }
 0x776   :  { %13195 = vmatmul.msk.bf16.gmra.mxu2 %vm199_vm0, %v18162_v29  ;;  %13199 = vmatmul.msk.bf16.gmra.mxu3 %vm199_vm0, %v18162_v29  ;;  %v13297_v52 = vor.u32 %v14275_v28, %v13294_v45  ;;  %v14269_v29 = vld [vmem:[#allocation18 + $0x6bc] sm:$0xf]  ;;  %v13273_v1 = vor.u32 %v14272_v59, %v13272_v24  ;;  %v14256_v24 = vld [vmem:[#allocation18 + $0x650] sm:$0xf0]  ;;  %v14259_v59 = vld [vmem:[#allocation18 + $0x66c] sm:$0xf] }
 0x777   :  { %13615 = vmatmul.msk.bf16.gmra.mxu1 %vm199_vm0, %v20195_v34  ;;  %13631 = vmatmul.msk.bf16.gmra.mxu0 %vm199_vm0, %v20195_v34  ;;  %v13269_v5 = vor.u32 %v14269_v29, %v13266_v14  ;;  %v13246_v29 = vld [vmem:[#allocation18 + $0x6a4] sm:$0xf0]  ;;  %v14267_v14 = vld [vmem:[#allocation18 + $0x6a8] sm:$0xf0] }
 0x778   :  { %9632 = vmatpush.bf16.msra.mxu1 %v13293_v42  ;;  %9719 = vmatpush.bf16.msra.mxu0 %v13297_v52  ;;  %v13204_v52 = vld [vmem:[#allocation18 + $0x640] sm:$0xf] }
 0x779   :  { %v8456_v63 = vpop.f32.mrf.mxu2  ;;  %v8543_v40 = vpop.f32.mrf.mxu3  ;;  %9546 = vmatpush.bf16.msra.mxu3 %v13269_v5  ;;  %v13232_v5 = vld [vmem:[#allocation18 + $0x670] sm:$0xf] }
 0x77a   :  { %v18902_v3 = vadd.f32 %v8456_v63, %v18439_v6  ;;  %v18905_v7 = vadd.f32 %v8543_v40, %v18556_v54  ;;  %v14264_v54 = vld [vmem:[#allocation18 + $0x694] sm:$0xf]  ;;  %v13252_v63 = vld [vmem:[#allocation18 + $0x698] sm:$0xf] }
 0x77b   :  { %v13249_v40 = vor.u32 %v14264_v54, %v13246_v29  ;;  %v13253_v31 = vor.u32 %v14267_v14, %v13252_v63  ;;  %v13234_v54 = vld [vmem:[#allocation18 + $0x684] sm:$0xf0] }
 0x77c   :  { %20196 = vst [vmem:[#allocation45_spill] sm:$0xff] %v18902_v3  ;;  %v8632_v28 = vpop.f32.mrf.mxu1  ;;  %v8719_v45 = vpop.f32.mrf.mxu0  ;;  %v14265_v3 = vld [vmem:[#allocation18 + $0x69c] sm:$0xf]  ;;  %9633 = vmatpush.bf16.msra.mxu1 %v13273_v1  ;;  %9720 = vmatpush.bf16.msra.mxu0 %v13277_v41  ;;  %v13229_v1 = vor.u32 %v14259_v59, %v13226_v8  ;;  %v14260_v41 = vld [vmem:[#allocation18 + $0x674] sm:$0xf] }
 0x77d   :  { %v18909_v17 = vadd.f32 %v8632_v28, %v7724_v57  ;;  %v18912_v6 = vadd.f32 %v8719_v45, %v18783_v22  ;;  %v13257_v42 = vor.u32 %v14265_v3, %v13254_v44  ;;  %9547 = vmatpush.bf16.msra.mxu3 %v13249_v40  ;;  %v13205_v22 = vor.u32 %v14256_v24, %v13204_v52  ;;  %v14262_v57 = vld [vmem:[#allocation18 + $0x680] sm:$0xf0]  ;;  %v13212_v52 = vld [vmem:[#allocation18 + $0x648] sm:$0xf]  ;;  %v14255_v24 = vld [vmem:[#allocation18 + $0x64c] sm:$0xf] }
 0x77e   :  { %v7727_v3 = vadd.f32 %v18454_v32, %v18689_v37  ;;  %v13233_v40 = vor.u32 %v14262_v57, %v13232_v5  ;;  %v13237_v14 = vor.u32 %v14260_v41, %v13234_v54  ;;  %v6598_v32 = vld [vmem:[#allocation2 + $0xe8] sm:$0x1]  ;;  %v13206_v37 = vld [vmem:[#allocation18 + $0x654] sm:$0xf0]  ;;  %v13506_v8 = vld [vmem:[#allocation18 + $0x8ac] sm:$0xf0] }
 0x77f   :  { %9462 = vmatpush.bf16.msrb.mxu2 %v13205_v22  ;;  %v13214_v59 = vld [vmem:[#allocation18 + $0x65c] sm:$0xf0] }
 0x780   :  { %9634 = vmatpush.bf16.msra.mxu1 %v13253_v31  ;;  %9721 = vmatpush.bf16.msra.mxu0 %v13257_v42  ;;  %v20198_v31 = vld [vmem:[#allocation52_spill] sm:$0xff]  ;;  %v13217_v22 = vor.u32 %v14255_v24, %v13214_v59 }
 0x781   :  { %v8458_v2 = vpop.f32.mrf.mxu2  ;;  %v8545_v0 = vpop.f32.mrf.mxu3  ;;  %9548 = vmatpush.bf16.msra.mxu3 %v13229_v1  ;;  %v20201_v59 = vld [vmem:[#allocation40_spill] sm:$0xff] }
 0x782   :  { %v18915_v28 = vadd.f32 %v8458_v2, %v18450_v21  ;;  %v18918_v45 = vadd.f32 %v8545_v0, %v18567_v48  ;;  %v14254_v48 = vld [vmem:[#allocation18 + $0x644] sm:$0xf]  ;;  %v6595_v2 = vld [vmem:[#allocation2 + $0xd0] sm:$0xff] }
 0x783   :  { %v13209_v42 = vor.u32 %v14254_v48, %v13206_v37 }
 0x784   :  { %v8635_v29 = vpop.f32.mrf.mxu1  ;;  %v8722_v63 = vpop.f32.mrf.mxu0  ;;  %9635 = vmatpush.bf16.msra.mxu1 %v13233_v40  ;;  %9722 = vmatpush.bf16.msra.mxu0 %v13237_v14  ;;  %v6674_v40 = vrot.slane %v6598_v32, 1 }
 0x785   :  { %v18922_v44 = vadd.f32 %v8635_v29, %v7727_v3  ;;  %v18925_v21 = vadd.f32 %v8722_v63, %v18797_v33  ;;  %v14257_v33 = vld [vmem:[#allocation18 + $0x658] sm:$0xf0]  ;;  %9549 = vmatpush.bf16.msra.mxu3 %v13209_v42  ;;  %v20200_v3 = vld [vmem:[#allocation37_spill] sm:$0xff]  ;;  %v6668_v63 = vrot.slane %v6595_v2, 1  ;;  %v20203_v2 = vld [vmem:[#allocation58_spill] sm:$0xff] }
 0x786   :  { %13196 = vmatmul.msk.bf16.gmra.mxu2 %vm199_vm0, %v18168_v60  ;;  %13200 = vmatmul.msk.bf16.gmra.mxu3 %vm199_vm0, %v18168_v60  ;;  %v13213_v0 = vor.u32 %v14257_v33, %v13212_v52  ;;  %v14329_v60 = vld [vmem:[#allocation18 + $0x89c] sm:$0xf]  ;;  %v7729_v29 = vadd.f32 %v20200_v3, %v18700_v56  ;;  %v13486_v42 = vld [vmem:[#allocation18 + $0x884] sm:$0xf0] }
 0x787   :  { %13616 = vmatmul.msk.bf16.gmra.mxu1 %vm199_vm0, %v20198_v31  ;;  %13632 = vmatmul.msk.bf16.gmra.mxu0 %vm199_vm0, %v20198_v31  ;;  %v13509_v1 = vor.u32 %v14329_v60, %v13506_v8 }
 0x788   :  { %9636 = vmatpush.bf16.msra.mxu1 %v13213_v0  ;;  %9723 = vmatpush.bf16.msra.mxu0 %v13217_v22  ;;  %v20204_v0 = vld [vmem:[#allocation43_spill] sm:$0xff] }
 0x789   :  { %v8461_v5 = vpop.f32.mrf.mxu2  ;;  %v8548_v57 = vpop.f32.mrf.mxu3  ;;  %9571 = vmatpush.bf16.msra.mxu2 %v13509_v1  ;;  %v20205_v22 = vrot.slane %v20204_v0, 1 }
 0x78a   :  { %v18936_v41 = vadd.f32 %v8461_v5, %v18469_v55  ;;  %v18939_v54 = vadd.f32 %v8548_v57, %v18586_v47  ;;  %v14324_v55 = vld [vmem:[#allocation18 + $0x874] sm:$0xf]  ;;  %v6675_v47 = vsel %vm6624_vm9, %v6668_v63, %v6674_v40 }
 0x78b   :  { %v13489_v33 = vor.u32 %v14324_v55, %v13486_v42  ;;  %v6669_v8 = vsel %vm6624_vm9, %v20205_v22, %v6668_v63  ;;  %v20206_v5 = vld [vmem:[#allocation31_spill] sm:$0xff]  ;;  %v13466_v63 = vld [vmem:[#allocation18 + $0x85c] sm:$0xf0] }
 0x78c   :  { %20199 = vst [vmem:[#allocation53_spill] sm:$0xff] %v18936_v41  ;;  %v8637_v14 = vpop.f32.mrf.mxu1  ;;  %v8724_v48 = vpop.f32.mrf.mxu0  ;;  %v7732_v57 = vadd.f32 %v20206_v5, %v18715_v16  ;;  %v13469_v16 = vor.u32 %v14319_v12, %v13466_v63  ;;  %v20208_v42 = vld [vmem:[#allocation56_spill] sm:$0xff]  ;;  %v13446_v5 = vld [vmem:[#allocation18 + $0x834] sm:$0xf0] }
 0x78d   :  { %v18943_v37 = vadd.f32 %v8637_v14, %v7729_v29  ;;  %v18946_v52 = vadd.f32 %v8724_v48, %v18807_v19  ;;  %9572 = vmatpush.bf16.msra.mxu2 %v13489_v33  ;;  %v6723_v19 = vsel %vm284_vm6, %v6675_v47, 0.0  ;;  %v20207_v48 = vld [vmem:[#allocation39_spill] sm:$0xff]  ;;  %v20210_v47 = vld [vmem:[#allocation57_spill] sm:$0xff]  ;;  %v20214_v63 = vld [vmem:[#allocation60_spill] sm:$0xff] }
 0x78e   :  { %v18967_v14 = vpack.c.bf16 %v6723_v19, %v6669_v8  ;;  %v14314_v19 = vld [vmem:[#allocation18 + $0x824] sm:$0xf] }
 0x791   :  { %v8463_v24 = vpop.f32.mrf.mxu2  ;;  %v8550_v56 = vpop.f32.mrf.mxu3  ;;  %9573 = vmatpush.bf16.msra.mxu2 %v13469_v16 }
 0x792   :  { %v18950_v32 = vadd.f32 %v8463_v24, %v20201_v59  ;;  %v18953_v60 = vadd.f32 %v8550_v56, %v20203_v2  ;;  %v20211_v56 = vld [vmem:[#allocation51_spill] sm:$0xff] }
 0x793   :  { %v7734_v59 = vadd.f32 %v20211_v56, %v18726_v30  ;;  %v13512_v56 = vld [vmem:[#allocation18 + $0x8a0] sm:$0xf] }
 0x794   :  { %20202 = vst [vmem:[#allocation54_spill] sm:$0xff] %v18950_v32  ;;  %v8640_v1 = vpop.f32.mrf.mxu1  ;;  %v8727_v3 = vpop.f32.mrf.mxu0 }
 0x795   :  { %v18962_v29 = vadd.f32 %v8640_v1, %v7732_v57  ;;  %v18965_v40 = vadd.f32 %v8727_v3, %v18837_v58  ;;  %v13449_v57 = vor.u32 %v14314_v19, %v13446_v5  ;;  %v13514_v19 = vld [vmem:[#allocation18 + $0x8b4] sm:$0xf0]  ;;  %v13520_v5 = vld [vmem:[#allocation18 + $0x8a8] sm:$0xf] }
 0x796   :  { %13197 = vmatmul.msk.bf16.gmra.mxu2 %vm199_vm0, %v20207_v48  ;;  %13201 = vmatmul.msk.bf16.gmra.mxu3 %vm199_vm0, %v20207_v48  ;;  %v20212_v48 = vld [vmem:[#allocation42_spill] sm:$0xff] }
 0x797   :  { %13617 = vmatmul.msk.bf16.gmra.mxu1 %vm199_vm0, %v18967_v14  ;;  %13633 = vmatmul.msk.bf16.gmra.mxu0 %vm199_vm0, %v18967_v14 }
 0x798   :  { %9574 = vmatpush.bf16.msra.mxu2 %v13449_v57  ;;  %v14333_v57 = vld [vmem:[#allocation18 + $0x8b8] sm:$0xf0] }
 0x799   :  { %v8466_v55 = vpop.f32.mrf.mxu2  ;;  %v8553_v58 = vpop.f32.mrf.mxu3 }
 0x79a   :  { %v18978_v33 = vadd.f32 %v8466_v55, %v20208_v42  ;;  %v18981_v24 = vadd.f32 %v8553_v58, %v20210_v47  ;;  %v20215_v58 = vld [vmem:[#allocation50_spill] sm:$0xff] }
 0x79b   :  { %v13426_v42 = vld [vmem:[#allocation18 + $0x80c] sm:$0xf0] }
 0x79c   :  { %20209 = vst [vmem:[#allocation36_spill] sm:$0xff] %v18978_v33  ;;  %v8642_v2 = vpop.f32.mrf.mxu1  ;;  %v8729_v0 = vpop.f32.mrf.mxu0 }
 0x79d   :  { %v18985_v22 = vadd.f32 %v8642_v2, %v7734_v59  ;;  %v18988_v8 = vadd.f32 %v8729_v0, %v18847_v46  ;;  %v14309_v46 = vld [vmem:[#allocation18 + $0x7fc] sm:$0xf]  ;;  %v14332_v59 = vld [vmem:[#allocation18 + $0x8b0] sm:$0xf0]  ;;  %v14330_v2 = vld [vmem:[#allocation18 + $0x8a4] sm:$0xf] }
 0x79e   :  { %v13429_v47 = vor.u32 %v14309_v46, %v13426_v42  ;;  %v13513_v0 = vor.u32 %v14332_v59, %v13512_v56  ;;  %v13492_v56 = vld [vmem:[#allocation18 + $0x878] sm:$0xf]  ;;  %v14327_v59 = vld [vmem:[#allocation18 + $0x888] sm:$0xf0] }
 0x79f   :  { %v13493_v33 = vor.u32 %v14327_v59, %v13492_v56  ;;  %v13480_v56 = vld [vmem:[#allocation18 + $0x858] sm:$0xf]  ;;  %v14323_v59 = vld [vmem:[#allocation18 + $0x868] sm:$0xf0] }
 0x7a0   :  { %9575 = vmatpush.bf16.msra.mxu2 %v13429_v47  ;;  %9658 = vmatpush.bf16.msrb.mxu3 %v13513_v0  ;;  %v13494_v47 = vld [vmem:[#allocation18 + $0x88c] sm:$0xf0] }
 0x7a1   :  { %v8468_v1 = vpop.f32.mrf.mxu2  ;;  %v8555_v3 = vpop.f32.mrf.mxu3 }
 0x7a2   :  { %v18991_v12 = vadd.f32 %v8468_v1, %v20212_v48  ;;  %v18994_v16 = vadd.f32 %v8555_v3, %v20214_v63  ;;  %v13517_v3 = vor.u32 %v14330_v2, %v13514_v19  ;;  %v13521_v48 = vor.u32 %v14333_v57, %v13520_v5  ;;  %v13500_v2 = vld [vmem:[#allocation18 + $0x880] sm:$0xf]  ;;  %v14328_v19 = vld [vmem:[#allocation18 + $0x890] sm:$0xf0] }
 0x7a3   :  { %v14304_v57 = vld [vmem:[#allocation18 + $0x7d4] sm:$0xf] }
 0x7a4   :  { %20213 = vst [vmem:[#allocation34_spill] sm:$0xff] %v18991_v12  ;;  %v8741_v30 = vpop.f32.mrf.mxu1  ;;  %9745 = vmatpush.bf16.msrb.mxu1 %v13517_v3  ;;  %9832 = vmatpush.bf16.msrb.mxu0 %v13521_v48  ;;  %v14325_v12 = vld [vmem:[#allocation18 + $0x87c] sm:$0xf]  ;;  %v14320_v3 = vld [vmem:[#allocation18 + $0x854] sm:$0xf] }
 0x7a5   :  { %v18997_v55 = vadd.f32 %v8741_v30, %v18857_v49  ;;  %v13497_v5 = vor.u32 %v14325_v12, %v13494_v47  ;;  %9659 = vmatpush.bf16.msrb.mxu3 %v13493_v33  ;;  %v13474_v48 = vld [vmem:[#allocation18 + $0x864] sm:$0xf0]  ;;  %v13481_v33 = vor.u32 %v14323_v59, %v13480_v56 }
 0x7a6   :  { %9463 = vmatmul.bf16.vlgmr.msrb.gmra.mxu2 %v20215_v58  ;;  %9550 = vmatmul.bf16.vlgmr.msra.gmra.mxu3 %v20215_v58  ;;  %v13477_v32 = vor.u32 %v14320_v3, %v13474_v48  ;;  %v14312_v48 = vld [vmem:[#allocation18 + $0x810] sm:$0xf0] }
 0x7a7   :  { %9637 = vmatmul.bf16.vlgmr.msra.gmra.mxu1 %v20215_v58  ;;  %9724 = vmatmul.bf16.vlgmr.msra.gmra.mxu0 %v20215_v58 }
 0x7a8   :  { %9746 = vmatpush.bf16.msrb.mxu1 %v13497_v5  ;;  %v14317_v5 = vld [vmem:[#allocation18 + $0x838] sm:$0xf0] }
 0x7a9   :  { %v8567_v49 = vpop.f32.mrf.mxu2  ;;  %v8654_v1 = vpop.f32.mrf.mxu3 }
 0x7aa   :  { %v19004_v63 = vadd.f32 %v8567_v49, %v18871_v39  ;;  %v19007_v30 = vadd.f32 %v8654_v1, %v18854_v15  ;;  %v13501_v39 = vor.u32 %v14328_v19, %v13500_v2  ;;  %v13406_v49 = vld [vmem:[#allocation18 + $0x7e4] sm:$0xf0]  ;;  %v13472_v15 = vld [vmem:[#allocation18 + $0x850] sm:$0xf]  ;;  %v14322_v1 = vld [vmem:[#allocation18 + $0x860] sm:$0xf0] }
 0x7ab   :  { %v13409_v0 = vor.u32 %v14304_v57, %v13406_v49  ;;  %v13452_v19 = vld [vmem:[#allocation18 + $0x828] sm:$0xf]  ;;  %v14318_v49 = vld [vmem:[#allocation18 + $0x840] sm:$0xf0] }
 0x7ac   :  { %20216 = vst [vmem:[#allocation46_spill] sm:$0xff] %v19004_v63  ;;  %v8743_v46 = vpop.f32.mrf.mxu1  ;;  %9833 = vmatpush.bf16.msrb.mxu0 %v13501_v39  ;;  %9747 = vmatpush.bf16.msrb.mxu1 %v13477_v32  ;;  %v14315_v39 = vld [vmem:[#allocation18 + $0x82c] sm:$0xf] }
 0x7ad   :  { %v19010_v42 = vadd.f32 %v8743_v46, %v18878_v50  ;;  %v13473_v46 = vor.u32 %v14322_v1, %v13472_v15  ;;  %9576 = vmatpush.bf16.msra.mxu2 %v13409_v0  ;;  %v20218_v57 = vld [vmem:[#allocation29_spill] sm:$0xff]  ;;  %v13386_v0 = vld [vmem:[#allocation18 + $0x7bc] sm:$0xf0] }
 0x7ae   :  { %v14299_v15 = vld [vmem:[#allocation18 + $0x7ac] sm:$0xf]  ;;  %v13432_v1 = vld [vmem:[#allocation18 + $0x800] sm:$0xf] }
 0x7af   :  { %9660 = vmatpush.bf16.msrb.mxu3 %v13473_v46  ;;  %v13389_v3 = vor.u32 %v14299_v15, %v13386_v0  ;;  %v13434_v46 = vld [vmem:[#allocation18 + $0x814] sm:$0xf0]  ;;  %v13414_v0 = vld [vmem:[#allocation18 + $0x7ec] sm:$0xf0] }
 0x7b0   :  { %9834 = vmatpush.bf16.msrb.mxu0 %v13481_v33  ;;  %v13433_v33 = vor.u32 %v14312_v48, %v13432_v1  ;;  %v13420_v1 = vld [vmem:[#allocation18 + $0x7e0] sm:$0xf] }
 0x7b1   :  { %v8569_v63 = vpop.f32.mrf.mxu2  ;;  %v8656_v50 = vpop.f32.mrf.mxu3  ;;  %9577 = vmatpush.bf16.msra.mxu2 %v13389_v3  ;;  %v13392_v3 = vld [vmem:[#allocation18 + $0x7b0] sm:$0xf] }
 0x7b2   :  { %v19013_v41 = vadd.f32 %v8569_v63, %v18884_v23  ;;  %v19016_v12 = vadd.f32 %v8656_v50, %v18875_v36  ;;  %v13453_v36 = vor.u32 %v14317_v5, %v13452_v19  ;;  %v13454_v23 = vld [vmem:[#allocation18 + $0x83c] sm:$0xf0]  ;;  %v13460_v63 = vld [vmem:[#allocation18 + $0x830] sm:$0xf]  ;;  %v14310_v50 = vld [vmem:[#allocation18 + $0x804] sm:$0xf] }
 0x7b3   :  { %v13461_v32 = vor.u32 %v14318_v49, %v13460_v63  ;;  %v13440_v19 = vld [vmem:[#allocation18 + $0x808] sm:$0xf]  ;;  %v14313_v5 = vld [vmem:[#allocation18 + $0x818] sm:$0xf0]  ;;  %v13412_v49 = vld [vmem:[#allocation18 + $0x7d8] sm:$0xf] }
 0x7b4   :  { %20217 = vst [vmem:[#allocation52_spill] sm:$0xff] %v19013_v41  ;;  %v8746_v47 = vpop.f32.mrf.mxu1  ;;  %9661 = vmatpush.bf16.msrb.mxu3 %v13453_v36  ;;  %v13441_v36 = vor.u32 %v14313_v5, %v13440_v19 }
 0x7b5   :  { %v19019_v2 = vadd.f32 %v8746_v47, %v18891_v62  ;;  %v13457_v62 = vor.u32 %v14315_v39, %v13454_v23  ;;  %9835 = vmatpush.bf16.msrb.mxu0 %v13461_v32  ;;  %v13437_v47 = vor.u32 %v14310_v50, %v13434_v46  ;;  %v14305_v32 = vld [vmem:[#allocation18 + $0x7dc] sm:$0xf]  ;;  %v13366_v46 = vld [vmem:[#allocation18 + $0x794] sm:$0xf0] }
 0x7b6   :  { %13604 = vmatmul.msk.bf16.gmra.mxu2 %vm18758_vm5, %v20218_v57  ;;  %13620 = vmatmul.msk.bf16.gmra.mxu3 %vm18758_vm5, %v20218_v57  ;;  %v13417_v48 = vor.u32 %v14305_v32, %v13414_v0 }
 0x7b7   :  { %13636 = vmatmul.msk.bf16.gmra.mxu1 %vm18758_vm5, %v20218_v57  ;;  %13652 = vmatmul.msk.bf16.gmra.mxu0 %vm18758_vm5, %v20218_v57 }
 0x7b8   :  { %9748 = vmatpush.bf16.msrb.mxu1 %v13457_v62  ;;  %9662 = vmatpush.bf16.msrb.mxu3 %v13433_v33  ;;  %v14307_v62 = vld [vmem:[#allocation18 + $0x7e8] sm:$0xf0]  ;;  %v14300_v33 = vld [vmem:[#allocation18 + $0x7b4] sm:$0xf] }
 0x7b9   :  { %v8572_v56 = vpop.f32.mrf.mxu2  ;;  %v8659_v59 = vpop.f32.mrf.mxu3  ;;  %9836 = vmatpush.bf16.msrb.mxu0 %v13441_v36  ;;  %v13413_v15 = vor.u32 %v14307_v62, %v13412_v49  ;;  %v14303_v49 = vld [vmem:[#allocation18 + $0x7c8] sm:$0xf0] }
 0x7ba   :  { %v19034_v41 = vadd.f32 %v8572_v56, %v18905_v7  ;;  %v19037_v39 = vadd.f32 %v8659_v59, %v18888_v25  ;;  %v14308_v7 = vld [vmem:[#allocation18 + $0x7f0] sm:$0xf0]  ;;  %v14294_v25 = vld [vmem:[#allocation18 + $0x784] sm:$0xf] }
 0x7bb   :  { %v13421_v50 = vor.u32 %v14308_v7, %v13420_v1  ;;  %v13369_v56 = vor.u32 %v14294_v25, %v13366_v46  ;;  %v14302_v59 = vld [vmem:[#allocation18 + $0x7c0] sm:$0xf0]  ;;  %v13372_v1 = vld [vmem:[#allocation18 + $0x788] sm:$0xf]  ;;  %v14297_v7 = vld [vmem:[#allocation18 + $0x798] sm:$0xf0] }
 0x7bc   :  { %v8748_v23 = vpop.f32.mrf.mxu1  ;;  %9749 = vmatpush.bf16.msrb.mxu1 %v13437_v47  ;;  %9663 = vmatpush.bf16.msrb.mxu3 %v13413_v15  ;;  %v13393_v5 = vor.u32 %v14302_v59, %v13392_v3  ;;  %v14295_v25 = vld [vmem:[#allocation18 + $0x78c] sm:$0xf]  ;;  %v13374_v46 = vld [vmem:[#allocation18 + $0x79c] sm:$0xf0]  ;;  %v13380_v3 = vld [vmem:[#allocation18 + $0x790] sm:$0xf] }
 0x7bd   :  { %v19040_v63 = vadd.f32 %v8748_v23, %v18912_v6  ;;  %v13394_v6 = vld [vmem:[#allocation18 + $0x7c4] sm:$0xf0]  ;;  %9837 = vmatpush.bf16.msrb.mxu0 %v13421_v50  ;;  %v13400_v23 = vld [vmem:[#allocation18 + $0x7b8] sm:$0xf]  ;;  %9578 = vmatpush.bf16.msra.mxu2 %v13369_v56  ;;  %v13373_v50 = vor.u32 %v14297_v7, %v13372_v1 }
 0x7be   :  { %v13397_v36 = vor.u32 %v14300_v33, %v13394_v6  ;;  %v13401_v15 = vor.u32 %v14303_v49, %v13400_v23  ;;  %v20219_v59 = vld [vmem:[#allocation35_spill] sm:$0xff]  ;;  %v13592_v33 = vld [vmem:[#allocation18 + $0x940] sm:$0xf]  ;;  %v6596_v49 = vld [vmem:[#allocation2 + $0xd8] sm:$0x1] }
 0x7bf   :  { %v14352_v6 = vld [vmem:[#allocation18 + $0x950] sm:$0xf0]  ;;  %v6593_v23 = vld [vmem:[#allocation2 + $0xc0] sm:$0xff]  ;;  %v6670_v7 = vrot.slane %v6596_v49, 1 }
 0x7c0   :  { %9750 = vmatpush.bf16.msrb.mxu1 %v13417_v48  ;;  %9664 = vmatpush.bf16.msrb.mxu3 %v13393_v5  ;;  %v6664_v1 = vrot.slane %v6593_v23, 1 }
 0x7c1   :  { %v8574_v19 = vpop.f32.mrf.mxu2  ;;  %v8661_v47 = vpop.f32.mrf.mxu3  ;;  %9838 = vmatpush.bf16.msrb.mxu0 %v13401_v15 }
 0x7c2   :  { %v19043_v62 = vadd.f32 %v8574_v19, %v18918_v45  ;;  %v19046_v32 = vadd.f32 %v8661_v47, %v18909_v17  ;;  %v14298_v45 = vld [vmem:[#allocation18 + $0x7a0] sm:$0xf0]  ;;  %v13377_v17 = vor.u32 %v14295_v25, %v13374_v46  ;;  %v19064_v25 = vpop.f32.mrf.mxu0 }
 0x7c3   :  { %v13381_v56 = vor.u32 %v14298_v45, %v13380_v3  ;;  %v20220_v3 = vld [vmem:[#allocation44_spill] sm:$0xff] }
 0x7c4   :  { %v8751_v0 = vpop.f32.mrf.mxu1  ;;  %9751 = vmatpush.bf16.msrb.mxu1 %v13397_v36  ;;  %9665 = vmatpush.bf16.msrb.mxu3 %v13373_v50  ;;  %v20221_v45 = vrot.slane %v20220_v3, 1 }
 0x7c5   :  { %v19049_v48 = vadd.f32 %v8751_v0, %v18925_v21  ;;  %v13593_v21 = vor.u32 %v14352_v6, %v13592_v33  ;;  %9839 = vmatpush.bf16.msrb.mxu0 %v13381_v56 }
 0x7c6   :  { %9473 = vmatmul.bf16.gmra.mxu2 %v20219_v59  ;;  %9560 = vmatmul.bf16.gmra.mxu3 %v20219_v59 }
 0x7c7   :  { %9647 = vmatmul.bf16.gmra.mxu1 %v20219_v59  ;;  %9734 = vmatmul.bf16.gmra.mxu0 %v20219_v59 }
 0x7c8   :  { %9752 = vmatpush.bf16.msrb.mxu1 %v13377_v17  ;;  %9691 = vmatpush.bf16.msrb.mxu2 %v13593_v21  ;;  %v13572_v21 = vld [vmem:[#allocation18 + $0x918] sm:$0xf] }
 0x7c9   :  { %v8577_v19 = vpop.f32.mrf.mxu2  ;;  %v8664_v47 = vpop.f32.mrf.mxu3 }
 0x7ca   :  { %v19056_v5 = vadd.f32 %v8577_v19, %v18939_v54  ;;  %v19059_v36 = vadd.f32 %v8664_v47, %v18922_v44  ;;  %v6665_v54 = vsel %vm6624_vm9, %v20221_v45, %v6664_v1  ;;  %v6671_v44 = vsel %vm6624_vm9, %v6664_v1, %v6670_v7  ;;  %v19093_v47 = vpop.f32.mrf.mxu0 }
 0x7cb   :  { %v19076_v33 = vpack.c.bf16 %v6671_v44, %v6665_v54  ;;  %v14350_v54 = vld [vmem:[#allocation18 + $0x944] sm:$0xf]  ;;  %v13594_v44 = vld [vmem:[#allocation18 + $0x954] sm:$0xf0] }
 0x7cc   :  { %v8753_v15 = vpop.f32.mrf.mxu1 }
 0x7cd   :  { %v19062_v0 = vadd.f32 %v8753_v15, %v18946_v52 }
 0x7d1   :  { %v8579_v50 = vpop.f32.mrf.mxu2  ;;  %v8666_v46 = vpop.f32.mrf.mxu3 }
 0x7d2   :  { %v19071_v17 = vadd.f32 %v8579_v50, %v18953_v60  ;;  %v19074_v56 = vadd.f32 %v8666_v46, %v18943_v37  ;;  %v14347_v60 = vld [vmem:[#allocation18 + $0x928] sm:$0xf0]  ;;  %v19110_v45 = vpop.f32.mrf.mxu0 }
 0x7d3   :  { %v13573_v37 = vor.u32 %v14347_v60, %v13572_v21 }
 0x7d4   :  { %v8756_v52 = vpop.f32.mrf.mxu1 }
 0x7d5   :  { %v19079_v6 = vadd.f32 %v8756_v52, %v18965_v40  ;;  %9692 = vmatpush.bf16.msrb.mxu2 %v13573_v37 }
 0x7d6   :  { %13607 = vmatmul.msk.bf16.gmra.mxu2 %vm18820_vm7, %v19076_v33  ;;  %13623 = vmatmul.msk.bf16.gmra.mxu3 %vm18820_vm7, %v19076_v33 }
 0x7d7   :  { %13639 = vmatmul.msk.bf16.gmra.mxu1 %vm18820_vm7, %v19076_v33  ;;  %13655 = vmatmul.msk.bf16.gmra.mxu0 %vm18820_vm7, %v19076_v33 }
 0x7d9   :  { %v8582_v40 = vpop.f32.mrf.mxu2  ;;  %v8669_v19 = vpop.f32.mrf.mxu3 }
 0x7da   :  { %v19096_v23 = vadd.f32 %v8582_v40, %v18981_v24  ;;  %v19099_v49 = vadd.f32 %v8669_v19, %v18962_v29  ;;  %v13552_v29 = vld [vmem:[#allocation18 + $0x8f0] sm:$0xf]  ;;  %v14342_v24 = vld [vmem:[#allocation18 + $0x900] sm:$0xf0]  ;;  %v19124_v40 = vpop.f32.mrf.mxu0 }
 0x7dc   :  { %20222 = vst [vmem:[#allocation37_spill] sm:$0xff] %v19096_v23  ;;  %v8758_v15 = vpop.f32.mrf.mxu1 }
 0x7dd   :  { %v19102_v1 = vadd.f32 %v8758_v15, %v18988_v8  ;;  %v13553_v8 = vor.u32 %v14342_v24, %v13552_v29  ;;  %v14353_v29 = vld [vmem:[#allocation18 + $0x958] sm:$0xf0] }
 0x7de   :  { %v14345_v24 = vld [vmem:[#allocation18 + $0x91c] sm:$0xf] }
 0x7df   :  { %9693 = vmatpush.bf16.msrb.mxu2 %v13553_v8 }
 0x7e1   :  { %v8584_v7 = vpop.f32.mrf.mxu2  ;;  %v8671_v50 = vpop.f32.mrf.mxu3 }
 0x7e2   :  { %v19105_v46 = vadd.f32 %v8584_v7, %v18994_v16  ;;  %v19108_v3 = vadd.f32 %v8671_v50, %v18985_v22  ;;  %v13597_v16 = vor.u32 %v14350_v54, %v13594_v44  ;;  %v19146_v8 = vpop.f32.mrf.mxu0  ;;  %v13574_v44 = vld [vmem:[#allocation18 + $0x92c] sm:$0xf0] }
 0x7e4   :  { %20223 = vst [vmem:[#allocation40_spill] sm:$0xff] %v19105_v46  ;;  %9778 = vmatpush.bf16.msra.mxu3 %v13597_v16  ;;  %v19122_v37 = vpop.f32.mrf.mxu1  ;;  %v13560_v46 = vld [vmem:[#allocation18 + $0x8f8] sm:$0xf] }
 0x7e6   :  { %9579 = vmatmul.bf16.vlgmr.msra.gmra.mxu2 %v20163_v18  ;;  %9666 = vmatmul.bf16.vlgmr.msrb.gmra.mxu3 %v20163_v18 }
 0x7e7   :  { %9753 = vmatmul.bf16.vlgmr.msrb.gmra.mxu1 %v20163_v18  ;;  %9840 = vmatmul.bf16.vlgmr.msrb.gmra.mxu0 %v20163_v18 }
 0x7e9   :  { %v8683_v52 = vpop.f32.mrf.mxu2  ;;  %v8770_v21 = vpop.f32.mrf.mxu3 }
 0x7ea   :  { %v19117_v22 = vadd.f32 %v8683_v52, %v19007_v30  ;;  %v19120_v60 = vadd.f32 %v8770_v21, %v18997_v55  ;;  %v13532_v55 = vld [vmem:[#allocation18 + $0x8c8] sm:$0xf]  ;;  %v14337_v30 = vld [vmem:[#allocation18 + $0x8d8] sm:$0xf0]  ;;  %v13577_v21 = vor.u32 %v14345_v24, %v13574_v44  ;;  %v19162_v44 = vpop.f32.mrf.mxu0 }
 0x7ec   :  { %20224 = vst [vmem:[#allocation58_spill] sm:$0xff] %v19120_v60  ;;  %v19132_v50 = vpop.f32.mrf.mxu1  ;;  %9779 = vmatpush.bf16.msra.mxu3 %v13577_v21  ;;  %v13554_v60 = vld [vmem:[#allocation18 + $0x904] sm:$0xf0]  ;;  %v13540_v21 = vld [vmem:[#allocation18 + $0x8d0] sm:$0xf] }
 0x7f1   :  { %v8685_v19 = vpop.f32.mrf.mxu2  ;;  %v8772_v18 = vpop.f32.mrf.mxu3 }
 0x7f2   :  { %v19127_v15 = vadd.f32 %v8685_v19, %v19016_v12  ;;  %v19130_v7 = vadd.f32 %v8772_v18, %v19010_v42  ;;  %v13533_v42 = vor.u32 %v14337_v30, %v13532_v55  ;;  %v13600_v12 = vld [vmem:[#allocation18 + $0x948] sm:$0xf]  ;;  %v14348_v55 = vld [vmem:[#allocation18 + $0x930] sm:$0xf0] }
 0x7f3   :  { %v13601_v54 = vor.u32 %v14353_v29, %v13600_v12  ;;  %v14340_v30 = vld [vmem:[#allocation18 + $0x8f4] sm:$0xf]  ;;  %v14343_v12 = vld [vmem:[#allocation18 + $0x908] sm:$0xf0] }
 0x7f4   :  { %20225 = vst [vmem:[#allocation43_spill] sm:$0xff] %v19130_v7  ;;  %9694 = vmatpush.bf16.msrb.mxu2 %v13533_v42  ;;  %v13557_v29 = vor.u32 %v14340_v30, %v13554_v60  ;;  %v13561_v23 = vor.u32 %v14343_v12, %v13560_v46  ;;  %v19154_v42 = vpop.f32.mrf.mxu1 }
 0x7f5   :  { %9865 = vmatpush.bf16.msra.mxu1 %v13601_v54 }
 0x7f6   :  { %13626 = vmatmul.msk.bf16.gmra.mxu2 %vm18758_vm5, %v20171_v61  ;;  %13642 = vmatmul.msk.bf16.gmra.mxu3 %vm18758_vm5, %v20171_v61 }
 0x7f7   :  { %13658 = vmatmul.msk.bf16.gmra.mxu1 %vm18758_vm5, %v20171_v61  ;;  %13674 = vmatmul.msk.bf16.gmra.mxu0 %vm18758_vm5, %v20171_v61  ;;  %v13580_v61 = vld [vmem:[#allocation18 + $0x920] sm:$0xf] }
 0x7f8   :  { %v13581_v7 = vor.u32 %v14348_v55, %v13580_v61  ;;  %9780 = vmatpush.bf16.msra.mxu3 %v13557_v29  ;;  %v13360_v61 = vld [vmem:[#allocation18 + $0x768] sm:$0xf]  ;;  %v14293_v55 = vld [vmem:[#allocation18 + $0x778] sm:$0xf0] }
 0x7f9   :  { %v8688_v16 = vpop.f32.mrf.mxu2  ;;  %v8775_v52 = vpop.f32.mrf.mxu3 }
 0x7fa   :  { %v19149_v19 = vadd.f32 %v8688_v16, %v19037_v39  ;;  %v19152_v18 = vadd.f32 %v8775_v52, %v19019_v2  ;;  %9866 = vmatpush.bf16.msra.mxu1 %v13581_v7  ;;  %v14335_v16 = vld [vmem:[#allocation18 + $0x8cc] sm:$0xf]  ;;  %v13534_v52 = vld [vmem:[#allocation18 + $0x8dc] sm:$0xf0]  ;;  %v14338_v7 = vld [vmem:[#allocation18 + $0x8e0] sm:$0xf0] }
 0x7fb   :  { %v13537_v60 = vor.u32 %v14335_v16, %v13534_v52  ;;  %v13541_v46 = vor.u32 %v14338_v7, %v13540_v21  ;;  %v14288_v16 = vld [vmem:[#allocation18 + $0x750] sm:$0xf0] }
 0x7fc   :  { %v19168_v30 = vpop.f32.mrf.mxu1 }
 0x7fd   :  { %9781 = vmatpush.bf16.msra.mxu3 %v13537_v60 }
 0x7fe   :  { %9867 = vmatpush.bf16.msra.mxu1 %v13561_v23 }
 0x801   :  { %v8690_v39 = vpop.f32.mrf.mxu2  ;;  %v8777_v24 = vpop.f32.mrf.mxu3 }
 0x802   :  { %v19157_v2 = vadd.f32 %v8690_v39, %v19046_v32  ;;  %v19160_v54 = vadd.f32 %v8777_v24, %v19040_v63  ;;  %v13361_v63 = vor.u32 %v14293_v55, %v13360_v61  ;;  %9868 = vmatpush.bf16.msra.mxu1 %v13541_v46  ;;  %v19176_v39 = vpop.f32.mrf.mxu0  ;;  %v13340_v24 = vld [vmem:[#allocation18 + $0x740] sm:$0xf] }
 0x803   :  { %v13341_v21 = vor.u32 %v14288_v16, %v13340_v24  ;;  %v13300_v24 = vld [vmem:[#allocation18 + $0x6f0] sm:$0xf]  ;;  %v14278_v16 = vld [vmem:[#allocation18 + $0x700] sm:$0xf0] }
 0x804   :  { %9803 = vmatpush.bf16.msra.mxu2 %v13361_v63  ;;  %v19184_v46 = vpop.f32.mrf.mxu1 }
 0x806   :  { %9589 = vmatmul.bf16.gmra.mxu2 %v20176_v11  ;;  %9676 = vmatmul.bf16.gmra.mxu3 %v20176_v11 }
 0x807   :  { %9763 = vmatmul.bf16.gmra.mxu1 %v20176_v11  ;;  %9850 = vmatmul.bf16.gmra.mxu0 %v20176_v11 }
 0x808   :  { %9804 = vmatpush.bf16.msra.mxu2 %v13341_v21  ;;  %v13301_v21 = vor.u32 %v14278_v16, %v13300_v24  ;;  %v13260_v24 = vld [vmem:[#allocation18 + $0x6a0] sm:$0xf]  ;;  %v14268_v16 = vld [vmem:[#allocation18 + $0x6b0] sm:$0xf0] }
 0x809   :  { %v8693_v32 = vpop.f32.mrf.mxu2  ;;  %v8780_v23 = vpop.f32.mrf.mxu3 }
 0x80a   :  { %v19171_v12 = vadd.f32 %v8693_v32, %v19059_v36  ;;  %v19174_v29 = vadd.f32 %v8780_v23, %v19049_v48  ;;  %v19192_v48 = vpop.f32.mrf.mxu0  ;;  %v13320_v36 = vld [vmem:[#allocation18 + $0x718] sm:$0xf] }
 0x80c   :  { %v19206_v23 = vpop.f32.mrf.mxu1 }
 0x811   :  { %v8695_v52 = vpop.f32.mrf.mxu2  ;;  %v8782_v11 = vpop.f32.mrf.mxu3 }
 0x812   :  { %v19179_v60 = vadd.f32 %v8695_v52, %v19074_v56  ;;  %v19182_v7 = vadd.f32 %v8782_v11, %v19062_v0  ;;  %v14283_v0 = vld [vmem:[#allocation18 + $0x728] sm:$0xf0] }
 0x813   :  { %v13321_v55 = vor.u32 %v14283_v0, %v13320_v36  ;;  %v14273_v36 = vld [vmem:[#allocation18 + $0x6d8] sm:$0xf0] }
 0x814   :  { %20226 = vst [vmem:[#allocation31_spill] sm:$0xff] %v19182_v7 }
 0x815   :  { %9805 = vmatpush.bf16.msra.mxu2 %v13321_v55 }
 0x816   :  { %13629 = vmatmul.msk.bf16.gmra.mxu2 %vm18820_vm7, %v18828_v51  ;;  %13645 = vmatmul.msk.bf16.gmra.mxu3 %vm18820_vm7, %v18828_v51 }
 0x817   :  { %13661 = vmatmul.msk.bf16.gmra.mxu1 %vm18820_vm7, %v18828_v51  ;;  %13677 = vmatmul.msk.bf16.gmra.mxu0 %vm18820_vm7, %v18828_v51 }
 0x819   :  { %v8698_v56 = vpop.f32.mrf.mxu2  ;;  %v8785_v61 = vpop.f32.mrf.mxu3  ;;  %9806 = vmatpush.bf16.msra.mxu2 %v13301_v21 }
 0x81a   :  { %v19201_v63 = vadd.f32 %v8698_v56, %v19099_v49  ;;  %v19204_v32 = vadd.f32 %v8785_v61, %v19079_v6  ;;  %v19220_v6 = vpop.f32.mrf.mxu1  ;;  %v13280_v49 = vld [vmem:[#allocation18 + $0x6c8] sm:$0xf] }
 0x81b   :  { %v13281_v56 = vor.u32 %v14273_v36, %v13280_v49 }
 0x81d   :  { %9807 = vmatpush.bf16.msra.mxu2 %v13281_v56  ;;  %v9609_v56 = vpop.f32.mrf.mxu0 }
 0x821   :  { %v8700_v52 = vpop.f32.mrf.mxu2  ;;  %v8787_v11 = vpop.f32.mrf.mxu3 }
 0x822   :  { %v19209_v51 = vadd.f32 %v8700_v52, %v19108_v3  ;;  %v19212_v7 = vadd.f32 %v8787_v11, %v19102_v1  ;;  %v13261_v11 = vor.u32 %v14268_v16, %v13260_v24  ;;  %v9539_v21 = vpop.f32.mrf.mxu1  ;;  %v14258_v24 = vld [vmem:[#allocation18 + $0x660] sm:$0xf0] }
 0x824   :  { %20227 = vst [vmem:[#allocation39_spill] sm:$0xff] %v19212_v7  ;;  %9808 = vmatpush.bf16.msra.mxu2 %v13261_v11 }
 0x826   :  { %13646 = vmatmul.msk.bf16.vlgmr.msrb.gmra.mxu2 %vm199_vm0, %v20189_v38  ;;  %13662 = vmatmul.msk.bf16.vlgmr.msra.gmra.mxu3 %vm199_vm0, %v20189_v38 }
 0x827   :  { %13678 = vmatmul.msk.bf16.vlgmr.msra.gmra.mxu1 %vm199_vm0, %v20189_v38 }
 0x829   :  { %v9464_v0 = vpop.f32.mrf.mxu2  ;;  %v19222_v3 = vpop.f32.mrf.mxu3 }
 0x82a   :  { %v9494_v1 = vadd.f32 %v19064_v25, %v9464_v0 }
 0x82c   :  { %v9523_v61 = vadd.f32 %v19122_v37, %v9494_v1  ;;  %v14263_v37 = vld [vmem:[#allocation18 + $0x688] sm:$0xf0] }
 0x82e   :  { %v19227_v55 = vadd.f32 %v9523_v61, %v18743_v4  ;;  %v13240_v4 = vld [vmem:[#allocation18 + $0x678] sm:$0xf]  ;;  %v13220_v61 = vld [vmem:[#allocation18 + $0x650] sm:$0xf] }
 0x831   :  { %v9466_v52 = vpop.f32.mrf.mxu2  ;;  %v19229_v38 = vpop.f32.mrf.mxu3 }
 0x832   :  { %v9496_v7 = vadd.f32 %v19093_v47, %v9466_v52  ;;  %v13241_v47 = vor.u32 %v14263_v37, %v13240_v4  ;;  %v13221_v52 = vor.u32 %v14258_v24, %v13220_v61 }
 0x834   :  { %v9525_v49 = vadd.f32 %v19132_v50, %v9496_v7  ;;  %9809 = vmatpush.bf16.msra.mxu2 %v13241_v47 }
 0x836   :  { %v19234_v25 = vadd.f32 %v9525_v49, %v18753_v20  ;;  %13647 = vmatmul.msk.bf16.gmra.mxu2 %vm199_vm0, %v20195_v34  ;;  %13663 = vmatmul.msk.bf16.gmra.mxu3 %vm199_vm0, %v20195_v34  ;;  %v19245_v20 = vpop.f32.mrf.mxu1  ;;  %v9611_v49 = vpop.f32.mrf.mxu0 }
 0x837   :  { %13679 = vmatmul.msk.bf16.gmra.mxu1 %vm199_vm0, %v20195_v34 }
 0x838   :  { %9810 = vmatpush.bf16.msra.mxu2 %v13221_v52 }
 0x839   :  { %v9469_v36 = vpop.f32.mrf.mxu2  ;;  %v19242_v0 = vpop.f32.mrf.mxu3 }
 0x83a   :  { %v9499_v50 = vadd.f32 %v19110_v45, %v9469_v36 }
 0x83c   :  { %v9528_v7 = vadd.f32 %v19154_v42, %v9499_v50 }
 0x83e   :  { %v19249_v1 = vadd.f32 %v9528_v7, %v18776_v27  ;;  %v19255_v4 = vpop.f32.mrf.mxu1  ;;  %v9614_v36 = vpop.f32.mrf.mxu0 }
 0x841   :  { %v9471_v34 = vpop.f32.mrf.mxu2  ;;  %v19251_v16 = vpop.f32.mrf.mxu3 }
 0x842   :  { %v9501_v11 = vadd.f32 %v19124_v40, %v9471_v34 }
 0x844   :  { %v9530_v45 = vadd.f32 %v19168_v30, %v9501_v11 }
 0x846   :  { %v19258_v37 = vadd.f32 %v9530_v45, %v18786_v13  ;;  %13648 = vmatmul.msk.bf16.gmra.mxu2 %vm199_vm0, %v20198_v31  ;;  %13664 = vmatmul.msk.bf16.gmra.mxu3 %vm199_vm0, %v20198_v31  ;;  %v19273_v47 = vpop.f32.mrf.mxu1 }
 0x847   :  { %13680 = vmatmul.msk.bf16.gmra.mxu1 %vm199_vm0, %v20198_v31 }
 0x848   :  { %20228 = vst [vmem:[#allocation56_spill] sm:$0xff] %v19258_v37 }
 0x849   :  { %v9474_v27 = vpop.f32.mrf.mxu2  ;;  %v19266_v40 = vpop.f32.mrf.mxu3 }
 0x84a   :  { %v9504_v42 = vadd.f32 %v19146_v8, %v9474_v27 }
 0x84c   :  { %v9533_v30 = vadd.f32 %v19184_v46, %v9504_v42 }
 0x84e   :  { %v19271_v13 = vadd.f32 %v9533_v30, %v18800_v9  ;;  %v9616_v9 = vpop.f32.mrf.mxu0  ;;  %v19290_v34 = vpop.f32.mrf.mxu1 }
 0x850   :  { %20229 = vst [vmem:[#allocation57_spill] sm:$0xff] %v19271_v13 }
 0x851   :  { %v9476_v50 = vpop.f32.mrf.mxu2  ;;  %v19275_v7 = vpop.f32.mrf.mxu3 }
 0x852   :  { %v9506_v61 = vadd.f32 %v19162_v44, %v9476_v50 }
 0x854   :  { %v9535_v31 = vadd.f32 %v19206_v23, %v9506_v61 }
 0x856   :  { %v19280_v24 = vadd.f32 %v9535_v31, %v18810_v26  ;;  %13649 = vmatmul.msk.bf16.gmra.mxu2 %vm199_vm0, %v18967_v14  ;;  %13665 = vmatmul.msk.bf16.gmra.mxu3 %vm199_vm0, %v18967_v14  ;;  %v9619_v45 = vpop.f32.mrf.mxu0  ;;  %v19302_v42 = vpop.f32.mrf.mxu1 }
 0x857   :  { %13681 = vmatmul.msk.bf16.gmra.mxu1 %vm199_vm0, %v18967_v14  ;;  %v19300_v14 = vld [vmem:[#allocation20] sm:$0x1f] }
 0x858   :  { %20230 = vst [vmem:[#allocation51_spill] sm:$0xff] %v19280_v24  ;;  %v19305_v50 = vperm.slane %v19300_v14, 0 }
 0x859   :  { %v9479_v8 = vpop.f32.mrf.mxu2  ;;  %v19288_v46 = vpop.f32.mrf.mxu3 }
 0x85a   :  { %v9509_v44 = vadd.f32 %v19176_v39, %v9479_v8  ;;  %v20232_v39 = vld [vmem:[#allocation76_spill] sm:$0xff] }
 0x85c   :  { %v9538_v26 = vadd.f32 %v19220_v6, %v9509_v44  ;;  %v20234_v6 = vld [vmem:[#allocation59_spill] sm:$0xff] }
 0x85e   :  { %v19295_v23 = vadd.f32 %v9538_v26, %v18840_v10  ;;  %v20233_v10 = vld [vmem:[#allocation33_spill] sm:$0xff]  ;;  %v19318_v24 = vpop.f32.mrf.mxu1 }
 0x85f   :  { %v8481_v31 = vadd.f32 %v20234_v6, %v20233_v10 }
 0x860   :  { %20231 = vst [vmem:[#allocation42_spill] sm:$0xff] %v19295_v23 }
 0x861   :  { %v9481_v52 = vpop.f32.mrf.mxu2  ;;  %v19297_v11 = vpop.f32.mrf.mxu3 }
 0x862   :  { %v9511_v27 = vadd.f32 %v19192_v48, %v9481_v52  ;;  %v20236_v52 = vld [vmem:[#allocation66_spill] sm:$0xff] }
 0x864   :  { %v9540_v30 = vadd.f32 %v9539_v21, %v9511_v27  ;;  %v8510_v21 = vadd.f32 %v20236_v52, %v8481_v31  ;;  %v9621_v27 = vpop.f32.mrf.mxu0 }
 0x866   :  { %v9925_v61 = vadd.f32 %v9540_v30, %v20232_v39  ;;  %9811 = vmatmul.bf16.vlgmr.msra.gmra.mxu2 %v20215_v58  ;;  %v20238_v58 = vld [vmem:[#allocation55_spill] sm:$0xff] }
 0x867   :  { %v8483_v39 = vadd.f32 %v20238_v58, %v18881_v35 }
 0x868   :  { %v19312_v8 = vadd.f32 %v19305_v50, %v9925_v61 }
 0x869   :  { %v9580_v44 = vpop.f32.mrf.mxu2  ;;  %v19314_v48 = vpop.f32.mrf.mxu3 }
 0x86a   :  { %20235 = vst [vmem:[#allocation60_spill] sm:$0xff] %v19312_v8  ;;  %v9581_v26 = vadd.f32 %v9580_v44, %v19222_v3  ;;  %v20239_v8 = vld [vmem:[#allocation38_spill] sm:$0xff] }
 0x86b   :  { %v8512_v13 = vadd.f32 %v20239_v8, %v8483_v39 }
 0x86c   :  { %v9610_v23 = vadd.f32 %v9609_v56, %v9581_v26  ;;  %v9624_v3 = vpop.f32.mrf.mxu0  ;;  %v20241_v56 = vld [vmem:[#allocation45_spill] sm:$0xff]  ;;  %v19335_v26 = vpop.f32.mrf.mxu1 }
 0x86e   :  { %v19320_v30 = vadd.f32 %v9610_v23, %v8510_v21  ;;  %v20242_v23 = vld [vmem:[#allocation61_spill] sm:$0xff]  ;;  %v20243_v21 = vld [vmem:[#allocation47_spill] sm:$0xff] }
 0x86f   :  { %v8486_v31 = vadd.f32 %v20242_v23, %v20241_v56  ;;  %v20246_v56 = vld [vmem:[#allocation32_spill] sm:$0xff] }
 0x870   :  { %20237 = vst [vmem:[#allocation50_spill] sm:$0xff] %v19320_v30 }
 0x871   :  { %v9582_v10 = vpop.f32.mrf.mxu2  ;;  %v19324_v6 = vpop.f32.mrf.mxu3  ;;  %v8515_v8 = vadd.f32 %v20243_v21, %v8486_v31  ;;  %v20249_v31 = vld [vmem:[#allocation62_spill] sm:$0xff] }
 0x872   :  { %v9583_v61 = vadd.f32 %v9582_v10, %v19229_v38 }
 0x874   :  { %v9612_v37 = vadd.f32 %v9611_v49, %v9583_v61  ;;  %v9626_v43 = vpop.f32.mrf.mxu0  ;;  %v19347_v10 = vpop.f32.mrf.mxu1 }
 0x876   :  { %v19328_v44 = vadd.f32 %v9612_v37, %v8512_v13  ;;  %13668 = vmatmul.msk.bf16.gmra.mxu2 %vm18758_vm5, %v20218_v57  ;;  %v20245_v37 = vld [vmem:[#allocation41_spill] sm:$0xff] }
 0x877   :  { %v8488_v13 = vadd.f32 %v20245_v37, %v18915_v28 }
 0x878   :  { %20240 = vst [vmem:[#allocation29_spill] sm:$0xff] %v19328_v44 }
 0x879   :  { %v9585_v35 = vpop.f32.mrf.mxu2  ;;  %v19337_v52 = vpop.f32.mrf.mxu3  ;;  %v8517_v23 = vadd.f32 %v20246_v56, %v8488_v13 }
 0x87a   :  { %v9586_v38 = vadd.f32 %v9585_v35, %v19242_v0 }
 0x87c   :  { %v9615_v49 = vadd.f32 %v9614_v36, %v9586_v38  ;;  %v20248_v36 = vld [vmem:[#allocation53_spill] sm:$0xff]  ;;  %v9725_v21 = vpop.f32.mrf.mxu0 }
 0x87d   :  { %v8491_v35 = vadd.f32 %v20249_v31, %v20248_v36 }
 0x87e   :  { %v19341_v58 = vadd.f32 %v9615_v49, %v8515_v8  ;;  %v20250_v49 = vld [vmem:[#allocation71_spill] sm:$0xff] }
 0x87f   :  { %v8520_v37 = vadd.f32 %v20250_v49, %v8491_v35  ;;  %v20256_v35 = vld [vmem:[#allocation64_spill] sm:$0xff] }
 0x880   :  { %20244 = vst [vmem:[#allocation35_spill] sm:$0xff] %v19341_v58  ;;  %v9754_v58 = vpop.f32.mrf.mxu1 }
 0x881   :  { %v9587_v57 = vpop.f32.mrf.mxu2  ;;  %v19345_v39 = vpop.f32.mrf.mxu3 }
 0x882   :  { %v9588_v61 = vadd.f32 %v9587_v57, %v19251_v16 }
 0x884   :  { %v9617_v44 = vadd.f32 %v9616_v9, %v9588_v61  ;;  %v20251_v9 = vld [vmem:[#allocation54_spill] sm:$0xff]  ;;  %v9727_v31 = vpop.f32.mrf.mxu0 }
 0x886   :  { %v19351_v0 = vadd.f32 %v9617_v44, %v8517_v23  ;;  %9821 = vmatmul.bf16.gmra.mxu2 %v20219_v59  ;;  %v20252_v44 = vld [vmem:[#allocation63_spill] sm:$0xff]  ;;  %v20253_v23 = vld [vmem:[#allocation30_spill] sm:$0xff] }
 0x887   :  { %v8493_v13 = vadd.f32 %v20252_v44, %v20251_v9 }
 0x888   :  { %20247 = vst [vmem:[#allocation44_spill] sm:$0xff] %v19351_v0  ;;  %v9756_v30 = vpop.f32.mrf.mxu1 }
 0x889   :  { %v9590_v38 = vpop.f32.mrf.mxu2  ;;  %v19356_v28 = vpop.f32.mrf.mxu3  ;;  %v8522_v36 = vadd.f32 %v20253_v23, %v8493_v13  ;;  %v20260_v13 = vld [vmem:[#allocation65_spill] sm:$0xff] }
 0x88a   :  { %v9591_v8 = vadd.f32 %v9590_v38, %v19266_v40 }
 0x88c   :  { %v9620_v16 = vadd.f32 %v9619_v45, %v9591_v8  ;;  %v20255_v45 = vld [vmem:[#allocation36_spill] sm:$0xff]  ;;  %v9730_v44 = vpop.f32.mrf.mxu0 }
 0x88d   :  { %v8496_v38 = vadd.f32 %v20256_v35, %v20255_v45 }
 0x88e   :  { %v19360_v57 = vadd.f32 %v9620_v16, %v8520_v37 }
 0x891   :  { %v9592_v61 = vpop.f32.mrf.mxu2  ;;  %v19364_v59 = vpop.f32.mrf.mxu3 }
 0x892   :  { %v9593_v56 = vadd.f32 %v9592_v61, %v19275_v7  ;;  %v20257_v7 = vld [vmem:[#allocation48_spill] sm:$0xff] }
 0x893   :  { %v8525_v16 = vadd.f32 %v20257_v7, %v8496_v38  ;;  %v9755_v38 = vadd.f32 %v9754_v58, %v9725_v21 }
 0x894   :  { %v9622_v0 = vadd.f32 %v9621_v27, %v9593_v56  ;;  %v9759_v56 = vpop.f32.mrf.mxu1 }
 0x896   :  { %v19368_v40 = vadd.f32 %v9622_v0, %v8522_v36  ;;  %13671 = vmatmul.msk.bf16.gmra.mxu2 %vm18820_vm7, %v19076_v33  ;;  %v20259_v0 = vld [vmem:[#allocation34_spill] sm:$0xff] }
 0x897   :  { %v8498_v61 = vadd.f32 %v20260_v13, %v20259_v0  ;;  %v20261_v36 = vld [vmem:[#allocation74_spill] sm:$0xff] }
 0x898   :  { %20254 = vst [vmem:[#allocation76_spill] sm:$0xff] %v19368_v40 }
 0x899   :  { %v9595_v8 = vpop.f32.mrf.mxu2  ;;  %v19375_v49 = vpop.f32.mrf.mxu3  ;;  %v8527_v45 = vadd.f32 %v20261_v36, %v8498_v61 }
 0x89a   :  { %v9596_v37 = vadd.f32 %v9595_v8, %v19288_v46  ;;  %v9732_v46 = vpop.f32.mrf.mxu0  ;;  %v20262_v8 = vld [vmem:[#allocation46_spill] sm:$0xff] }
 0x89c   :  { %v9625_v9 = vadd.f32 %v9624_v3, %v9596_v37  ;;  %v9668_v3 = vadd.f32 %v19314_v48, %v19245_v20  ;;  %v20263_v37 = vld [vmem:[#allocation67_spill] sm:$0xff]  ;;  %v9761_v0 = vpop.f32.mrf.mxu1  ;;  %v9757_v48 = vadd.f32 %v9756_v30, %v9727_v31  ;;  %v9760_v31 = vadd.f32 %v9759_v56, %v9730_v44 }
 0x89d   :  { %v8597_v7 = vadd.f32 %v20263_v37, %v20262_v8 }
 0x89e   :  { %v19379_v27 = vadd.f32 %v9625_v9, %v8525_v16 }
 0x8a0   :  { %20258 = vst [vmem:[#allocation33_spill] sm:$0xff] %v19379_v27  ;;  %v19394_v27 = vperm.slane %v19300_v14, 2 }
 0x8a1   :  { %v9597_v53 = vpop.f32.mrf.mxu2  ;;  %v19383_v33 = vpop.f32.mrf.mxu3 }
 0x8a2   :  { %v9598_v23 = vadd.f32 %v9597_v53, %v19297_v11  ;;  %v9670_v53 = vadd.f32 %v19324_v6, %v19255_v4  ;;  %v9735_v37 = vpop.f32.mrf.mxu0 }
 0x8a4   :  { %v9627_v35 = vadd.f32 %v9626_v43, %v9598_v23  ;;  %v19397_v43 = vperm.slane %v19300_v14, 3 }
 0x8a6   :  { %v19387_v40 = vadd.f32 %v9627_v35, %v8527_v45 }
 0x8a9   :  { %v9696_v16 = vpop.f32.mrf.mxu2  ;;  %v9783_v9 = vpop.f32.mrf.mxu3 }
 0x8aa   :  { %v9697_v13 = vadd.f32 %v9696_v16, %v9668_v3  ;;  %v9784_v11 = vadd.f32 %v9783_v9, %v9755_v38  ;;  %v20264_v38 = vld [vmem:[#allocation52_spill] sm:$0xff]  ;;  %v9764_v9 = vpop.f32.mrf.mxu1 }
 0x8ab   :  { %v20265_v3 = vld [vmem:[#allocation68_spill] sm:$0xff] }
 0x8ac   :  { %v9892_v61 = vadd.f32 %v9697_v13, %v8597_v7  ;;  %v9893_v58 = vadd.f32 %v9784_v11, %v19117_v22  ;;  %v8599_v8 = vadd.f32 %v20265_v3, %v20264_v38 }
 0x8ae   :  { %v19401_v21 = vadd.f32 %v19394_v27, %v9892_v61  ;;  %v9945_v20 = vadd.f32 %v19397_v43, %v9893_v58  ;;  %v9673_v61 = vadd.f32 %v19337_v52, %v19273_v47 }
 0x8b0   :  { %v9982_v23 = vsub.f32 0.0, %v19401_v21  ;;  %v9983_v36 = vsub.f32 0.0, %v9945_v20 }
 0x8b1   :  { %v9698_v45 = vpop.f32.mrf.mxu2  ;;  %v9785_v35 = vpop.f32.mrf.mxu3 }
 0x8b2   :  { %v9699_v7 = vadd.f32 %v9698_v45, %v9670_v53  ;;  %v9786_v22 = vadd.f32 %v9785_v35, %v9757_v48  ;;  %v10006_v16 = vmul.f32 1.442695, %v9982_v23  ;;  %v10008_v30 = vmul.f32 1.442695, %v9983_v36  ;;  %v20266_v48 = vld [vmem:[#allocation69_spill] sm:$0xff]  ;;  %v9766_v47 = vpop.f32.mrf.mxu1 }
 0x8b3   :  { %v8602_v53 = vadd.f32 %v20266_v48, %v19034_v41 }
 0x8b4   :  { %v9897_v13 = vadd.f32 %v9699_v7, %v8599_v8  ;;  %v9898_v11 = vadd.f32 %v9786_v22, %v19127_v15  ;;  %14498 = vpow2.f32 %v10006_v16  ;;  %v9737_v7 = vpop.f32.mrf.mxu0  ;;  %v9762_v16 = vadd.f32 %v9761_v0, %v9732_v46 }
 0x8b5   :  { %14500 = vpow2.f32 %v10008_v30 }
 0x8b6   :  { %v19411_v4 = vadd.f32 %v19394_v27, %v9897_v13  ;;  %v9950_v6 = vadd.f32 %v19397_v43, %v9898_v11  ;;  %v9675_v13 = vadd.f32 %v19345_v39, %v19290_v34 }
 0x8b8   :  { %v9986_v58 = vsub.f32 0.0, %v9950_v6  ;;  %v9985_v20 = vsub.f32 0.0, %v19411_v4 }
 0x8b9   :  { %v9701_v23 = vpop.f32.mrf.mxu2  ;;  %v9788_v45 = vpop.f32.mrf.mxu3 }
 0x8ba   :  { %v14499_v15 = vpop.eup %14498  ;;  %v9702_v36 = vadd.f32 %v9701_v23, %v9673_v61  ;;  %v9789_v35 = vadd.f32 %v9788_v45, %v9760_v31  ;;  %v10014_v38 = vmul.f32 1.442695, %v9986_v58  ;;  %v10012_v3 = vmul.f32 1.442695, %v9985_v20 }
 0x8bb   :  { %v10054_v8 = vadd.f32 1.0, %v14499_v15  ;;  %v14501_v22 = vpop.eup %14500 }
 0x8bc   :  { %v9902_v44 = vadd.f32 %v9702_v36, %v8602_v53  ;;  %v9903_v56 = vadd.f32 %v9789_v35, %v19149_v19  ;;  %14502 = vpow2.f32 %v10014_v38  ;;  %v20267_v19 = vld [vmem:[#allocation70_spill] sm:$0xff]  ;;  %v10055_v36 = vadd.f32 1.0, %v14501_v22 }
 0x8bd   :  { %10102 = vrot.lane.b32.xlu0 %v10054_v8, %s14948_s8  ;;  %14504 = vpow2.f32 %v10012_v3  ;;  %v8604_v6 = vadd.f32 %v20267_v19, %v19043_v62  ;;  %v9740_v62 = vpop.f32.mrf.mxu0  ;;  %v9765_v38 = vadd.f32 %v9764_v9, %v9735_v37  ;;  %v9678_v3 = vadd.f32 %v19356_v28, %v19302_v42 }
 0x8be   :  { %v19422_v41 = vadd.f32 %v19394_v27, %v9902_v44  ;;  %v9955_v52 = vadd.f32 %v19397_v43, %v9903_v56  ;;  %v20268_v56 = vld [vmem:[#allocation72_spill] sm:$0xff] }
 0x8c0   :  { %v9988_v11 = vsub.f32 0.0, %v19422_v41  ;;  %v9989_v30 = vsub.f32 0.0, %v9955_v52  ;;  %v8607_v52 = vadd.f32 %v20268_v56, %v19056_v5 }
 0x8c1   :  { %v9703_v31 = vpop.f32.mrf.mxu2  ;;  %v9790_v61 = vpop.f32.mrf.mxu3 }
 0x8c2   :  { %v14503_v58 = vpop.eup %14502  ;;  %v10020_v20 = vmul.f32 1.442695, %v9989_v30  ;;  %v9704_v48 = vadd.f32 %v9703_v31, %v9675_v13  ;;  %v9791_v53 = vadd.f32 %v9790_v61, %v9762_v16  ;;  %v10018_v23 = vmul.f32 1.442695, %v9988_v11 }
 0x8c3   :  { %v14505_v45 = vpop.eup %14504  ;;  %v10058_v15 = vadd.f32 1.0, %v14503_v58 }
 0x8c4   :  { %v9907_v46 = vadd.f32 %v9704_v48, %v8604_v6  ;;  %v9908_v0 = vadd.f32 %v9791_v53, %v19157_v2  ;;  %v10057_v34 = vadd.f32 1.0, %v14505_v45  ;;  %14506 = vpow2.f32 %v10020_v20  ;;  %v9769_v2 = vpop.f32.mrf.mxu1 }
 0x8c5   :  { %10110 = vrot.lane.b32.xlu2 %v10058_v15, %s14948_s8  ;;  %10104 = vrot.lane.b32.xlu0 %v10055_v36, %s14948_s8  ;;  %14508 = vpow2.f32 %v10018_v23  ;;  %v9742_v58 = vpop.f32.mrf.mxu0  ;;  %v9767_v20 = vadd.f32 %v9766_v47, %v9737_v7  ;;  %v9680_v48 = vadd.f32 %v19364_v59, %v19318_v24  ;;  %v20269_v23 = vld [vmem:[#allocation73_spill] sm:$0xff]  ;;  %v9770_v56 = vadd.f32 %v9769_v2, %v9740_v62 }
 0x8c6   :  { %v19434_v39 = vadd.f32 %v19394_v27, %v9907_v46  ;;  %v9960_v35 = vadd.f32 %v19397_v43, %v9908_v0  ;;  %10108 = vrot.lane.b32.xlu1 %v10057_v34, %s14948_s8  ;;  %v8609_v45 = vadd.f32 %v20269_v23, %v19071_v17  ;;  %v9685_v23 = vadd.f32 %v19383_v33, %v19347_v10 }
 0x8c8   :  { %v9991_v8 = vsub.f32 0.0, %v19434_v39  ;;  %v9992_v44 = vsub.f32 0.0, %v9960_v35 }
 0x8c9   :  { %v9706_v22 = vpop.f32.mrf.mxu2  ;;  %v9793_v16 = vpop.f32.mrf.mxu3 }
 0x8ca   :  { %v14507_v13 = vpop.eup %14506  ;;  %v10026_v11 = vmul.f32 1.442695, %v9992_v44  ;;  %v9707_v30 = vadd.f32 %v9706_v22, %v9678_v3  ;;  %v9794_v19 = vadd.f32 %v9793_v16, %v9765_v38  ;;  %v10024_v6 = vmul.f32 1.442695, %v9991_v8 }
 0x8cb   :  { %v14509_v31 = vpop.eup %14508  ;;  %v10061_v61 = vadd.f32 1.0, %v14507_v13  ;;  %v20271_v13 = vld [vmem:[#allocation49_spill] sm:$0xff] }
 0x8cc   :  { %v9912_v37 = vadd.f32 %v9707_v30, %v8607_v52  ;;  %v9913_v9 = vadd.f32 %v9794_v19, %v19171_v12  ;;  %v10060_v42 = vadd.f32 1.0, %v14509_v31  ;;  %14510 = vpow2.f32 %v10026_v11  ;;  %v9771_v8 = vpop.f32.mrf.mxu1 }
 0x8cd   :  { %14512 = vpow2.f32 %v10024_v6  ;;  %v9683_v52 = vadd.f32 %v19375_v49, %v19335_v26 }
 0x8ce   :  { %v19445_v28 = vadd.f32 %v19394_v27, %v9912_v37  ;;  %v9965_v5 = vadd.f32 %v19397_v43, %v9913_v9  ;;  %10116 = vrot.lane.b32.xlu1 %v10061_v61, %s14948_s8  ;;  %10114 = vrot.lane.b32.xlu0 %v10060_v42, %s14948_s8 }
 0x8d0   :  { %v9994_v53 = vsub.f32 0.0, %v19445_v28  ;;  %v9995_v12 = vsub.f32 0.0, %v9965_v5  ;;  %v9841_v5 = vpop.f32.mrf.mxu0 }
 0x8d1   :  { %v9708_v15 = vpop.f32.mrf.mxu2  ;;  %v9795_v36 = vpop.f32.mrf.mxu3 }
 0x8d2   :  { %v14511_v46 = vpop.eup %14510  ;;  %v10032_v0 = vmul.f32 1.442695, %v9995_v12  ;;  %v9709_v34 = vadd.f32 %v9708_v15, %v9680_v48  ;;  %v9796_v35 = vadd.f32 %v9795_v36, %v9767_v20  ;;  %v10030_v38 = vmul.f32 1.442695, %v9994_v53  ;;  %v20272_v15 = vld [vmem:[#allocation40_spill] sm:$0xff]  ;;  %v20273_v36 = vld [vmem:[#allocation75_spill] sm:$0xff] }
 0x8d3   :  { %v14513_v3 = vpop.eup %14512  ;;  %v10064_v44 = vadd.f32 1.0, %v14511_v46  ;;  %v9772_v12 = vadd.f32 %v9771_v8, %v9742_v58  ;;  %v8614_v46 = vadd.f32 %v20273_v36, %v20272_v15 }
 0x8d4   :  { %v9917_v7 = vadd.f32 %v9709_v34, %v8609_v45  ;;  %v9918_v47 = vadd.f32 %v9796_v35, %v19179_v60  ;;  %v10063_v24 = vadd.f32 1.0, %v14513_v3  ;;  %14514 = vpow2.f32 %v10032_v0  ;;  %v20270_v60 = vld [vmem:[#allocation37_spill] sm:$0xff]  ;;  %v9870_v49 = vpop.f32.mrf.mxu1 }
 0x8d5   :  { %14516 = vpow2.f32 %v10030_v38  ;;  %v8612_v11 = vadd.f32 %v20271_v13, %v20270_v60 }
 0x8d6   :  { %v19457_v59 = vadd.f32 %v19394_v27, %v9917_v7  ;;  %v9970_v17 = vadd.f32 %v19397_v43, %v9918_v47  ;;  %10122 = vrot.lane.b32.xlu1 %v10064_v44, %s14948_s8  ;;  %10120 = vrot.lane.b32.xlu0 %v10063_v24, %s14948_s8 }
 0x8d8   :  { %v9997_v22 = vsub.f32 0.0, %v19457_v59  ;;  %v9998_v16 = vsub.f32 0.0, %v9970_v17  ;;  %v9843_v10 = vpop.f32.mrf.mxu0 }
 0x8d9   :  { %v9711_v30 = vpop.f32.mrf.mxu2  ;;  %v9798_v19 = vpop.f32.mrf.mxu3 }
 0x8da   :  { %v14515_v6 = vpop.eup %14514  ;;  %v10038_v31 = vmul.f32 1.442695, %v9998_v16  ;;  %v9712_v61 = vadd.f32 %v9711_v30, %v9683_v52  ;;  %v9799_v37 = vadd.f32 %v9798_v19, %v9770_v56  ;;  %v10036_v9 = vmul.f32 1.442695, %v9997_v22 }
 0x8db   :  { %v14517_v42 = vpop.eup %14516  ;;  %v10067_v20 = vadd.f32 1.0, %v14515_v6  ;;  %v19488_v6 = vperm.slane %v19300_v14, 4 }
 0x8dc   :  { %v9922_v62 = vadd.f32 %v9712_v61, %v8612_v11  ;;  %v9923_v2 = vadd.f32 %v9799_v37, %v19201_v63  ;;  %v10066_v26 = vadd.f32 1.0, %v14517_v42  ;;  %14518 = vpow2.f32 %v10038_v31  ;;  %v9872_v52 = vpop.f32.mrf.mxu1 }
 0x8dd   :  { %14520 = vpow2.f32 %v10036_v9 }
 0x8de   :  { %v19469_v48 = vadd.f32 %v19394_v27, %v9922_v62  ;;  %v9975_v53 = vadd.f32 %v19397_v43, %v9923_v2  ;;  %10128 = vrot.lane.b32.xlu1 %v10067_v20, %s14948_s8  ;;  %10126 = vrot.lane.b32.xlu0 %v10066_v26, %s14948_s8 }
 0x8e0   :  { %v10000_v45 = vsub.f32 0.0, %v19469_v48  ;;  %v10001_v63 = vsub.f32 0.0, %v9975_v53  ;;  %v9846_v61 = vpop.f32.mrf.mxu0 }
 0x8e1   :  { %v9713_v0 = vpop.f32.mrf.mxu2  ;;  %v9800_v34 = vpop.f32.mrf.mxu3 }
 0x8e2   :  { %v14519_v35 = vpop.eup %14518  ;;  %v10044_v38 = vmul.f32 1.442695, %v10001_v63  ;;  %v9714_v3 = vadd.f32 %v9713_v0, %v9685_v23  ;;  %v9801_v44 = vadd.f32 %v9800_v34, %v9772_v12  ;;  %v10042_v7 = vmul.f32 1.442695, %v10000_v45  ;;  %v20275_v12 = vld [vmem:[#allocation43_spill] sm:$0xff] }
 0x8e3   :  { %v14521_v47 = vpop.eup %14520  ;;  %v10070_v24 = vadd.f32 1.0, %v14519_v35 }
 0x8e4   :  { %v9927_v17 = vadd.f32 %v9714_v3, %v8614_v46  ;;  %v9928_v58 = vadd.f32 %v9801_v44, %v19209_v51  ;;  %v10069_v8 = vadd.f32 1.0, %v14521_v47  ;;  %14522 = vpow2.f32 %v10044_v38  ;;  %v9875_v9 = vpop.f32.mrf.mxu1 }
 0x8e5   :  { %14524 = vpow2.f32 %v10042_v7 }
 0x8e6   :  { %v19481_v33 = vadd.f32 %v19394_v27, %v9927_v17  ;;  %v9980_v56 = vadd.f32 %v19397_v43, %v9928_v58  ;;  %10134 = vrot.lane.b32.xlu1 %v10070_v24, %s14948_s8  ;;  %10132 = vrot.lane.b32.xlu0 %v10069_v8, %s14948_s8  ;;  %v20274_v43 = vld [vmem:[#allocation58_spill] sm:$0xff] }
 0x8e8   :  { %v10003_v22 = vsub.f32 0.0, %v19481_v33  ;;  %v10004_v26 = vsub.f32 0.0, %v9980_v56  ;;  %v9848_v15 = vpop.f32.mrf.mxu0 }
 0x8e9   :  { %v9812_v16 = vpop.f32.mrf.mxu2 }
 0x8ea   :  { %v14523_v60 = vpop.eup %14522  ;;  %v9842_v13 = vadd.f32 %v9841_v5, %v9812_v16  ;;  %v10048_v51 = vmul.f32 1.442695, %v10003_v22  ;;  %v10050_v45 = vmul.f32 1.442695, %v10004_v26 }
 0x8eb   :  { %v14525_v11 = vpop.eup %14524  ;;  %v10073_v30 = vadd.f32 1.0, %v14523_v60 }
 0x8ec   :  { %v9871_v19 = vadd.f32 %v9870_v49, %v9842_v13  ;;  %v10072_v27 = vadd.f32 1.0, %v14525_v11  ;;  %14526 = vpow2.f32 %v10048_v51  ;;  %v9877_v34 = vpop.f32.mrf.mxu1 }
 0x8ee   :  { %v9894_v31 = vadd.f32 %v9871_v19, %v20274_v43  ;;  %10140 = vrot.lane.b32.xlu1 %v10073_v30, %s14948_s8  ;;  %10138 = vrot.lane.b32.xlu0 %v10072_v27, %s14948_s8 }
 0x8f0   :  { %v9946_v37 = vadd.f32 %v19488_v6, %v9894_v31 }
 0x8f1   :  { %v9814_v42 = vpop.f32.mrf.mxu2 }
 0x8f2   :  { %v14527_v5 = vpop.eup %14526  ;;  %v9844_v20 = vadd.f32 %v9843_v10, %v9814_v42  ;;  %v9984_v62 = vsub.f32 0.0, %v9946_v37  ;;  %v9851_v10 = vpop.f32.mrf.mxu0 }
 0x8f3   :  { %v10075_v2 = vadd.f32 1.0, %v14527_v5 }
 0x8f4   :  { %v9873_v49 = vadd.f32 %v9872_v52, %v9844_v20  ;;  %v10010_v53 = vmul.f32 1.442695, %v9984_v62  ;;  %v9880_v16 = vpop.f32.mrf.mxu1 }
 0x8f6   :  { %v9899_v23 = vadd.f32 %v9873_v49, %v20275_v12  ;;  %10144 = vrot.lane.b32.xlu0 %v10075_v2, %s14948_s8  ;;  %14528 = vpow2.f32 %v10010_v53  ;;  %v20276_v12 = vld [vmem:[#allocation31_spill] sm:$0xff] }
 0x8f7   :  { %14530 = vpow2.f32 %v10050_v45 }
 0x8f8   :  { %v9951_v63 = vadd.f32 %v19488_v6, %v9899_v23 }
 0x8f9   :  { %v9817_v36 = vpop.f32.mrf.mxu2 }
 0x8fa   :  { %v9847_v46 = vadd.f32 %v9846_v61, %v9817_v36  ;;  %v9987_v0 = vsub.f32 0.0, %v9951_v63  ;;  %v9853_v61 = vpop.f32.mrf.mxu0 }
 0x8fc   :  { %v14529_v35 = vpop.eup %14528  ;;  %v9876_v38 = vadd.f32 %v9875_v9, %v9847_v46  ;;  %v10016_v3 = vmul.f32 1.442695, %v9987_v0  ;;  %v9882_v42 = vpop.f32.mrf.mxu1 }
 0x8fd   :  { %v10056_v44 = vadd.f32 1.0, %v14529_v35  ;;  %v14531_v17 = vpop.eup %14530 }
 0x8fe   :  { %v9904_v7 = vadd.f32 %v9876_v38, %v19152_v18  ;;  %14532 = vpow2.f32 %v10016_v3  ;;  %v10076_v13 = vadd.f32 1.0, %v14531_v17 }
 0x8ff   :  { %10106 = vrot.lane.b32.xlu1 %v10056_v44, %s14948_s8 }
 0x900   :  { %v9956_v47 = vadd.f32 %v19488_v6, %v9904_v7 }
 0x901   :  { %v9819_v24 = vpop.f32.mrf.mxu2 }
 0x902   :  { %v9849_v58 = vadd.f32 %v9848_v15, %v9819_v24  ;;  %v9990_v8 = vsub.f32 0.0, %v9956_v47  ;;  %v9856_v45 = vpop.f32.mrf.mxu0 }
 0x904   :  { %v14533_v56 = vpop.eup %14532  ;;  %v9878_v52 = vadd.f32 %v9877_v34, %v9849_v58  ;;  %v10022_v22 = vmul.f32 1.442695, %v9990_v8  ;;  %v9885_v63 = vpop.f32.mrf.mxu1 }
 0x905   :  { %v10059_v60 = vadd.f32 1.0, %v14533_v56 }
 0x906   :  { %v9909_v51 = vadd.f32 %v9878_v52, %v19160_v54  ;;  %14534 = vpow2.f32 %v10022_v22  ;;  %v20277_v22 = vld [vmem:[#allocation39_spill] sm:$0xff] }
 0x907   :  { %10112 = vrot.lane.b32.xlu2 %v10059_v60, %s14948_s8  ;;  %10146 = vrot.lane.b32.xlu1 %v10076_v13, %s14948_s8 }
 0x908   :  { %v9961_v18 = vadd.f32 %v19488_v6, %v9909_v51 }
 0x909   :  { %v9822_v11 = vpop.f32.mrf.mxu2 }
 0x90a   :  { %v9852_v30 = vadd.f32 %v9851_v10, %v9822_v11  ;;  %v9993_v19 = vsub.f32 0.0, %v9961_v18  ;;  %v9858_v7 = vpop.f32.mrf.mxu0 }
 0x90c   :  { %v14535_v27 = vpop.eup %14534  ;;  %v9881_v43 = vadd.f32 %v9880_v16, %v9852_v30  ;;  %v10028_v31 = vmul.f32 1.442695, %v9993_v19  ;;  %v9887_v58 = vpop.f32.mrf.mxu1 }
 0x90d   :  { %v10062_v37 = vadd.f32 1.0, %v14535_v27 }
 0x90e   :  { %v9914_v9 = vadd.f32 %v9881_v43, %v19174_v29  ;;  %14536 = vpow2.f32 %v10028_v31 }
 0x90f   :  { %10118 = vrot.lane.b32.xlu2 %v10062_v37, %s14948_s8 }
 0x910   :  { %v9966_v54 = vadd.f32 %v19488_v6, %v9914_v9 }
 0x911   :  { %v9824_v5 = vpop.f32.mrf.mxu2 }
 0x912   :  { %v9854_v20 = vadd.f32 %v9853_v61, %v9824_v5  ;;  %v9996_v62 = vsub.f32 0.0, %v9966_v54 }
 0x914   :  { %v14537_v2 = vpop.eup %14536  ;;  %v9883_v26 = vadd.f32 %v9882_v42, %v9854_v20  ;;  %v10034_v49 = vmul.f32 1.442695, %v9996_v62 }
 0x915   :  { %v10065_v53 = vadd.f32 1.0, %v14537_v2 }
 0x916   :  { %v9919_v23 = vadd.f32 %v9883_v26, %v20276_v12  ;;  %14538 = vpow2.f32 %v10034_v49 }
 0x917   :  { %10124 = vrot.lane.b32.xlu2 %v10065_v53, %s14948_s8 }
 0x918   :  { %v9971_v29 = vadd.f32 %v19488_v6, %v9919_v23 }
 0x919   :  { %v9827_v15 = vpop.f32.mrf.mxu2 }
 0x91a   :  { %v9857_v36 = vadd.f32 %v9856_v45, %v9827_v15  ;;  %v9999_v46 = vsub.f32 0.0, %v9971_v29  ;;  %v9942_v15 = vadd.f32 %v19305_v50, %v19227_v55 }
 0x91c   :  { %v14539_v0 = vpop.eup %14538  ;;  %v9886_v34 = vadd.f32 %v9885_v63, %v9857_v36  ;;  %v10040_v35 = vmul.f32 1.442695, %v9999_v46 }
 0x91d   :  { %v10068_v38 = vadd.f32 1.0, %v14539_v0 }
 0x91e   :  { %v9924_v3 = vadd.f32 %v9886_v34, %v19204_v32  ;;  %14540 = vpow2.f32 %v10040_v35  ;;  %v9947_v34 = vadd.f32 %v19305_v50, %v19234_v25 }
 0x91f   :  { %10130 = vrot.lane.b32.xlu2 %v10068_v38, %s14948_s8  ;;  %v19520_v43 = vpop.permute.xlu2 %10110 }
 0x920   :  { %v9976_v44 = vadd.f32 %v19488_v6, %v9924_v3 }
 0x921   :  { %v9829_v47 = vpop.f32.mrf.mxu2 }
 0x922   :  { %v9859_v24 = vadd.f32 %v9858_v7, %v9829_v47  ;;  %v10002_v17 = vsub.f32 0.0, %v9976_v44 }
 0x924   :  { %v14541_v8 = vpop.eup %14540  ;;  %v9888_v10 = vadd.f32 %v9887_v58, %v9859_v24  ;;  %v10046_v56 = vmul.f32 1.442695, %v10002_v17 }
 0x925   :  { %v10071_v52 = vadd.f32 1.0, %v14541_v8 }
 0x926   :  { %v9929_v16 = vadd.f32 %v9888_v10, %v20277_v22  ;;  %14542 = vpow2.f32 %v10046_v56 }
 0x927   :  { %10136 = vrot.lane.b32.xlu2 %v10071_v52, %s14948_s8 }
 0x928   :  { %v9981_v32 = vadd.f32 %v19488_v6, %v9929_v16 }
 0x92a   :  { %v10005_v60 = vsub.f32 0.0, %v9981_v32 }
 0x92c   :  { %v14543_v13 = vpop.eup %14542  ;;  %v10052_v51 = vmul.f32 1.442695, %v10005_v60 }
 0x92d   :  { %v10074_v18 = vadd.f32 1.0, %v14543_v13 }
 0x92e   :  { %14544 = vpow2.f32 %v10052_v51  ;;  %v9952_v51 = vadd.f32 %v19305_v50, %v19249_v1 }
 0x92f   :  { %10142 = vrot.lane.b32.xlu2 %v10074_v18, %s14948_s8  ;;  %v10103_v11 = vpop.permute.xlu0 %10102 }
 0x934   :  { %v14545_v30 = vpop.eup %14544 }
 0x935   :  { %v10077_v19 = vadd.f32 1.0, %v14545_v30 }
 0x937   :  { %10148 = vrot.lane.b32.xlu2 %v10077_v19, %s14948_s8  ;;  %v19518_v27 = vpop.permute.xlu0 %10104 }
 0x938   :  { %v10109_v31 = vpop.permute.xlu1 %10108  ;;  %v10150_v6 = vsel %vm199_vm0, %v10103_v11, %v19518_v27 }
 0x939   :  { %v10152_v61 = vsel %vm199_vm0, %v10109_v31, %v19520_v43  ;;  %14546 = vrcp.f32 %v10150_v6  ;;  %v10201_v49 = vand.u32 2147483648, %v10150_v6  ;;  %v10199_v23 = vand.u32 2147483647, %v10150_v6 }
 0x93a   :  { %14548 = vrcp.f32 %v10152_v61  ;;  %v10246_v53 = vand.u32 2147483648, %v10152_v61  ;;  %v10244_v29 = vand.u32 2147483647, %v10152_v61  ;;  %vm10195_vm9 = vweird.f32 %v10150_v6 }
 0x93b   :  { %vm10240_vm10 = vweird.f32 %v10152_v61  ;;  %v10202_v46 = vor.u32 1.1754944e-38, %v10201_v49  ;;  %vm10200_vm13 = vcmp.eq.f32.partialorder %v10199_v23, 8.507059e+37  ;;  %v20278_v49 = vld [vmem:[#allocation56_spill] sm:$0xff] }
 0x93c   :  { %v10247_v35 = vor.u32 1.1754944e-38, %v10246_v53  ;;  %vm10245_vm14 = vcmp.eq.f32.partialorder %v10244_v29, 8.507059e+37  ;;  %v9957_v53 = vadd.f32 %v19305_v50, %v20278_v49 }
 0x93f   :  { %v14547_v37 = vpop.eup %14546 }
 0x940   :  { %v14549_v9 = vpop.eup %14548  ;;  %v10191_v42 = vmul.f32 %v14547_v37, %v10150_v6  ;;  %v19526_v54 = vpop.permute.xlu1 %10116  ;;  %vm10196_vm3 = vweird.f32 %v14547_v37 }
 0x941   :  { %v10115_v5 = vpop.permute.xlu0 %10114  ;;  %v10236_v20 = vmul.f32 %v14549_v9, %v10152_v61  ;;  %vm10241_vm8 = vweird.f32 %v14549_v9  ;;  %vm10197_vm11 = vmor %vm10195_vm9, %vm10196_vm3 }
 0x942   :  { %v10154_v62 = vsel %vm199_vm0, %v10115_v5, %v19526_v54  ;;  %v10192_v2 = vsub.f32 1.0, %v10191_v42  ;;  %vm10242_vm12 = vmor %vm10240_vm10, %vm10241_vm8 }
 0x943   :  { %14550 = vrcp.f32 %v10154_v62  ;;  %v10237_v26 = vsub.f32 1.0, %v10236_v20  ;;  %v10291_v25 = vand.u32 2147483648, %v10154_v62  ;;  %v10289_v52 = vand.u32 2147483647, %v10154_v62 }
 0x944   :  { %v10193_v12 = vmul.f32 %v14547_v37, %v10192_v2  ;;  %vm10285_vm1 = vweird.f32 %v10154_v62 }
 0x945   :  { %v10238_v45 = vmul.f32 %v14549_v9, %v10237_v26  ;;  %v10292_v16 = vor.u32 1.1754944e-38, %v10291_v25  ;;  %vm10290_vm4 = vcmp.eq.f32.partialorder %v10289_v52, 8.507059e+37  ;;  %v20280_v52 = vld [vmem:[#allocation51_spill] sm:$0xff] }
 0x946   :  { %v10194_v63 = vadd.f32 %v14547_v37, %v10193_v12 }
 0x947   :  { %v10239_v36 = vadd.f32 %v14549_v9, %v10238_v45 }
 0x948   :  { %v10198_v38 = vsel %vm10197_vm11, %v14547_v37, %v10194_v63  ;;  %v19534_v3 = vpop.permute.xlu1 %10122 }
 0x949   :  { %v14551_v0 = vpop.eup %14550  ;;  %v10121_v44 = vpop.permute.xlu0 %10120  ;;  %v10243_v7 = vsel %vm10242_vm12, %v14549_v9, %v10239_v36  ;;  %v10203_v47 = vsel %vm10200_vm13, %v10202_v46, %v10198_v38 }
 0x94a   :  { %v10281_v24 = vmul.f32 %v14551_v0, %v10154_v62  ;;  %v10248_v55 = vsel %vm10245_vm14, %v10247_v35, %v10243_v7  ;;  %v10204_v17 = vmul.f32 %v10203_v47, %v9942_v15  ;;  %v10156_v58 = vsel %vm199_vm0, %v10121_v44, %v19534_v3 }
 0x94b   :  { %v10249_v8 = vmul.f32 %v10248_v55, %v9947_v34  ;;  %14552 = vrcp.f32 %v10156_v58  ;;  %vm10286_vm15 = vweird.f32 %v14551_v0  ;;  %v10336_v61 = vand.u32 2147483648, %v10156_v58  ;;  %v20279_v34 = vld [vmem:[#allocation57_spill] sm:$0xff] }
 0x94c   :  { %v10282_v10 = vsub.f32 1.0, %v10281_v24  ;;  %10550 = vst [vmem:[#allocation21] sm:$0xff] %v10204_v17  ;;  %vm10287_vm2 = vmor %vm10285_vm1, %vm10286_vm15  ;;  %v10334_v9 = vand.u32 2147483647, %v10156_v58  ;;  %vm10330_vm6 = vweird.f32 %v10156_v58  ;;  %v9962_v35 = vadd.f32 %v19305_v50, %v20279_v34 }
 0x94d   :  { %10553 = vst [vmem:[#allocation21 + $0x18] sm:$0xff] %v10249_v8  ;;  %v10337_v62 = vor.u32 1.1754944e-38, %v10336_v61  ;;  %v20285_v61 = vld [vmem:[#allocation44_spill] sm:$0xff] }
 0x94e   :  { %v10283_v56 = vmul.f32 %v14551_v0, %v10282_v10  ;;  %vm10335_vm3 = vcmp.eq.f32.partialorder %v10334_v9, 8.507059e+37 }
 0x950   :  { %v10284_v22 = vadd.f32 %v14551_v0, %v10283_v56  ;;  %v19538_v32 = vpop.permute.xlu1 %10128 }
 0x951   :  { %v10127_v60 = vpop.permute.xlu0 %10126  ;;  %v14553_v13 = vpop.eup %14552 }
 0x952   :  { %v10288_v18 = vsel %vm10287_vm2, %v14551_v0, %v10284_v22  ;;  %v10158_v11 = vsel %vm199_vm0, %v10127_v60, %v19538_v32  ;;  %v10326_v19 = vmul.f32 %v14553_v13, %v10156_v58  ;;  %vm10331_vm5 = vweird.f32 %v14553_v13 }
 0x953   :  { %v10293_v30 = vsel %vm10290_vm4, %v10292_v16, %v10288_v18  ;;  %14554 = vrcp.f32 %v10158_v11  ;;  %vm10332_vm7 = vmor %vm10330_vm6, %vm10331_vm5  ;;  %v10381_v63 = vand.u32 2147483648, %v10158_v11  ;;  %v10379_v36 = vand.u32 2147483647, %v10158_v11 }
 0x954   :  { %v10294_v31 = vmul.f32 %v10293_v30, %v9952_v51  ;;  %v10327_v6 = vsub.f32 1.0, %v10326_v19  ;;  %vm10375_vm9 = vweird.f32 %v10158_v11  ;;  %v19561_v58 = vperm.slane %v19300_v14, 1  ;;  %v20281_v51 = vld [vmem:[#allocation42_spill] sm:$0xff]  ;;  %v20283_v30 = vld [vmem:[#allocation29_spill] sm:$0xff] }
 0x955   :  { %v10382_v38 = vor.u32 1.1754944e-38, %v10381_v63  ;;  %vm10380_vm11 = vcmp.eq.f32.partialorder %v10379_v36, 8.507059e+37  ;;  %v9967_v22 = vadd.f32 %v19305_v50, %v20280_v52  ;;  %v19576_v18 = vadd.f32 %v19305_v50, %v20281_v51 }
 0x956   :  { %10556 = vst [vmem:[#allocation21 + $0x30] sm:$0xff] %v10294_v31  ;;  %v10328_v37 = vmul.f32 %v14553_v13, %v10327_v6  ;;  %v19584_v19 = vadd.f32 %v19561_v58, %v20283_v30  ;;  %v20284_v31 = vld [vmem:[#allocation35_spill] sm:$0xff]  ;;  %v19596_v50 = vadd.f32 %v19561_v58, %v19360_v57 }
 0x957   :  { %v19588_v6 = vadd.f32 %v19561_v58, %v20284_v31 }
 0x958   :  { %v10329_v5 = vadd.f32 %v14553_v13, %v10328_v37  ;;  %v19544_v20 = vpop.permute.xlu1 %10134  ;;  %v19592_v37 = vadd.f32 %v19561_v58, %v20285_v61 }
 0x959   :  { %v14555_v42 = vpop.eup %14554  ;;  %v10133_v1 = vpop.permute.xlu0 %10132 }
 0x95a   :  { %v10371_v2 = vmul.f32 %v14555_v42, %v10158_v11  ;;  %v10160_v26 = vsel %vm199_vm0, %v10133_v1, %v19544_v20  ;;  %v10333_v12 = vsel %vm10332_vm7, %v14553_v13, %v10329_v5  ;;  %vm10376_vm8 = vweird.f32 %v14555_v42 }
 0x95b   :  { %14556 = vrcp.f32 %v10160_v26  ;;  %v10338_v23 = vsel %vm10335_vm3, %v10337_v62, %v10333_v12  ;;  %vm10377_vm10 = vmor %vm10375_vm9, %vm10376_vm8  ;;  %v10424_v16 = vand.u32 2147483647, %v10160_v26  ;;  %v10426_v60 = vand.u32 2147483648, %v10160_v26 }
 0x95c   :  { %v10372_v45 = vsub.f32 1.0, %v10371_v2  ;;  %v10339_v29 = vmul.f32 %v10338_v23, %v9957_v53  ;;  %vm10420_vm13 = vweird.f32 %v10160_v26 }
 0x95d   :  { %vm10425_vm15 = vcmp.eq.f32.partialorder %v10424_v16, 8.507059e+37  ;;  %v10427_v5 = vor.u32 1.1754944e-38, %v10426_v60 }
 0x95e   :  { %v10373_v15 = vmul.f32 %v14555_v42, %v10372_v45  ;;  %10559 = vst [vmem:[#allocation21 + $0x48] sm:$0xff] %v10339_v29 }
 0x960   :  { %v10374_v46 = vadd.f32 %v14555_v42, %v10373_v15  ;;  %v19552_v44 = vpop.permute.xlu1 %10140 }
 0x961   :  { %v14557_v0 = vpop.eup %14556  ;;  %v10139_v7 = vpop.permute.xlu0 %10138 }
 0x962   :  { %v10378_v47 = vsel %vm10377_vm10, %v14555_v42, %v10374_v46  ;;  %v10416_v24 = vmul.f32 %v14557_v0, %v10160_v26  ;;  %v19556_v55 = vsel %vm199_vm0, %v10139_v7, %v19552_v44  ;;  %v19558_v17 = vpop.permute.xlu2 %10112  ;;  %vm10421_vm12 = vweird.f32 %v14557_v0 }
 0x963   :  { %v10383_v8 = vsel %vm10380_vm11, %v10382_v38, %v10378_v47  ;;  %14558 = vrcp.f32 %v19556_v55  ;;  %v19567_v56 = vsel %vm199_vm0, %v19520_v43, %v19558_v17  ;;  %v10469_v13 = vand.u32 2147483647, %v19556_v55  ;;  %v20282_v43 = vld [vmem:[#allocation50_spill] sm:$0xff]  ;;  %vm10422_vm14 = vmor %vm10420_vm13, %vm10421_vm12 }
 0x964   :  { %v10384_v10 = vmul.f32 %v10383_v8, %v9962_v35  ;;  %v10417_v25 = vsub.f32 1.0, %v10416_v24  ;;  %14560 = vrcp.f32 %v19567_v56  ;;  %v19580_v11 = vadd.f32 %v19561_v58, %v20282_v43 }
 0x965   :  { %14562 = vrcp.f32 %v19558_v17  ;;  %vm10465_vm1 = vweird.f32 %v19556_v55  ;;  %v10471_v1 = vand.u32 2147483648, %v19556_v55  ;;  %vm19601_vm2 = vcmp.eq.f32.partialorder %v10469_v13, 8.507059e+37 }
 0x966   :  { %10562 = vst [vmem:[#allocation21 + $0x60] sm:$0xff] %v10384_v10  ;;  %v10418_v14 = vmul.f32 %v14557_v0, %v10417_v25  ;;  %v10259_v57 = vand.u32 2147483647, %v19567_v56  ;;  %v10261_v23 = vand.u32 2147483648, %v19567_v56  ;;  %v10274_v46 = vand.u32 2147483647, %v19558_v17 }
 0x967   :  { %vm10255_vm4 = vweird.f32 %v19567_v56  ;;  %v10276_v34 = vand.u32 2147483648, %v19558_v17  ;;  %v10472_v35 = vor.u32 1.1754944e-38, %v10471_v1  ;;  %vm10270_vm7 = vweird.f32 %v19558_v17 }
 0x968   :  { %v10419_v9 = vadd.f32 %v14557_v0, %v10418_v14  ;;  %vm19621_vm6 = vcmp.eq.f32.partialorder %v10259_v57, 8.507059e+37  ;;  %v10262_v47 = vor.u32 1.1754944e-38, %v10261_v23  ;;  %vm19626_vm8 = vcmp.eq.f32.partialorder %v10274_v46, 8.507059e+37 }
 0x969   :  { %v14559_v42 = vpop.eup %14558  ;;  %v10277_v16 = vor.u32 1.1754944e-38, %v10276_v34 }
 0x96a   :  { %v10423_v62 = vsel %vm10422_vm14, %v14557_v0, %v10419_v9  ;;  %v10461_v2 = vmul.f32 %v14559_v42, %v19556_v55  ;;  %v19606_v53 = vpop.permute.xlu2 %10118  ;;  %v14561_v26 = vpop.eup %14560  ;;  %vm10466_vm5 = vweird.f32 %v14559_v42 }
 0x96b   :  { %v10428_v12 = vsel %vm10425_vm15, %v10427_v5, %v10423_v62  ;;  %v19612_v45 = vsel %vm199_vm0, %v19526_v54, %v19606_v53  ;;  %14564 = vrcp.f32 %v19606_v53  ;;  %v14563_v29 = vpop.eup %14562  ;;  %v10251_v36 = vmul.f32 %v14561_v26, %v19567_v56  ;;  %vm10467_vm9 = vmor %vm10465_vm1, %vm10466_vm5 }
 0x96c   :  { %v10429_v63 = vmul.f32 %v10428_v12, %v9967_v22  ;;  %v10462_v15 = vsub.f32 1.0, %v10461_v2  ;;  %v10266_v0 = vmul.f32 %v14563_v29, %v19558_v17  ;;  %14566 = vrcp.f32 %v19612_v45  ;;  %v20292_v12 = vld [vmem:[#allocation76_spill] sm:$0xff] }
 0x96d   :  { %v10252_v38 = vsub.f32 1.0, %v10251_v36  ;;  %vm10256_vm3 = vweird.f32 %v14561_v26  ;;  %vm10271_vm10 = vweird.f32 %v14563_v29  ;;  %v10304_v60 = vand.u32 2147483647, %v19612_v45 }
 0x96e   :  { %10565 = vst [vmem:[#allocation21 + $0x78] sm:$0xff] %v10429_v63  ;;  %v10463_v54 = vmul.f32 %v14559_v42, %v10462_v15  ;;  %v10267_v24 = vsub.f32 1.0, %v10266_v0  ;;  %v10306_v51 = vand.u32 2147483648, %v19612_v45  ;;  %vm10257_vm11 = vmor %vm10255_vm4, %vm10256_vm3  ;;  %v10319_v56 = vand.u32 2147483647, %v19606_v53 }
 0x96f   :  { %v10253_v10 = vmul.f32 %v14561_v26, %v10252_v38  ;;  %vm10272_vm12 = vmor %vm10270_vm7, %vm10271_vm10  ;;  %v10321_v17 = vand.u32 2147483648, %v19606_v53  ;;  %v19665_v23 = vadd.f32 %v19561_v58, %v20292_v12  ;;  %vm10300_vm14 = vweird.f32 %v19612_v45 }
 0x970   :  { %v10464_v8 = vadd.f32 %v14559_v42, %v10463_v54  ;;  %v10268_v22 = vmul.f32 %v14563_v29, %v10267_v24  ;;  %vm10315_vm1 = vweird.f32 %v19606_v53  ;;  %v10307_v46 = vor.u32 1.1754944e-38, %v10306_v51 }
 0x971   :  { %v14565_v52 = vpop.eup %14564  ;;  %v10254_v13 = vadd.f32 %v14561_v26, %v10253_v10  ;;  %vm10320_vm5 = vcmp.eq.f32.partialorder %v10319_v56, 8.507059e+37  ;;  %v10322_v54 = vor.u32 1.1754944e-38, %v10321_v17 }
 0x972   :  { %v10468_v14 = vsel %vm10467_vm9, %v14559_v42, %v10464_v8  ;;  %v10311_v43 = vmul.f32 %v14565_v52, %v19606_v53  ;;  %v19635_v30 = vpop.permute.xlu2 %10124  ;;  %v14567_v31 = vpop.eup %14566  ;;  %v10269_v55 = vadd.f32 %v14563_v29, %v10268_v22  ;;  %vm10316_vm13 = vweird.f32 %v14565_v52 }
 0x973   :  { %v10473_v61 = vsel %vm19601_vm2, %v10472_v35, %v10468_v14  ;;  %v19645_v9 = vsel %vm199_vm0, %v19534_v3, %v19635_v30  ;;  %14568 = vrcp.f32 %v19635_v30  ;;  %v10258_v5 = vsel %vm10257_vm11, %v14561_v26, %v10254_v13  ;;  %v19661_v26 = vpop.permute.xlu1 %10106  ;;  %vm10317_vm4 = vmor %vm10315_vm1, %vm10316_vm13 }
 0x974   :  { %v10474_v42 = vmul.f32 %v10473_v61, %v19576_v18  ;;  %v10296_v1 = vmul.f32 %v14567_v31, %v19612_v45  ;;  %v10263_v62 = vsel %vm19621_vm6, %v10262_v47, %v10258_v5  ;;  %v10273_v2 = vsel %vm10272_vm12, %v14563_v29, %v10269_v55 }
 0x975   :  { %v10312_v49 = vsub.f32 1.0, %v10311_v43  ;;  %14570 = vrcp.f32 %v19645_v9  ;;  %v10264_v3 = vmul.f32 %v10263_v62, %v19584_v19  ;;  %v10278_v18 = vsel %vm19626_vm8, %v10277_v16, %v10273_v2 }
 0x976   :  { %10568 = vst [vmem:[#allocation21 + $0x90] sm:$0xff] %v10474_v42  ;;  %v10297_v57 = vsub.f32 1.0, %v10296_v1  ;;  %v10279_v29 = vmul.f32 %v10278_v18, %v19411_v4  ;;  %vm10301_vm15 = vweird.f32 %v14567_v31  ;;  %vm19671_vm2 = vcmp.eq.f32.partialorder %v10304_v60, 8.507059e+37 }
 0x977   :  { %v10313_v63 = vmul.f32 %v14565_v52, %v10312_v49  ;;  %10554 = vst [vmem:[#allocation21 + $0x20] sm:$0xff] %v10264_v3  ;;  %v19678_v4 = vsel %vm199_vm0, %v19518_v27, %v19661_v26  ;;  %vm10302_vm6 = vmor %vm10300_vm14, %vm10301_vm15  ;;  %vm10345_vm7 = vweird.f32 %v19645_v9  ;;  %v10349_v47 = vand.u32 2147483647, %v19645_v9 }
 0x978   :  { %v10298_v15 = vmul.f32 %v14567_v31, %v10297_v57  ;;  %10555 = vst.msk [vmem:[#allocation21 + $0x28] sm:$0xff] %vm199_vm0, %v10279_v29  ;;  %14572 = vrcp.f32 %v19678_v4  ;;  %v10351_v10 = vand.u32 2147483648, %v19645_v9  ;;  %v10366_v14 = vand.u32 2147483648, %v19635_v30 }
 0x979   :  { %v14569_v19 = vpop.eup %14568  ;;  %v10314_v0 = vadd.f32 %v14565_v52, %v10313_v63  ;;  %14574 = vrcp.f32 %v19661_v26  ;;  %vm19699_vm3 = vcmp.eq.f32.partialorder %v10349_v47, 8.507059e+37  ;;  %vm10360_vm8 = vweird.f32 %v19635_v30 }
 0x97a   :  { %v10299_v34 = vadd.f32 %v14567_v31, %v10298_v15  ;;  %v10356_v53 = vmul.f32 %v14569_v19, %v19635_v30  ;;  %v19681_v35 = vpop.permute.xlu2 %10130  ;;  %vm10361_vm9 = vweird.f32 %v14569_v19  ;;  %v10352_v61 = vor.u32 1.1754944e-38, %v10351_v10  ;;  %v10145_v15 = vpop.permute.xlu0 %10144 }
 0x97b   :  { %v14571_v38 = vpop.eup %14570  ;;  %v10318_v7 = vsel %vm10317_vm4, %v14565_v52, %v10314_v0  ;;  %v10364_v52 = vand.u32 2147483647, %v19635_v30  ;;  %v19708_v43 = vsel %vm199_vm0, %v19538_v32, %v19681_v35  ;;  %vm10362_vm12 = vmor %vm10360_vm8, %vm10361_vm9  ;;  %v10367_v30 = vor.u32 1.1754944e-38, %v10366_v14  ;;  %v19724_v17 = vpop.permute.xlu1 %10146 }
 0x97c   :  { %v10303_v27 = vsel %vm10302_vm6, %v14567_v31, %v10299_v34  ;;  %v10323_v24 = vsel %vm10320_vm5, %v10322_v54, %v10318_v7  ;;  %v10341_v8 = vmul.f32 %v14571_v38, %v19645_v9  ;;  %v10357_v45 = vsub.f32 1.0, %v10356_v53 }
 0x97d   :  { %v10308_v25 = vsel %vm19671_vm2, %v10307_v46, %v10303_v27  ;;  %v10324_v22 = vmul.f32 %v10323_v24, %v19422_v41  ;;  %vm10346_vm10 = vweird.f32 %v14571_v38  ;;  %vm10365_vm11 = vcmp.eq.f32.partialorder %v10364_v52, 8.507059e+37 }
 0x97e   :  { %v10309_v16 = vmul.f32 %v10308_v25, %v19588_v6  ;;  %v10342_v60 = vsub.f32 1.0, %v10341_v8  ;;  %v10358_v51 = vmul.f32 %v14569_v19, %v10357_v45  ;;  %v10214_v6 = vand.u32 2147483647, %v19678_v4  ;;  %v14573_v31 = vpop.eup %14572  ;;  %vm10347_vm14 = vmor %vm10345_vm7, %vm10346_vm10 }
 0x97f   :  { %10558 = vst.msk [vmem:[#allocation21 + $0x40] sm:$0xff] %vm199_vm0, %v10324_v22  ;;  %14576 = vrcp.f32 %v19708_v43  ;;  %v10206_v5 = vmul.f32 %v14573_v31, %v19678_v4  ;;  %vm10210_vm13 = vweird.f32 %v19678_v4  ;;  %v10216_v32 = vand.u32 2147483648, %v19678_v4  ;;  %v14575_v2 = vpop.eup %14574 }
 0x980   :  { %10557 = vst [vmem:[#allocation21 + $0x38] sm:$0xff] %v10309_v16  ;;  %v10343_v41 = vmul.f32 %v14571_v38, %v10342_v60  ;;  %v10359_v55 = vadd.f32 %v14569_v19, %v10358_v51  ;;  %v10229_v56 = vand.u32 2147483647, %v19661_v26  ;;  %14578 = vrcp.f32 %v19681_v35 }
 0x981   :  { %v10207_v18 = vsub.f32 1.0, %v10206_v5  ;;  %vm19720_vm15 = vcmp.eq.f32.partialorder %v10214_v6, 8.507059e+37  ;;  %v10221_v29 = vmul.f32 %v14575_v2, %v19661_v26  ;;  %v10231_v63 = vand.u32 2147483648, %v19661_v26 }
 0x982   :  { %v10344_v42 = vadd.f32 %v14571_v38, %v10343_v41  ;;  %v10363_v1 = vsel %vm10362_vm12, %v14569_v19, %v10359_v55  ;;  %v19718_v62 = vpop.permute.xlu2 %10136  ;;  %vm10211_vm1 = vweird.f32 %v14573_v31  ;;  %vm10225_vm2 = vweird.f32 %v19661_v26 }
 0x983   :  { %v10368_v3 = vsel %vm10365_vm11, %v10367_v30, %v10363_v1  ;;  %v10208_v36 = vmul.f32 %v14573_v31, %v10207_v18  ;;  %v10217_v0 = vor.u32 1.1754944e-38, %v10216_v32  ;;  %v10222_v34 = vsub.f32 1.0, %v10221_v29  ;;  %vm10212_vm6 = vmor %vm10210_vm13, %vm10211_vm1 }
 0x984   :  { %v10348_v49 = vsel %vm10347_vm14, %v14571_v38, %v10344_v42  ;;  %v10369_v12 = vmul.f32 %v10368_v3, %v19434_v39  ;;  %vm19734_vm4 = vcmp.eq.f32.partialorder %v10229_v56, 8.507059e+37  ;;  %v19740_v39 = vsel %vm199_vm0, %v10145_v15, %v19724_v17 }
 0x985   :  { %v10353_v9 = vsel %vm19699_vm3, %v10352_v61, %v10348_v49  ;;  %v14577_v46 = vpop.eup %14576  ;;  %v10209_v53 = vadd.f32 %v14573_v31, %v10208_v36  ;;  %vm10390_vm5 = vweird.f32 %v19708_v43  ;;  %14580 = vrcp.f32 %v19740_v39 }
 0x986   :  { %v10354_v19 = vmul.f32 %v10353_v9, %v19592_v37  ;;  %10561 = vst.msk [vmem:[#allocation21 + $0x58] sm:$0xff] %vm199_vm0, %v10369_v12  ;;  %v10386_v37 = vmul.f32 %v14577_v46, %v19708_v43  ;;  %v14579_v38 = vpop.eup %14578  ;;  %v10223_v7 = vmul.f32 %v14575_v2, %v10222_v34  ;;  %vm10226_vm7 = vweird.f32 %v14575_v2  ;;  %v20301_v9 = vld [vmem:[#allocation33_spill] sm:$0xff] }
 0x987   :  { %v10232_v47 = vor.u32 1.1754944e-38, %v10231_v63  ;;  %v10394_v27 = vand.u32 2147483647, %v19708_v43  ;;  %v10213_v24 = vsel %vm10212_vm6, %v14573_v31, %v10209_v53  ;;  %v10396_v10 = vand.u32 2147483648, %v19708_v43  ;;  %vm10227_vm8 = vmor %vm10225_vm2, %vm10226_vm7 }
 0x988   :  { %10560 = vst [vmem:[#allocation21 + $0x50] sm:$0xff] %v10354_v19  ;;  %v10387_v8 = vsub.f32 1.0, %v10386_v37  ;;  %v10401_v25 = vmul.f32 %v14579_v38, %v19681_v35  ;;  %v10218_v22 = vsel %vm19720_vm15, %v10217_v0, %v10213_v24  ;;  %v10224_v45 = vadd.f32 %v14575_v2, %v10223_v7 }
 0x989   :  { %vm10391_vm3 = vweird.f32 %v14577_v46  ;;  %v10409_v52 = vand.u32 2147483647, %v19681_v35  ;;  %v10219_v4 = vmul.f32 %v10218_v22, %v19580_v11  ;;  %v19759_v14 = vsel %vm199_vm0, %v19544_v20, %v19718_v62 }
 0x98a   :  { %v10388_v16 = vmul.f32 %v14577_v46, %v10387_v8  ;;  %v10402_v60 = vsub.f32 1.0, %v10401_v25  ;;  %v10228_v13 = vsel %vm10227_vm8, %v14575_v2, %v10224_v45  ;;  %vm10405_vm9 = vweird.f32 %v19681_v35  ;;  %v19764_v41 = vpop.permute.xlu2 %10142  ;;  %vm10392_vm11 = vmor %vm10390_vm5, %vm10391_vm3 }
 0x98b   :  { %v10411_v51 = vand.u32 2147483648, %v19681_v35  ;;  %14582 = vrcp.f32 %v19759_v14  ;;  %v14581_v11 = vpop.eup %14580  ;;  %v10233_v26 = vsel %vm19734_vm4, %v10232_v47, %v10228_v13  ;;  %10551 = vst [vmem:[#allocation21 + $0x8] sm:$0xff] %v10219_v4  ;;  %vm10406_vm10 = vweird.f32 %v14579_v38 }
 0x98c   :  { %v10389_v6 = vadd.f32 %v14577_v46, %v10388_v16  ;;  %v10403_v31 = vmul.f32 %v14579_v38, %v10402_v60  ;;  %v10234_v20 = vmul.f32 %v10233_v26, %v19401_v21  ;;  %vm10395_vm12 = vcmp.eq.f32.partialorder %v10394_v27, 8.507059e+37  ;;  %vm10407_vm14 = vmor %vm10405_vm9, %vm10406_vm10 }
 0x98d   :  { %v10397_v61 = vor.u32 1.1754944e-38, %v10396_v10  ;;  %v10506_v55 = vmul.f32 %v14581_v11, %v19740_v39  ;;  %vm10410_vm13 = vcmp.eq.f32.partialorder %v10409_v52, 8.507059e+37  ;;  %14584 = vrcp.f32 %v19718_v62 }
 0x98e   :  { %v10393_v42 = vsel %vm10392_vm11, %v14577_v46, %v10389_v6  ;;  %v10404_v30 = vadd.f32 %v14579_v38, %v10403_v31  ;;  %10552 = vst.msk [vmem:[#allocation21 + $0x10] sm:$0xff] %vm199_vm0, %v10234_v20  ;;  %v10412_v21 = vor.u32 1.1754944e-38, %v10411_v51  ;;  %v10514_v43 = vand.u32 2147483647, %v19740_v39 }
 0x98f   :  { %v10398_v5 = vsel %vm10395_vm12, %v10397_v61, %v10393_v42  ;;  %v10507_v1 = vsub.f32 1.0, %v10506_v55  ;;  %vm10511_vm15 = vweird.f32 %v14581_v11  ;;  %v10516_v2 = vand.u32 2147483648, %v19740_v39 }
 0x990   :  { %v10399_v32 = vmul.f32 %v10398_v5, %v19596_v50  ;;  %v10408_v56 = vsel %vm10407_vm14, %v14579_v38, %v10404_v30  ;;  %v10439_v57 = vand.u32 2147483647, %v19759_v14  ;;  %v19784_v35 = vsel %vm199_vm0, %v19552_v44, %v19764_v41  ;;  %v20304_v38 = vld [vmem:[#allocation60_spill] sm:$0xff] }
 0x991   :  { %v14583_v49 = vpop.eup %14582  ;;  %v10413_v3 = vsel %vm10410_vm13, %v10412_v21, %v10408_v56  ;;  %v10508_v18 = vmul.f32 %v14581_v11, %v10507_v1  ;;  %v19788_v12 = vadd.f32 %v19561_v58, %v20301_v9  ;;  %vm10510_vm1 = vweird.f32 %v19740_v39 }
 0x992   :  { %v10414_v50 = vmul.f32 %v10413_v3, %v19445_v28  ;;  %10563 = vst [vmem:[#allocation21 + $0x68] sm:$0xff] %v10399_v32  ;;  %v10431_v29 = vmul.f32 %v14583_v49, %v19759_v14  ;;  %vm10515_vm2 = vcmp.eq.f32.partialorder %v10514_v43, 8.507059e+37  ;;  %v10441_v15 = vand.u32 2147483648, %v19759_v14  ;;  %vm10512_vm4 = vmor %vm10510_vm1, %vm10511_vm15  ;;  %v19805_v54 = vpop.permute.xlu2 %10148 }
 0x993   :  { %v10509_v63 = vadd.f32 %v14581_v11, %v10508_v18  ;;  %14586 = vrcp.f32 %v19784_v35  ;;  %v14585_v19 = vpop.eup %14584  ;;  %v10517_v44 = vor.u32 1.1754944e-38, %v10516_v2  ;;  %v10454_v28 = vand.u32 2147483647, %v19718_v62 }
 0x994   :  { %10564 = vst.msk [vmem:[#allocation21 + $0x70] sm:$0xff] %vm199_vm0, %v10414_v50  ;;  %v10432_v36 = vsub.f32 1.0, %v10431_v29  ;;  %14588 = vrcp.f32 %v19764_v41  ;;  %vm10435_vm5 = vweird.f32 %v19759_v14  ;;  %vm19800_vm6 = vcmp.eq.f32.partialorder %v10439_v57, 8.507059e+37 }
 0x995   :  { %v10513_v46 = vsel %vm10512_vm4, %v14581_v11, %v10509_v63  ;;  %v10446_v34 = vmul.f32 %v14585_v19, %v19718_v62  ;;  %vm10436_vm7 = vweird.f32 %v14583_v49  ;;  %v10456_v37 = vand.u32 2147483648, %v19718_v62 }
 0x996   :  { %v10518_v39 = vsel %vm10515_vm2, %v10517_v44, %v10513_v46  ;;  %v10433_v53 = vmul.f32 %v14583_v49, %v10432_v36  ;;  %v10442_v47 = vor.u32 1.1754944e-38, %v10441_v15  ;;  %vm10450_vm3 = vweird.f32 %v19718_v62  ;;  %vm10437_vm9 = vmor %vm10435_vm5, %vm10436_vm7 }
 0x997   :  { %v10519_v7 = vmul.f32 %v10518_v39, %v20304_v38  ;;  %v10447_v27 = vsub.f32 1.0, %v10446_v34  ;;  %vm19810_vm8 = vcmp.eq.f32.partialorder %v10454_v28, 8.507059e+37  ;;  %v19817_v10 = vsel %vm199_vm0, %v19724_v17, %v19805_v54 }
 0x998   :  { %v10434_v24 = vadd.f32 %v14583_v49, %v10433_v53  ;;  %14590 = vrcp.f32 %v19805_v54  ;;  %vm10451_vm10 = vweird.f32 %v14585_v19  ;;  %v10484_v45 = vand.u32 2147483647, %v19784_v35 }
 0x999   :  { %v14587_v25 = vpop.eup %14586  ;;  %10571 = vst [vmem:[#allocation21 + $0xa8] sm:$0xff] %v10519_v7  ;;  %v10448_v22 = vmul.f32 %v14585_v19, %v10447_v27  ;;  %14592 = vrcp.f32 %v19817_v10  ;;  %v10457_v16 = vor.u32 1.1754944e-38, %v10456_v37  ;;  %v10486_v17 = vand.u32 2147483648, %v19784_v35  ;;  %vm10452_vm12 = vmor %vm10450_vm3, %vm10451_vm10 }
 0x99a   :  { %v14589_v52 = vpop.eup %14588  ;;  %v10438_v4 = vsel %vm10437_vm9, %v14583_v49, %v10434_v24  ;;  %v10476_v60 = vmul.f32 %v14587_v25, %v19784_v35  ;;  %vm10480_vm11 = vweird.f32 %v19784_v35  ;;  %v10499_v6 = vand.u32 2147483647, %v19764_v41 }
 0x99b   :  { %v10443_v13 = vsel %vm19800_vm6, %v10442_v47, %v10438_v4  ;;  %v10449_v51 = vadd.f32 %v14585_v19, %v10448_v22  ;;  %v10491_v14 = vmul.f32 %v14589_v52, %v19764_v41  ;;  %v10501_v31 = vand.u32 2147483648, %v19764_v41 }
 0x99c   :  { %v10444_v11 = vmul.f32 %v10443_v13, %v19665_v23  ;;  %v10477_v26 = vsub.f32 1.0, %v10476_v60  ;;  %vm19835_vm13 = vcmp.eq.f32.partialorder %v10484_v45, 8.507059e+37  ;;  %vm10495_vm14 = vweird.f32 %v19764_v41 }
 0x99d   :  { %v10453_v20 = vsel %vm10452_vm12, %v14585_v19, %v10449_v51  ;;  %v10492_v55 = vsub.f32 1.0, %v10491_v14  ;;  %vm10481_vm15 = vweird.f32 %v14587_v25  ;;  %v10487_v30 = vor.u32 1.1754944e-38, %v10486_v17 }
 0x99e   :  { %v14591_v42 = vpop.eup %14590  ;;  %v10458_v23 = vsel %vm19810_vm8, %v10457_v16, %v10453_v20  ;;  %10566 = vst [vmem:[#allocation21 + $0x80] sm:$0xff] %v10444_v11  ;;  %v10478_v62 = vmul.f32 %v14587_v25, %v10477_v26  ;;  %vm10496_vm1 = vweird.f32 %v14589_v52  ;;  %vm19844_vm2 = vcmp.eq.f32.partialorder %v10499_v6, 8.507059e+37  ;;  %vm10482_vm4 = vmor %vm10480_vm11, %vm10481_vm15 }
 0x99f   :  { %v14593_v5 = vpop.eup %14592  ;;  %v10459_v21 = vmul.f32 %v10458_v23, %v19457_v59  ;;  %v10493_v1 = vmul.f32 %v14589_v52, %v10492_v55  ;;  %v10536_v43 = vmul.f32 %v14591_v42, %v19805_v54  ;;  %v10502_v2 = vor.u32 1.1754944e-38, %v10501_v31  ;;  %vm10497_vm5 = vmor %vm10495_vm14, %vm10496_vm1 }
 0x9a0   :  { %v10479_v32 = vadd.f32 %v14587_v25, %v10478_v62  ;;  %v10521_v49 = vmul.f32 %v14593_v5, %v19817_v10  ;;  %v10529_v59 = vand.u32 2147483647, %v19817_v10  ;;  %v10531_v18 = vand.u32 2147483648, %v19817_v10 }
 0x9a1   :  { %10567 = vst.msk [vmem:[#allocation21 + $0x88] sm:$0xff] %vm199_vm0, %v10459_v21  ;;  %v10494_v3 = vadd.f32 %v14589_v52, %v10493_v1  ;;  %v10537_v57 = vsub.f32 1.0, %v10536_v43  ;;  %v10544_v29 = vand.u32 2147483647, %v19805_v54  ;;  %v10546_v63 = vand.u32 2147483648, %v19805_v54 }
 0x9a2   :  { %v10483_v9 = vsel %vm10482_vm4, %v14587_v25, %v10479_v32  ;;  %v10522_v50 = vsub.f32 1.0, %v10521_v49  ;;  %vm10541_vm6 = vweird.f32 %v14591_v42  ;;  %vm10526_vm7 = vweird.f32 %v14593_v5 }
 0x9a3   :  { %v10488_v15 = vsel %vm19835_vm13, %v10487_v30, %v10483_v9  ;;  %v10498_v35 = vsel %vm10497_vm5, %v14589_v52, %v10494_v3  ;;  %v10538_v19 = vmul.f32 %v14591_v42, %v10537_v57  ;;  %vm10540_vm3 = vweird.f32 %v19805_v54 }
 0x9a4   :  { %v10489_v44 = vmul.f32 %v10488_v15, %v19788_v12  ;;  %v10503_v36 = vsel %vm19844_vm2, %v10502_v2, %v10498_v35  ;;  %v10523_v28 = vmul.f32 %v14593_v5, %v10522_v50  ;;  %vm10525_vm8 = vweird.f32 %v19817_v10  ;;  %vm10542_vm9 = vmor %vm10540_vm3, %vm10541_vm6 }
 0x9a5   :  { %v10504_v41 = vmul.f32 %v10503_v36, %v19469_v48  ;;  %v10539_v46 = vadd.f32 %v14591_v42, %v10538_v19  ;;  %v10547_v34 = vor.u32 1.1754944e-38, %v10546_v63  ;;  %vm10527_vm10 = vmor %vm10525_vm8, %vm10526_vm7  ;;  %v10532_v12 = vor.u32 1.1754944e-38, %v10531_v18 }
 0x9a6   :  { %10569 = vst [vmem:[#allocation21 + $0x98] sm:$0xff] %v10489_v44  ;;  %v10524_v0 = vadd.f32 %v14593_v5, %v10523_v28  ;;  %vm10545_vm11 = vcmp.eq.f32.partialorder %v10544_v29, 8.507059e+37  ;;  %v9978_v54 = vadd.f32 %v19561_v58, %v19387_v40  ;;  %vm10530_vm12 = vcmp.eq.f32.partialorder %v10529_v59, 8.507059e+37 }
 0x9a7   :  { %10570 = vst.msk [vmem:[#allocation21 + $0xa0] sm:$0xff] %vm199_vm0, %v10504_v41  ;;  %v10543_v48 = vsel %vm10542_vm9, %v14591_v42, %v10539_v46 }
 0x9a8   :  { %v10528_v39 = vsel %vm10527_vm10, %v14593_v5, %v10524_v0  ;;  %v10548_v53 = vsel %vm10545_vm11, %v10547_v34, %v10543_v48 }
 0x9a9   :  { %v10533_v37 = vsel %vm10530_vm12, %v10532_v12, %v10528_v39  ;;  %v10549_v38 = vmul.f32 %v10548_v53, %v19481_v33 }
 0x9aa   :  { %v10534_v7 = vmul.f32 %v10533_v37, %v9978_v54 }
 0x9ab   :  { %10573 = vst.msk [vmem:[#allocation21 + $0xb8] sm:$0xff] %vm199_vm0, %v10549_v38 }
 0x9ac   :  { %10572 = vst [vmem:[#allocation21 + $0xb0] sm:$0xff] %v10534_v7 }
 0x9ad   :  { %10586 = dma.vmem_to_hbm [thread:$0]  %s10579_s27, 3072, %s10581_s30, [#allocation5], %s14950_s11, %s14950_s11, %s14951_s1  }
 0x9ae   :  { %14928 = dma.done.wait [#allocation5], 3072  }
 0x9af   :  { %14929 = vsyncadd [#allocation5], 4294964224 }
 0x9b0   :  { %10591 = vsyncpa [#allocation4], 1 }
 0x9b1   :  { %10592 = vsyncpa [#allocation7], 1 }
 0x9b2   :  { %10593 = vsyncpa [#allocation10], 1 }
 0x9b3   :  { %10594 = vsyncpa [#allocation13], 1 }
 0x9b4   :  { %10595 = vsyncpa [#allocation16], 1 }
 0x9b5   :  { %10596 = vsyncpa [#allocation19], 1 }
 0x9b6   :  { %10597 = vsyncpa [#allocation5], 1 }

</bundles_post_ra>
